<compile_context>
chip_gen: v7x
topology: tpu7x:2x2x1
jax: 0.10.0
libtpu: 0.0.40
codegen_flags: <defaults>
</compile_context>

<pallas_src>
import jax
import jax.numpy as jnp
from jax.experimental import pallas as pl
from jax.experimental.pallas import tpu as pltpu


C_OUT = 64            # hard-coded by the PyTorch module (global_avg_pool / bn1)
DILATIONS = (6, 12, 18)
HALO = 18             # max dilation -> required zero-halo width
LPAD = 24             # in-VMEM halo pad, >= HALO, rounded up to a sublane multiple


# ------------------------------ tiling helpers ------------------------------


def _pick_row_tile(H, W, target=4096):
    """Largest TH dividing H with TH*W <= target rows and a lane-dense
    (TH*W % 128 == 0) output block, or the full image."""
    target = max(target, W)
    for th in range(H, 0, -1):
        if H % th == 0 and th * W <= target and (th == H or (th * W) % 128 == 0):
            return th
    return H


def _roundup(a, b):
    return (a + b - 1) // b * b


# ---------------------------- fused ASPP kernel ------------------------------


def _make_fused_kernel(TH, H, W, Cin):
    """All four conv branches + concat + final 1x1 conv + BN + ReLU + pool bias."""
    THW = TH * W
    C = C_OUT
    LP = LPAD
    inv_hw = 1.0 / float(H * W)

    def kernel(x_ref, w1_ref, wd_ref, bbr_ref, wcb_ref, wg_ref, bg_ref,
               wcp_ref, bc_ref, o_ref, xp_ref, bias_ref):
        # x_ref   : (H, W, Cin)      f32  full image of the current n (1 HBM read)
        # w1_ref  : (Cin, 64)        bf16 1x1 branch weights (BN scale folded)
        # wd_ref  : (3, 9*Cin, 64)   bf16 dilated branch im2col weights (BN folded)
        # bbr_ref : (4, 64)          f32  per-branch BN biases
        # wcb_ref : (4*64, 64)       bf16 final 1x1 conv weights, branches 1..4 rows
        # wg_ref  : (Cin, 64)        f32  pool-branch 1x1 conv weights (BN folded)
        # bg_ref  : (1, 64)          f32  pool-branch BN bias
        # wcp_ref : (64, 64)         f32  final 1x1 conv rows for the pool branch
        # bc_ref  : (1, 64)          f32  bn1 bias
        # o_ref   : (64, TH*W)       f32  lane-dense output tile
        # xp_ref  : (Hp, Wp, Cin)    bf16 scratch: zero-padded image (resident per n)
        # bias_ref: (1, 64)          f32  scratch: bn1 bias + pool-branch contribution
        t = pl.program_id(1)

        # ---- once per image (x block only changes with n; t axis is arbitrary) ----
        @pl.when(t == 0)
        def _():
            # In-VMEM zero-pad (replaces the HBM-inflating XLA jnp.pad of v2).
            xp_ref[...] = jnp.zeros_like(xp_ref)
            xp_ref[LP:LP + H, LP:LP + W, :] = x_ref[...].astype(xp_ref.dtype)
            # Global-average-pool branch, exact f32: mean -> 1x1 conv -> BN ->
            # ReLU, then folded through the final 1x1 conv as a per-image bias.
            mean = jnp.sum(x_ref[...].reshape(H * W, Cin), axis=0,
                           keepdims=True) * inv_hw
            y5 = jnp.maximum(
                jnp.dot(mean, wg_ref[...], preferred_element_type=jnp.float32)
                + bg_ref[...], 0.0)
            bias_ref[...] = bc_ref[...] + jnp.dot(
                y5, wcp_ref[...], preferred_element_type=jnp.float32)

        row0 = t * TH
        if TH % 8 == 0:
            row0 = pl.multiple_of(row0, 8)

        def row_band(roff):                                   # 1 dynamic slice / offset
            return xp_ref[pl.ds(row0 + LP + roff, TH), :, :]  # (TH, Wp, Cin)

        def col_win(band, coff):                              # static column shift
            return band[:, LP + coff:LP + coff + W, :]        # (TH, W, Cin)

        band0 = row_band(0)            # shared: branch 1 + every dilation's center tap
        bbr = bbr_ref[...]

        # branch 1: 1x1 conv (BN folded) + bias + ReLU
        y1 = jnp.dot(col_win(band0, 0).reshape(THW, Cin), w1_ref[...],
                     preferred_element_type=jnp.float32)
        branches = [jnp.maximum(y1 + bbr[0:1, :], 0.0)]

        # branches 2..4: dilated 3x3 conv == ONE im2col matmul each (K = 9*Cin)
        for bi, d in enumerate(DILATIONS):
            bands = (row_band(-d), band0, row_band(d))
            cols = jnp.concatenate(
                [col_win(bands[ky], (kx - 1) * d)
                 for ky in range(3) for kx in range(3)], axis=-1)  # (TH, W, 9*Cin)
            yb = jnp.dot(cols.reshape(THW, 9 * Cin), wd_ref[bi],
                         preferred_element_type=jnp.float32)
            branches.append(jnp.maximum(yb + bbr[bi + 1:bi + 2, :], 0.0))

        # implicit concat + final 1x1 conv as ONE bf16 (THW,256)@(256,64) matmul
        cat = jnp.concatenate(branches, axis=-1).astype(jnp.bfloat16)  # (THW, 4C)
        out = jnp.dot(cat, wcb_ref[...], preferred_element_type=jnp.float32)
        out = jnp.maximum(out + bias_ref[...], 0.0)            # + bn1 bias + pool bias

        # lane-dense (C, THW) store; the wrapper only reshapes to NCHW
        o_ref[...] = jnp.transpose(out).astype(o_ref.dtype)

    return kernel


def fused_aspp(x_nhwc, w1, wd, bbr, wcb, wg, bg, wcp, bc):
    N, H, W, Cin = x_nhwc.shape
    C = C_OUT
    LP = LPAD
    Hp, Wp = H + 2 * LP, W + 2 * LP
    TH = _pick_row_tile(H, W)
    T = H // TH
    THW = TH * W

    # VMEM budget estimate (padded-image scratch + pipelined blocks + transients).
    cin_l = _roundup(Cin, 128)
    est = (Hp * _roundup(Wp, 8) * cin_l * 2                 # padded image scratch, bf16
           + 2 * H * _roundup(W, 8) * cin_l * 4             # x block, f32, double-buffered
           + 2 * _roundup(C, 8) * _roundup(THW, 128) * 4    # out block, f32, double-buffered
           + (Cin + 27 * Cin + 4 * C + 3 * C) * 128 * 4     # weights / biases
           + 20 * _roundup(THW, 8) * 128 * 4)               # transient windows / im2col / cat
    try:
        cap = int(pltpu.get_tpu_info().vmem_capacity_bytes)  # 128 MiB v5e/v6e, 64 MiB v7x
    except Exception:
        cap = 64 * 1024 * 1024
    vmem_limit = int(min(int(cap * 0.85),
                         max(est + (4 << 20), 32 * 1024 * 1024)))

    flops = 2 * N * H * W * C * (28 * Cin + 4 * C)
    bytes_accessed = (x_nhwc.size * 4 + N * H * W * C * 4
                      + (w1.size + wd.size + wcb.size) * 2
                      + (bbr.size + wg.size + bg.size + wcp.size + bc.size) * 4)

    return pl.pallas_call(
        _make_fused_kernel(TH, H, W, Cin),
        out_shape=jax.ShapeDtypeStruct((N, C, H * W), jnp.float32),
        grid=(N, T),
        in_specs=[
            pl.BlockSpec((None, H, W, Cin), lambda n, t: (n, 0, 0, 0)),
            pl.BlockSpec((Cin, C), lambda n, t: (0, 0)),
            pl.BlockSpec((3, 9 * Cin, C), lambda n, t: (0, 0, 0)),
            pl.BlockSpec((4, C), lambda n, t: (0, 0)),
            pl.BlockSpec((4 * C, C), lambda n, t: (0, 0)),
            pl.BlockSpec((Cin, C), lambda n, t: (0, 0)),
            pl.BlockSpec((1, C), lambda n, t: (0, 0)),
            pl.BlockSpec((C, C), lambda n, t: (0, 0)),
            pl.BlockSpec((1, C), lambda n, t: (0, 0)),
        ],
        out_specs=pl.BlockSpec((None, C, THW), lambda n, t: (n, 0, t)),
        scratch_shapes=[
            pltpu.VMEM((Hp, Wp, Cin), jnp.bfloat16),   # zero-padded image (per image)
            pltpu.VMEM((1, C), jnp.float32),           # bn1 bias + pool-branch bias
        ],
        compiler_params=pltpu.CompilerParams(
            # T carries per-image scratch state (pad + pool bias) -> arbitrary;
            # N is independent -> parallel (megacore / 2 TCs on v7x).
            dimension_semantics=("parallel", "arbitrary"),
            vmem_limit_bytes=vmem_limit),
        cost_estimate=pl.CostEstimate(flops=int(flops), transcendentals=0,
                                      bytes_accessed=int(bytes_accessed)),
    )(x_nhwc, w1, wd, bbr, wcb, wg, bg, wcp, bc)


# ------------------------- parameter folding / forward -----------------------


def fold_params(p):
    """One-time transform: fold BN scales into conv weights, reshape the dilated
    branch weights for im2col (K = 9*Cin), split the final 1x1 conv between the
    spatial branches (bf16) and the pool branch (f32)."""
    C = C_OUT
    fp = {}
    fp["w1"] = (p["w1"] * p["s1"][None, :]).astype(jnp.bfloat16)        # (Cin, 64)
    fp["wd"] = jnp.stack([p["w2"] * p["s2"][None, :],
                          p["w3"] * p["s3"][None, :],
                          p["w4"] * p["s4"][None, :]]).astype(jnp.bfloat16)  # (3, 9Cin, 64)
    fp["bbr"] = jnp.stack([p["b1"], p["b2"], p["b3"], p["b4"]])          # (4, 64) f32
    wc_s = p["wc"] * p["sc"][None, :]                                    # (320, 64) f32
    fp["wcb"] = wc_s[:4 * C].astype(jnp.bfloat16)    # conv1 rows for branches 1..4
    fp["wcp"] = wc_s[4 * C:]                         # conv1 rows for the pool branch
    fp["wg"] = p["wg"] * p["sg"][None, :]            # pool 1x1 conv (f32)
    fp["bg"] = p["bg"].reshape(1, C)
    fp["bc"] = p["bc"].reshape(1, C)
    return fp


def aspp_forward(x_nchw, fp):
    """ASPP forward.  Input/output NCHW (matches PyTorch)."""
    N, Cin, H, W = x_nchw.shape
    x = jnp.transpose(x_nchw, (0, 2, 3, 1))          # NHWC, read once by the kernel
    y = fused_aspp(x, fp["w1"], fp["wd"], fp["bbr"], fp["wcb"],
                   fp["wg"], fp["bg"], fp["wcp"], fp["bc"])
    # dropout(p=0.5): inference-mode identity
    # TODO(synk): train-mode dropout RNG masking / train-mode BN batch stats
    # are not implemented (no deterministic eval-equivalent).
    return y.reshape(N, C_OUT, H, W)                 # kernel already emits (N, C, H*W)


# -------------------------- deterministic parameters -------------------------


def init_params(key, cin, cout):
    assert cout == 64, "ASPP hard-codes 64 channels in global_avg_pool / bn1"
    ks = jax.random.split(key, 12)

    def conv_w(k, fan_in, out):
        return jax.random.normal(k, (fan_in, out), jnp.float32) * (2.0 / fan_in) ** 0.5

    def bn(k, c, eps=1e-5):
        k1, k2, k3, k4 = jax.random.split(k, 4)
        gamma = 1.0 + 0.2 * jax.random.normal(k1, (c,), jnp.float32)
        beta = 0.1 * jax.random.normal(k2, (c,), jnp.float32)
        rmean = 0.1 * jax.random.normal(k3, (c,), jnp.float32)
        rvar = jax.random.uniform(k4, (c,), jnp.float32, minval=0.5, maxval=1.5)
        scale = gamma * jax.lax.rsqrt(rvar + eps)
        return scale, beta - rmean * scale

    p = {}
    p["w1"] = conv_w(ks[0], cin, cout);            p["s1"], p["b1"] = bn(ks[1], cout)
    p["w2"] = conv_w(ks[2], 9 * cin, cout);        p["s2"], p["b2"] = bn(ks[3], cout)
    p["w3"] = conv_w(ks[4], 9 * cin, cout);        p["s3"], p["b3"] = bn(ks[5], cout)
    p["w4"] = conv_w(ks[6], 9 * cin, cout);        p["s4"], p["b4"] = bn(ks[7], cout)
    p["wg"] = conv_w(ks[8], cin, 64);              p["sg"], p["bg"] = bn(ks[9], 64)
    p["wc"] = conv_w(ks[10], 4 * cout + 64, cout); p["sc"], p["bc"] = bn(ks[11], cout)
    return p


# ------------------------------ pure-JAX reference ---------------------------


def aspp_reference(x_nchw, p):
    x = jnp.transpose(x_nchw, (0, 2, 3, 1))
    N, H, W, Cin = x.shape

    def conv_bn_relu(w_flat, k, d, s, b):
        w = w_flat.reshape(k, k, Cin, w_flat.shape[-1])
        pad = d * (k // 2)
        y = jax.lax.conv_general_dilated(
            x, w, window_strides=(1, 1),
            padding=((pad, pad), (pad, pad)),
            rhs_dilation=(d, d),
            dimension_numbers=("NHWC", "HWIO", "NHWC"))
        return jnp.maximum(y * s + b, 0.0)

    x1 = conv_bn_relu(p["w1"], 1, 1, p["s1"], p["b1"])
    x2 = conv_bn_relu(p["w2"], 3, 6, p["s2"], p["b2"])
    x3 = conv_bn_relu(p["w3"], 3, 12, p["s3"], p["b3"])
    x4 = conv_bn_relu(p["w4"], 3, 18, p["s4"], p["b4"])
    x5 = jnp.maximum(jnp.mean(x, axis=(1, 2)) @ p["wg"] * p["sg"] + p["bg"], 0.0)
    x5 = jnp.broadcast_to(x5[:, None, None, :], (N, H, W, 64))
    cat = jnp.concatenate([x1, x2, x3, x4, x5], axis=-1)
    y = jnp.maximum(jnp.einsum("nhwc,ck->nhwk", cat, p["wc"]) * p["sc"] + p["bc"], 0.0)
    return jnp.transpose(y, (0, 3, 1, 2))


# ------------------------------------- main ----------------------------------


if __name__ == "__main__":
    key = jax.random.PRNGKey(0)
    kx, kp = jax.random.split(key)

    N, Cin, H, W = 2, 4, 16, 16
    Cout = 64  # forced by hard-coded 64 channels inside the module

    x = jax.random.normal(kx, (N, Cin, H, W), jnp.float32)
    params = init_params(kp, Cin, Cout)
    fparams = fold_params(params)  # one-time BN fold + bf16 cast + im2col weight layout

    out = jax.jit(aspp_forward)(x, fparams)
    out = jax.block_until_ready(out)

    ref = aspp_reference(x, params)

    assert out.shape == (N, Cout, H, W), out.shape
    assert bool(jnp.all(jnp.isfinite(out)))
    max_err = float(jnp.max(jnp.abs(out - ref)))
    # bf16 inputs / branch weights / final-projection operands on the MXU
    # (f32 accumulation) vs the f32 reference.
    assert bool(jnp.allclose(out, ref, atol=5e-2, rtol=5e-2)), f"max abs err {max_err}"

    print("KERNEL_OK")
</pallas_src>

<mosaic_0001>
module attributes {stable_mosaic.version = 11 : i64} {
  func.func @kernel(%arg0: i32, %arg1: i32, %arg2: memref<1x16x16x4xf32, #tpu.memory_space<vmem>>, %arg3: memref<4x64xbf16, #tpu.memory_space<vmem>>, %arg4: memref<3x36x64xbf16, #tpu.memory_space<vmem>>, %arg5: memref<4x64xf32, #tpu.memory_space<vmem>>, %arg6: memref<256x64xbf16, #tpu.memory_space<vmem>>, %arg7: memref<4x64xf32, #tpu.memory_space<vmem>>, %arg8: memref<1x64xf32, #tpu.memory_space<vmem>>, %arg9: memref<64x64xf32, #tpu.memory_space<vmem>>, %arg10: memref<1x64xf32, #tpu.memory_space<vmem>>, %arg11: memref<1x64x256xf32, #tpu.memory_space<vmem>>, %arg12: memref<64x64x4xbf16, #tpu.memory_space<vmem>>, %arg13: memref<1x64xf32, #tpu.memory_space<vmem>>) attributes {dimension_semantics = [#tpu.dimension_semantics<parallel>, #tpu.dimension_semantics<arbitrary>], iteration_bounds = array<i64: 2, 1>, scalar_prefetch = 0 : i64, scratch_operands = 2 : i64, tpu.core_type = #tpu.core_type<tc>, window_params = [{transform_indices = @transform_0, window_bounds = array<i64: 1, 16, 16, 4>}, {pipeline_mode = #tpu.pipeline_mode<synchronous>, transform_indices = @transform_1, window_bounds = array<i64: 4, 64>}, {pipeline_mode = #tpu.pipeline_mode<synchronous>, transform_indices = @transform_2, window_bounds = array<i64: 3, 36, 64>}, {pipeline_mode = #tpu.pipeline_mode<synchronous>, transform_indices = @transform_3, window_bounds = array<i64: 4, 64>}, {pipeline_mode = #tpu.pipeline_mode<synchronous>, transform_indices = @transform_4, window_bounds = array<i64: 256, 64>}, {pipeline_mode = #tpu.pipeline_mode<synchronous>, transform_indices = @transform_5, window_bounds = array<i64: 4, 64>}, {pipeline_mode = #tpu.pipeline_mode<synchronous>, transform_indices = @transform_6, window_bounds = array<i64: 1, 64>}, {pipeline_mode = #tpu.pipeline_mode<synchronous>, transform_indices = @transform_7, window_bounds = array<i64: 64, 64>}, {pipeline_mode = #tpu.pipeline_mode<synchronous>, transform_indices = @transform_8, window_bounds = array<i64: 1, 64>}, {transform_indices = @transform_9, window_bounds = array<i64: 1, 64, 256>}]} {
    %c0_i32 = arith.constant 0 : i32
    %0 = arith.cmpi eq, %arg1, %c0_i32 : i32
    %1 = arith.extui %0 : i1 to i32
    %c0_i32_0 = arith.constant 0 : i32
    %2 = arith.cmpi ne, %1, %c0_i32_0 : i32
    scf.if %2 {
      %cst_48 = arith.constant 0.000000e+00 : bf16
      %113 = vector.broadcast %cst_48 : bf16 to vector<64x64x4xbf16>
      %c0_49 = arith.constant 0 : index
      %c0_50 = arith.constant 0 : index
      %c0_51 = arith.constant 0 : index
      %114 = vector.load %arg12[%c0_49, %c0_50, %c0_51] : memref<64x64x4xbf16, #tpu.memory_space<vmem>>, vector<64x64x4xbf16>
      tpu.vector_store %arg12[%c0_49, %c0_50, %c0_51], %113 {strides = array<i32>} : memref<64x64x4xbf16, #tpu.memory_space<vmem>>, vector<64x64x4xbf16>,
      %c0_52 = arith.constant 0 : index
      %c0_53 = arith.constant 0 : index
      %c0_54 = arith.constant 0 : index
      %c0_55 = arith.constant 0 : index
      %115 = vector.load %arg2[%c0_52, %c0_53, %c0_54, %c0_55] : memref<1x16x16x4xf32, #tpu.memory_space<vmem>>, vector<1x16x16x4xf32>
      %116 = vector.shape_cast %115 : vector<1x16x16x4xf32> to vector<16x16x4xf32>
      %117 = arith.truncf %116 : vector<16x16x4xf32> to vector<16x16x4xbf16>
      %c24 = arith.constant 24 : index
      %c24_56 = arith.constant 24 : index
      %c0_57 = arith.constant 0 : index
      %118 = vector.load %arg12[%c24, %c24_56, %c0_57] : memref<64x64x4xbf16, #tpu.memory_space<vmem>>, vector<16x16x4xbf16>
      tpu.vector_store %arg12[%c24, %c24_56, %c0_57], %117 {strides = array<i32>} : memref<64x64x4xbf16, #tpu.memory_space<vmem>>, vector<16x16x4xbf16>,
      %c0_58 = arith.constant 0 : index
      %c0_59 = arith.constant 0 : index
      %c0_60 = arith.constant 0 : index
      %c0_61 = arith.constant 0 : index
      %119 = vector.load %arg2[%c0_58, %c0_59, %c0_60, %c0_61] : memref<1x16x16x4xf32, #tpu.memory_space<vmem>>, vector<1x16x16x4xf32>
      %120 = vector.shape_cast %119 : vector<1x16x16x4xf32> to vector<16x16x4xf32>
      %121 = vector.shape_cast %120 : vector<16x16x4xf32> to vector<256x4xf32>
      %cst_62 = arith.constant dense<0.000000e+00> : vector<4xf32>
      %122 = vector.multi_reduction <add>, %121, %cst_62 [0] : vector<256x4xf32> to vector<4xf32>
      %123 = vector.shape_cast %122 : vector<4xf32> to vector<1x4xf32>
      %cst_63 = arith.constant 3.906250e-03 : f32
      %124 = vector.broadcast %cst_63 : f32 to vector<1x4xf32>
      %125 = arith.mulf %123, %124 : vector<1x4xf32>
      %c0_64 = arith.constant 0 : index
      %c0_65 = arith.constant 0 : index
      %126 = vector.load %arg7[%c0_64, %c0_65] : memref<4x64xf32, #tpu.memory_space<vmem>>, vector<4x64xf32>
      %cst_66 = arith.constant dense<0.000000e+00> : vector<1x64xf32>
      %127 = tpu.matmul %125, %126, %cst_66 {dimension_numbers = #tpu.dot_dimension_numbers<[1], [0], [0], [1], [0, 0, 1, 1], [], []>} : vector<1x4xf32>, vector<4x64xf32>, vector<1x64xf32> -> vector<1x64xf32>
      %c0_67 = arith.constant 0 : index
      %c0_68 = arith.constant 0 : index
      %128 = vector.load %arg8[%c0_67, %c0_68] : memref<1x64xf32, #tpu.memory_space<vmem>>, vector<1x64xf32>
      %129 = arith.addf %127, %128 : vector<1x64xf32>
      %cst_69 = arith.constant 0.000000e+00 : f32
      %130 = vector.broadcast %cst_69 : f32 to vector<1x64xf32>
      %131 = arith.maximumf %129, %130 : vector<1x64xf32>
      %c0_70 = arith.constant 0 : index
      %c0_71 = arith.constant 0 : index
      %132 = vector.load %arg10[%c0_70, %c0_71] : memref<1x64xf32, #tpu.memory_space<vmem>>, vector<1x64xf32>
      %c0_72 = arith.constant 0 : index
      %c0_73 = arith.constant 0 : index
      %133 = vector.load %arg9[%c0_72, %c0_73] : memref<64x64xf32, #tpu.memory_space<vmem>>, vector<64x64xf32>
      %cst_74 = arith.constant dense<0.000000e+00> : vector<1x64xf32>
      %134 = tpu.matmul %131, %133, %cst_74 {dimension_numbers = #tpu.dot_dimension_numbers<[1], [0], [0], [1], [0, 0, 1, 1], [], []>} : vector<1x64xf32>, vector<64x64xf32>, vector<1x64xf32> -> vector<1x64xf32>
      %135 = arith.addf %132, %134 : vector<1x64xf32>
      %c0_75 = arith.constant 0 : index
      %c0_76 = arith.constant 0 : index
      %136 = vector.load %arg13[%c0_75, %c0_76] : memref<1x64xf32, #tpu.memory_space<vmem>>, vector<1x64xf32>
      tpu.vector_store %arg13[%c0_75, %c0_76], %135 {strides = array<i32>} : memref<1x64xf32, #tpu.memory_space<vmem>>, vector<1x64xf32>,
    } else {
    }
    %c16_i32 = arith.constant 16 : i32
    %3 = arith.muli %arg1, %c16_i32 : i32
    %4 = tpu.assume_multiple %3, 8 : i32
    %c24_i32 = arith.constant 24 : i32
    %5 = arith.addi %4, %c24_i32 : i32
    %c0_i32_1 = arith.constant 0 : i32
    %6 = arith.addi %5, %c0_i32_1 : i32
    %7 = arith.index_cast %6 : i32 to index
    %c0 = arith.constant 0 : index
    %c0_2 = arith.constant 0 : index
    %8 = vector.load %arg12[%7, %c0, %c0_2] : memref<64x64x4xbf16, #tpu.memory_space<vmem>>, vector<16x64x4xbf16>
    %c0_3 = arith.constant 0 : index
    %c0_4 = arith.constant 0 : index
    %9 = vector.load %arg5[%c0_3, %c0_4] : memref<4x64xf32, #tpu.memory_space<vmem>>, vector<4x64xf32>
    %10 = vector.extract_strided_slice %8 {offsets = [0, 24, 0], sizes = [16, 16, 4], strides = [1, 1, 1]} : vector<16x64x4xbf16> to vector<16x16x4xbf16>
    %11 = vector.shape_cast %10 : vector<16x16x4xbf16> to vector<256x4xbf16>
    %c0_5 = arith.constant 0 : index
    %c0_6 = arith.constant 0 : index
    %12 = vector.load %arg3[%c0_5, %c0_6] : memref<4x64xbf16, #tpu.memory_space<vmem>>, vector<4x64xbf16>
    %cst = arith.constant dense<0.000000e+00> : vector<256x64xf32>
    %13 = tpu.matmul %11, %12, %cst {dimension_numbers = #tpu.dot_dimension_numbers<[1], [0], [0], [1], [0, 0, 1, 1], [], []>} : vector<256x4xbf16>, vector<4x64xbf16>, vector<256x64xf32> -> vector<256x64xf32>
    %14 = vector.extract_strided_slice %9 {offsets = [0, 0], sizes = [1, 64], strides = [1, 1]} : vector<4x64xf32> to vector<1x64xf32>
    %15 = vector.broadcast %14 : vector<1x64xf32> to vector<256x64xf32>
    %16 = arith.addf %13, %15 : vector<256x64xf32>
    %cst_7 = arith.constant 0.000000e+00 : f32
    %17 = vector.broadcast %cst_7 : f32 to vector<256x64xf32>
    %18 = arith.maximumf %16, %17 : vector<256x64xf32>
    %c24_i32_8 = arith.constant 24 : i32
    %19 = arith.addi %4, %c24_i32_8 : i32
    %c-6_i32 = arith.constant -6 : i32
    %20 = arith.addi %19, %c-6_i32 : i32
    %21 = arith.index_cast %20 : i32 to index
    %c0_9 = arith.constant 0 : index
    %c0_10 = arith.constant 0 : index
    %22 = vector.load %arg12[%21, %c0_9, %c0_10] : memref<64x64x4xbf16, #tpu.memory_space<vmem>>, vector<16x64x4xbf16>
    %c24_i32_11 = arith.constant 24 : i32
    %23 = arith.addi %4, %c24_i32_11 : i32
    %c6_i32 = arith.constant 6 : i32
    %24 = arith.addi %23, %c6_i32 : i32
    %25 = arith.index_cast %24 : i32 to index
    %c0_12 = arith.constant 0 : index
    %c0_13 = arith.constant 0 : index
    %26 = vector.load %arg12[%25, %c0_12, %c0_13] : memref<64x64x4xbf16, #tpu.memory_space<vmem>>, vector<16x64x4xbf16>
    %27 = vector.extract_strided_slice %22 {offsets = [0, 18, 0], sizes = [16, 16, 4], strides = [1, 1, 1]} : vector<16x64x4xbf16> to vector<16x16x4xbf16>
    %28 = vector.extract_strided_slice %22 {offsets = [0, 24, 0], sizes = [16, 16, 4], strides = [1, 1, 1]} : vector<16x64x4xbf16> to vector<16x16x4xbf16>
    %29 = vector.extract_strided_slice %22 {offsets = [0, 30, 0], sizes = [16, 16, 4], strides = [1, 1, 1]} : vector<16x64x4xbf16> to vector<16x16x4xbf16>
    %30 = vector.extract_strided_slice %8 {offsets = [0, 18, 0], sizes = [16, 16, 4], strides = [1, 1, 1]} : vector<16x64x4xbf16> to vector<16x16x4xbf16>
    %31 = vector.extract_strided_slice %8 {offsets = [0, 24, 0], sizes = [16, 16, 4], strides = [1, 1, 1]} : vector<16x64x4xbf16> to vector<16x16x4xbf16>
    %32 = vector.extract_strided_slice %8 {offsets = [0, 30, 0], sizes = [16, 16, 4], strides = [1, 1, 1]} : vector<16x64x4xbf16> to vector<16x16x4xbf16>
    %33 = vector.extract_strided_slice %26 {offsets = [0, 18, 0], sizes = [16, 16, 4], strides = [1, 1, 1]} : vector<16x64x4xbf16> to vector<16x16x4xbf16>
    %34 = vector.extract_strided_slice %26 {offsets = [0, 24, 0], sizes = [16, 16, 4], strides = [1, 1, 1]} : vector<16x64x4xbf16> to vector<16x16x4xbf16>
    %35 = vector.extract_strided_slice %26 {offsets = [0, 30, 0], sizes = [16, 16, 4], strides = [1, 1, 1]} : vector<16x64x4xbf16> to vector<16x16x4xbf16>
    %36 = tpu.concatenate %27, %28, %29, %30, %31, %32, %33, %34, %35 in 2 : vector<16x16x4xbf16>, vector<16x16x4xbf16>, vector<16x16x4xbf16>, vector<16x16x4xbf16>, vector<16x16x4xbf16>, vector<16x16x4xbf16>, vector<16x16x4xbf16>, vector<16x16x4xbf16>, vector<16x16x4xbf16> -> vector<16x16x36xbf16>
    %37 = vector.shape_cast %36 : vector<16x16x36xbf16> to vector<256x36xbf16>
    %c0_14 = arith.constant 0 : index
    %c0_15 = arith.constant 0 : index
    %c0_16 = arith.constant 0 : index
    %38 = vector.load %arg4[%c0_14, %c0_15, %c0_16] : memref<3x36x64xbf16, #tpu.memory_space<vmem>>, vector<1x36x64xbf16>
    %39 = vector.shape_cast %38 : vector<1x36x64xbf16> to vector<36x64xbf16>
    %cst_17 = arith.constant dense<0.000000e+00> : vector<256x64xf32>
    %40 = tpu.matmul %37, %39, %cst_17 {dimension_numbers = #tpu.dot_dimension_numbers<[1], [0], [0], [1], [0, 0, 1, 1], [], []>} : vector<256x36xbf16>, vector<36x64xbf16>, vector<256x64xf32> -> vector<256x64xf32>
    %41 = vector.extract_strided_slice %9 {offsets = [1, 0], sizes = [1, 64], strides = [1, 1]} : vector<4x64xf32> to vector<1x64xf32>
    %42 = vector.broadcast %41 : vector<1x64xf32> to vector<256x64xf32>
    %43 = arith.addf %40, %42 : vector<256x64xf32>
    %cst_18 = arith.constant 0.000000e+00 : f32
    %44 = vector.broadcast %cst_18 : f32 to vector<256x64xf32>
    %45 = arith.maximumf %43, %44 : vector<256x64xf32>
    %c24_i32_19 = arith.constant 24 : i32
    %46 = arith.addi %4, %c24_i32_19 : i32
    %c-12_i32 = arith.constant -12 : i32
    %47 = arith.addi %46, %c-12_i32 : i32
    %48 = arith.index_cast %47 : i32 to index
    %c0_20 = arith.constant 0 : index
    %c0_21 = arith.constant 0 : index
    %49 = vector.load %arg12[%48, %c0_20, %c0_21] : memref<64x64x4xbf16, #tpu.memory_space<vmem>>, vector<16x64x4xbf16>
    %c24_i32_22 = arith.constant 24 : i32
    %50 = arith.addi %4, %c24_i32_22 : i32
    %c12_i32 = arith.constant 12 : i32
    %51 = arith.addi %50, %c12_i32 : i32
    %52 = arith.index_cast %51 : i32 to index
    %c0_23 = arith.constant 0 : index
    %c0_24 = arith.constant 0 : index
    %53 = vector.load %arg12[%52, %c0_23, %c0_24] : memref<64x64x4xbf16, #tpu.memory_space<vmem>>, vector<16x64x4xbf16>
    %54 = vector.extract_strided_slice %49 {offsets = [0, 12, 0], sizes = [16, 16, 4], strides = [1, 1, 1]} : vector<16x64x4xbf16> to vector<16x16x4xbf16>
    %55 = vector.extract_strided_slice %49 {offsets = [0, 24, 0], sizes = [16, 16, 4], strides = [1, 1, 1]} : vector<16x64x4xbf16> to vector<16x16x4xbf16>
    %56 = vector.extract_strided_slice %49 {offsets = [0, 36, 0], sizes = [16, 16, 4], strides = [1, 1, 1]} : vector<16x64x4xbf16> to vector<16x16x4xbf16>
    %57 = vector.extract_strided_slice %8 {offsets = [0, 12, 0], sizes = [16, 16, 4], strides = [1, 1, 1]} : vector<16x64x4xbf16> to vector<16x16x4xbf16>
    %58 = vector.extract_strided_slice %8 {offsets = [0, 24, 0], sizes = [16, 16, 4], strides = [1, 1, 1]} : vector<16x64x4xbf16> to vector<16x16x4xbf16>
    %59 = vector.extract_strided_slice %8 {offsets = [0, 36, 0], sizes = [16, 16, 4], strides = [1, 1, 1]} : vector<16x64x4xbf16> to vector<16x16x4xbf16>
    %60 = vector.extract_strided_slice %53 {offsets = [0, 12, 0], sizes = [16, 16, 4], strides = [1, 1, 1]} : vector<16x64x4xbf16> to vector<16x16x4xbf16>
    %61 = vector.extract_strided_slice %53 {offsets = [0, 24, 0], sizes = [16, 16, 4], strides = [1, 1, 1]} : vector<16x64x4xbf16> to vector<16x16x4xbf16>
    %62 = vector.extract_strided_slice %53 {offsets = [0, 36, 0], sizes = [16, 16, 4], strides = [1, 1, 1]} : vector<16x64x4xbf16> to vector<16x16x4xbf16>
    %63 = tpu.concatenate %54, %55, %56, %57, %58, %59, %60, %61, %62 in 2 : vector<16x16x4xbf16>, vector<16x16x4xbf16>, vector<16x16x4xbf16>, vector<16x16x4xbf16>, vector<16x16x4xbf16>, vector<16x16x4xbf16>, vector<16x16x4xbf16>, vector<16x16x4xbf16>, vector<16x16x4xbf16> -> vector<16x16x36xbf16>
    %64 = vector.shape_cast %63 : vector<16x16x36xbf16> to vector<256x36xbf16>
    %c1 = arith.constant 1 : index
    %c0_25 = arith.constant 0 : index
    %c0_26 = arith.constant 0 : index
    %65 = vector.load %arg4[%c1, %c0_25, %c0_26] : memref<3x36x64xbf16, #tpu.memory_space<vmem>>, vector<1x36x64xbf16>
    %66 = vector.shape_cast %65 : vector<1x36x64xbf16> to vector<36x64xbf16>
    %cst_27 = arith.constant dense<0.000000e+00> : vector<256x64xf32>
    %67 = tpu.matmul %64, %66, %cst_27 {dimension_numbers = #tpu.dot_dimension_numbers<[1], [0], [0], [1], [0, 0, 1, 1], [], []>} : vector<256x36xbf16>, vector<36x64xbf16>, vector<256x64xf32> -> vector<256x64xf32>
    %68 = vector.extract_strided_slice %9 {offsets = [2, 0], sizes = [1, 64], strides = [1, 1]} : vector<4x64xf32> to vector<1x64xf32>
    %69 = vector.broadcast %68 : vector<1x64xf32> to vector<256x64xf32>
    %70 = arith.addf %67, %69 : vector<256x64xf32>
    %cst_28 = arith.constant 0.000000e+00 : f32
    %71 = vector.broadcast %cst_28 : f32 to vector<256x64xf32>
    %72 = arith.maximumf %70, %71 : vector<256x64xf32>
    %c24_i32_29 = arith.constant 24 : i32
    %73 = arith.addi %4, %c24_i32_29 : i32
    %c-18_i32 = arith.constant -18 : i32
    %74 = arith.addi %73, %c-18_i32 : i32
    %75 = arith.index_cast %74 : i32 to index
    %c0_30 = arith.constant 0 : index
    %c0_31 = arith.constant 0 : index
    %76 = vector.load %arg12[%75, %c0_30, %c0_31] : memref<64x64x4xbf16, #tpu.memory_space<vmem>>, vector<16x64x4xbf16>
    %c24_i32_32 = arith.constant 24 : i32
    %77 = arith.addi %4, %c24_i32_32 : i32
    %c18_i32 = arith.constant 18 : i32
    %78 = arith.addi %77, %c18_i32 : i32
    %79 = arith.index_cast %78 : i32 to index
    %c0_33 = arith.constant 0 : index
    %c0_34 = arith.constant 0 : index
    %80 = vector.load %arg12[%79, %c0_33, %c0_34] : memref<64x64x4xbf16, #tpu.memory_space<vmem>>, vector<16x64x4xbf16>
    %81 = vector.extract_strided_slice %76 {offsets = [0, 6, 0], sizes = [16, 16, 4], strides = [1, 1, 1]} : vector<16x64x4xbf16> to vector<16x16x4xbf16>
    %82 = vector.extract_strided_slice %76 {offsets = [0, 24, 0], sizes = [16, 16, 4], strides = [1, 1, 1]} : vector<16x64x4xbf16> to vector<16x16x4xbf16>
    %83 = vector.extract_strided_slice %76 {offsets = [0, 42, 0], sizes = [16, 16, 4], strides = [1, 1, 1]} : vector<16x64x4xbf16> to vector<16x16x4xbf16>
    %84 = vector.extract_strided_slice %8 {offsets = [0, 6, 0], sizes = [16, 16, 4], strides = [1, 1, 1]} : vector<16x64x4xbf16> to vector<16x16x4xbf16>
    %85 = vector.extract_strided_slice %8 {offsets = [0, 24, 0], sizes = [16, 16, 4], strides = [1, 1, 1]} : vector<16x64x4xbf16> to vector<16x16x4xbf16>
    %86 = vector.extract_strided_slice %8 {offsets = [0, 42, 0], sizes = [16, 16, 4], strides = [1, 1, 1]} : vector<16x64x4xbf16> to vector<16x16x4xbf16>
    %87 = vector.extract_strided_slice %80 {offsets = [0, 6, 0], sizes = [16, 16, 4], strides = [1, 1, 1]} : vector<16x64x4xbf16> to vector<16x16x4xbf16>
    %88 = vector.extract_strided_slice %80 {offsets = [0, 24, 0], sizes = [16, 16, 4], strides = [1, 1, 1]} : vector<16x64x4xbf16> to vector<16x16x4xbf16>
    %89 = vector.extract_strided_slice %80 {offsets = [0, 42, 0], sizes = [16, 16, 4], strides = [1, 1, 1]} : vector<16x64x4xbf16> to vector<16x16x4xbf16>
    %90 = tpu.concatenate %81, %82, %83, %84, %85, %86, %87, %88, %89 in 2 : vector<16x16x4xbf16>, vector<16x16x4xbf16>, vector<16x16x4xbf16>, vector<16x16x4xbf16>, vector<16x16x4xbf16>, vector<16x16x4xbf16>, vector<16x16x4xbf16>, vector<16x16x4xbf16>, vector<16x16x4xbf16> -> vector<16x16x36xbf16>
    %91 = vector.shape_cast %90 : vector<16x16x36xbf16> to vector<256x36xbf16>
    %c2 = arith.constant 2 : index
    %c0_35 = arith.constant 0 : index
    %c0_36 = arith.constant 0 : index
    %92 = vector.load %arg4[%c2, %c0_35, %c0_36] : memref<3x36x64xbf16, #tpu.memory_space<vmem>>, vector<1x36x64xbf16>
    %93 = vector.shape_cast %92 : vector<1x36x64xbf16> to vector<36x64xbf16>
    %cst_37 = arith.constant dense<0.000000e+00> : vector<256x64xf32>
    %94 = tpu.matmul %91, %93, %cst_37 {dimension_numbers = #tpu.dot_dimension_numbers<[1], [0], [0], [1], [0, 0, 1, 1], [], []>} : vector<256x36xbf16>, vector<36x64xbf16>, vector<256x64xf32> -> vector<256x64xf32>
    %95 = vector.extract_strided_slice %9 {offsets = [3, 0], sizes = [1, 64], strides = [1, 1]} : vector<4x64xf32> to vector<1x64xf32>
    %96 = vector.broadcast %95 : vector<1x64xf32> to vector<256x64xf32>
    %97 = arith.addf %94, %96 : vector<256x64xf32>
    %cst_38 = arith.constant 0.000000e+00 : f32
    %98 = vector.broadcast %cst_38 : f32 to vector<256x64xf32>
    %99 = arith.maximumf %97, %98 : vector<256x64xf32>
    %100 = tpu.concatenate %18, %45, %72, %99 in 1 : vector<256x64xf32>, vector<256x64xf32>, vector<256x64xf32>, vector<256x64xf32> -> vector<256x256xf32>
    %101 = arith.truncf %100 : vector<256x256xf32> to vector<256x256xbf16>
    %c0_39 = arith.constant 0 : index
    %c0_40 = arith.constant 0 : index
    %102 = vector.load %arg6[%c0_39, %c0_40] : memref<256x64xbf16, #tpu.memory_space<vmem>>, vector<256x64xbf16>
    %cst_41 = arith.constant dense<0.000000e+00> : vector<256x64xf32>
    %103 = tpu.matmul %101, %102, %cst_41 {dimension_numbers = #tpu.dot_dimension_numbers<[1], [0], [0], [1], [0, 0, 1, 1], [], []>} : vector<256x256xbf16>, vector<256x64xbf16>, vector<256x64xf32> -> vector<256x64xf32>
    %c0_42 = arith.constant 0 : index
    %c0_43 = arith.constant 0 : index
    %104 = vector.load %arg13[%c0_42, %c0_43] : memref<1x64xf32, #tpu.memory_space<vmem>>, vector<1x64xf32>
    %105 = vector.broadcast %104 : vector<1x64xf32> to vector<256x64xf32>
    %106 = arith.addf %103, %105 : vector<256x64xf32>
    %cst_44 = arith.constant 0.000000e+00 : f32
    %107 = vector.broadcast %cst_44 : f32 to vector<256x64xf32>
    %108 = arith.maximumf %106, %107 : vector<256x64xf32>
    %109 = tpu.transpose %108, [1, 0] : vector<256x64xf32> -> vector<64x256xf32>
    %c0_45 = arith.constant 0 : index
    %c0_46 = arith.constant 0 : index
    %c0_47 = arith.constant 0 : index
    %110 = vector.load %arg11[%c0_45, %c0_46, %c0_47] : memref<1x64x256xf32, #tpu.memory_space<vmem>>, vector<1x64x256xf32>
    %111 = vector.shape_cast %110 : vector<1x64x256xf32> to vector<64x256xf32>
    %112 = vector.shape_cast %109 : vector<64x256xf32> to vector<1x64x256xf32>
    tpu.vector_store %arg11[%c0_45, %c0_46, %c0_47], %112 {strides = array<i32>} : memref<1x64x256xf32, #tpu.memory_space<vmem>>, vector<1x64x256xf32>,
    return
  }
  func.func @transform_0(%arg0: i32, %arg1: i32) -> (i32, i32, i32, i32) {
    %c0_i32 = arith.constant 0 : i32
    %c0_i32_0 = arith.constant 0 : i32
    %c0_i32_1 = arith.constant 0 : i32
    %c0_i32_2 = arith.constant 0 : i32
    return %arg0, %c0_i32, %c0_i32_0, %c0_i32_1 : i32, i32, i32, i32
  }
  func.func @transform_1(%arg0: i32, %arg1: i32) -> (i32, i32) {
    %c0_i32 = arith.constant 0 : i32
    %c0_i32_0 = arith.constant 0 : i32
    %c0_i32_1 = arith.constant 0 : i32
    return %c0_i32, %c0_i32_0 : i32, i32
  }
  func.func @transform_2(%arg0: i32, %arg1: i32) -> (i32, i32, i32) {
    %c0_i32 = arith.constant 0 : i32
    %c0_i32_0 = arith.constant 0 : i32
    %c0_i32_1 = arith.constant 0 : i32
    %c0_i32_2 = arith.constant 0 : i32
    return %c0_i32, %c0_i32_0, %c0_i32_1 : i32, i32, i32
  }
  func.func @transform_3(%arg0: i32, %arg1: i32) -> (i32, i32) {
    %c0_i32 = arith.constant 0 : i32
    %c0_i32_0 = arith.constant 0 : i32
    %c0_i32_1 = arith.constant 0 : i32
    return %c0_i32, %c0_i32_0 : i32, i32
  }
  func.func @transform_4(%arg0: i32, %arg1: i32) -> (i32, i32) {
    %c0_i32 = arith.constant 0 : i32
    %c0_i32_0 = arith.constant 0 : i32
    %c0_i32_1 = arith.constant 0 : i32
    return %c0_i32, %c0_i32_0 : i32, i32
  }
  func.func @transform_5(%arg0: i32, %arg1: i32) -> (i32, i32) {
    %c0_i32 = arith.constant 0 : i32
    %c0_i32_0 = arith.constant 0 : i32
    %c0_i32_1 = arith.constant 0 : i32
    return %c0_i32, %c0_i32_0 : i32, i32
  }
  func.func @transform_6(%arg0: i32, %arg1: i32) -> (i32, i32) {
    %c0_i32 = arith.constant 0 : i32
    %c0_i32_0 = arith.constant 0 : i32
    %c0_i32_1 = arith.constant 0 : i32
    return %c0_i32, %c0_i32_0 : i32, i32
  }
  func.func @transform_7(%arg0: i32, %arg1: i32) -> (i32, i32) {
    %c0_i32 = arith.constant 0 : i32
    %c0_i32_0 = arith.constant 0 : i32
    %c0_i32_1 = arith.constant 0 : i32
    return %c0_i32, %c0_i32_0 : i32, i32
  }
  func.func @transform_8(%arg0: i32, %arg1: i32) -> (i32, i32) {
    %c0_i32 = arith.constant 0 : i32
    %c0_i32_0 = arith.constant 0 : i32
    %c0_i32_1 = arith.constant 0 : i32
    return %c0_i32, %c0_i32_0 : i32, i32
  }
  func.func @transform_9(%arg0: i32, %arg1: i32) -> (i32, i32, i32) {
    %c0_i32 = arith.constant 0 : i32
    %c0_i32_0 = arith.constant 0 : i32
    return %arg0, %c0_i32, %arg1 : i32, i32, i32
  }
}

</mosaic_0001>

<bundles_post_ra>
// kernel: aspp_forward.1
= control target key start
LH: loop header
LB: loop body
LE: loop exit
PB: predicated region body
PF: predicated region fallthrough
CT: control target
= control target key end

     0   :  { %s9153_s30 = smov 0   ;;  %s9155_s10 = smov 0   ;;  %s15345_s0 = inlined_call_operand.vmem [shape: f32[2,16,16,4], index: 0, kind: input, shape index: {}]   ;;  %s15346_s1 = inlined_call_operand.vmem [shape: bf16[4,64], index: 1, kind: input, shape index: {}]   ;;  %s15347_s2 = inlined_call_operand.vmem [shape: bf16[3,36,64], index: 2, kind: input, shape index: {}]   ;;  %s15348_s3 = inlined_call_operand.vmem [shape: f32[4,64], index: 3, kind: input, shape index: {}]   ;;  %s15349_s4 = inlined_call_operand.vmem [shape: bf16[256,64], index: 4, kind: input, shape index: {}]   ;;  %s15350_s5 = inlined_call_operand.vmem [shape: f32[4,64], index: 5, kind: input, shape index: {}]   ;;  %s15351_s6 = inlined_call_operand.vmem [shape: f32[1,64], index: 6, kind: input, shape index: {}]   ;;  %s15352_s7 = inlined_call_operand.vmem [shape: f32[64,64], index: 7, kind: input, shape index: {}]   ;;  %s15353_s8 = inlined_call_operand.vmem [shape: f32[1,64], index: 8, kind: input, shape index: {}]   ;;  %s15354_s9 = inlined_call_operand.vmem [shape: f32[2,64,256], index: 9, kind: output, shape index: {}]  }
   0x1   :  { %s9157_s11 = smov 0  }
   0x2 LB: > { %s31_s12 = sadd.s32 1, %s9084_s10  ;;  %p7839_p0 = scmp.ge.s32.totalorder %s9088_s11, 1  ;;  %s9088_s11 = sphi %s9157_s11, %s19_s11   ;;  %s9084_s10 = sphi %s9155_s10, %s16608_s10   ;;  %s9080_s30 = sphi %s9153_s30, %s16607_s30  }
   0x3   : > { %p33_p1 = scmp.ge.s32.totalorder %s31_s12, 2  ;;  %p301_p2 = scmp.lt.s32.totalorder %s9088_s11, 3 }
   0x5   : > { %s16610_s12 = smov (%p33_p1, %s31_s12), 0  ;;  %p302_p3 = pnand %p7839_p0, %p301_p2 }
   0x7   : > { %305 = sbr.rel (%p302_p3) target bundleno = 2279 (0x8e7), region = 56 }
   0xe   : > { %vm361_vm0 = vcmask 31744   ;;  %p341_p4 = scmp.lt.s32.totalorder %s9080_s30, 1  ;;  %v9090_v0 = vmov 0   ;;  %vm1523_vm1 = vcmask 1044480   ;;  %s9091_s17 = smov 4   ;;  %vm717_vm2 = vcmask 27648  }
   0xf   : > { %440 = vst.msk [vmem:[#allocation2 + $0x270] sm:$0xff] %vm361_vm0, %v9090_v0  ;;  %386 = vst.msk [vmem:[#allocation2 + $0xc0] sm:$0xff] %vm361_vm0, %v9090_v0  ;;  %vm715_vm3 = vcmask 31748   ;;  %vm1222_vm4 = vcmask 1041408   ;;  %s9092_s18 = smov 8   ;;  %s9093_s19 = smov 12  }
  0x10   : > { %387 = vst.msk [vmem:[#allocation2 + $0xc8] sm:$0xff] %vm361_vm0, %v9090_v0  ;;  %388 = vst.msk [vmem:[#allocation2 + $0xd0] sm:$0xff] %vm361_vm0, %v9090_v0  ;;  %s16612_s30 = smov (!%p341_p4, %s9080_s30), 1  ;;  %vm856_vm5 = vcmask 1043456   ;;  %vm9095_vm6 = vmmov 0   ;;  %s9096_s22 = smov 16  }
  0x11   : > { %389 = vst.msk [vmem:[#allocation2 + $0xd8] sm:$0xff] %vm361_vm0, %v9090_v0  ;;  %390 = vst.msk [vmem:[#allocation2 + $0xe0] sm:$0xff] %vm361_vm0, %v9090_v0  ;;  %s8333_s13 = sshll.u32 %s16612_s30, 8  ;;  %s9097_s23 = smov 20   ;;  %vm940_vm7 = vcmask 523264   ;;  %vm2453_vm8 = vcmask 64512  }
  0x12   : > { %391 = vst.msk [vmem:[#allocation2 + $0xe8] sm:$0xff] %vm361_vm0, %v9090_v0  ;;  %392 = vst.msk [vmem:[#allocation2 + $0xf0] sm:$0xff] %vm361_vm0, %v9090_v0  ;;  %s9599_s16 = scalar_lea.vmem %s15345_s0, %s8333_s13  ;;  %s9098_s24 = smov 24   ;;  %vm2518_vm9 = vcmask 97280   ;;  %vm2583_vm10 = vcmask 130048   ;;  %vm2648_vm11 = vcmask 162816  }
  0x13   : > { %393 = vst.msk [vmem:[#allocation2 + $0xf8] sm:$0xff] %vm361_vm0, %v9090_v0  ;;  %394 = vst.msk [vmem:[#allocation2 + $0x100] sm:$0xff] %vm361_vm0, %v9090_v0  ;;  %v618_v1 = vld [vmem:[%s9599_s16] sm:$0xff]  ;;  %v619_v2 = vld [vmem:[%s9599_s16 + $0x8] sm:$0xff]  ;;  %s9100_s20 = smov 28   ;;  %s9101_s13 = smov 32  }
  0x14   : > { %395 = vst.msk [vmem:[#allocation2 + $0x108] sm:$0xff] %vm361_vm0, %v9090_v0  ;;  %396 = vst.msk [vmem:[#allocation2 + $0x110] sm:$0xff] %vm361_vm0, %v9090_v0  ;;  %v620_v3 = vld [vmem:[%s9599_s16 + $0x10] sm:$0xff]  ;;  %v621_v4 = vld [vmem:[%s9599_s16 + $0x18] sm:$0xff]  ;;  %v650_v14 = vpack.c.bf16 %v619_v2, %v618_v1  ;;  %vm2713_vm12 = vcmask 195584   ;;  %vm2778_vm13 = vcmask 228352  }
  0x15   : > { %397 = vst.msk [vmem:[#allocation2 + $0x118] sm:$0xff] %vm361_vm0, %v9090_v0  ;;  %398 = vst.msk [vmem:[#allocation2 + $0x120] sm:$0xff] %vm361_vm0, %v9090_v0  ;;  %v622_v5 = vld [vmem:[%s9599_s16 + $0x20] sm:$0xff]  ;;  %v623_v6 = vld [vmem:[%s9599_s16 + $0x28] sm:$0xff]  ;;  %v651_v16 = vpack.c.bf16 %v621_v4, %v620_v3  ;;  %vm2843_vm14 = vcmask 261120   ;;  %vm2940_vm15 = vcmask 1046528  }
  0x16   : > { %399 = vst.msk [vmem:[#allocation2 + $0x128] sm:$0xff] %vm361_vm0, %v9090_v0  ;;  %400 = vst.msk [vmem:[#allocation2 + $0x130] sm:$0xff] %vm361_vm0, %v9090_v0  ;;  %v9607_v7 = vld [vmem:[#allocation2 + $0x270] sm:$0xff]  ;;  %v652_v17 = vpack.c.bf16 %v623_v6, %v622_v5  ;;  %v625_v25 = vld [vmem:[%s9599_s16 + $0x38] sm:$0xff]  ;;  %v682_v27 = vrot.slane %v650_v14, 4 }
  0x17   : > { %401 = vst.msk [vmem:[#allocation2 + $0x138] sm:$0xff] %vm361_vm0, %v9090_v0  ;;  %402 = vst.msk [vmem:[#allocation2 + $0x140] sm:$0xff] %vm361_vm0, %v9090_v0  ;;  %v1528_v10 = vrot.slane %v9607_v7, 3  ;;  %v624_v24 = vld [vmem:[%s9599_s16 + $0x30] sm:$0xff]  ;;  %v626_v26 = vld [vmem:[%s9599_s16 + $0x40] sm:$0xff]  ;;  %v683_v32 = vrot.slane %v651_v16, 4 }
  0x18   : > { %403 = vst.msk [vmem:[#allocation2 + $0x148] sm:$0xff] %vm361_vm0, %v9090_v0  ;;  %404 = vst.msk [vmem:[#allocation2 + $0x150] sm:$0xff] %vm361_vm0, %v9090_v0  ;;  %v627_v28 = vld [vmem:[%s9599_s16 + $0x48] sm:$0xff]  ;;  %v628_v29 = vld [vmem:[%s9599_s16 + $0x50] sm:$0xff]  ;;  %v684_v33 = vrot.slane %v652_v17, 4  ;;  %v653_v34 = vpack.c.bf16 %v625_v25, %v624_v24 }
  0x19   : > { %405 = vst.msk [vmem:[#allocation2 + $0x158] sm:$0xff] %vm361_vm0, %v9090_v0  ;;  %406 = vst.msk [vmem:[#allocation2 + $0x160] sm:$0xff] %vm361_vm0, %v9090_v0  ;;  %1578 = vrot.lane.b32.xlu1 %v1528_v10, %s9091_s17  ;;  %v629_v30 = vld [vmem:[%s9599_s16 + $0x58] sm:$0xff]  ;;  %v630_v35 = vld [vmem:[%s9599_s16 + $0x60] sm:$0xff]  ;;  %v654_v42 = vpack.c.bf16 %v627_v28, %v626_v26 }
  0x1a   : > { %407 = vst.msk [vmem:[#allocation2 + $0x168] sm:$0xff] %vm361_vm0, %v9090_v0  ;;  %408 = vst.msk [vmem:[#allocation2 + $0x170] sm:$0xff] %vm361_vm0, %v9090_v0  ;;  %v631_v36 = vld [vmem:[%s9599_s16 + $0x68] sm:$0xff]  ;;  %v632_v37 = vld [vmem:[%s9599_s16 + $0x70] sm:$0xff]  ;;  %v655_v43 = vpack.c.bf16 %v629_v30, %v628_v29  ;;  %v685_v47 = vrot.slane %v653_v34, 4 }
  0x1b   : > { %409 = vst.msk [vmem:[#allocation2 + $0x178] sm:$0xff] %vm361_vm0, %v9090_v0  ;;  %410 = vst.msk [vmem:[#allocation2 + $0x180] sm:$0xff] %vm361_vm0, %v9090_v0  ;;  %v633_v44 = vld [vmem:[%s9599_s16 + $0x78] sm:$0xff]  ;;  %v634_v45 = vld [vmem:[%s9599_s16 + $0x80] sm:$0xff]  ;;  %v656_v48 = vpack.c.bf16 %v631_v36, %v630_v35  ;;  %v686_v53 = vrot.slane %v654_v42, 4 }
  0x1c   : > { %411 = vst.msk [vmem:[#allocation2 + $0x188] sm:$0xff] %vm361_vm0, %v9090_v0  ;;  %412 = vst.msk [vmem:[#allocation2 + $0x190] sm:$0xff] %vm361_vm0, %v9090_v0  ;;  %v657_v49 = vpack.c.bf16 %v633_v44, %v632_v37  ;;  %v635_v50 = vld [vmem:[%s9599_s16 + $0x88] sm:$0xff]  ;;  %v9662_v51 = vld [vmem:[%s9599_s16 + $0x90] sm:$0xff]  ;;  %v687_v54 = vrot.slane %v655_v43, 4 }
  0x1d   : > { %413 = vst.msk [vmem:[#allocation2 + $0x198] sm:$0xff] %vm361_vm0, %v9090_v0  ;;  %414 = vst.msk [vmem:[#allocation2 + $0x1a0] sm:$0xff] %vm361_vm0, %v9090_v0  ;;  %v9665_v52 = vld [vmem:[%s9599_s16 + $0x98] sm:$0xff]  ;;  %v658_v55 = vpack.c.bf16 %v635_v50, %v634_v45  ;;  %v688_v57 = vrot.slane %v656_v48, 4  ;;  %v9754_v34 = vld [vmem:[%s9599_s16 + $0xa8] sm:$0xff] }
  0x1e   : > { %415 = vst.msk [vmem:[#allocation2 + $0x1a8] sm:$0xff] %vm361_vm0, %v9090_v0  ;;  %416 = vst.msk [vmem:[#allocation2 + $0x1b0] sm:$0xff] %vm361_vm0, %v9090_v0  ;;  %v659_v56 = vpack.c.bf16 %v9665_v52, %v9662_v51  ;;  %v689_v58 = vrot.slane %v657_v49, 4  ;;  %v9770_v42 = vld [vmem:[%s9599_s16 + $0xb0] sm:$0xff]  ;;  %v9773_v43 = vld [vmem:[%s9599_s16 + $0xb8] sm:$0xff] }
  0x1f   : > { %417 = vst.msk [vmem:[#allocation2 + $0x1b8] sm:$0xff] %vm361_vm0, %v9090_v0  ;;  %418 = vst.msk [vmem:[#allocation2 + $0x1c0] sm:$0xff] %vm361_vm0, %v9090_v0  ;;  %v690_v59 = vrot.slane %v658_v55, 4 }
  0x20   : > { %419 = vst.msk [vmem:[#allocation2 + $0x1c8] sm:$0xff] %vm361_vm0, %v9090_v0  ;;  %420 = vst.msk [vmem:[#allocation2 + $0x1d0] sm:$0xff] %vm361_vm0, %v9090_v0  ;;  %v691_v60 = vrot.slane %v659_v56, 4 }
  0x21   : > { %421 = vst.msk [vmem:[#allocation2 + $0x1d8] sm:$0xff] %vm361_vm0, %v9090_v0  ;;  %422 = vst.msk [vmem:[#allocation2 + $0x1e0] sm:$0xff] %vm361_vm0, %v9090_v0 }
  0x22   : > { %423 = vst.msk [vmem:[#allocation2 + $0x1e8] sm:$0xff] %vm361_vm0, %v9090_v0  ;;  %424 = vst.msk [vmem:[#allocation2 + $0x1f0] sm:$0xff] %vm361_vm0, %v9090_v0 }
  0x23   : > { %425 = vst.msk [vmem:[#allocation2 + $0x1f8] sm:$0xff] %vm361_vm0, %v9090_v0  ;;  %426 = vst.msk [vmem:[#allocation2 + $0x200] sm:$0xff] %vm361_vm0, %v9090_v0 }
  0x24   : > { %427 = vst.msk [vmem:[#allocation2 + $0x208] sm:$0xff] %vm361_vm0, %v9090_v0  ;;  %428 = vst.msk [vmem:[#allocation2 + $0x210] sm:$0xff] %vm361_vm0, %v9090_v0 }
  0x25   : > { %429 = vst.msk [vmem:[#allocation2 + $0x218] sm:$0xff] %vm361_vm0, %v9090_v0  ;;  %430 = vst.msk [vmem:[#allocation2 + $0x220] sm:$0xff] %vm361_vm0, %v9090_v0 }
  0x26   : > { %431 = vst.msk [vmem:[#allocation2 + $0x228] sm:$0xff] %vm361_vm0, %v9090_v0  ;;  %432 = vst.msk [vmem:[#allocation2 + $0x230] sm:$0xff] %vm361_vm0, %v9090_v0 }
  0x27   : > { %433 = vst.msk [vmem:[#allocation2 + $0x238] sm:$0xff] %vm361_vm0, %v9090_v0  ;;  %434 = vst.msk [vmem:[#allocation2 + $0x240] sm:$0xff] %vm361_vm0, %v9090_v0 }
  0x28   : > { %435 = vst.msk [vmem:[#allocation2 + $0x248] sm:$0xff] %vm361_vm0, %v9090_v0  ;;  %436 = vst.msk [vmem:[#allocation2 + $0x250] sm:$0xff] %vm361_vm0, %v9090_v0 }
  0x29   : > { %437 = vst.msk [vmem:[#allocation2 + $0x258] sm:$0xff] %vm361_vm0, %v9090_v0  ;;  %438 = vst.msk [vmem:[#allocation2 + $0x260] sm:$0xff] %vm361_vm0, %v9090_v0 }
  0x2a   : > { %439 = vst.msk [vmem:[#allocation2 + $0x268] sm:$0xff] %vm361_vm0, %v9090_v0  ;;  %441 = vst.msk [vmem:[#allocation2 + $0x278] sm:$0xff] %vm361_vm0, %v9090_v0 }
  0x2b   : > { %442 = vst.msk [vmem:[#allocation2 + $0x280] sm:$0xff] %vm361_vm0, %v9090_v0  ;;  %443 = vst.msk [vmem:[#allocation2 + $0x288] sm:$0xff] %vm361_vm0, %v9090_v0 }
  0x2c   : > { %444 = vst.msk [vmem:[#allocation2 + $0x290] sm:$0xff] %vm361_vm0, %v9090_v0  ;;  %445 = vst.msk [vmem:[#allocation2 + $0x298] sm:$0xff] %vm361_vm0, %v9090_v0 }
  0x2d   : > { %446 = vst.msk [vmem:[#allocation2 + $0x2a0] sm:$0xff] %vm361_vm0, %v9090_v0  ;;  %447 = vst.msk [vmem:[#allocation2 + $0x2a8] sm:$0xff] %vm361_vm0, %v9090_v0 }
  0x2e   : > { %448 = vst.msk [vmem:[#allocation2 + $0x2b0] sm:$0xff] %vm361_vm0, %v9090_v0  ;;  %449 = vst.msk [vmem:[#allocation2 + $0x2b8] sm:$0xff] %vm361_vm0, %v9090_v0 }
  0x2f   : > { %450 = vst.msk [vmem:[#allocation2 + $0x2c0] sm:$0xff] %vm361_vm0, %v9090_v0  ;;  %451 = vst.msk [vmem:[#allocation2 + $0x2c8] sm:$0xff] %vm361_vm0, %v9090_v0  ;;  %v9609_v8 = vld [vmem:[#allocation2 + $0x250] sm:$0xff]  ;;  %v9615_v12 = vld [vmem:[#allocation2 + $0x248] sm:$0xff] }
  0x30   : > { %452 = vst.msk [vmem:[#allocation2 + $0x2d0] sm:$0xff] %vm361_vm0, %v9090_v0  ;;  %453 = vst.msk [vmem:[#allocation2 + $0x2d8] sm:$0xff] %vm361_vm0, %v9090_v0  ;;  %v1525_v11 = vrot.slane %v9609_v8, 3  ;;  %v1524_v15 = vrot.slane %v9615_v12, 3 }
  0x31   : > { %454 = vst.msk [vmem:[#allocation2 + $0x2e0] sm:$0xff] %vm361_vm0, %v9090_v0  ;;  %455 = vst.msk [vmem:[#allocation2 + $0x2e8] sm:$0xff] %vm361_vm0, %v9090_v0  ;;  %v9627_v20 = vld [vmem:[#allocation2 + $0x268] sm:$0xff] }
  0x32   : > { %456 = vst.msk [vmem:[#allocation2 + $0x2f0] sm:$0xff] %vm361_vm0, %v9090_v0  ;;  %457 = vst.msk [vmem:[#allocation2 + $0x2f8] sm:$0xff] %vm361_vm0, %v9090_v0  ;;  %v9617_v13 = vld [vmem:[#allocation2 + $0x288] sm:$0xff]  ;;  %1574 = vrot.lane.b32.xlu0 %v1525_v11, %s9091_s17  ;;  %v1526_v22 = vsel %vm1523_vm1, %v1524_v15, %v1525_v11  ;;  %v1527_v38 = vrot.slane %v9627_v20, 3 }
  0x33   : > { %458 = vst.msk [vmem:[#allocation2 + $0x300] sm:$0xff] %vm361_vm0, %v9090_v0  ;;  %459 = vst.msk [vmem:[#allocation2 + $0x308] sm:$0xff] %vm361_vm0, %v9090_v0  ;;  %v9611_v9 = vld [vmem:[#allocation2 + $0x290] sm:$0xff]  ;;  %v1530_v23 = vrot.slane %v9617_v13, 3 }
  0x34   : > { %460 = vst.msk [vmem:[#allocation2 + $0x310] sm:$0xff] %vm361_vm0, %v9090_v0  ;;  %461 = vst.msk [vmem:[#allocation2 + $0x318] sm:$0xff] %vm361_vm0, %v9090_v0  ;;  %v1531_v18 = vrot.slane %v9611_v9, 3  ;;  %v9629_v21 = vld [vmem:[#allocation2 + $0x2a8] sm:$0xff]  ;;  %v1529_v61 = vsel %vm1523_vm1, %v1527_v38, %v1528_v10 }
  0x35   : > { %462 = vst.msk [vmem:[#allocation2 + $0x320] sm:$0xff] %vm361_vm0, %v9090_v0  ;;  %463 = vst.msk [vmem:[#allocation2 + $0x328] sm:$0xff] %vm361_vm0, %v9090_v0  ;;  %v9625_v19 = vld [vmem:[#allocation2 + $0x2b0] sm:$0xff]  ;;  %v1533_v39 = vrot.slane %v9629_v21, 3 }
  0x36   : > { %464 = vst.msk [vmem:[#allocation2 + $0x330] sm:$0xff] %vm361_vm0, %v9090_v0  ;;  %465 = vst.msk [vmem:[#allocation2 + $0x338] sm:$0xff] %vm361_vm0, %v9090_v0  ;;  %v1534_v31 = vrot.slane %v9625_v19, 3  ;;  %1582 = vrot.lane.b32.xlu1 %v1531_v18, %s9091_s17  ;;  %1572 = vrot.lane.b32.xlu0 %v1526_v22, %s9091_s17  ;;  %v9649_v41 = vld [vmem:[#allocation2 + $0x2c8] sm:$0xff]  ;;  %v1532_v46 = vsel %vm1523_vm1, %v1530_v23, %v1531_v18 }
  0x37   : > { %466 = vst.msk [vmem:[#allocation2 + $0x340] sm:$0xff] %vm361_vm0, %v9090_v0  ;;  %467 = vst.msk [vmem:[#allocation2 + $0x348] sm:$0xff] %vm361_vm0, %v9090_v0  ;;  %v9647_v40 = vld [vmem:[#allocation2 + $0x2d0] sm:$0xff] }
  0x38   : > { %468 = vst.msk [vmem:[#allocation2 + $0x350] sm:$0xff] %vm361_vm0, %v9090_v0  ;;  %469 = vst.msk [vmem:[#allocation2 + $0x358] sm:$0xff] %vm361_vm0, %v9090_v0  ;;  %v1535_v62 = vsel %vm1523_vm1, %v1533_v39, %v1534_v31  ;;  %v1537_v63 = vrot.slane %v9647_v40, 3  ;;  %v9689_v2 = vld [vmem:[#allocation2 + $0x2e8] sm:$0xff] }
  0x39   : > { %470 = vst.msk [vmem:[#allocation2 + $0x360] sm:$0xff] %vm361_vm0, %v9090_v0  ;;  %471 = vst.msk [vmem:[#allocation2 + $0x368] sm:$0xff] %vm361_vm0, %v9090_v0  ;;  %v9687_v1 = vld [vmem:[#allocation2 + $0x2f0] sm:$0xff]  ;;  %v1539_v5 = vrot.slane %v9689_v2, 3 }
  0x3a   : > { %472 = vst.msk [vmem:[#allocation2 + $0x370] sm:$0xff] %vm361_vm0, %v9090_v0  ;;  %473 = vst.msk [vmem:[#allocation2 + $0x378] sm:$0xff] %vm361_vm0, %v9090_v0  ;;  %1586 = vrot.lane.b32.xlu1 %v1534_v31, %s9091_s17  ;;  %1580 = vrot.lane.b32.xlu0 %v1532_v46, %s9091_s17  ;;  %v1540_v4 = vrot.slane %v9687_v1, 3 }
  0x3b   : > { %474 = vst.msk [vmem:[#allocation2 + $0x380] sm:$0xff] %vm361_vm0, %v9090_v0  ;;  %475 = vst.msk [vmem:[#allocation2 + $0x388] sm:$0xff] %vm361_vm0, %v9090_v0 }
  0x3c   : > { %476 = vst.msk [vmem:[#allocation2 + $0x390] sm:$0xff] %vm361_vm0, %v9090_v0  ;;  %477 = vst.msk [vmem:[#allocation2 + $0x398] sm:$0xff] %vm361_vm0, %v9090_v0  ;;  %v1541_v11 = vsel %vm1523_vm1, %v1539_v5, %v1540_v4 }
  0x3d   : > { %478 = vst.msk [vmem:[#allocation2 + $0x3a0] sm:$0xff] %vm361_vm0, %v9090_v0  ;;  %479 = vst.msk [vmem:[#allocation2 + $0x3a8] sm:$0xff] %vm361_vm0, %v9090_v0 }
  0x3e   : > { %480 = vst.msk [vmem:[#allocation2 + $0x3b0] sm:$0xff] %vm361_vm0, %v9090_v0  ;;  %481 = vst.msk [vmem:[#allocation2 + $0x3b8] sm:$0xff] %vm361_vm0, %v9090_v0  ;;  %1576 = vrot.lane.b32.xlu1 %v1529_v61, %s9091_s17  ;;  %1584 = vrot.lane.b32.xlu0 %v1535_v62, %s9091_s17  ;;  %v9822_v62 = vld [vmem:[%s9599_s16 + $0xd0] sm:$0xff] }
  0x3f   : > { %482 = vst.msk [vmem:[#allocation2 + $0x3c0] sm:$0xff] %vm361_vm0, %v9090_v0  ;;  %483 = vst.msk [vmem:[#allocation2 + $0x3c8] sm:$0xff] %vm361_vm0, %v9090_v0 }
  0x40   : > { %484 = vst.msk [vmem:[#allocation2 + $0x3d0] sm:$0xff] %vm361_vm0, %v9090_v0  ;;  %485 = vst.msk [vmem:[#allocation2 + $0x3d8] sm:$0xff] %vm361_vm0, %v9090_v0 }
  0x41   : > { %486 = vst.msk [vmem:[#allocation2 + $0x3e0] sm:$0xff] %vm361_vm0, %v9090_v0  ;;  %487 = vst.msk [vmem:[#allocation2 + $0x3e8] sm:$0xff] %vm361_vm0, %v9090_v0 }
  0x42   : > { %488 = vst.msk [vmem:[#allocation2 + $0x3f0] sm:$0xff] %vm361_vm0, %v9090_v0  ;;  %489 = vst.msk [vmem:[#allocation2 + $0x3f8] sm:$0xff] %vm361_vm0, %v9090_v0  ;;  %1590 = vrot.lane.b32.xlu1 %v1537_v63, %s9091_s17 }
  0x43   : > { %490 = vst.msk [vmem:[#allocation2 + $0x400] sm:$0xff] %vm361_vm0, %v9090_v0  ;;  %491 = vst.msk [vmem:[#allocation2 + $0x408] sm:$0xff] %vm361_vm0, %v9090_v0 }
  0x44   : > { %492 = vst.msk [vmem:[#allocation2 + $0x410] sm:$0xff] %vm361_vm0, %v9090_v0  ;;  %493 = vst.msk [vmem:[#allocation2 + $0x418] sm:$0xff] %vm361_vm0, %v9090_v0 }
  0x45   : > { %494 = vst.msk [vmem:[#allocation2 + $0x420] sm:$0xff] %vm361_vm0, %v9090_v0  ;;  %495 = vst.msk [vmem:[#allocation2 + $0x428] sm:$0xff] %vm361_vm0, %v9090_v0 }
  0x46   : > { %496 = vst.msk [vmem:[#allocation2 + $0x430] sm:$0xff] %vm361_vm0, %v9090_v0  ;;  %497 = vst.msk [vmem:[#allocation2 + $0x438] sm:$0xff] %vm361_vm0, %v9090_v0  ;;  %1594 = vrot.lane.b32.xlu1 %v1540_v4, %s9091_s17 }
  0x47   : > { %498 = vst.msk [vmem:[#allocation2 + $0x440] sm:$0xff] %vm361_vm0, %v9090_v0  ;;  %499 = vst.msk [vmem:[#allocation2 + $0x448] sm:$0xff] %vm361_vm0, %v9090_v0 }
  0x48   : > { %500 = vst.msk [vmem:[#allocation2 + $0x450] sm:$0xff] %vm361_vm0, %v9090_v0  ;;  %501 = vst.msk [vmem:[#allocation2 + $0x458] sm:$0xff] %vm361_vm0, %v9090_v0 }
  0x49   : > { %502 = vst.msk [vmem:[#allocation2 + $0x460] sm:$0xff] %vm361_vm0, %v9090_v0  ;;  %503 = vst.msk [vmem:[#allocation2 + $0x468] sm:$0xff] %vm361_vm0, %v9090_v0 }
  0x4a   : > { %504 = vst.msk [vmem:[#allocation2 + $0x470] sm:$0xff] %vm361_vm0, %v9090_v0  ;;  %505 = vst.msk [vmem:[#allocation2 + $0x478] sm:$0xff] %vm361_vm0, %v9090_v0 }
  0x4b   : > { %506 = vst.msk [vmem:[#allocation2 + $0x480] sm:$0xff] %vm361_vm0, %v9090_v0  ;;  %507 = vst.msk [vmem:[#allocation2 + $0x488] sm:$0xff] %vm361_vm0, %v9090_v0 }
  0x4c   : > { %508 = vst.msk [vmem:[#allocation2 + $0x490] sm:$0xff] %vm361_vm0, %v9090_v0  ;;  %509 = vst.msk [vmem:[#allocation2 + $0x498] sm:$0xff] %vm361_vm0, %v9090_v0 }
  0x4d   : > { %510 = vst.msk [vmem:[#allocation2 + $0x4a0] sm:$0xff] %vm361_vm0, %v9090_v0  ;;  %511 = vst.msk [vmem:[#allocation2 + $0x4a8] sm:$0xff] %vm361_vm0, %v9090_v0 }
  0x4e   : > { %512 = vst.msk [vmem:[#allocation2 + $0x4b0] sm:$0xff] %vm361_vm0, %v9090_v0  ;;  %513 = vst.msk [vmem:[#allocation2 + $0x4b8] sm:$0xff] %vm361_vm0, %v9090_v0 }
  0x4f   : > { %514 = vst.msk [vmem:[#allocation2 + $0x4c0] sm:$0xff] %vm361_vm0, %v9090_v0  ;;  %515 = vst.msk [vmem:[#allocation2 + $0x4c8] sm:$0xff] %vm361_vm0, %v9090_v0 }
  0x50   : > { %516 = vst.msk [vmem:[#allocation2 + $0x4d0] sm:$0xff] %vm361_vm0, %v9090_v0  ;;  %517 = vst.msk [vmem:[#allocation2 + $0x4d8] sm:$0xff] %vm361_vm0, %v9090_v0 }
  0x51   : > { %518 = vst.msk [vmem:[#allocation2 + $0x4e0] sm:$0xff] %vm361_vm0, %v9090_v0  ;;  %519 = vst.msk [vmem:[#allocation2 + $0x4e8] sm:$0xff] %vm361_vm0, %v9090_v0 }
  0x52   : > { %520 = vst.msk [vmem:[#allocation2 + $0x4f0] sm:$0xff] %vm361_vm0, %v9090_v0  ;;  %521 = vst.msk [vmem:[#allocation2 + $0x4f8] sm:$0xff] %vm361_vm0, %v9090_v0 }
  0x53   : > { %522 = vst.msk [vmem:[#allocation2 + $0x500] sm:$0xff] %vm361_vm0, %v9090_v0  ;;  %523 = vst.msk [vmem:[#allocation2 + $0x508] sm:$0xff] %vm361_vm0, %v9090_v0 }
  0x54   : > { %524 = vst.msk [vmem:[#allocation2 + $0x510] sm:$0xff] %vm361_vm0, %v9090_v0  ;;  %525 = vst.msk [vmem:[#allocation2 + $0x518] sm:$0xff] %vm361_vm0, %v9090_v0 }
  0x55   : > { %526 = vst.msk [vmem:[#allocation2 + $0x520] sm:$0xff] %vm361_vm0, %v9090_v0  ;;  %527 = vst.msk [vmem:[#allocation2 + $0x528] sm:$0xff] %vm361_vm0, %v9090_v0 }
  0x56   : > { %528 = vst.msk [vmem:[#allocation2 + $0x530] sm:$0xff] %vm361_vm0, %v9090_v0  ;;  %529 = vst.msk [vmem:[#allocation2 + $0x538] sm:$0xff] %vm361_vm0, %v9090_v0 }
  0x57   : > { %530 = vst.msk [vmem:[#allocation2 + $0x540] sm:$0xff] %vm361_vm0, %v9090_v0  ;;  %531 = vst.msk [vmem:[#allocation2 + $0x548] sm:$0xff] %vm361_vm0, %v9090_v0 }
  0x58   : > { %532 = vst.msk [vmem:[#allocation2 + $0x550] sm:$0xff] %vm361_vm0, %v9090_v0  ;;  %533 = vst.msk [vmem:[#allocation2 + $0x558] sm:$0xff] %vm361_vm0, %v9090_v0 }
  0x59   : > { %534 = vst.msk [vmem:[#allocation2 + $0x560] sm:$0xff] %vm361_vm0, %v9090_v0  ;;  %535 = vst.msk [vmem:[#allocation2 + $0x568] sm:$0xff] %vm361_vm0, %v9090_v0 }
  0x5a   : > { %536 = vst.msk [vmem:[#allocation2 + $0x570] sm:$0xff] %vm361_vm0, %v9090_v0  ;;  %537 = vst.msk [vmem:[#allocation2 + $0x578] sm:$0xff] %vm361_vm0, %v9090_v0 }
  0x5b   : > { %538 = vst.msk [vmem:[#allocation2 + $0x580] sm:$0xff] %vm361_vm0, %v9090_v0  ;;  %539 = vst.msk [vmem:[#allocation2 + $0x588] sm:$0xff] %vm361_vm0, %v9090_v0 }
  0x5c   : > { %540 = vst.msk [vmem:[#allocation2 + $0x590] sm:$0xff] %vm361_vm0, %v9090_v0  ;;  %541 = vst.msk [vmem:[#allocation2 + $0x598] sm:$0xff] %vm361_vm0, %v9090_v0 }
  0x5d   : > { %542 = vst.msk [vmem:[#allocation2 + $0x5a0] sm:$0xff] %vm361_vm0, %v9090_v0  ;;  %543 = vst.msk [vmem:[#allocation2 + $0x5a8] sm:$0xff] %vm361_vm0, %v9090_v0 }
  0x5e   : > { %544 = vst.msk [vmem:[#allocation2 + $0x5b0] sm:$0xff] %vm361_vm0, %v9090_v0  ;;  %545 = vst.msk [vmem:[#allocation2 + $0x5b8] sm:$0xff] %vm361_vm0, %v9090_v0 }
  0x5f   : > { %546 = vst.msk [vmem:[#allocation2 + $0x5c0] sm:$0xff] %vm361_vm0, %v9090_v0  ;;  %547 = vst.msk [vmem:[#allocation2 + $0x5c8] sm:$0xff] %vm361_vm0, %v9090_v0 }
  0x60   : > { %548 = vst.msk [vmem:[#allocation2 + $0x5d0] sm:$0xff] %vm361_vm0, %v9090_v0  ;;  %549 = vst.msk [vmem:[#allocation2 + $0x5d8] sm:$0xff] %vm361_vm0, %v9090_v0 }
  0x61   : > { %550 = vst.msk [vmem:[#allocation2 + $0x5e0] sm:$0xff] %vm361_vm0, %v9090_v0  ;;  %551 = vst.msk [vmem:[#allocation2 + $0x5e8] sm:$0xff] %vm361_vm0, %v9090_v0 }
  0x62   : > { %552 = vst.msk [vmem:[#allocation2 + $0x5f0] sm:$0xff] %vm361_vm0, %v9090_v0  ;;  %553 = vst.msk [vmem:[#allocation2 + $0x5f8] sm:$0xff] %vm361_vm0, %v9090_v0 }
  0x63   : > { %554 = vst.msk [vmem:[#allocation2 + $0x600] sm:$0xff] %vm361_vm0, %v9090_v0  ;;  %555 = vst.msk [vmem:[#allocation2 + $0x608] sm:$0xff] %vm361_vm0, %v9090_v0 }
  0x64   : > { %556 = vst.msk [vmem:[#allocation2 + $0x610] sm:$0xff] %vm361_vm0, %v9090_v0  ;;  %557 = vst.msk [vmem:[#allocation2 + $0x618] sm:$0xff] %vm361_vm0, %v9090_v0 }
  0x65   : > { %558 = vst.msk [vmem:[#allocation2 + $0x620] sm:$0xff] %vm361_vm0, %v9090_v0  ;;  %559 = vst.msk [vmem:[#allocation2 + $0x628] sm:$0xff] %vm361_vm0, %v9090_v0 }
  0x66   : > { %560 = vst.msk [vmem:[#allocation2 + $0x630] sm:$0xff] %vm361_vm0, %v9090_v0  ;;  %561 = vst.msk [vmem:[#allocation2 + $0x638] sm:$0xff] %vm361_vm0, %v9090_v0 }
  0x67   : > { %562 = vst.msk [vmem:[#allocation2 + $0x640] sm:$0xff] %vm361_vm0, %v9090_v0  ;;  %563 = vst.msk [vmem:[#allocation2 + $0x648] sm:$0xff] %vm361_vm0, %v9090_v0 }
  0x68   : > { %564 = vst.msk [vmem:[#allocation2 + $0x650] sm:$0xff] %vm361_vm0, %v9090_v0  ;;  %565 = vst.msk [vmem:[#allocation2 + $0x658] sm:$0xff] %vm361_vm0, %v9090_v0 }
  0x69   : > { %566 = vst.msk [vmem:[#allocation2 + $0x660] sm:$0xff] %vm361_vm0, %v9090_v0  ;;  %567 = vst.msk [vmem:[#allocation2 + $0x668] sm:$0xff] %vm361_vm0, %v9090_v0 }
  0x6a   : > { %568 = vst.msk [vmem:[#allocation2 + $0x670] sm:$0xff] %vm361_vm0, %v9090_v0  ;;  %569 = vst.msk [vmem:[#allocation2 + $0x678] sm:$0xff] %vm361_vm0, %v9090_v0 }
  0x6b   : > { %570 = vst.msk [vmem:[#allocation2 + $0x680] sm:$0xff] %vm361_vm0, %v9090_v0  ;;  %571 = vst.msk [vmem:[#allocation2 + $0x688] sm:$0xff] %vm361_vm0, %v9090_v0 }
  0x6c   : > { %572 = vst.msk [vmem:[#allocation2 + $0x690] sm:$0xff] %vm361_vm0, %v9090_v0  ;;  %573 = vst.msk [vmem:[#allocation2 + $0x698] sm:$0xff] %vm361_vm0, %v9090_v0 }
  0x6d   : > { %574 = vst.msk [vmem:[#allocation2 + $0x6a0] sm:$0xff] %vm361_vm0, %v9090_v0  ;;  %575 = vst.msk [vmem:[#allocation2 + $0x6a8] sm:$0xff] %vm361_vm0, %v9090_v0 }
  0x6e   : > { %576 = vst.msk [vmem:[#allocation2 + $0x6b0] sm:$0xff] %vm361_vm0, %v9090_v0  ;;  %577 = vst.msk [vmem:[#allocation2 + $0x6b8] sm:$0xff] %vm361_vm0, %v9090_v0 }
  0x6f   : > { %578 = vst.msk [vmem:[#allocation2 + $0x6c0] sm:$0xff] %vm361_vm0, %v9090_v0  ;;  %579 = vst.msk [vmem:[#allocation2 + $0x6c8] sm:$0xff] %vm361_vm0, %v9090_v0 }
  0x70   : > { %580 = vst.msk [vmem:[#allocation2 + $0x6d0] sm:$0xff] %vm361_vm0, %v9090_v0  ;;  %581 = vst.msk [vmem:[#allocation2 + $0x6d8] sm:$0xff] %vm361_vm0, %v9090_v0 }
  0x71   : > { %582 = vst.msk [vmem:[#allocation2 + $0x6e0] sm:$0xff] %vm361_vm0, %v9090_v0  ;;  %583 = vst.msk [vmem:[#allocation2 + $0x6e8] sm:$0xff] %vm361_vm0, %v9090_v0 }
  0x72   : > { %584 = vst.msk [vmem:[#allocation2 + $0x6f0] sm:$0xff] %vm361_vm0, %v9090_v0  ;;  %585 = vst.msk [vmem:[#allocation2 + $0x6f8] sm:$0xff] %vm361_vm0, %v9090_v0 }
  0x73   : > { %586 = vst.msk [vmem:[#allocation2 + $0x700] sm:$0xff] %vm361_vm0, %v9090_v0  ;;  %587 = vst.msk [vmem:[#allocation2 + $0x708] sm:$0xff] %vm361_vm0, %v9090_v0 }
  0x74   : > { %588 = vst.msk [vmem:[#allocation2 + $0x710] sm:$0xff] %vm361_vm0, %v9090_v0  ;;  %589 = vst.msk [vmem:[#allocation2 + $0x718] sm:$0xff] %vm361_vm0, %v9090_v0 }
  0x75   : > { %590 = vst.msk [vmem:[#allocation2 + $0x720] sm:$0xff] %vm361_vm0, %v9090_v0  ;;  %591 = vst.msk [vmem:[#allocation2 + $0x728] sm:$0xff] %vm361_vm0, %v9090_v0 }
  0x76   : > { %592 = vst.msk [vmem:[#allocation2 + $0x730] sm:$0xff] %vm361_vm0, %v9090_v0  ;;  %593 = vst.msk [vmem:[#allocation2 + $0x738] sm:$0xff] %vm361_vm0, %v9090_v0  ;;  %v1536_v0 = vrot.slane %v9649_v41, 3 }
  0x77   : > { %718 = vst.msk [vmem:[#allocation2 + $0x310] sm:$0xf] %vm717_vm2, %v682_v27  ;;  %720 = vst.msk [vmem:[#allocation2 + $0x330] sm:$0xf] %vm717_vm2, %v683_v32 }
  0x78   : > { %716 = vst.msk [vmem:[#allocation2 + $0x308] sm:$0xf0] %vm715_vm3, %v682_v27  ;;  %719 = vst.msk [vmem:[#allocation2 + $0x328] sm:$0xf0] %vm715_vm3, %v683_v32  ;;  %v1538_v3 = vsel %vm1523_vm1, %v1536_v0, %v1537_v63  ;;  %v9831_v63 = vld [vmem:[%s9599_s16 + $0xd8] sm:$0xff] }
  0x79   : > { %722 = vst.msk [vmem:[#allocation2 + $0x350] sm:$0xf] %vm717_vm2, %v684_v33  ;;  %724 = vst.msk [vmem:[#allocation2 + $0x370] sm:$0xf] %vm717_vm2, %v685_v47  ;;  %1588 = vrot.lane.b32.xlu0 %v1538_v3, %s9091_s17  ;;  %v663_v5 = vpack.c.bf16 %v9831_v63, %v9822_v62 }
  0x7a   : > { %721 = vst.msk [vmem:[#allocation2 + $0x348] sm:$0xf0] %vm715_vm3, %v684_v33  ;;  %723 = vst.msk [vmem:[#allocation2 + $0x368] sm:$0xf0] %vm715_vm3, %v685_v47  ;;  %v9751_v33 = vld [vmem:[%s9599_s16 + $0xa0] sm:$0xff]  ;;  %v661_v47 = vpack.c.bf16 %v9773_v43, %v9770_v42 }
  0x7b   : > { %726 = vst.msk [vmem:[#allocation2 + $0x390] sm:$0xf] %vm717_vm2, %v686_v53  ;;  %728 = vst.msk [vmem:[#allocation2 + $0x3b0] sm:$0xf] %vm717_vm2, %v687_v54  ;;  %v660_v37 = vpack.c.bf16 %v9754_v34, %v9751_v33 }
  0x7c   : > { %725 = vst.msk [vmem:[#allocation2 + $0x388] sm:$0xf0] %vm715_vm3, %v686_v53  ;;  %727 = vst.msk [vmem:[#allocation2 + $0x3a8] sm:$0xf0] %vm715_vm3, %v687_v54  ;;  %v693_v50 = vrot.slane %v661_v47, 4  ;;  %v9796_v53 = vld [vmem:[%s9599_s16 + $0xc0] sm:$0xff] }
  0x7d   : > { %730 = vst.msk [vmem:[#allocation2 + $0x3d0] sm:$0xf] %vm717_vm2, %v688_v57  ;;  %732 = vst.msk [vmem:[#allocation2 + $0x3f0] sm:$0xf] %vm717_vm2, %v689_v58  ;;  %1592 = vrot.lane.b32.xlu0 %v1541_v11, %s9091_s17  ;;  %v692_v39 = vrot.slane %v660_v37, 4  ;;  %v9799_v54 = vld [vmem:[%s9599_s16 + $0xc8] sm:$0xff] }
  0x7e   : > { %729 = vst.msk [vmem:[#allocation2 + $0x3c8] sm:$0xf0] %vm715_vm3, %v688_v57  ;;  %731 = vst.msk [vmem:[#allocation2 + $0x3e8] sm:$0xf0] %vm715_vm3, %v689_v58  ;;  %v9700_v6 = vld [vmem:[#allocation2 + $0x310] sm:$0xff]  ;;  %v662_v55 = vpack.c.bf16 %v9799_v54, %v9796_v53 }
  0x7f   : > { %734 = vst.msk [vmem:[#allocation2 + $0x410] sm:$0xf] %vm717_vm2, %v690_v59  ;;  %736 = vst.msk [vmem:[#allocation2 + $0x430] sm:$0xf] %vm717_vm2, %v691_v60  ;;  %v9702_v10 = vld [vmem:[#allocation2 + $0x308] sm:$0xff]  ;;  %v9708_v14 = vrot.slane %v9700_v6, 3 }
  0x80   : > { %733 = vst.msk [vmem:[#allocation2 + $0x408] sm:$0xf0] %vm715_vm3, %v690_v59  ;;  %735 = vst.msk [vmem:[#allocation2 + $0x428] sm:$0xf0] %vm715_vm3, %v691_v60  ;;  %v1542_v15 = vrot.slane %v9702_v10, 3  ;;  %v9711_v16 = vld [vmem:[#allocation2 + $0x330] sm:$0xff] }
  0x81   : > { %15516 = vst [vmem:[#allocation4_spill] sm:$0xff] %v9702_v10  ;;  %v9713_v17 = vld [vmem:[#allocation2 + $0x328] sm:$0xff]  ;;  %v9722_v22 = vrot.slane %v9711_v16, 3  ;;  %v9725_v24 = vld [vmem:[#allocation2 + $0x350] sm:$0xff]  ;;  %1598 = vrot.lane.b32.xlu1 %v9708_v14, %s9091_s17  ;;  %738 = vst.msk [vmem:[#allocation2 + $0x450] sm:$0xf] %vm717_vm2, %v692_v39 }
  0x82   : > { %15517 = vst [vmem:[#allocation5_spill] sm:$0xff] %v9713_v17  ;;  %v9719_v18 = vsel %vm1523_vm1, %v1542_v15, %v9708_v14  ;;  %v1545_v23 = vrot.slane %v9713_v17, 3  ;;  %v9727_v25 = vld [vmem:[#allocation2 + $0x348] sm:$0xff]  ;;  %v9733_v26 = vld [vmem:[#allocation2 + $0x370] sm:$0xff]  ;;  %v9740_v28 = vrot.slane %v9725_v24, 3  ;;  %v694_v61 = vrot.slane %v662_v55, 4 }
  0x83   : > { %15518 = vst [vmem:[#allocation6_spill] sm:$0xff] %v9727_v25  ;;  %1596 = vrot.lane.b32.xlu0 %v9719_v18, %s9091_s17  ;;  %v1548_v29 = vrot.slane %v9727_v25, 3  ;;  %v9743_v30 = vld [vmem:[#allocation2 + $0x368] sm:$0xff]  ;;  %v9746_v31 = vrot.slane %v9733_v26, 3  ;;  %v9748_v32 = vld [vmem:[#allocation2 + $0x390] sm:$0xff] }
  0x84   : > { %v9737_v27 = vsel %vm1523_vm1, %v1545_v23, %v9722_v22  ;;  %15519 = vst [vmem:[#allocation7_spill] sm:$0xff] %v9743_v30  ;;  %v1551_v35 = vrot.slane %v9743_v30, 3  ;;  %v9761_v36 = vld [vmem:[#allocation2 + $0x388] sm:$0xff]  ;;  %v9780_v44 = vrot.slane %v9748_v32, 3  ;;  %v9783_v46 = vld [vmem:[#allocation2 + $0x3b0] sm:$0xff]  ;;  %v695_v23 = vrot.slane %v663_v5, 4 }
  0x85   : > { %1602 = vrot.lane.b32.xlu1 %v9722_v22, %s9091_s17  ;;  %15520 = vst [vmem:[#allocation8_spill] sm:$0xff] %v9761_v36  ;;  %v9767_v38 = vsel %vm1523_vm1, %v1548_v29, %v9740_v28  ;;  %v1554_v45 = vrot.slane %v9761_v36, 3  ;;  %737 = vst.msk [vmem:[#allocation2 + $0x448] sm:$0xf0] %vm715_vm3, %v692_v39  ;;  %v9793_v49 = vld [vmem:[#allocation2 + $0x3a8] sm:$0xff]  ;;  %v9814_v57 = vrot.slane %v9783_v46, 3 }
  0x86   : > { %v9791_v48 = vsel %vm1523_vm1, %v1551_v35, %v9746_v31  ;;  %15521 = vst [vmem:[#allocation9_spill] sm:$0xff] %v9793_v49  ;;  %740 = vst.msk [vmem:[#allocation2 + $0x470] sm:$0xf] %vm717_vm2, %v693_v50  ;;  %v1557_v58 = vrot.slane %v9793_v49, 3  ;;  %v9817_v59 = vld [vmem:[#allocation2 + $0x3d0] sm:$0xff]  ;;  %v9819_v60 = vld [vmem:[#allocation2 + $0x3c8] sm:$0xff] }
  0x87   : > { %1600 = vrot.lane.b32.xlu0 %v9737_v27, %s9091_s17  ;;  %739 = vst.msk [vmem:[#allocation2 + $0x468] sm:$0xf0] %vm715_vm3, %v693_v50  ;;  %v9811_v56 = vsel %vm1523_vm1, %v1554_v45, %v9780_v44  ;;  %15523 = vst [vmem:[#allocation11_spill] sm:$0xff] %v9814_v57  ;;  %v9838_v3 = vrot.slane %v9817_v59, 3  ;;  %v1560_v4 = vrot.slane %v9819_v60, 3  ;;  %v9843_v11 = vld [vmem:[#allocation2 + $0x3f0] sm:$0xff] }
  0x88   : > { %15522 = vst [vmem:[#allocation10_spill] sm:$0xff] %v9811_v56  ;;  %15524 = vst [vmem:[#allocation12_spill] sm:$0xff] %v9819_v60  ;;  %v9835_v0 = vsel %vm1523_vm1, %v1557_v58, %v9814_v57  ;;  %v9845_v15 = vld [vmem:[#allocation2 + $0x3e8] sm:$0xff]  ;;  %v9848_v29 = vld [vmem:[%s9599_s16 + $0xe0] sm:$0xff]  ;;  %v9862_v39 = vrot.slane %v9843_v11, 3 }
  0x89   : > { %1606 = vrot.lane.b32.xlu1 %v9740_v28, %s9091_s17  ;;  %742 = vst.msk [vmem:[#allocation2 + $0x490] sm:$0xf] %vm717_vm2, %v694_v61  ;;  %15525 = vst [vmem:[#allocation13_spill] sm:$0xff] %v9835_v0  ;;  %v9855_v35 = vld [vmem:[%s9599_s16 + $0xe8] sm:$0xff]  ;;  %v9859_v37 = vsel %vm1523_vm1, %v1560_v4, %v9838_v3  ;;  %v1563_v45 = vrot.slane %v9845_v15, 3  ;;  %v9869_v50 = vld [vmem:[#allocation2 + $0x410] sm:$0xff] }
  0x8a   : > { %741 = vst.msk [vmem:[#allocation2 + $0x488] sm:$0xf0] %vm715_vm3, %v694_v61  ;;  %15526 = vst [vmem:[#allocation14_spill] sm:$0xff] %v9838_v3  ;;  %v664_v47 = vpack.c.bf16 %v9855_v35, %v9848_v29  ;;  %v9871_v55 = vld [vmem:[#allocation2 + $0x408] sm:$0xff]  ;;  %v9874_v61 = vld [vmem:[%s9599_s16 + $0xf0] sm:$0xff] }
  0x8b   : > { %1604 = vrot.lane.b32.xlu0 %v9767_v38, %s9091_s17  ;;  %15527 = vst [vmem:[#allocation15_spill] sm:$0xff] %v9845_v15  ;;  %15528 = vst [vmem:[#allocation16_spill] sm:$0xff] %v9859_v37  ;;  %v9881_v4 = vld [vmem:[%s9599_s16 + $0xf8] sm:$0xff]  ;;  %v9885_v5 = vsel %vm1523_vm1, %v1563_v45, %v9862_v39 }
  0x8c   : > { %744 = vst.msk [vmem:[#allocation2 + $0x4b0] sm:$0xf] %vm717_vm2, %v695_v23  ;;  %15529 = vst [vmem:[#allocation17_spill] sm:$0xff] %v9871_v55  ;;  %v696_v58 = vrot.slane %v664_v47, 4  ;;  %v665_v47 = vpack.c.bf16 %v9881_v4, %v9874_v61 }
  0x8d   : > { %1610 = vrot.lane.b32.xlu1 %v9746_v31, %s9091_s17  ;;  %743 = vst.msk [vmem:[#allocation2 + $0x4a8] sm:$0xf0] %vm715_vm3, %v695_v23  ;;  %15530 = vst [vmem:[#allocation18_spill] sm:$0xff] %v9885_v5  ;;  %v9888_v23 = vrot.slane %v9869_v50, 3 }
  0x8e   : > { %746 = vst.msk [vmem:[#allocation2 + $0x4d0] sm:$0xf] %vm717_vm2, %v696_v58 }
  0x8f   : > { %1608 = vrot.lane.b32.xlu0 %v9791_v48, %s9091_s17  ;;  %15531 = vst [vmem:[#allocation19_spill] sm:$0xff] %v9888_v23  ;;  %745 = vst.msk [vmem:[#allocation2 + $0x4c8] sm:$0xf0] %vm715_vm3, %v696_v58 }
  0x91   : > { %1614 = vrot.lane.b32.xlu1 %v9780_v44, %s9091_s17 }
  0x93   : > { %1612 = vrot.lane.b32.xlu0 %v9811_v56, %s9091_s17 }
  0x95   : > { %1618 = vrot.lane.b32.xlu1 %v9814_v57, %s9091_s17  ;;  %v697_v57 = vrot.slane %v665_v47, 4 }
  0x97   : > { %1616 = vrot.lane.b32.xlu0 %v9835_v0, %s9091_s17  ;;  %v1566_v0 = vrot.slane %v9871_v55, 3  ;;  %748 = vst.msk [vmem:[#allocation2 + $0x4f0] sm:$0xf] %vm717_vm2, %v697_v57  ;;  %vm3013_vm2 = vcmask 293888  }
  0x98   : > { %747 = vst.msk [vmem:[#allocation2 + $0x4e8] sm:$0xf0] %vm715_vm3, %v697_v57  ;;  %vm1015_vm3 = vcmask 516096  }
  0x99   : > { %1622 = vrot.lane.b32.xlu1 %v9838_v3, %s9091_s17  ;;  %v9895_v3 = vld [vmem:[#allocation2 + $0x430] sm:$0xff]  ;;  %v9905_v45 = vsel %vm1523_vm1, %v1566_v0, %v9888_v23  ;;  %v1638_v0 = vrot.slane %v9609_v8, 6 }
  0x9a   : > { %15533 = vst [vmem:[#allocation21_spill] sm:$0xff] %v9905_v45  ;;  %v9908_v58 = vrot.slane %v9895_v3, 3 }
  0x9b   : > { %1620 = vrot.lane.b32.xlu0 %v9859_v37, %s9091_s17  ;;  %v9897_v37 = vld [vmem:[#allocation2 + $0x428] sm:$0xff] }
  0x9c   : > { %15532 = vst [vmem:[#allocation20_spill] sm:$0xff] %v9897_v37  ;;  %v1569_v56 = vrot.slane %v9897_v37, 3 }
  0x9d   : > { %1626 = vrot.lane.b32.xlu1 %v9862_v39, %s9091_s17 }
  0x9e   : > { %v9919_v47 = vsel %vm1523_vm1, %v1569_v56, %v9908_v58  ;;  %v1643_v56 = vrot.slane %v9617_v13, 6  ;;  %v1650_v13 = vrot.slane %v9647_v40, 6 }
  0x9f   : > { %1624 = vrot.lane.b32.xlu0 %v9885_v5, %s9091_s17  ;;  %v1637_v5 = vrot.slane %v9615_v12, 6  ;;  %v1644_v12 = vrot.slane %v9611_v9, 6 }
  0xa1   : > { %1630 = vrot.lane.b32.xlu1 %v9888_v23, %s9091_s17  ;;  %v1639_v57 = vsel %vm1222_vm4, %v1637_v5, %v1638_v0  ;;  %v1641_v23 = vrot.slane %v9607_v7, 6  ;;  %v1645_v5 = vsel %vm1222_vm4, %v1643_v56, %v1644_v12  ;;  %v1647_v7 = vrot.slane %v9625_v19, 6 }
  0xa3   : > { %1628 = vrot.lane.b32.xlu0 %v9905_v45, %s9091_s17  ;;  %v1640_v45 = vrot.slane %v9627_v20, 6  ;;  %v1646_v20 = vrot.slane %v9629_v21, 6  ;;  %v1653_v21 = vrot.slane %v9687_v1, 6 }
  0xa5   : > { %1634 = vrot.lane.b32.xlu1 %v9908_v58, %s9091_s17  ;;  %v1642_v8 = vsel %vm1222_vm4, %v1640_v45, %v1641_v23  ;;  %v1648_v9 = vsel %vm1222_vm4, %v1646_v20, %v1647_v7  ;;  %v1652_v45 = vrot.slane %v9689_v2, 6  ;;  %v751_v2 = vld [vmem:[%s9599_s16 + $0x10] sm:$0xff]  ;;  %v9972_v20 = vrot.slane %v9711_v16, 6 }
  0xa7   : > { %1632 = vrot.lane.b32.xlu0 %v9919_v47, %s9091_s17  ;;  %v1654_v40 = vsel %vm1222_vm4, %v1652_v45, %v1653_v21 }
  0xa9   : > { %1687 = vrot.lane.b32.xlu1 %v1638_v0, %s9092_s18  ;;  %v9954_v0 = vrot.slane %v9700_v6, 6 }
  0xab   : > { %1685 = vrot.lane.b32.xlu0 %v1639_v57, %s9092_s18  ;;  %v749_v57 = vld [vmem:[%s9599_s16] sm:$0xff] }
  0xad   : > { %1691 = vrot.lane.b32.xlu1 %v1641_v23, %s9092_s18  ;;  %v1649_v23 = vrot.slane %v9649_v41, 6  ;;  %v15365_v41 = vrot.slane %v9702_v10, 6 }
  0xaf   : > { %1689 = vrot.lane.b32.xlu0 %v1642_v8, %s9092_s18  ;;  %v1651_v19 = vsel %vm1222_vm4, %v1649_v23, %v1650_v13  ;;  %v750_v8 = vld [vmem:[%s9599_s16 + $0x8] sm:$0xff] }
  0xb0   : > { %v782_v1 = vsel %vm361_vm0, %v750_v8, 0.0  ;;  %v9990_v8 = vrot.slane %v9725_v24, 6 }
  0xb1   : > { %1695 = vrot.lane.b32.xlu1 %v1644_v12, %s9092_s18  ;;  %v781_v12 = vsel %vm361_vm0, %v749_v57, 0.0 }
  0xb2   : > { %v783_v56 = vadd.f32 %v782_v1, %v781_v12  ;;  %v15364_v12 = vrot.slane %v9727_v25, 6  ;;  %v754_v1 = vld [vmem:[%s9599_s16 + $0x28] sm:$0xff] }
  0xb3   : > { %1693 = vrot.lane.b32.xlu0 %v1645_v5, %s9092_s18  ;;  %v784_v5 = vsel %vm361_vm0, %v751_v2, 0.0 }
  0xb4   : > { %v785_v23 = vadd.f32 %v784_v5, %v783_v56  ;;  %v790_v56 = vsel %vm361_vm0, %v754_v1, 0.0  ;;  %v755_v5 = vld [vmem:[%s9599_s16 + $0x30] sm:$0xff] }
  0xb5   : > { %1699 = vrot.lane.b32.xlu1 %v1647_v7, %s9092_s18  ;;  %v9969_v7 = vsel %vm1222_vm4, %v15365_v41, %v9954_v0  ;;  %v759_v41 = vld [vmem:[%s9599_s16 + $0x50] sm:$0xff] }
  0xb6   : > { %15534 = vst [vmem:[#allocation22_spill] sm:$0xff] %v9969_v7 }
  0xb7   : > { %1697 = vrot.lane.b32.xlu0 %v1648_v9, %s9092_s18  ;;  %v15363_v9 = vrot.slane %v9713_v17, 6 }
  0xb9   : > { %1703 = vrot.lane.b32.xlu1 %v1650_v13, %s9092_s18  ;;  %v752_v13 = vld [vmem:[%s9599_s16 + $0x18] sm:$0xff]  ;;  %v9987_v57 = vsel %vm1222_vm4, %v15363_v9, %v9972_v20 }
  0xba   : > { %15535 = vst [vmem:[#allocation23_spill] sm:$0xff] %v9987_v57 }
  0xbb   : > { %1701 = vrot.lane.b32.xlu0 %v1651_v19, %s9092_s18  ;;  %v786_v19 = vsel %vm361_vm0, %v752_v13, 0.0 }
  0xbc   : > { %v787_v45 = vadd.f32 %v786_v19, %v785_v23  ;;  %v792_v23 = vsel %vm361_vm0, %v755_v5, 0.0  ;;  %v10005_v19 = vsel %vm1222_vm4, %v15364_v12, %v9990_v8 }
  0xbd   : > { %1707 = vrot.lane.b32.xlu1 %v1653_v21, %s9092_s18  ;;  %v753_v21 = vld [vmem:[%s9599_s16 + $0x20] sm:$0xff]  ;;  %15536 = vst [vmem:[#allocation24_spill] sm:$0xff] %v10005_v19 }
  0xbf   : > { %1705 = vrot.lane.b32.xlu0 %v1654_v40, %s9092_s18  ;;  %v788_v40 = vsel %vm361_vm0, %v753_v21, 0.0  ;;  %v10008_v21 = vrot.slane %v9733_v26, 6 }
  0xc0   : > { %v789_v2 = vadd.f32 %v788_v40, %v787_v45  ;;  %v15368_v45 = vrot.slane %v9743_v30, 6  ;;  %v756_v40 = vld [vmem:[%s9599_s16 + $0x38] sm:$0xff] }
  0xc1   : > { %1711 = vrot.lane.b32.xlu1 %v9954_v0, %s9092_s18  ;;  %15537 = vst [vmem:[#allocation25_spill] sm:$0xff] %v10008_v21 }
  0xc2   : > { %v791_v13 = vadd.f32 %v790_v56, %v789_v2  ;;  %v794_v2 = vsel %vm361_vm0, %v756_v40, 0.0  ;;  %v757_v56 = vld [vmem:[%s9599_s16 + $0x40] sm:$0xff]  ;;  %v10023_v12 = vsel %vm1222_vm4, %v15368_v45, %v10008_v21  ;;  %v758_v40 = vld [vmem:[%s9599_s16 + $0x48] sm:$0xff] }
  0xc3   : > { %1709 = vrot.lane.b32.xlu0 %v9969_v7, %s9092_s18  ;;  %v796_v5 = vsel %vm361_vm0, %v757_v56, 0.0  ;;  %15538 = vst [vmem:[#allocation26_spill] sm:$0xff] %v10023_v12  ;;  %v800_v56 = vsel %vm361_vm0, %v759_v41, 0.0 }
  0xc4   : > { %v793_v1 = vadd.f32 %v792_v23, %v791_v13  ;;  %v10026_v13 = vrot.slane %v9748_v32, 6  ;;  %v15372_v23 = vrot.slane %v9761_v36, 6 }
  0xc5   : > { %1715 = vrot.lane.b32.xlu1 %v9972_v20, %s9092_s18 }
  0xc6   : > { %v795_v9 = vadd.f32 %v794_v2, %v793_v1  ;;  %15539 = vst [vmem:[#allocation27_spill] sm:$0xff] %v10026_v13  ;;  %v798_v2 = vsel %vm361_vm0, %v758_v40, 0.0  ;;  %v10041_v45 = vsel %vm1222_vm4, %v15372_v23, %v10026_v13  ;;  %v760_v40 = vld [vmem:[%s9599_s16 + $0x58] sm:$0xff] }
  0xc7   : > { %1713 = vrot.lane.b32.xlu0 %v9987_v57, %s9092_s18  ;;  %15540 = vst [vmem:[#allocation28_spill] sm:$0xff] %v10041_v45 }
  0xc8   : > { %v797_v1 = vadd.f32 %v796_v5, %v795_v9  ;;  %v10044_v9 = vrot.slane %v9783_v46, 6  ;;  %v15376_v5 = vrot.slane %v9793_v49, 6 }
  0xc9   : > { %1719 = vrot.lane.b32.xlu1 %v9990_v8, %s9092_s18 }
  0xca   : > { %15541 = vst [vmem:[#allocation29_spill] sm:$0xff] %v10044_v9  ;;  %v10059_v23 = vsel %vm1222_vm4, %v15376_v5, %v10044_v9 }
  0xcb   : > { %1717 = vrot.lane.b32.xlu0 %v10005_v19, %s9092_s18  ;;  %v799_v19 = vadd.f32 %v798_v2, %v797_v1  ;;  %v802_v2 = vsel %vm361_vm0, %v760_v40, 0.0  ;;  %15542 = vst [vmem:[#allocation30_spill] sm:$0xff] %v10059_v23  ;;  %v762_v40 = vld [vmem:[%s9599_s16 + $0x68] sm:$0xff] }
  0xcd   : > { %1723 = vrot.lane.b32.xlu1 %v10008_v21, %s9092_s18  ;;  %v801_v1 = vadd.f32 %v800_v56, %v799_v19  ;;  %v10062_v19 = vrot.slane %v9817_v59, 6  ;;  %v15380_v56 = vrot.slane %v9819_v60, 6 }
  0xcf   : > { %1721 = vrot.lane.b32.xlu0 %v10023_v12, %s9092_s18  ;;  %v761_v12 = vld [vmem:[%s9599_s16 + $0x60] sm:$0xff]  ;;  %v803_v21 = vadd.f32 %v802_v2, %v801_v1  ;;  %15543 = vst [vmem:[#allocation31_spill] sm:$0xff] %v10062_v19  ;;  %v806_v2 = vsel %vm361_vm0, %v762_v40, 0.0  ;;  %v10077_v5 = vsel %vm1222_vm4, %v15380_v56, %v10062_v19  ;;  %v764_v40 = vld [vmem:[%s9599_s16 + $0x78] sm:$0xff] }
  0xd0   : > { %v804_v41 = vsel %vm361_vm0, %v761_v12, 0.0  ;;  %15544 = vst [vmem:[#allocation32_spill] sm:$0xff] %v10077_v5 }
  0xd1   : > { %1727 = vrot.lane.b32.xlu1 %v10026_v13, %s9092_s18  ;;  %v805_v1 = vadd.f32 %v804_v41, %v803_v21  ;;  %v10080_v21 = vrot.slane %v9843_v11, 6  ;;  %v15384_v41 = vrot.slane %v9845_v15, 6 }
  0xd3   : > { %1725 = vrot.lane.b32.xlu0 %v10041_v45, %s9092_s18  ;;  %v763_v45 = vld [vmem:[%s9599_s16 + $0x70] sm:$0xff]  ;;  %v807_v13 = vadd.f32 %v806_v2, %v805_v1  ;;  %v810_v2 = vsel %vm361_vm0, %v764_v40, 0.0  ;;  %v10095_v56 = vsel %vm1222_vm4, %v15384_v41, %v10080_v21  ;;  %v766_v40 = vld [vmem:[%s9599_s16 + $0x88] sm:$0xff]  ;;  %v816_v41 = vsel %vm361_vm0, %v9662_v51, 0.0 }
  0xd4   : > { %v808_v12 = vsel %vm361_vm0, %v763_v45, 0.0  ;;  %15545 = vst [vmem:[#allocation33_spill] sm:$0xff] %v10095_v56 }
  0xd5   : > { %1731 = vrot.lane.b32.xlu1 %v10044_v9, %s9092_s18  ;;  %v809_v1 = vadd.f32 %v808_v12, %v807_v13  ;;  %v765_v9 = vld [vmem:[%s9599_s16 + $0x80] sm:$0xff]  ;;  %v10098_v13 = vrot.slane %v9869_v50, 6  ;;  %v15385_v12 = vrot.slane %v9871_v55, 6 }
  0xd6   : > { %v812_v45 = vsel %vm361_vm0, %v765_v9, 0.0 }
  0xd7   : > { %1729 = vrot.lane.b32.xlu0 %v10059_v23, %s9092_s18  ;;  %v811_v23 = vadd.f32 %v810_v2, %v809_v1  ;;  %v10102_v2 = vpop.permute.xlu1 %1578 }
  0xd8   : > { %15546 = vst [vmem:[#allocation34_spill] sm:$0xff] %v10102_v2  ;;  %v818_v2 = vsel %vm361_vm0, %v9665_v52, 0.0 }
  0xd9   : > { %1735 = vrot.lane.b32.xlu1 %v10062_v19, %s9092_s18  ;;  %v813_v1 = vadd.f32 %v812_v45, %v811_v23  ;;  %v10104_v19 = vpop.permute.xlu0 %1574  ;;  %v10117_v23 = vsel %vm1222_vm4, %v15385_v12, %v10098_v13  ;;  %v10120_v45 = vrot.slane %v9895_v3, 6  ;;  %v820_v12 = vsel %vm361_vm0, %v9751_v33, 0.0 }
  0xda   : > { %15547 = vst [vmem:[#allocation35_spill] sm:$0xff] %v10104_v19  ;;  %15548 = vst [vmem:[#allocation36_spill] sm:$0xff] %v10117_v23  ;;  %v824_v33 = vsel %vm361_vm0, %v9770_v42, 0.0 }
  0xdb   : > { %1733 = vrot.lane.b32.xlu0 %v10077_v5, %s9092_s18  ;;  %v814_v5 = vsel %vm361_vm0, %v766_v40, 0.0 }
  0xdc   : > { %v815_v9 = vadd.f32 %v814_v5, %v813_v1  ;;  %v15386_v5 = vrot.slane %v9897_v37, 6  ;;  %v10123_v1 = vpop.permute.xlu1 %1582 }
  0xdd   : > { %1739 = vrot.lane.b32.xlu1 %v10080_v21, %s9092_s18  ;;  %15549 = vst [vmem:[#allocation37_spill] sm:$0xff] %v10123_v1  ;;  %v10125_v19 = vpop.permute.xlu0 %1572 }
  0xde   : > { %v817_v40 = vadd.f32 %v816_v41, %v815_v9  ;;  %15550 = vst [vmem:[#allocation38_spill] sm:$0xff] %v10125_v19  ;;  %v10139_v41 = vsel %vm1222_vm4, %v15386_v5, %v10120_v45 }
  0xdf   : > { %1737 = vrot.lane.b32.xlu0 %v10095_v56, %s9092_s18  ;;  %15551 = vst [vmem:[#allocation39_spill] sm:$0xff] %v10139_v41 }
  0xe0   : > { %v819_v51 = vadd.f32 %v818_v2, %v817_v40  ;;  %v10141_v19 = vpop.permute.xlu1 %1586  ;;  %v822_v2 = vsel %vm361_vm0, %v9754_v34, 0.0  ;;  %v828_v34 = vsel %vm361_vm0, %v9796_v53, 0.0 }
  0xe1   : > { %1743 = vrot.lane.b32.xlu1 %v10098_v13, %s9092_s18  ;;  %v10143_v52 = vpop.permute.xlu0 %1580 }
  0xe2   : > { %v821_v9 = vadd.f32 %v820_v12, %v819_v51  ;;  %15552 = vst [vmem:[#allocation40_spill] sm:$0xff] %v10143_v52  ;;  %v826_v51 = vsel %vm361_vm0, %v9773_v43, 0.0 }
  0xe3   : > { %1741 = vrot.lane.b32.xlu0 %v10117_v23, %s9092_s18 }
  0xe4   : > { %v823_v40 = vadd.f32 %v822_v2, %v821_v9  ;;  %v10153_v1 = vpop.permute.xlu1 %1576 }
  0xe5   : > { %1747 = vrot.lane.b32.xlu1 %v10120_v45, %s9092_s18  ;;  %v10155_v12 = vpop.permute.xlu0 %1584 }
  0xe6   : > { %v825_v5 = vadd.f32 %v824_v33, %v823_v40  ;;  %v830_v40 = vsel %vm361_vm0, %v9799_v54, 0.0  ;;  %v834_v33 = vsel %vm361_vm0, %v9831_v63, 0.0 }
  0xe7   : > { %1745 = vrot.lane.b32.xlu0 %v10139_v41, %s9092_s18 }
  0xe8   : > { %v827_v52 = vadd.f32 %v826_v51, %v825_v5  ;;  %v10165_v9 = vpop.permute.xlu1 %1590 }
  0xe9   : > { %1751 = vrot.lane.b32.xlu1 %v9700_v6, %s9093_s19  ;;  %v832_v6 = vsel %vm361_vm0, %v9822_v62, 0.0 }
  0xea   : > { %v829_v42 = vadd.f32 %v828_v34, %v827_v52 }
  0xeb   : > { %1749 = vrot.lane.b32.xlu0 %v9702_v10, %s9093_s19  ;;  %v10167_v2 = vpop.permute.xlu0 %1588 }
  0xec   : > { %v831_v43 = vadd.f32 %v830_v40, %v829_v42  ;;  %v10177_v53 = vpop.permute.xlu1 %1594  ;;  %v838_v42 = vsel %vm361_vm0, %v9855_v35, 0.0 }
  0xed   : > { %1755 = vrot.lane.b32.xlu1 %v9711_v16, %s9093_s19  ;;  %v836_v16 = vsel %vm361_vm0, %v9848_v29, 0.0 }
  0xee   : > { %v833_v5 = vadd.f32 %v832_v6, %v831_v43  ;;  %v842_v6 = vsel %vm361_vm0, %v9881_v4, 0.0 }
  0xef   : > { %1753 = vrot.lane.b32.xlu0 %v9713_v17, %s9093_s19  ;;  %v10179_v52 = vpop.permute.xlu0 %1592 }
  0xf0   : > { %15553 = vst [vmem:[#allocation41_spill] sm:$0xff] %v10179_v52  ;;  %v835_v51 = vadd.f32 %v834_v33, %v833_v5 }
  0xf1   : > { %1759 = vrot.lane.b32.xlu1 %v9725_v24, %s9093_s19  ;;  %v840_v24 = vsel %vm361_vm0, %v9874_v61, 0.0 }
  0xf2   : > { %v837_v54 = vadd.f32 %v836_v16, %v835_v51 }
  0xf3   : > { %1757 = vrot.lane.b32.xlu0 %v9727_v25, %s9093_s19  ;;  %v10189_v62 = vpop.permute.xlu1 %1598  ;;  %v10306_v25 = vld [vmem:[#allocation2 + $0x4c8] sm:$0xff] }
  0xf4   : > { %15554 = vst [vmem:[#allocation42_spill] sm:$0xff] %v10189_v62  ;;  %v839_v40 = vadd.f32 %v838_v42, %v837_v54  ;;  %15580 = vst [vmem:[#allocation68_spill] sm:$0xff] %v10306_v25 }
  0xf5   : > { %v10191_v34 = vpop.permute.xlu0 %1596  ;;  %1763 = vrot.lane.b32.xlu1 %v9733_v26, %s9093_s19 }
  0xf6   : > { %15555 = vst [vmem:[#allocation43_spill] sm:$0xff] %v10191_v34  ;;  %v841_v63 = vadd.f32 %v840_v24, %v839_v40  ;;  %v851_v24 = vld [vmem:[%s15350_s5] sm:$0xf] }
  0xf7   : > { %1761 = vrot.lane.b32.xlu0 %v9743_v30, %s9093_s19  ;;  %v10201_v29 = vpop.permute.xlu1 %1602  ;;  %v10304_v30 = vld [vmem:[#allocation2 + $0x4d0] sm:$0xff] }
  0xf8   : > { %15556 = vst [vmem:[#allocation44_spill] sm:$0xff] %v10201_v29  ;;  %v843_v5 = vadd.f32 %v842_v6, %v841_v63  ;;  %v10856_v29 = vld [vmem:[#allocation2 + $0x5b0] sm:$0xff] }
  0xf9   : > { %v10203_v43 = vpop.permute.xlu0 %1600  ;;  %1767 = vrot.lane.b32.xlu1 %v9748_v32, %s9093_s19 }
  0xfa   : > { %15557 = vst [vmem:[#allocation45_spill] sm:$0xff] %v10203_v43  ;;  %v844_v26 = vrot.slane %v843_v5, 4 }
  0xfb   : > { %1765 = vrot.lane.b32.xlu0 %v9761_v36, %s9093_s19  ;;  %v10211_v35 = vpop.permute.xlu1 %1606 }
  0xfc   : > { %15558 = vst [vmem:[#allocation46_spill] sm:$0xff] %v10211_v35  ;;  %v845_v61 = vadd.f32 %v844_v26, %v843_v5 }
  0xfd   : > { %v10213_v33 = vpop.permute.xlu0 %1604  ;;  %1771 = vrot.lane.b32.xlu1 %v9783_v46, %s9093_s19 }
  0xfe   : > { %15559 = vst [vmem:[#allocation47_spill] sm:$0xff] %v10213_v33  ;;  %v846_v4 = vrot.slane %v845_v61, 2  ;;  %v10823_v33 = vld [vmem:[#allocation2 + $0x588] sm:$0xff] }
  0xff   : > { %1769 = vrot.lane.b32.xlu0 %v9793_v49, %s9093_s19  ;;  %v10219_v51 = vpop.permute.xlu1 %1610 }
 0x100   : > { %15560 = vst [vmem:[#allocation48_spill] sm:$0xff] %v10219_v51  ;;  %v847_v32 = vadd.f32 %v846_v4, %v845_v61  ;;  %v10256_v61 = vld [vmem:[#allocation2 + $0x450] sm:$0xff]  ;;  %v10258_v4 = vld [vmem:[#allocation2 + $0x448] sm:$0xff] }
 0x101   : > { %v10221_v16 = vpop.permute.xlu0 %1608  ;;  %1775 = vrot.lane.b32.xlu1 %v9817_v59, %s9093_s19  ;;  %v9094_v59 = vmov 0.0   ;;  %15568 = vst [vmem:[#allocation56_spill] sm:$0xff] %v10258_v4  ;;  %v10821_v51 = vld [vmem:[#allocation2 + $0x590] sm:$0xff] }
 0x102   : > { %15561 = vst [vmem:[#allocation49_spill] sm:$0xff] %v10221_v16  ;;  %v848_v54 = vrot.slane %v847_v32, 1  ;;  %8532 = vmatprep.subr.mxu0 %v9094_v59  ;;  %8534 = vmatprep.mubr.msk.f32.mxu0 %vm9095_vm6, %v9094_v59 }
 0x103   : > { %1773 = vrot.lane.b32.xlu0 %v9819_v60, %s9093_s19  ;;  %v10227_v42 = vpop.permute.xlu1 %1614  ;;  %8533 = vmatpush3.msk.msra.mxu0 %vm856_vm5, %v851_v24  ;;  %v10294_v60 = vld [vmem:[#allocation2 + $0x4a8] sm:$0xff] }
 0x104   : > { %15562 = vst [vmem:[#allocation50_spill] sm:$0xff] %v10227_v42  ;;  %v849_v46 = vadd.f32 %v848_v54, %v847_v32  ;;  %8553 = vmatprep.mubr.msk.f32.mxu1 %vm9095_vm6, %v9094_v59  ;;  %v10268_v54 = vld [vmem:[#allocation2 + $0x470] sm:$0xff]  ;;  %15577 = vst [vmem:[#allocation65_spill] sm:$0xff] %v10294_v60  ;;  %vm5415_vm6 = vcmask 1045504  }
 0x105   : > { %v10229_v40 = vpop.permute.xlu0 %1612  ;;  %1779 = vrot.lane.b32.xlu1 %v9843_v11, %s9093_s19  ;;  %v10280_v59 = vld [vmem:[#allocation2 + $0x490] sm:$0xff] }
 0x106   : > { %15563 = vst [vmem:[#allocation51_spill] sm:$0xff] %v10229_v40  ;;  %v850_v63 = vmul.f32 0.00390625, %v849_v46 }
 0x107   : > { %1777 = vrot.lane.b32.xlu0 %v9845_v15, %s9093_s19  ;;  %v10238_v6 = vpop.permute.xlu1 %1618  ;;  %v10292_v15 = vld [vmem:[#allocation2 + $0x4b0] sm:$0xff] }
 0x108   : > { %15564 = vst [vmem:[#allocation52_spill] sm:$0xff] %v10238_v6  ;;  %8535 = vmatmul.mubr.msk.f32.vlgmr.msra.gmra.mrb[0].mxu0 %vm361_vm0, %v850_v63  ;;  %v10282_v63 = vld [vmem:[#allocation2 + $0x488] sm:$0xff]  ;;  %v852_v6 = vld [vmem:[%s15351_s6] sm:$0x1] }
 0x109   : > { %v10240_v5 = vpop.permute.xlu0 %1616  ;;  %1783 = vrot.lane.b32.xlu1 %v9869_v50, %s9093_s19  ;;  %15574 = vst [vmem:[#allocation62_spill] sm:$0xff] %v10282_v63 }
 0x10a   : > { %15565 = vst [vmem:[#allocation53_spill] sm:$0xff] %v10240_v5  ;;  %v10802_v5 = vld [vmem:[#allocation2 + $0x568] sm:$0xff] }
 0x10b   : > { %1781 = vrot.lane.b32.xlu0 %v9871_v55, %s9093_s19  ;;  %v10248_v11 = vpop.permute.xlu1 %1622 }
 0x10c   : > { %15566 = vst [vmem:[#allocation54_spill] sm:$0xff] %v10248_v11  ;;  %v936_v11 = vld [vmem:[%s15352_s7 + $0x20] sm:$0xff] }
 0x10d   : > { %v10250_v26 = vpop.permute.xlu0 %1620  ;;  %1787 = vrot.lane.b32.xlu1 %v9895_v3, %s9093_s19  ;;  %v10270_v3 = vld [vmem:[#allocation2 + $0x468] sm:$0xff] }
 0x10e   : > { %15567 = vst [vmem:[#allocation55_spill] sm:$0xff] %v10250_v26  ;;  %15571 = vst [vmem:[#allocation59_spill] sm:$0xff] %v10270_v3  ;;  %v10784_v26 = vld [vmem:[#allocation2 + $0x548] sm:$0xff] }
 0x10f   : > { %1785 = vrot.lane.b32.xlu0 %v9897_v37, %s9093_s19  ;;  %v10260_v32 = vpop.permute.xlu1 %1626 }
 0x110   : > { %15569 = vst [vmem:[#allocation57_spill] sm:$0xff] %v10260_v32 }
 0x111   : > { %v10262_v50 = vpop.permute.xlu0 %1624  ;;  %1791 = vrot.lane.b32.xlu1 %v10256_v61, %s9093_s19 }
 0x112   : > { %15570 = vst [vmem:[#allocation58_spill] sm:$0xff] %v10262_v50  ;;  %v10766_v50 = vld [vmem:[#allocation2 + $0x528] sm:$0xff] }
 0x113   : > { %1789 = vrot.lane.b32.xlu0 %v10258_v4, %s9093_s19  ;;  %v10272_v46 = vpop.permute.xlu1 %1630 }
 0x114   : > { %15572 = vst [vmem:[#allocation60_spill] sm:$0xff] %v10272_v46  ;;  %v10764_v46 = vld [vmem:[#allocation2 + $0x530] sm:$0xff] }
 0x115   : > { %v10274_v24 = vpop.permute.xlu0 %1628  ;;  %1795 = vrot.lane.b32.xlu1 %v10268_v54, %s9093_s19 }
 0x116   : > { %15573 = vst [vmem:[#allocation61_spill] sm:$0xff] %v10274_v24  ;;  %v9099_v24 = vmov 0.0|0.0  }
 0x117   : > { %1793 = vrot.lane.b32.xlu0 %v10270_v3, %s9093_s19  ;;  %v10284_v37 = vpop.permute.xlu1 %1634  ;;  %8704 = vmatprep.subr.bf16.mxu1 %v9099_v24 }
 0x118   : > { %15575 = vst [vmem:[#allocation63_spill] sm:$0xff] %v10284_v37 }
 0x119   : > { %v10286_v55 = vpop.permute.xlu0 %1632  ;;  %1799 = vrot.lane.b32.xlu1 %v10280_v59, %s9093_s19 }
 0x11a   : > { %15576 = vst [vmem:[#allocation64_spill] sm:$0xff] %v10286_v55 }
 0x11b   : > { %1797 = vrot.lane.b32.xlu0 %v10282_v63, %s9093_s19  ;;  %v10296_v49 = vpop.permute.xlu1 %1687 }
 0x11c   : > { %15578 = vst [vmem:[#allocation66_spill] sm:$0xff] %v10296_v49  ;;  %v10318_v49 = vld [vmem:[#allocation2 + $0x4e8] sm:$0xff] }
 0x11d   : > { %v10298_v36 = vpop.permute.xlu0 %1685  ;;  %1803 = vrot.lane.b32.xlu1 %v10292_v15, %s9093_s19  ;;  %15583 = vst [vmem:[#allocation71_spill] sm:$0xff] %v10318_v49 }
 0x11e   : > { %15579 = vst [vmem:[#allocation67_spill] sm:$0xff] %v10298_v36  ;;  %v10316_v36 = vld [vmem:[#allocation2 + $0x4f0] sm:$0xff] }
 0x11f   : > { %1801 = vrot.lane.b32.xlu0 %v10294_v60, %s9093_s19  ;;  %v10308_v17 = vpop.permute.xlu1 %1691 }
 0x120   : > { %15581 = vst [vmem:[#allocation69_spill] sm:$0xff] %v10308_v17 }
 0x121   : > { %v10310_v10 = vpop.permute.xlu0 %1689  ;;  %1807 = vrot.lane.b32.xlu1 %v10304_v30, %s9093_s19 }
 0x122   : > { %15582 = vst [vmem:[#allocation70_spill] sm:$0xff] %v10310_v10 }
 0x123   : > { %1805 = vrot.lane.b32.xlu0 %v10306_v25, %s9093_s19  ;;  %v10320_v55 = vpop.permute.xlu1 %1695 }
 0x124   : > { %15584 = vst [vmem:[#allocation72_spill] sm:$0xff] %v10320_v55 }
 0x125   : > { %v10322_v37 = vpop.permute.xlu0 %1693  ;;  %1811 = vrot.lane.b32.xlu1 %v10316_v36, %s9093_s19 }
 0x126   : > { %15585 = vst [vmem:[#allocation73_spill] sm:$0xff] %v10322_v37 }
 0x127   : > { %1809 = vrot.lane.b32.xlu0 %v10318_v49, %s9093_s19  ;;  %v10328_v10 = vpop.permute.xlu1 %1699 }
 0x128   : > { %15586 = vst [vmem:[#allocation74_spill] sm:$0xff] %v10328_v10 }
 0x129   : > { %v10330_v17 = vpop.permute.xlu0 %1697  ;;  %1863 = vrot.lane.b32.xlu1 %v9708_v14, %s9096_s22 }
 0x12a   : > { %15587 = vst [vmem:[#allocation75_spill] sm:$0xff] %v10330_v17 }
 0x12b   : > { %1861 = vrot.lane.b32.xlu0 %v9719_v18, %s9096_s22  ;;  %v10336_v55 = vpop.permute.xlu1 %1703 }
 0x12c   : > { %15588 = vst [vmem:[#allocation76_spill] sm:$0xff] %v10336_v55 }
 0x12d   : > { %v10338_v37 = vpop.permute.xlu0 %1701  ;;  %1867 = vrot.lane.b32.xlu1 %v9722_v22, %s9096_s22 }
 0x12e   : > { %15589 = vst [vmem:[#allocation77_spill] sm:$0xff] %v10338_v37 }
 0x12f   : > { %1865 = vrot.lane.b32.xlu0 %v9737_v27, %s9096_s22  ;;  %v10344_v10 = vpop.permute.xlu1 %1707 }
 0x130   : > { %15590 = vst [vmem:[#allocation78_spill] sm:$0xff] %v10344_v10  ;;  %v932_v10 = vld [vmem:[%s15352_s7] sm:$0xff] }
 0x131   : > { %v10346_v17 = vpop.permute.xlu0 %1705  ;;  %1871 = vrot.lane.b32.xlu1 %v9740_v28, %s9096_s22  ;;  %v15596_v28 = vld [vmem:[#allocation10_spill] sm:$0xff] }
 0x132   : > { %15591 = vst [vmem:[#allocation79_spill] sm:$0xff] %v10346_v17 }
 0x133   : > { %1869 = vrot.lane.b32.xlu0 %v9767_v38, %s9096_s22  ;;  %v10352_v14 = vpop.permute.xlu1 %1711 }
 0x134   : > { %15592 = vst [vmem:[#allocation80_spill] sm:$0xff] %v10352_v14 }
 0x135   : > { %v10354_v18 = vpop.permute.xlu0 %1709  ;;  %1875 = vrot.lane.b32.xlu1 %v9746_v31, %s9096_s22  ;;  %v15600_v31 = vld [vmem:[#allocation13_spill] sm:$0xff] }
 0x136   : > { %15593 = vst [vmem:[#allocation81_spill] sm:$0xff] %v10354_v18  ;;  %v15599_v18 = vld [vmem:[#allocation11_spill] sm:$0xff] }
 0x137   : > { %1873 = vrot.lane.b32.xlu0 %v9791_v48, %s9096_s22  ;;  %v10360_v22 = vpop.permute.xlu1 %1715 }
 0x138   : > { %15594 = vst [vmem:[#allocation82_spill] sm:$0xff] %v10360_v22 }
 0x139   : > { %v10362_v27 = vpop.permute.xlu0 %1713  ;;  %1879 = vrot.lane.b32.xlu1 %v9780_v44, %s9096_s22  ;;  %v15604_v44 = vld [vmem:[#allocation16_spill] sm:$0xff] }
 0x13a   : > { %15595 = vst [vmem:[#allocation83_spill] sm:$0xff] %v10362_v27  ;;  %v15603_v27 = vld [vmem:[#allocation14_spill] sm:$0xff] }
 0x13b   : > { %1877 = vrot.lane.b32.xlu0 %v15596_v28, %s9096_s22  ;;  %v10368_v38 = vpop.permute.xlu1 %1719 }
 0x13c   : > { %15597 = vst [vmem:[#allocation10_spill] sm:$0xff] %v10368_v38 }
 0x13d   : > { %v10370_v14 = vpop.permute.xlu0 %1717  ;;  %1883 = vrot.lane.b32.xlu1 %v15599_v18, %s9096_s22  ;;  %v15607_v18 = vld [vmem:[#allocation18_spill] sm:$0xff] }
 0x13e   : > { %15598 = vst [vmem:[#allocation84_spill] sm:$0xff] %v10370_v14 }
 0x13f   : > { %1881 = vrot.lane.b32.xlu0 %v15600_v31, %s9096_s22  ;;  %v10376_v48 = vpop.permute.xlu1 %1723 }
 0x140   : > { %15601 = vst [vmem:[#allocation11_spill] sm:$0xff] %v10376_v48 }
 0x141   : > { %v10378_v22 = vpop.permute.xlu0 %1721  ;;  %1887 = vrot.lane.b32.xlu1 %v15603_v27, %s9096_s22  ;;  %v15611_v27 = vld [vmem:[#allocation21_spill] sm:$0xff] }
 0x142   : > { %15602 = vst [vmem:[#allocation13_spill] sm:$0xff] %v10378_v22  ;;  %v15610_v22 = vld [vmem:[#allocation19_spill] sm:$0xff] }
 0x143   : > { %1885 = vrot.lane.b32.xlu0 %v15604_v44, %s9096_s22  ;;  %v10384_v28 = vpop.permute.xlu1 %1727  ;;  %v1844_v44 = vrot.slane %v10256_v61, 3 }
 0x144   : > { %15605 = vst [vmem:[#allocation14_spill] sm:$0xff] %v10384_v28 }
 0x145   : > { %v10386_v38 = vpop.permute.xlu0 %1725  ;;  %1891 = vrot.lane.b32.xlu1 %v9862_v39, %s9096_s22 }
 0x146   : > { %15606 = vst [vmem:[#allocation16_spill] sm:$0xff] %v10386_v38  ;;  %v1843_v38 = vrot.slane %v10258_v4, 3 }
 0x147   : > { %1889 = vrot.lane.b32.xlu0 %v15607_v18, %s9096_s22  ;;  %v10392_v31 = vpop.permute.xlu1 %1731 }
 0x148   : > { %15608 = vst [vmem:[#allocation18_spill] sm:$0xff] %v10392_v31  ;;  %v1845_v18 = vsel %vm1523_vm1, %v1843_v38, %v1844_v44 }
 0x149   : > { %v10394_v48 = vpop.permute.xlu0 %1729  ;;  %1895 = vrot.lane.b32.xlu1 %v15610_v22, %s9096_s22  ;;  %v1847_v22 = vrot.slane %v10268_v54, 3 }
 0x14a   : > { %15609 = vst [vmem:[#allocation85_spill] sm:$0xff] %v10394_v48 }
 0x14b   : > { %1893 = vrot.lane.b32.xlu0 %v15611_v27, %s9096_s22  ;;  %v10402_v28 = vpop.permute.xlu1 %1735  ;;  %v1846_v27 = vrot.slane %v10270_v3, 3 }
 0x14c   : > { %15612 = vst [vmem:[#allocation19_spill] sm:$0xff] %v10402_v28 }
 0x14d   : > { %v10404_v39 = vpop.permute.xlu0 %1733  ;;  %1899 = vrot.lane.b32.xlu1 %v9908_v58, %s9096_s22  ;;  %v1850_v58 = vrot.slane %v10280_v59, 3 }
 0x14e   : > { %15613 = vst [vmem:[#allocation21_spill] sm:$0xff] %v10404_v39  ;;  %v1848_v39 = vsel %vm1523_vm1, %v1846_v27, %v1847_v22 }
 0x14f   : > { %1897 = vrot.lane.b32.xlu0 %v9919_v47, %s9096_s22  ;;  %v10413_v48 = vpop.permute.xlu1 %1739  ;;  %v1849_v47 = vrot.slane %v10282_v63, 3 }
 0x150   : > { %15614 = vst [vmem:[#allocation86_spill] sm:$0xff] %v10413_v48 }
 0x151   : > { %v10415_v31 = vpop.permute.xlu0 %1737  ;;  %1903 = vrot.lane.b32.xlu1 %v1844_v44, %s9096_s22  ;;  %v1853_v44 = vrot.slane %v10292_v15, 3 }
 0x152   : > { %15615 = vst [vmem:[#allocation87_spill] sm:$0xff] %v10415_v31  ;;  %v1851_v31 = vsel %vm1523_vm1, %v1849_v47, %v1850_v58 }
 0x153   : > { %1901 = vrot.lane.b32.xlu0 %v1845_v18, %s9096_s22  ;;  %v10422_v28 = vpop.permute.xlu1 %1743  ;;  %v1852_v18 = vrot.slane %v10294_v60, 3 }
 0x154   : > { %15616 = vst [vmem:[#allocation88_spill] sm:$0xff] %v10422_v28 }
 0x155   : > { %v10424_v38 = vpop.permute.xlu0 %1741  ;;  %1907 = vrot.lane.b32.xlu1 %v1847_v22, %s9096_s22  ;;  %v1856_v22 = vrot.slane %v10304_v30, 3 }
 0x156   : > { %15617 = vst [vmem:[#allocation89_spill] sm:$0xff] %v10424_v38  ;;  %v1854_v38 = vsel %vm1523_vm1, %v1852_v18, %v1853_v44 }
 0x157   : > { %1905 = vrot.lane.b32.xlu0 %v1848_v39, %s9096_s22  ;;  %v10431_v48 = vpop.permute.xlu1 %1747  ;;  %v1855_v39 = vrot.slane %v10306_v25, 3 }
 0x158   : > { %15618 = vst [vmem:[#allocation90_spill] sm:$0xff] %v10431_v48 }
 0x159   : > { %v10433_v27 = vpop.permute.xlu0 %1745  ;;  %1911 = vrot.lane.b32.xlu1 %v1850_v58, %s9096_s22  ;;  %v1859_v58 = vrot.slane %v10316_v36, 3 }
 0x15a   : > { %15619 = vst [vmem:[#allocation91_spill] sm:$0xff] %v10433_v27  ;;  %v1857_v27 = vsel %vm1523_vm1, %v1855_v39, %v1856_v22 }
 0x15b   : > { %1909 = vrot.lane.b32.xlu0 %v1851_v31, %s9096_s22  ;;  %v10440_v28 = vpop.permute.xlu1 %1751  ;;  %v1858_v31 = vrot.slane %v10318_v49, 3 }
 0x15c   : > { %15620 = vst [vmem:[#allocation92_spill] sm:$0xff] %v10440_v28 }
 0x15d   : > { %v10442_v47 = vpop.permute.xlu0 %1749  ;;  %1915 = vrot.lane.b32.xlu1 %v1853_v44, %s9096_s22 }
 0x15e   : > { %15621 = vst [vmem:[#allocation93_spill] sm:$0xff] %v10442_v47  ;;  %v1860_v47 = vsel %vm1523_vm1, %v1858_v31, %v1859_v58 }
 0x15f   : > { %1913 = vrot.lane.b32.xlu0 %v1854_v38, %s9096_s22  ;;  %v10449_v48 = vpop.permute.xlu1 %1755 }
 0x160   : > { %15622 = vst [vmem:[#allocation94_spill] sm:$0xff] %v10449_v48 }
 0x161   : > { %v10451_v18 = vpop.permute.xlu0 %1753  ;;  %1919 = vrot.lane.b32.xlu1 %v1856_v22, %s9096_s22 }
 0x162   : > { %15623 = vst [vmem:[#allocation95_spill] sm:$0xff] %v10451_v18 }
 0x163   : > { %1917 = vrot.lane.b32.xlu0 %v1857_v27, %s9096_s22  ;;  %v10456_v28 = vpop.permute.xlu1 %1759 }
 0x164   : > { %15624 = vst [vmem:[#allocation96_spill] sm:$0xff] %v10456_v28 }
 0x165   : > { %v10458_v44 = vpop.permute.xlu0 %1757  ;;  %1923 = vrot.lane.b32.xlu1 %v1859_v58, %s9096_s22 }
 0x166   : > { %15625 = vst [vmem:[#allocation97_spill] sm:$0xff] %v10458_v44 }
 0x167   : > { %1921 = vrot.lane.b32.xlu0 %v1860_v47, %s9096_s22  ;;  %v10462_v38 = vpop.permute.xlu1 %1763 }
 0x168   : > { %15626 = vst [vmem:[#allocation98_spill] sm:$0xff] %v10462_v38 }
 0x169   : > { %v10464_v39 = vpop.permute.xlu0 %1761  ;;  %1975 = vrot.lane.b32.xlu1 %v9954_v0, %s9097_s23  ;;  %v15632_v0 = vld [vmem:[#allocation24_spill] sm:$0xff] }
 0x16a   : > { %15627 = vst [vmem:[#allocation99_spill] sm:$0xff] %v10464_v39 }
 0x16b   : > { %1973 = vrot.lane.b32.xlu0 %v9969_v7, %s9097_s23  ;;  %v10470_v27 = vpop.permute.xlu1 %1767 }
 0x16c   : > { %15628 = vst [vmem:[#allocation100_spill] sm:$0xff] %v10470_v27 }
 0x16d   : > { %v10472_v22 = vpop.permute.xlu0 %1765  ;;  %1979 = vrot.lane.b32.xlu1 %v9972_v20, %s9097_s23  ;;  %v15636_v20 = vld [vmem:[#allocation26_spill] sm:$0xff] }
 0x16e   : > { %15629 = vst [vmem:[#allocation101_spill] sm:$0xff] %v10472_v22  ;;  %v15635_v22 = vld [vmem:[#allocation25_spill] sm:$0xff] }
 0x16f   : > { %1977 = vrot.lane.b32.xlu0 %v9987_v57, %s9097_s23  ;;  %v10478_v47 = vpop.permute.xlu1 %1771 }
 0x170   : > { %15630 = vst [vmem:[#allocation102_spill] sm:$0xff] %v10478_v47 }
 0x171   : > { %v10480_v58 = vpop.permute.xlu0 %1769  ;;  %1983 = vrot.lane.b32.xlu1 %v9990_v8, %s9097_s23  ;;  %v15640_v8 = vld [vmem:[#allocation28_spill] sm:$0xff] }
 0x172   : > { %15631 = vst [vmem:[#allocation103_spill] sm:$0xff] %v10480_v58  ;;  %v15639_v58 = vld [vmem:[#allocation27_spill] sm:$0xff] }
 0x173   : > { %1981 = vrot.lane.b32.xlu0 %v15632_v0, %s9097_s23  ;;  %v10486_v31 = vpop.permute.xlu1 %1775 }
 0x174   : > { %15633 = vst [vmem:[#allocation104_spill] sm:$0xff] %v10486_v31 }
 0x175   : > { %v10488_v7 = vpop.permute.xlu0 %1773  ;;  %1987 = vrot.lane.b32.xlu1 %v15635_v22, %s9097_s23  ;;  %v15644_v22 = vld [vmem:[#allocation30_spill] sm:$0xff] }
 0x176   : > { %15634 = vst [vmem:[#allocation105_spill] sm:$0xff] %v10488_v7  ;;  %v15643_v7 = vld [vmem:[#allocation29_spill] sm:$0xff] }
 0x177   : > { %1985 = vrot.lane.b32.xlu0 %v15636_v20, %s9097_s23  ;;  %v10494_v57 = vpop.permute.xlu1 %1779 }
 0x178   : > { %15637 = vst [vmem:[#allocation25_spill] sm:$0xff] %v10494_v57 }
 0x179   : > { %v10496_v39 = vpop.permute.xlu0 %1777  ;;  %1991 = vrot.lane.b32.xlu1 %v15639_v58, %s9097_s23  ;;  %v15648_v58 = vld [vmem:[#allocation32_spill] sm:$0xff] }
 0x17a   : > { %15638 = vst [vmem:[#allocation106_spill] sm:$0xff] %v10496_v39  ;;  %v15647_v39 = vld [vmem:[#allocation31_spill] sm:$0xff] }
 0x17b   : > { %1989 = vrot.lane.b32.xlu0 %v15640_v8, %s9097_s23  ;;  %v10502_v0 = vpop.permute.xlu1 %1783 }
 0x17c   : > { %15641 = vst [vmem:[#allocation27_spill] sm:$0xff] %v10502_v0 }
 0x17d   : > { %v10504_v31 = vpop.permute.xlu0 %1781  ;;  %1995 = vrot.lane.b32.xlu1 %v15643_v7, %s9097_s23 }
 0x17e   : > { %15642 = vst [vmem:[#allocation107_spill] sm:$0xff] %v10504_v31 }
 0x17f   : > { %1993 = vrot.lane.b32.xlu0 %v15644_v22, %s9097_s23  ;;  %v10510_v20 = vpop.permute.xlu1 %1787 }
 0x180   : > { %15645 = vst [vmem:[#allocation29_spill] sm:$0xff] %v10510_v20 }
 0x181   : > { %v10512_v57 = vpop.permute.xlu0 %1785  ;;  %1999 = vrot.lane.b32.xlu1 %v15647_v39, %s9097_s23  ;;  %v1956_v39 = vrot.slane %v10256_v61, 6 }
 0x182   : > { %15646 = vst [vmem:[#allocation108_spill] sm:$0xff] %v10512_v57 }
 0x183   : > { %1997 = vrot.lane.b32.xlu0 %v15648_v58, %s9097_s23  ;;  %v10518_v8 = vpop.permute.xlu1 %1791  ;;  %v15409_v58 = vrot.slane %v10258_v4, 6 }
 0x184   : > { %15649 = vst [vmem:[#allocation31_spill] sm:$0xff] %v10518_v8 }
 0x185   : > { %v10520_v0 = vpop.permute.xlu0 %1789  ;;  %2003 = vrot.lane.b32.xlu1 %v10080_v21, %s9097_s23 }
 0x186   : > { %15650 = vst [vmem:[#allocation109_spill] sm:$0xff] %v10520_v0 }
 0x187   : > { %2001 = vrot.lane.b32.xlu0 %v10095_v56, %s9097_s23  ;;  %v10526_v7 = vpop.permute.xlu1 %1795  ;;  %v15413_v56 = vrot.slane %v10270_v3, 6 }
 0x188   : > { %15651 = vst [vmem:[#allocation110_spill] sm:$0xff] %v10526_v7 }
 0x189   : > { %v10528_v22 = vpop.permute.xlu0 %1793  ;;  %2007 = vrot.lane.b32.xlu1 %v10098_v13, %s9097_s23  ;;  %v10547_v13 = vsel %vm1222_vm4, %v15409_v58, %v1956_v39  ;;  %v1962_v58 = vrot.slane %v10280_v59, 6 }
 0x18a   : > { %15652 = vst [vmem:[#allocation111_spill] sm:$0xff] %v10528_v22  ;;  %15655 = vst [vmem:[#allocation114_spill] sm:$0xff] %v10547_v13 }
 0x18b   : > { %2005 = vrot.lane.b32.xlu0 %v10117_v23, %s9097_s23  ;;  %v10536_v0 = vpop.permute.xlu1 %1799  ;;  %v1959_v23 = vrot.slane %v10268_v54, 6 }
 0x18c   : > { %15653 = vst [vmem:[#allocation112_spill] sm:$0xff] %v10536_v0 }
 0x18d   : > { %v10538_v21 = vpop.permute.xlu0 %1797  ;;  %2011 = vrot.lane.b32.xlu1 %v10120_v45, %s9097_s23  ;;  %v10561_v45 = vsel %vm1222_vm4, %v15413_v56, %v1959_v23  ;;  %v1965_v56 = vrot.slane %v10292_v15, 6 }
 0x18e   : > { %15654 = vst [vmem:[#allocation113_spill] sm:$0xff] %v10538_v21  ;;  %15658 = vst [vmem:[#allocation117_spill] sm:$0xff] %v10561_v45 }
 0x18f   : > { %2009 = vrot.lane.b32.xlu0 %v10139_v41, %s9097_s23  ;;  %v10551_v22 = vpop.permute.xlu1 %1803  ;;  %v15416_v41 = vrot.slane %v10282_v63, 6 }
 0x190   : > { %15656 = vst [vmem:[#allocation115_spill] sm:$0xff] %v10551_v22 }
 0x191   : > { %v10553_v0 = vpop.permute.xlu0 %1801  ;;  %2015 = vrot.lane.b32.xlu1 %v1956_v39, %s9097_s23  ;;  %v10575_v39 = vsel %vm1222_vm4, %v15416_v41, %v1962_v58  ;;  %v1968_v41 = vrot.slane %v10304_v30, 6 }
 0x192   : > { %15657 = vst [vmem:[#allocation116_spill] sm:$0xff] %v10553_v0  ;;  %15661 = vst [vmem:[#allocation120_spill] sm:$0xff] %v10575_v39 }
 0x193   : > { %2013 = vrot.lane.b32.xlu0 %v10547_v13, %s9097_s23  ;;  %v10565_v21 = vpop.permute.xlu1 %1807  ;;  %v15419_v13 = vrot.slane %v10294_v60, 6 }
 0x194   : > { %15659 = vst [vmem:[#allocation118_spill] sm:$0xff] %v10565_v21 }
 0x195   : > { %v10567_v57 = vpop.permute.xlu0 %1805  ;;  %2019 = vrot.lane.b32.xlu1 %v1959_v23, %s9097_s23  ;;  %v10589_v23 = vsel %vm1222_vm4, %v15419_v13, %v1965_v56  ;;  %v1971_v13 = vrot.slane %v10316_v36, 6 }
 0x196   : > { %15660 = vst [vmem:[#allocation119_spill] sm:$0xff] %v10567_v57  ;;  %15664 = vst [vmem:[#allocation123_spill] sm:$0xff] %v10589_v23 }
 0x197   : > { %2017 = vrot.lane.b32.xlu0 %v10561_v45, %s9097_s23  ;;  %v10579_v0 = vpop.permute.xlu1 %1811  ;;  %v15422_v45 = vrot.slane %v10306_v25, 6 }
 0x198   : > { %15662 = vst [vmem:[#allocation121_spill] sm:$0xff] %v10579_v0 }
 0x199   : > { %v10581_v22 = vpop.permute.xlu0 %1809  ;;  %2023 = vrot.lane.b32.xlu1 %v1962_v58, %s9097_s23  ;;  %v10603_v58 = vsel %vm1222_vm4, %v15422_v45, %v1968_v41 }
 0x19a   : > { %15663 = vst [vmem:[#allocation122_spill] sm:$0xff] %v10581_v22  ;;  %15667 = vst [vmem:[#allocation126_spill] sm:$0xff] %v10603_v58 }
 0x19b   : > { %2021 = vrot.lane.b32.xlu0 %v10575_v39, %s9097_s23  ;;  %v10593_v57 = vpop.permute.xlu1 %1863  ;;  %v15425_v39 = vrot.slane %v10318_v49, 6 }
 0x19c   : > { %15665 = vst [vmem:[#allocation124_spill] sm:$0xff] %v10593_v57 }
 0x19d   : > { %v10595_v21 = vpop.permute.xlu0 %1861  ;;  %2027 = vrot.lane.b32.xlu1 %v1965_v56, %s9097_s23  ;;  %v10617_v56 = vsel %vm1222_vm4, %v15425_v39, %v1971_v13  ;;  %v10638_v39 = vld [vmem:[#allocation2 + $0x3f0] sm:$0xff] }
 0x19e   : > { %15666 = vst [vmem:[#allocation125_spill] sm:$0xff] %v10595_v21  ;;  %15670 = vst [vmem:[#allocation129_spill] sm:$0xff] %v10617_v56 }
 0x19f   : > { %2025 = vrot.lane.b32.xlu0 %v10589_v23, %s9097_s23  ;;  %v10607_v22 = vpop.permute.xlu1 %1867 }
 0x1a0   : > { %15668 = vst [vmem:[#allocation127_spill] sm:$0xff] %v10607_v22 }
 0x1a1   : > { %v10609_v0 = vpop.permute.xlu0 %1865  ;;  %2031 = vrot.lane.b32.xlu1 %v1968_v41, %s9097_s23  ;;  %v10628_v41 = vld [vmem:[#allocation2 + $0x3c8] sm:$0xff] }
 0x1a2   : > { %15669 = vst [vmem:[#allocation128_spill] sm:$0xff] %v10609_v0  ;;  %v10626_v0 = vld [vmem:[#allocation2 + $0x3d0] sm:$0xff]  ;;  %v2133_v43 = vrot.slane %v10628_v41, 3 }
 0x1a3   : > { %2029 = vrot.lane.b32.xlu0 %v10603_v58, %s9097_s23  ;;  %v10619_v45 = vpop.permute.xlu1 %1871 }
 0x1a4   : > { %15671 = vst [vmem:[#allocation130_spill] sm:$0xff] %v10619_v45 }
 0x1a5   : > { %v10621_v23 = vpop.permute.xlu0 %1869  ;;  %2035 = vrot.lane.b32.xlu1 %v1971_v13, %s9097_s23  ;;  %v10640_v13 = vld [vmem:[#allocation2 + $0x3e8] sm:$0xff] }
 0x1a6   : > { %15672 = vst [vmem:[#allocation131_spill] sm:$0xff] %v10621_v23 }
 0x1a7   : > { %2033 = vrot.lane.b32.xlu0 %v10617_v56, %s9097_s23  ;;  %v10630_v22 = vpop.permute.xlu1 %1875 }
 0x1a8   : > { %15673 = vst [vmem:[#allocation132_spill] sm:$0xff] %v10630_v22  ;;  %v10652_v22 = vld [vmem:[#allocation2 + $0x408] sm:$0xff] }
 0x1a9   : > { %v10632_v58 = vpop.permute.xlu0 %1873  ;;  %2071 = vrot.lane.b32.xlu1 %v10626_v0, %s9098_s24 }
 0x1aa   : > { %15674 = vst [vmem:[#allocation133_spill] sm:$0xff] %v10632_v58  ;;  %v10650_v58 = vld [vmem:[#allocation2 + $0x410] sm:$0xff] }
 0x1ab   : > { %2069 = vrot.lane.b32.xlu0 %v10628_v41, %s9098_s24  ;;  %v10642_v56 = vpop.permute.xlu1 %1879 }
 0x1ac   : > { %15675 = vst [vmem:[#allocation134_spill] sm:$0xff] %v10642_v56  ;;  %v10664_v56 = vld [vmem:[#allocation2 + $0x428] sm:$0xff] }
 0x1ad   : > { %v10644_v23 = vpop.permute.xlu0 %1877  ;;  %2075 = vrot.lane.b32.xlu1 %v10638_v39, %s9098_s24 }
 0x1ae   : > { %15676 = vst [vmem:[#allocation135_spill] sm:$0xff] %v10644_v23  ;;  %v10662_v23 = vld [vmem:[#allocation2 + $0x430] sm:$0xff] }
 0x1af   : > { %2073 = vrot.lane.b32.xlu0 %v10640_v13, %s9098_s24  ;;  %v10654_v45 = vpop.permute.xlu1 %1883 }
 0x1b0   : > { %15677 = vst [vmem:[#allocation136_spill] sm:$0xff] %v10654_v45  ;;  %v10676_v45 = vld [vmem:[#allocation2 + $0x448] sm:$0xff] }
 0x1b1   : > { %v10656_v21 = vpop.permute.xlu0 %1881  ;;  %2079 = vrot.lane.b32.xlu1 %v10650_v58, %s9098_s24 }
 0x1b2   : > { %15678 = vst [vmem:[#allocation137_spill] sm:$0xff] %v10656_v21  ;;  %v10674_v21 = vld [vmem:[#allocation2 + $0x450] sm:$0xff] }
 0x1b3   : > { %2077 = vrot.lane.b32.xlu0 %v10652_v22, %s9098_s24  ;;  %v10666_v57 = vpop.permute.xlu1 %1887 }
 0x1b4   : > { %15679 = vst [vmem:[#allocation138_spill] sm:$0xff] %v10666_v57  ;;  %v10688_v57 = vld [vmem:[#allocation2 + $0x468] sm:$0xff] }
 0x1b5   : > { %v10668_v7 = vpop.permute.xlu0 %1885  ;;  %2083 = vrot.lane.b32.xlu1 %v10662_v23, %s9098_s24 }
 0x1b6   : > { %15680 = vst [vmem:[#allocation139_spill] sm:$0xff] %v10668_v7  ;;  %v10686_v7 = vld [vmem:[#allocation2 + $0x470] sm:$0xff] }
 0x1b7   : > { %2081 = vrot.lane.b32.xlu0 %v10664_v56, %s9098_s24  ;;  %v10678_v8 = vpop.permute.xlu1 %1891 }
 0x1b8   : > { %15681 = vst [vmem:[#allocation140_spill] sm:$0xff] %v10678_v8  ;;  %v10700_v8 = vld [vmem:[#allocation2 + $0x488] sm:$0xff] }
 0x1b9   : > { %v10680_v20 = vpop.permute.xlu0 %1889  ;;  %2087 = vrot.lane.b32.xlu1 %v10674_v21, %s9098_s24 }
 0x1ba   : > { %15682 = vst [vmem:[#allocation141_spill] sm:$0xff] %v10680_v20  ;;  %v10698_v20 = vld [vmem:[#allocation2 + $0x490] sm:$0xff] }
 0x1bb   : > { %2085 = vrot.lane.b32.xlu0 %v10676_v45, %s9098_s24  ;;  %v10690_v31 = vpop.permute.xlu1 %1895 }
 0x1bc   : > { %15683 = vst [vmem:[#allocation142_spill] sm:$0xff] %v10690_v31  ;;  %v10712_v31 = vld [vmem:[#allocation2 + $0x4a8] sm:$0xff] }
 0x1bd   : > { %v10692_v47 = vpop.permute.xlu0 %1893  ;;  %2091 = vrot.lane.b32.xlu1 %v10686_v7, %s9098_s24 }
 0x1be   : > { %15684 = vst [vmem:[#allocation143_spill] sm:$0xff] %v10692_v47  ;;  %v10710_v47 = vld [vmem:[#allocation2 + $0x4b0] sm:$0xff] }
 0x1bf   : > { %2089 = vrot.lane.b32.xlu0 %v10688_v57, %s9098_s24  ;;  %v10702_v27 = vpop.permute.xlu1 %1899 }
 0x1c0   : > { %15685 = vst [vmem:[#allocation144_spill] sm:$0xff] %v10702_v27  ;;  %v10724_v27 = vld [vmem:[#allocation2 + $0x4c8] sm:$0xff] }
 0x1c1   : > { %v10704_v38 = vpop.permute.xlu0 %1897  ;;  %2095 = vrot.lane.b32.xlu1 %v10698_v20, %s9098_s24 }
 0x1c2   : > { %15686 = vst [vmem:[#allocation145_spill] sm:$0xff] %v10704_v38  ;;  %v10722_v38 = vld [vmem:[#allocation2 + $0x4d0] sm:$0xff] }
 0x1c3   : > { %2093 = vrot.lane.b32.xlu0 %v10700_v8, %s9098_s24  ;;  %v10714_v44 = vpop.permute.xlu1 %1903 }
 0x1c4   : > { %15687 = vst [vmem:[#allocation146_spill] sm:$0xff] %v10714_v44  ;;  %v10736_v44 = vld [vmem:[#allocation2 + $0x4e8] sm:$0xff] }
 0x1c5   : > { %v10716_v18 = vpop.permute.xlu0 %1901  ;;  %2099 = vrot.lane.b32.xlu1 %v10710_v47, %s9098_s24 }
 0x1c6   : > { %15688 = vst [vmem:[#allocation147_spill] sm:$0xff] %v10716_v18  ;;  %v10734_v18 = vld [vmem:[#allocation2 + $0x4f0] sm:$0xff] }
 0x1c7   : > { %2097 = vrot.lane.b32.xlu0 %v10712_v31, %s9098_s24  ;;  %v10726_v28 = vpop.permute.xlu1 %1907 }
 0x1c8   : > { %15689 = vst [vmem:[#allocation148_spill] sm:$0xff] %v10726_v28  ;;  %v10748_v28 = vld [vmem:[#allocation2 + $0x508] sm:$0xff] }
 0x1c9   : > { %v10728_v48 = vpop.permute.xlu0 %1905  ;;  %2103 = vrot.lane.b32.xlu1 %v10722_v38, %s9098_s24 }
 0x1ca   : > { %15690 = vst [vmem:[#allocation149_spill] sm:$0xff] %v10728_v48  ;;  %v10746_v48 = vld [vmem:[#allocation2 + $0x510] sm:$0xff] }
 0x1cb   : > { %2101 = vrot.lane.b32.xlu0 %v10724_v27, %s9098_s24  ;;  %v10738_v14 = vpop.permute.xlu1 %1911 }
 0x1cc   : > { %15691 = vst [vmem:[#allocation150_spill] sm:$0xff] %v10738_v14  ;;  %v933_v14 = vld [vmem:[%s15352_s7 + $0x8] sm:$0xff] }
 0x1cd   : > { %v10740_v17 = vpop.permute.xlu0 %1909  ;;  %2107 = vrot.lane.b32.xlu1 %v10734_v18, %s9098_s24  ;;  %v8705_v55 = vpack.c.bf16 %v933_v14, %v932_v10  ;;  %v935_v10 = vld [vmem:[%s15352_s7 + $0x18] sm:$0xff] }
 0x1ce   : > { %15692 = vst [vmem:[#allocation151_spill] sm:$0xff] %v10740_v17 }
 0x1cf   : > { %2105 = vrot.lane.b32.xlu0 %v10736_v44, %s9098_s24  ;;  %v10756_v37 = vpop.permute.xlu1 %1915  ;;  %8706 = vmatpush3.bf16.msra.mxu1 %v8705_v55  ;;  %v10782_v55 = vld [vmem:[#allocation2 + $0x550] sm:$0xff] }
 0x1d0   : > { %15693 = vst [vmem:[#allocation152_spill] sm:$0xff] %v10756_v37  ;;  %v934_v37 = vld [vmem:[%s15352_s7 + $0x10] sm:$0xff]  ;;  %8707 = vmatprep.subr.bf16.mxu1 %v9099_v24 }
 0x1d1   : > { %v10758_v17 = vpop.permute.xlu0 %1913  ;;  %2111 = vrot.lane.b32.xlu1 %v10746_v48, %s9098_s24  ;;  %v8708_v32 = vpack.c.bf16 %v935_v10, %v934_v37 }
 0x1d2   : > { %15694 = vst [vmem:[#allocation153_spill] sm:$0xff] %v10758_v17 }
 0x1d3   : > { %2109 = vrot.lane.b32.xlu0 %v10748_v28, %s9098_s24  ;;  %v10774_v14 = vpop.permute.xlu1 %1919  ;;  %8709 = vmatpush3.bf16.msra.mxu1 %v8708_v32  ;;  %v10800_v32 = vld [vmem:[#allocation2 + $0x570] sm:$0xff] }
 0x1d4   : > { %15695 = vst [vmem:[#allocation154_spill] sm:$0xff] %v10774_v14  ;;  %8710 = vmatprep.subr.bf16.mxu1 %v9099_v24 }
 0x1d5   : > { %v10776_v17 = vpop.permute.xlu0 %1917  ;;  %2115 = vrot.lane.b32.xlu1 %v10764_v46, %s9098_s24 }
 0x1d6   : > { %15696 = vst [vmem:[#allocation155_spill] sm:$0xff] %v10776_v17  ;;  %v937_v17 = vld [vmem:[%s15352_s7 + $0x28] sm:$0xff] }
 0x1d7   : > { %2113 = vrot.lane.b32.xlu0 %v10766_v50, %s9098_s24  ;;  %v10792_v37 = vpop.permute.xlu1 %1923  ;;  %v8711_v14 = vpack.c.bf16 %v937_v17, %v936_v11  ;;  %v939_v17 = vld [vmem:[%s15352_s7 + $0x38] sm:$0xff] }
 0x1d8   : > { %15697 = vst [vmem:[#allocation156_spill] sm:$0xff] %v10792_v37 }
 0x1d9   : > { %v10794_v10 = vpop.permute.xlu0 %1921  ;;  %2119 = vrot.lane.b32.xlu1 %v10782_v55, %s9098_s24  ;;  %8712 = vmatpush3.bf16.msra.mxu1 %v8711_v14 }
 0x1da   : > { %15698 = vst [vmem:[#allocation157_spill] sm:$0xff] %v10794_v10  ;;  %v938_v10 = vld [vmem:[%s15352_s7 + $0x30] sm:$0xff]  ;;  %8713 = vmatprep.subr.bf16.mxu1 %v9099_v24 }
 0x1db   : > { %2117 = vrot.lane.b32.xlu0 %v10784_v26, %s9098_s24  ;;  %v10813_v11 = vpop.permute.xlu1 %1975  ;;  %v8714_v40 = vpack.c.bf16 %v939_v17, %v938_v10  ;;  %v926_v42 = vpop.f32.mrb[0].mxu0  ;;  %v1168_v10 = vld [vmem:[%s15346_s1] sm:$0x3] }
 0x1dc   : > { %15699 = vst [vmem:[#allocation158_spill] sm:$0xff] %v10813_v11  ;;  %v927_v14 = vadd.f32 %v926_v42, %v852_v6  ;;  %v8536_v16 = vpop.f32.mrb[1].mxu0  ;;  %v1224_v42 = vsel %vm1222_vm4, %v1168_v10, 0  ;;  %v10841_v6 = vld [vmem:[#allocation2 + $0x310] sm:$0xff] }
 0x1dd   : > { %v10815_v37 = vpop.permute.xlu0 %1973  ;;  %2123 = vrot.lane.b32.xlu1 %v10800_v32, %s9098_s24  ;;  %8715 = vmatpush3.bf16.msra.mxu1 %v8714_v40  ;;  %v10838_v16 = vld [vmem:[#allocation2 + $0x308] sm:$0xff]  ;;  %15704 = vst [vmem:[#allocation163_spill] sm:$0xff] %v10841_v6  ;;  %v10844_v17 = vrot.slane %v10841_v6, 4 }
 0x1de   : > { %15700 = vst [vmem:[#allocation159_spill] sm:$0xff] %v10815_v37  ;;  %v930_v24 = vmax.f32 %v927_v14, 0.0  ;;  %8716 = vmatprep.subr.msk.bf16.mxu1 %vm1222_vm4, %v1168_v10  ;;  %15703 = vst [vmem:[#allocation162_spill] sm:$0xff] %v10838_v16  ;;  %v1120_v40 = vrot.slane %v10838_v16, 4  ;;  %v10846_v14 = vld [vmem:[#allocation2 + $0x328] sm:$0xff]  ;;  %v10849_v10 = vld [vmem:[#allocation2 + $0x330] sm:$0xff] }
 0x1df   : > { %2121 = vrot.lane.b32.xlu0 %v10802_v5, %s9098_s24  ;;  %v10825_v35 = vpop.permute.xlu1 %1979  ;;  %15705 = vst [vmem:[#allocation164_spill] sm:$0xff] %v10844_v17  ;;  %15706 = vst [vmem:[#allocation165_spill] sm:$0xff] %v10846_v14  ;;  %v2134_v37 = vrot.slane %v10626_v0, 3  ;;  %v10858_v16 = vld [vmem:[#allocation2 + $0x5a8] sm:$0xff] }
 0x1e0   : > { %15701 = vst [vmem:[#allocation160_spill] sm:$0xff] %v10825_v35  ;;  %15707 = vst [vmem:[#allocation166_spill] sm:$0xff] %v10849_v10  ;;  %v10852_v35 = vrot.slane %v10849_v10, 4  ;;  %8554 = vmatmul.mubr.msk.f32.vlgmr.msra.gmra.mrb[0].mxu1 %vm940_vm7, %v930_v24  ;;  %v2137_v24 = vrot.slane %v10638_v39, 3 }
 0x1e1   : > { %v10827_v11 = vpop.permute.xlu0 %1977  ;;  %2127 = vrot.lane.b32.xlu1 %v10821_v51, %s9098_s24  ;;  %8557 = vmatpush3.bf16.msra.mxu1 %v1224_v42  ;;  %v2135_v42 = vsel %vm1523_vm1, %v2133_v43, %v2134_v37  ;;  %v10892_v43 = vld [vmem:[#allocation2 + $0x368] sm:$0xff] }
 0x1e2   : > { %15702 = vst [vmem:[#allocation161_spill] sm:$0xff] %v10827_v11  ;;  %v1123_v11 = vrot.slane %v10846_v14, 4  ;;  %15708 = vst [vmem:[#allocation167_spill] sm:$0xff] %v10852_v35  ;;  %v1122_v14 = vsel %vm856_vm5, %v1120_v40, %v10844_v17 }
 0x1e3   : > { %2125 = vrot.lane.b32.xlu0 %v10823_v33, %s9098_s24  ;;  %v10861_v34 = vpop.permute.xlu1 %1983  ;;  %8558 = vmatprep.mubr.msk.bf16.mxu1 %vm361_vm0, %v1122_v14  ;;  %15716 = vst [vmem:[#allocation175_spill] sm:$0xff] %v10892_v43 }
 0x1e4   : > { %15709 = vst [vmem:[#allocation168_spill] sm:$0xff] %v10861_v34  ;;  %v1125_v10 = vsel %vm856_vm5, %v1123_v11, %v10852_v35  ;;  %v2136_v34 = vrot.slane %v10640_v13, 3  ;;  %v10882_v11 = vld [vmem:[#allocation2 + $0x348] sm:$0xff]  ;;  %v10887_v35 = vld [vmem:[#allocation2 + $0x350] sm:$0xff] }
 0x1e5   : > { %v10863_v6 = vpop.permute.xlu0 %1981  ;;  %2131 = vrot.lane.b32.xlu1 %v10856_v29, %s9098_s24  ;;  %8559 = vmatmul.mubr.msk.bf16.vlgmr.msra.gmra.mrb[4].mxu1 %vm361_vm0, %v1125_v10  ;;  %15713 = vst [vmem:[#allocation172_spill] sm:$0xff] %v10882_v11  ;;  %v1126_v14 = vrot.slane %v10882_v11, 4  ;;  %15714 = vst [vmem:[#allocation173_spill] sm:$0xff] %v10887_v35  ;;  %v1129_v10 = vrot.slane %v10892_v43, 4  ;;  %v2140_v11 = vrot.slane %v10650_v58, 3 }
 0x1e6   : > { %15710 = vst [vmem:[#allocation169_spill] sm:$0xff] %v10863_v6  ;;  %v10890_v6 = vrot.slane %v10887_v35, 4 }
 0x1e7   : > { %2129 = vrot.lane.b32.xlu0 %v10858_v16, %s9098_s24  ;;  %v10878_v40 = vpop.permute.xlu1 %1987 }
 0x1e8   : > { %15711 = vst [vmem:[#allocation170_spill] sm:$0xff] %v10878_v40  ;;  %15715 = vst [vmem:[#allocation174_spill] sm:$0xff] %v10890_v6  ;;  %v10895_v40 = vld [vmem:[#allocation2 + $0x370] sm:$0xff]  ;;  %v1128_v35 = vsel %vm856_vm5, %v1126_v14, %v10890_v6  ;;  %v10922_v6 = vld [vmem:[#allocation2 + $0x388] sm:$0xff] }
 0x1e9   : > { %v10880_v17 = vpop.permute.xlu0 %1985  ;;  %2183 = vrot.lane.b32.xlu1 %v2134_v37, %s9100_s20  ;;  %15717 = vst [vmem:[#allocation176_spill] sm:$0xff] %v10895_v40  ;;  %v2139_v37 = vrot.slane %v10652_v22, 3  ;;  %8562 = vmatprep.mubr.msk.bf16.mxu1 %vm361_vm0, %v1128_v35  ;;  %15723 = vst [vmem:[#allocation182_spill] sm:$0xff] %v10922_v6  ;;  %v1132_v35 = vrot.slane %v10922_v6, 4 }
 0x1ea   : > { %15712 = vst [vmem:[#allocation171_spill] sm:$0xff] %v10880_v17  ;;  %v10898_v17 = vrot.slane %v10895_v40, 4  ;;  %v2143_v40 = vrot.slane %v10662_v23, 3 }
 0x1eb   : > { %2181 = vrot.lane.b32.xlu0 %v2135_v42, %s9100_s20  ;;  %v2138_v42 = vsel %vm1523_vm1, %v2136_v34, %v2137_v24  ;;  %v10903_v62 = vpop.permute.xlu1 %1991  ;;  %v2142_v34 = vrot.slane %v10664_v56, 3 }
 0x1ec   : > { %15718 = vst [vmem:[#allocation177_spill] sm:$0xff] %v10898_v17  ;;  %15719 = vst [vmem:[#allocation178_spill] sm:$0xff] %v10903_v62  ;;  %v1131_v43 = vsel %vm856_vm5, %v1129_v10, %v10898_v17  ;;  %v2141_v62 = vsel %vm1523_vm1, %v2139_v37, %v2140_v11  ;;  %v10932_v37 = vld [vmem:[#allocation2 + $0x3a8] sm:$0xff] }
 0x1ed   : > { %v10905_v52 = vpop.permute.xlu0 %1989  ;;  %2187 = vrot.lane.b32.xlu1 %v2137_v24, %s9100_s20  ;;  %8563 = vmatmul.mubr.msk.bf16.gmra.mrb[8].mxu1 %vm361_vm0, %v1131_v43  ;;  %v10927_v24 = vld [vmem:[#allocation2 + $0x390] sm:$0xff]  ;;  %15726 = vst [vmem:[#allocation185_spill] sm:$0xff] %v10932_v37  ;;  %v1135_v43 = vrot.slane %v10932_v37, 4 }
 0x1ee   : > { %15720 = vst [vmem:[#allocation179_spill] sm:$0xff] %v10905_v52  ;;  %15724 = vst [vmem:[#allocation183_spill] sm:$0xff] %v10927_v24  ;;  %v10930_v10 = vrot.slane %v10927_v24, 4 }
 0x1ef   : > { %2185 = vrot.lane.b32.xlu0 %v2138_v42, %s9100_s20  ;;  %v10918_v52 = vpop.permute.xlu1 %1995  ;;  %v10935_v42 = vld [vmem:[#allocation2 + $0x3b0] sm:$0xff] }
 0x1f0   : > { %15721 = vst [vmem:[#allocation180_spill] sm:$0xff] %v10918_v52  ;;  %15725 = vst [vmem:[#allocation184_spill] sm:$0xff] %v10930_v10  ;;  %v10938_v17 = vrot.slane %v10935_v42, 4  ;;  %v1134_v24 = vsel %vm856_vm5, %v1132_v35, %v10930_v10  ;;  %v10962_v10 = vld [vmem:[#allocation2 + $0x3c8] sm:$0xff] }
 0x1f1   : > { %v10920_v14 = vpop.permute.xlu0 %1993  ;;  %2191 = vrot.lane.b32.xlu1 %v2140_v11, %s9100_s20  ;;  %15727 = vst [vmem:[#allocation186_spill] sm:$0xff] %v10935_v42  ;;  %v2145_v11 = vrot.slane %v10676_v45, 3  ;;  %8566 = vmatprep.mubr.msk.bf16.mxu1 %vm361_vm0, %v1134_v24  ;;  %v2149_v42 = vrot.slane %v10686_v7, 3  ;;  %15733 = vst [vmem:[#allocation192_spill] sm:$0xff] %v10962_v10  ;;  %v1138_v24 = vrot.slane %v10962_v10, 4 }
 0x1f2   : > { %15722 = vst [vmem:[#allocation181_spill] sm:$0xff] %v10920_v14  ;;  %15728 = vst [vmem:[#allocation187_spill] sm:$0xff] %v10938_v17  ;;  %v2146_v14 = vrot.slane %v10674_v21, 3  ;;  %v1137_v37 = vsel %vm856_vm5, %v1135_v43, %v10938_v17 }
 0x1f3   : > { %2189 = vrot.lane.b32.xlu0 %v2141_v62, %s9100_s20  ;;  %v2144_v62 = vsel %vm1523_vm1, %v2142_v34, %v2143_v40  ;;  %v10943_v52 = vpop.permute.xlu1 %1999  ;;  %v2148_v34 = vrot.slane %v10688_v57, 3 }
 0x1f4   : > { %15729 = vst [vmem:[#allocation188_spill] sm:$0xff] %v10943_v52  ;;  %v2147_v52 = vsel %vm1523_vm1, %v2145_v11, %v2146_v14  ;;  %v10972_v11 = vld [vmem:[#allocation2 + $0x3e8] sm:$0xff] }
 0x1f5   : > { %v10945_v6 = vpop.permute.xlu0 %1997  ;;  %2195 = vrot.lane.b32.xlu1 %v2143_v40, %s9100_s20  ;;  %8567 = vmatmul.mubr.msk.bf16.gmra.mrb[12].mxu1 %vm361_vm0, %v1137_v37  ;;  %v10967_v40 = vld [vmem:[#allocation2 + $0x3d0] sm:$0xff]  ;;  %15736 = vst [vmem:[#allocation195_spill] sm:$0xff] %v10972_v11  ;;  %v1141_v37 = vrot.slane %v10972_v11, 4 }
 0x1f6   : > { %15730 = vst [vmem:[#allocation189_spill] sm:$0xff] %v10945_v6  ;;  %15734 = vst [vmem:[#allocation193_spill] sm:$0xff] %v10967_v40  ;;  %v10970_v43 = vrot.slane %v10967_v40, 4 }
 0x1f7   : > { %2193 = vrot.lane.b32.xlu0 %v2144_v62, %s9100_s20  ;;  %v10958_v6 = vpop.permute.xlu1 %2003  ;;  %v10975_v62 = vld [vmem:[#allocation2 + $0x3f0] sm:$0xff] }
 0x1f8   : > { %15731 = vst [vmem:[#allocation190_spill] sm:$0xff] %v10958_v6  ;;  %15735 = vst [vmem:[#allocation194_spill] sm:$0xff] %v10970_v43  ;;  %v10978_v17 = vrot.slane %v10975_v62, 4  ;;  %v1140_v40 = vsel %vm856_vm5, %v1138_v24, %v10970_v43  ;;  %v11002_v43 = vld [vmem:[#allocation2 + $0x408] sm:$0xff] }
 0x1f9   : > { %v10960_v35 = vpop.permute.xlu0 %2001  ;;  %2199 = vrot.lane.b32.xlu1 %v2146_v14, %s9100_s20  ;;  %15737 = vst [vmem:[#allocation196_spill] sm:$0xff] %v10975_v62  ;;  %v2151_v14 = vrot.slane %v10700_v8, 3  ;;  %8570 = vmatprep.mubr.msk.bf16.mxu1 %vm361_vm0, %v1140_v40  ;;  %v2155_v62 = vrot.slane %v10710_v47, 3  ;;  %15743 = vst [vmem:[#allocation202_spill] sm:$0xff] %v11002_v43  ;;  %v1144_v40 = vrot.slane %v11002_v43, 4 }
 0x1fa   : > { %15732 = vst [vmem:[#allocation191_spill] sm:$0xff] %v10960_v35  ;;  %15738 = vst [vmem:[#allocation197_spill] sm:$0xff] %v10978_v17  ;;  %v2152_v35 = vrot.slane %v10698_v20, 3  ;;  %v1143_v11 = vsel %vm856_vm5, %v1141_v37, %v10978_v17 }
 0x1fb   : > { %2197 = vrot.lane.b32.xlu0 %v2147_v52, %s9100_s20  ;;  %v2150_v52 = vsel %vm1523_vm1, %v2148_v34, %v2149_v42  ;;  %v10983_v6 = vpop.permute.xlu1 %2007  ;;  %v2154_v34 = vrot.slane %v10712_v31, 3 }
 0x1fc   : > { %15739 = vst [vmem:[#allocation198_spill] sm:$0xff] %v10983_v6  ;;  %v2153_v6 = vsel %vm1523_vm1, %v2151_v14, %v2152_v35  ;;  %v11012_v14 = vld [vmem:[#allocation2 + $0x428] sm:$0xff] }
 0x1fd   : > { %v10985_v10 = vpop.permute.xlu0 %2005  ;;  %2203 = vrot.lane.b32.xlu1 %v2149_v42, %s9100_s20  ;;  %8571 = vmatmul.mubr.msk.bf16.gmra.mrb[16].mxu1 %vm361_vm0, %v1143_v11  ;;  %v11007_v42 = vld [vmem:[#allocation2 + $0x410] sm:$0xff]  ;;  %15746 = vst [vmem:[#allocation205_spill] sm:$0xff] %v11012_v14  ;;  %v1147_v11 = vrot.slane %v11012_v14, 4 }
 0x1fe   : > { %15740 = vst [vmem:[#allocation199_spill] sm:$0xff] %v10985_v10  ;;  %15744 = vst [vmem:[#allocation203_spill] sm:$0xff] %v11007_v42  ;;  %v11010_v37 = vrot.slane %v11007_v42, 4 }
 0x1ff   : > { %2201 = vrot.lane.b32.xlu0 %v2150_v52, %s9100_s20  ;;  %v10998_v10 = vpop.permute.xlu1 %2011  ;;  %v11015_v52 = vld [vmem:[#allocation2 + $0x430] sm:$0xff] }
 0x200   : > { %15741 = vst [vmem:[#allocation200_spill] sm:$0xff] %v10998_v10  ;;  %15745 = vst [vmem:[#allocation204_spill] sm:$0xff] %v11010_v37  ;;  %v11018_v17 = vrot.slane %v11015_v52, 4  ;;  %v1146_v42 = vsel %vm856_vm5, %v1144_v40, %v11010_v37 }
 0x201   : > { %v11000_v24 = vpop.permute.xlu0 %2009  ;;  %2207 = vrot.lane.b32.xlu1 %v2152_v35, %s9100_s20  ;;  %15747 = vst [vmem:[#allocation206_spill] sm:$0xff] %v11015_v52  ;;  %v2157_v35 = vrot.slane %v10724_v27, 3  ;;  %8574 = vmatprep.mubr.msk.bf16.mxu1 %vm361_vm0, %v1146_v42  ;;  %v2161_v52 = vrot.slane %v10734_v18, 3  ;;  %v1153_v42 = vrot.slane %v10270_v3, 4 }
 0x202   : > { %15742 = vst [vmem:[#allocation201_spill] sm:$0xff] %v11000_v24  ;;  %15748 = vst [vmem:[#allocation207_spill] sm:$0xff] %v11018_v17  ;;  %v2158_v24 = vrot.slane %v10722_v38, 3  ;;  %v1149_v14 = vsel %vm856_vm5, %v1147_v11, %v11018_v17  ;;  %v1150_v11 = vrot.slane %v10258_v4, 4 }
 0x203   : > { %2205 = vrot.lane.b32.xlu0 %v2153_v6, %s9100_s20  ;;  %v2156_v6 = vsel %vm1523_vm1, %v2154_v34, %v2155_v62  ;;  %v11023_v10 = vpop.permute.xlu1 %2015  ;;  %v2160_v34 = vrot.slane %v10736_v44, 3 }
 0x204   : > { %15749 = vst [vmem:[#allocation208_spill] sm:$0xff] %v11023_v10  ;;  %v2159_v10 = vsel %vm1523_vm1, %v2157_v35, %v2158_v24  ;;  %v2163_v35 = vrot.slane %v10748_v28, 3 }
 0x205   : > { %v11025_v43 = vpop.permute.xlu0 %2013  ;;  %2211 = vrot.lane.b32.xlu1 %v2155_v62, %s9100_s20  ;;  %8575 = vmatmul.mubr.msk.bf16.gmra.mrb[20].mxu1 %vm361_vm0, %v1149_v14  ;;  %v11046_v62 = vrot.slane %v10256_v61, 4  ;;  %v2164_v14 = vrot.slane %v10746_v48, 3  ;;  %v2162_v17 = vsel %vm1523_vm1, %v2160_v34, %v2161_v52 }
 0x206   : > { %15750 = vst [vmem:[#allocation209_spill] sm:$0xff] %v11025_v43 }
 0x207   : > { %2209 = vrot.lane.b32.xlu0 %v2156_v6, %s9100_s20  ;;  %v11038_v43 = vpop.permute.xlu1 %2019  ;;  %15753 = vst [vmem:[#allocation212_spill] sm:$0xff] %v11046_v62  ;;  %v11050_v6 = vrot.slane %v10268_v54, 4  ;;  %v2167_v54 = vrot.slane %v10764_v46, 3  ;;  %v2165_v34 = vsel %vm1523_vm1, %v2163_v35, %v2164_v14  ;;  %v2170_v35 = vrot.slane %v10782_v55, 3 }
 0x208   : > { %15751 = vst [vmem:[#allocation210_spill] sm:$0xff] %v11038_v43  ;;  %v15809_v43 = vld [vmem:[#allocation37_spill] sm:$0xff] }
 0x209   : > { %v11040_v40 = vpop.permute.xlu0 %2017  ;;  %2215 = vrot.lane.b32.xlu1 %v2158_v24, %s9100_s20  ;;  %15754 = vst [vmem:[#allocation213_spill] sm:$0xff] %v11050_v6  ;;  %v1155_v61 = vsel %vm856_vm5, %v1153_v42, %v11050_v6  ;;  %v2166_v24 = vrot.slane %v10766_v50, 3  ;;  %v1156_v42 = vrot.slane %v10282_v63, 4 }
 0x20a   : > { %15752 = vst [vmem:[#allocation211_spill] sm:$0xff] %v11040_v40  ;;  %v8964_v40 = vld [vmem:[#allocation2 + $0x290] sm:$0xff] }
 0x20b   : > { %2213 = vrot.lane.b32.xlu0 %v2159_v10, %s9100_s20  ;;  %v11055_v37 = vpop.permute.xlu1 %2023  ;;  %v1152_v10 = vsel %vm856_vm5, %v1150_v11, %v11046_v62  ;;  %v2168_v6 = vsel %vm1523_vm1, %v2166_v24, %v2167_v54  ;;  %v2172_v24 = vrot.slane %v10802_v5, 3 }
 0x20c   : > { %15755 = vst [vmem:[#allocation214_spill] sm:$0xff] %v11055_v37  ;;  %8578 = vmatprep.mubr.msk.bf16.mxu1 %vm361_vm0, %v1152_v10  ;;  %v11082_v10 = vrot.slane %v10292_v15, 4  ;;  %v2173_v15 = vrot.slane %v10800_v32, 3  ;;  %v8963_v37 = vld [vmem:[#allocation2 + $0x250] sm:$0xff] }
 0x20d   : > { %v11057_v4 = vpop.permute.xlu0 %2021  ;;  %2219 = vrot.lane.b32.xlu1 %v2161_v52, %s9100_s20  ;;  %8579 = vmatmul.mubr.msk.bf16.gmra.mrb[24].mxu1 %vm361_vm0, %v1155_v61  ;;  %v1159_v52 = vrot.slane %v10294_v60, 4  ;;  %v2169_v61 = vrot.slane %v10784_v26, 3 }
 0x20e   : > { %15756 = vst [vmem:[#allocation215_spill] sm:$0xff] %v11057_v4  ;;  %15760 = vst [vmem:[#allocation219_spill] sm:$0xff] %v11082_v10  ;;  %v2174_v60 = vsel %vm1523_vm1, %v2172_v24, %v2173_v15  ;;  %v2179_v24 = vrot.slane %v10856_v29, 3 }
 0x20f   : > { %2217 = vrot.lane.b32.xlu0 %v2162_v17, %s9100_s20  ;;  %v11070_v3 = vpop.permute.xlu1 %2027  ;;  %v11078_v17 = vrot.slane %v10280_v59, 4  ;;  %v1161_v59 = vsel %vm856_vm5, %v1159_v52, %v11082_v10  ;;  %v2175_v10 = vrot.slane %v10823_v33, 3 }
 0x210   : > { %15757 = vst [vmem:[#allocation216_spill] sm:$0xff] %v11070_v3  ;;  %v8031_v3 = vld [vmem:[#allocation2 + $0x228] sm:$0xff] }
 0x211   : > { %v11072_v11 = vpop.permute.xlu0 %2025  ;;  %2223 = vrot.lane.b32.xlu1 %v2164_v14, %s9100_s20  ;;  %15759 = vst [vmem:[#allocation218_spill] sm:$0xff] %v11078_v17  ;;  %v1158_v14 = vsel %vm856_vm5, %v1156_v42, %v11078_v17  ;;  %v8917_v42 = vld [vmem:[%s15347_s2] sm:$0xff]  }
 0x212   : > { %15758 = vst [vmem:[#allocation217_spill] sm:$0xff] %v11072_v11  ;;  %8582 = vmatprep.mubr.msk.bf16.mxu1 %vm361_vm0, %v1158_v14  ;;  %8590 = vmatprep.subr.bf16.mxu1 %v8917_v42  ;;  %v11117_v14 = vrot.slane %v10316_v36, 4 }
 0x213   : > { %2221 = vrot.lane.b32.xlu0 %v2165_v34, %s9100_s20  ;;  %v11087_v62 = vpop.permute.xlu1 %2031  ;;  %v2171_v34 = vsel %vm1523_vm1, %v2169_v61, %v2170_v35  ;;  %v1165_v61 = vrot.slane %v10318_v49, 4  ;;  %8591 = vmatpush3.bf16.msra.mxu1 %v8917_v42  ;;  %v2178_v42 = vrot.slane %v10858_v16, 3 }
 0x214   : > { %15761 = vst [vmem:[#allocation220_spill] sm:$0xff] %v11087_v62  ;;  %15766 = vst [vmem:[#allocation225_spill] sm:$0xff] %v11117_v14 }
 0x215   : > { %v11089_v63 = vpop.permute.xlu0 %2029  ;;  %2227 = vrot.lane.b32.xlu1 %v2167_v54, %s9100_s20  ;;  %8583 = vmatmul.mubr.msk.bf16.gmra.mrb[28].mxu1 %vm361_vm0, %v1161_v59  ;;  %v1162_v54 = vrot.slane %v10306_v25, 4  ;;  %v2176_v59 = vrot.slane %v10821_v51, 3  ;;  %v1167_v36 = vsel %vm856_vm5, %v1165_v61, %v11117_v14 }
 0x216   : > { %15762 = vst [vmem:[#allocation221_spill] sm:$0xff] %v11089_v63  ;;  %v11323_v63 = vld [vmem:[#allocation2 + $0x1f0] sm:$0xff] }
 0x217   : > { %2225 = vrot.lane.b32.xlu0 %v2168_v6, %s9100_s20  ;;  %v11105_v17 = vpop.permute.xlu1 %2035  ;;  %v11113_v6 = vrot.slane %v10304_v30, 4  ;;  %v2177_v25 = vsel %vm1523_vm1, %v2175_v10, %v2176_v59  ;;  %v2246_v10 = vrot.slane %v10626_v0, 6  ;;  %15800 = vst [vmem:[#allocation259_spill] sm:$0xff] %v11323_v63 }
 0x218   : > { %15763 = vst [vmem:[#allocation222_spill] sm:$0xff] %v11105_v17  ;;  %v11313_v17 = vld [vmem:[#allocation2 + $0x1d0] sm:$0xff] }
 0x219   : > { %v11107_v52 = vpop.permute.xlu0 %2033  ;;  %2231 = vrot.lane.b32.xlu1 %v2170_v35, %s9100_s20  ;;  %15765 = vst [vmem:[#allocation224_spill] sm:$0xff] %v11113_v6  ;;  %v8918_v35 = vld [vmem:[%s15347_s2 + $0x8] sm:$0xff]   ;;  %v1164_v49 = vsel %vm856_vm5, %v1162_v54, %v11113_v6  ;;  %v8919_v54 = vld [vmem:[%s15347_s2 + $0x10] ss:$0 sps:$4 sm:$0x33]   ;;  %15797 = vst [vmem:[#allocation256_spill] sm:$0xff] %v11313_v17 }
 0x21a   : > { %15764 = vst [vmem:[#allocation223_spill] sm:$0xff] %v11107_v52  ;;  %8586 = vmatprep.mubr.msk.bf16.mxu1 %vm361_vm0, %v1164_v49  ;;  %8592 = vmatprep.subr.bf16.mxu1 %v8918_v35  ;;  %v8019_v52 = vld [vmem:[#allocation2 + $0x1c8] sm:$0xff] }
 0x21b   : > { %2229 = vrot.lane.b32.xlu0 %v2171_v34, %s9100_s20  ;;  %v11125_v34 = vpop.permute.xlu1 %2071  ;;  %8593 = vmatpush3.bf16.msra.mxu1 %v8918_v35  ;;  %v2249_v35 = vrot.slane %v10638_v39, 6 }
 0x21c   : > { %8717 = vmatprep.subr.msk.bf16.mxu1 %vm1222_vm4, %v8919_v54 }
 0x21d   : > { %v11127_v30 = vpop.permute.xlu0 %2069  ;;  %2235 = vrot.lane.b32.xlu1 %v2173_v15, %s9100_s20  ;;  %8587 = vmatmul.mubr.msk.bf16.gmra.mrb[32].mxu1 %vm361_vm0, %v1167_v36  ;;  %v2245_v15 = vrot.slane %v10628_v41, 6  ;;  %v2180_v36 = vsel %vm1523_vm1, %v2178_v42, %v2179_v24  ;;  %v2252_v42 = vrot.slane %v10650_v58, 6 }
 0x21f   : > { %2233 = vrot.lane.b32.xlu0 %v2174_v60, %s9100_s20  ;;  %v11143_v61 = vpop.permute.xlu1 %2075  ;;  %v3063_v60 = vsel %vm1222_vm4, %v8919_v54, 0 }
 0x220   : > { %8595 = vmatpush3.bf16.msra.mxu1 %v3063_v60  ;;  %v2255_v60 = vrot.slane %v10662_v23, 6 }
 0x221   : > { %v11145_v49 = vpop.permute.xlu0 %2073  ;;  %2239 = vrot.lane.b32.xlu1 %v2176_v59, %s9100_s20  ;;  %v2248_v59 = vrot.slane %v10640_v13, 6 }
 0x223   : > { %2237 = vrot.lane.b32.xlu0 %v2177_v25, %s9100_s20  ;;  %v11154_v14 = vpop.permute.xlu1 %2079  ;;  %v2247_v25 = vsel %vm1222_vm4, %v2245_v15, %v2246_v10  ;;  %v2250_v54 = vsel %vm1222_vm4, %v2248_v59, %v2249_v35 }
 0x225   : > { %v11156_v6 = vpop.permute.xlu0 %2077  ;;  %2243 = vrot.lane.b32.xlu1 %v2179_v24, %s9100_s20  ;;  %v2251_v24 = vrot.slane %v10652_v22, 6  ;;  %v2258_v22 = vrot.slane %v10674_v21, 6 }
 0x227   : > { %2241 = vrot.lane.b32.xlu0 %v2180_v36, %s9100_s20  ;;  %v11163_v0 = vpop.permute.xlu1 %2083  ;;  %v2253_v15 = vsel %vm1222_vm4, %v2251_v24, %v2252_v42 }
 0x228   : > { %15767 = vst [vmem:[#allocation226_spill] sm:$0xff] %v11163_v0  ;;  %v15878_v0 = vld [vmem:[#allocation81_spill] sm:$0xff] }
 0x229   : > { %v11165_v41 = vpop.permute.xlu0 %2081  ;;  %2295 = vrot.lane.b32.xlu1 %v2246_v10, %s9101_s13  ;;  %v2254_v10 = vrot.slane %v10664_v56, 6  ;;  %v2261_v56 = vrot.slane %v10686_v7, 6 }
 0x22a   : > { %15768 = vst [vmem:[#allocation227_spill] sm:$0xff] %v11165_v41 }
 0x22b   : > { %2293 = vrot.lane.b32.xlu0 %v2247_v25, %s9101_s13  ;;  %v11172_v39 = vpop.permute.xlu1 %2087  ;;  %v2256_v59 = vsel %vm1222_vm4, %v2254_v10, %v2255_v60 }
 0x22c   : > { %15769 = vst [vmem:[#allocation228_spill] sm:$0xff] %v11172_v39 }
 0x22d   : > { %v11174_v13 = vpop.permute.xlu0 %2085  ;;  %2299 = vrot.lane.b32.xlu1 %v2249_v35, %s9101_s13  ;;  %v2257_v35 = vrot.slane %v10676_v45, 6  ;;  %v2264_v45 = vrot.slane %v10698_v20, 6 }
 0x22e   : > { %15770 = vst [vmem:[#allocation229_spill] sm:$0xff] %v11174_v13 }
 0x22f   : > { %2297 = vrot.lane.b32.xlu0 %v2250_v54, %s9101_s13  ;;  %v11181_v36 = vpop.permute.xlu1 %2091  ;;  %v2259_v24 = vsel %vm1222_vm4, %v2257_v35, %v2258_v22 }
 0x230   : > { %15771 = vst [vmem:[#allocation230_spill] sm:$0xff] %v11181_v36  ;;  %v15846_v36 = vld [vmem:[#allocation192_spill] sm:$0xff] }
 0x231   : > { %v11183_v58 = vpop.permute.xlu0 %2089  ;;  %2303 = vrot.lane.b32.xlu1 %v2252_v42, %s9101_s13  ;;  %v2260_v42 = vrot.slane %v10688_v57, 6  ;;  %v2267_v57 = vrot.slane %v10710_v47, 6 }
 0x232   : > { %15772 = vst [vmem:[#allocation231_spill] sm:$0xff] %v11183_v58  ;;  %v15843_v58 = vld [vmem:[#allocation54_spill] sm:$0xff] }
 0x233   : > { %2301 = vrot.lane.b32.xlu0 %v2253_v15, %s9101_s13  ;;  %v11190_v25 = vpop.permute.xlu1 %2095  ;;  %v2262_v10 = vsel %vm1222_vm4, %v2260_v42, %v2261_v56 }
 0x234   : > { %15773 = vst [vmem:[#allocation232_spill] sm:$0xff] %v11190_v25 }
 0x235   : > { %v11192_v23 = vpop.permute.xlu0 %2093  ;;  %2307 = vrot.lane.b32.xlu1 %v2255_v60, %s9101_s13  ;;  %v2263_v60 = vrot.slane %v10700_v8, 6  ;;  %v2270_v8 = vrot.slane %v10722_v38, 6 }
 0x236   : > { %15774 = vst [vmem:[#allocation233_spill] sm:$0xff] %v11192_v23  ;;  %v15834_v23 = vld [vmem:[#allocation175_spill] sm:$0xff] }
 0x237   : > { %2305 = vrot.lane.b32.xlu0 %v2256_v59, %s9101_s13  ;;  %v11199_v54 = vpop.permute.xlu1 %2099  ;;  %v2265_v35 = vsel %vm1222_vm4, %v2263_v60, %v2264_v45 }
 0x238   : > { %15775 = vst [vmem:[#allocation234_spill] sm:$0xff] %v11199_v54  ;;  %v15821_v54 = vld [vmem:[#allocation166_spill] sm:$0xff] }
 0x239   : > { %v11201_v21 = vpop.permute.xlu0 %2097  ;;  %2311 = vrot.lane.b32.xlu1 %v2258_v22, %s9101_s13  ;;  %v2266_v22 = vrot.slane %v10712_v31, 6  ;;  %v2273_v31 = vrot.slane %v10734_v18, 6 }
 0x23a   : > { %15776 = vst [vmem:[#allocation235_spill] sm:$0xff] %v11201_v21  ;;  %v15820_v21 = vld [vmem:[#allocation44_spill] sm:$0xff] }
 0x23b   : > { %2309 = vrot.lane.b32.xlu0 %v2259_v24, %s9101_s13  ;;  %v11208_v15 = vpop.permute.xlu1 %2103  ;;  %v2268_v42 = vsel %vm1222_vm4, %v2266_v22, %v2267_v57 }
 0x23c   : > { %15777 = vst [vmem:[#allocation236_spill] sm:$0xff] %v11208_v15  ;;  %v8969_v15 = vld [vmem:[#allocation2 + $0x2a8] sm:$0xff] }
 0x23d   : > { %v11210_v7 = vpop.permute.xlu0 %2101  ;;  %2315 = vrot.lane.b32.xlu1 %v2261_v56, %s9101_s13  ;;  %v2269_v56 = vrot.slane %v10724_v27, 6  ;;  %v2276_v27 = vrot.slane %v10746_v48, 6 }
 0x23e   : > { %15778 = vst [vmem:[#allocation237_spill] sm:$0xff] %v11210_v7 }
 0x23f   : > { %2313 = vrot.lane.b32.xlu0 %v2262_v10, %s9101_s13  ;;  %v11217_v59 = vpop.permute.xlu1 %2107  ;;  %v2271_v60 = vsel %vm1222_vm4, %v2269_v56, %v2270_v8 }
 0x240   : > { %15779 = vst [vmem:[#allocation238_spill] sm:$0xff] %v11217_v59  ;;  %v15814_v59 = vld [vmem:[#allocation40_spill] sm:$0xff] }
 0x241   : > { %v11219_v20 = vpop.permute.xlu0 %2105  ;;  %2319 = vrot.lane.b32.xlu1 %v2264_v45, %s9101_s13  ;;  %v2272_v45 = vrot.slane %v10736_v44, 6  ;;  %v2279_v44 = vrot.slane %v10764_v46, 6 }
 0x242   : > { %15780 = vst [vmem:[#allocation239_spill] sm:$0xff] %v11219_v20  ;;  %v8966_v20 = vld [vmem:[#allocation2 + $0x2b0] sm:$0xff] }
 0x243   : > { %2317 = vrot.lane.b32.xlu0 %v2265_v35, %s9101_s13  ;;  %v11226_v24 = vpop.permute.xlu1 %2111  ;;  %v2274_v22 = vsel %vm1222_vm4, %v2272_v45, %v2273_v31 }
 0x244   : > { %15781 = vst [vmem:[#allocation240_spill] sm:$0xff] %v11226_v24  ;;  %v8965_v24 = vld [vmem:[#allocation2 + $0x248] sm:$0xff] }
 0x245   : > { %v11228_v47 = vpop.permute.xlu0 %2109  ;;  %2323 = vrot.lane.b32.xlu1 %v2267_v57, %s9101_s13  ;;  %v2275_v57 = vrot.slane %v10748_v28, 6  ;;  %v2282_v28 = vrot.slane %v10782_v55, 6 }
 0x246   : > { %15782 = vst [vmem:[#allocation241_spill] sm:$0xff] %v11228_v47  ;;  %v11365_v47 = vld [vmem:[#allocation2 + $0x250] sm:$0xff] }
 0x247   : > { %2321 = vrot.lane.b32.xlu0 %v2268_v42, %s9101_s13  ;;  %v11235_v10 = vpop.permute.xlu1 %2115  ;;  %v2277_v56 = vsel %vm1222_vm4, %v2275_v57, %v2276_v27  ;;  %15812 = vst [vmem:[#allocation37_spill] sm:$0xff] %v11365_v47 }
 0x248   : > { %15783 = vst [vmem:[#allocation242_spill] sm:$0xff] %v11235_v10 }
 0x249   : > { %v11237_v38 = vpop.permute.xlu0 %2113  ;;  %2327 = vrot.lane.b32.xlu1 %v2270_v8, %s9101_s13  ;;  %v2278_v8 = vrot.slane %v10766_v50, 6  ;;  %v2285_v50 = vrot.slane %v10800_v32, 6 }
 0x24a   : > { %15784 = vst [vmem:[#allocation243_spill] sm:$0xff] %v11237_v38  ;;  %v15808_v38 = vld [vmem:[#allocation35_spill] sm:$0xff] }
 0x24b   : > { %2325 = vrot.lane.b32.xlu0 %v2271_v60, %s9101_s13  ;;  %v11244_v35 = vpop.permute.xlu1 %2119  ;;  %v2280_v45 = vsel %vm1222_vm4, %v2278_v8, %v2279_v44  ;;  %v11355_v10 = vsel %vm361_vm0, %v8963_v37, %v15808_v38  ;;  %v11371_v37 = vsel %vm361_vm0, %v8966_v20, %v10141_v19  ;;  %v8967_v38 = vld [vmem:[#allocation2 + $0x288] sm:$0xff] }
 0x24c   : > { %15785 = vst [vmem:[#allocation244_spill] sm:$0xff] %v11244_v35  ;;  %v3441_v35 = vrot.slane %v8031_v3, 6  ;;  %v8971_v19 = vld [vmem:[#allocation2 + $0x2c8] sm:$0xff] }
 0x24d   : > { %v11246_v18 = vpop.permute.xlu0 %2117  ;;  %2331 = vrot.lane.b32.xlu1 %v2273_v31, %s9101_s13  ;;  %v2281_v31 = vrot.slane %v10784_v26, 6  ;;  %v2288_v26 = vrot.slane %v10821_v51, 6  ;;  %v11389_v20 = vsel %vm361_vm0, %v8971_v19, %v10167_v2  ;;  %v15817_v2 = vld [vmem:[#allocation163_spill] sm:$0xff] }
 0x24e   : > { %15786 = vst [vmem:[#allocation245_spill] sm:$0xff] %v11246_v18  ;;  %v11343_v18 = vld [vmem:[#allocation2 + $0x230] sm:$0xff] }
 0x24f   : > { %2329 = vrot.lane.b32.xlu0 %v2274_v22, %s9101_s13  ;;  %v11253_v42 = vpop.permute.xlu1 %2123  ;;  %v2283_v57 = vsel %vm1222_vm4, %v2281_v31, %v2282_v28  ;;  %15806 = vst [vmem:[#allocation265_spill] sm:$0xff] %v11343_v18 }
 0x250   : > { %15787 = vst [vmem:[#allocation246_spill] sm:$0xff] %v11253_v42  ;;  %v11333_v42 = vld [vmem:[#allocation2 + $0x210] sm:$0xff] }
 0x251   : > { %v11255_v48 = vpop.permute.xlu0 %2121  ;;  %2335 = vrot.lane.b32.xlu1 %v2276_v27, %s9101_s13  ;;  %v2284_v27 = vrot.slane %v10802_v5, 6  ;;  %v2291_v5 = vrot.slane %v10856_v29, 6  ;;  %15803 = vst [vmem:[#allocation262_spill] sm:$0xff] %v11333_v42 }
 0x252   : > { %15788 = vst [vmem:[#allocation247_spill] sm:$0xff] %v11255_v48  ;;  %v8027_v48 = vld [vmem:[#allocation2 + $0x208] sm:$0xff] }
 0x253   : > { %2333 = vrot.lane.b32.xlu0 %v2277_v56, %s9101_s13  ;;  %v11262_v60 = vpop.permute.xlu1 %2127  ;;  %v2286_v8 = vsel %vm1222_vm4, %v2284_v27, %v2285_v50  ;;  %v11293_v27 = vld [vmem:[#allocation2 + $0x190] sm:$0xff]  ;;  %v3438_v11 = vrot.slane %v8027_v48, 6 }
 0x254   : > { %15789 = vst [vmem:[#allocation248_spill] sm:$0xff] %v11262_v60  ;;  %v3427_v29 = vrot.slane %v11293_v27, 6  ;;  %v8023_v60 = vld [vmem:[#allocation2 + $0x1e8] sm:$0xff]  ;;  %v15807_v48 = vld [vmem:[#allocation34_spill] sm:$0xff] }
 0x255   : > { %v11264_v46 = vpop.permute.xlu0 %2125  ;;  %2339 = vrot.lane.b32.xlu1 %v2279_v44, %s9101_s13  ;;  %v2287_v44 = vrot.slane %v10823_v33, 6  ;;  %v8011_v33 = vld [vmem:[#allocation2 + $0x188] sm:$0xff]  ;;  %v3435_v62 = vrot.slane %v8023_v60, 6 }
 0x256   : > { %15790 = vst [vmem:[#allocation249_spill] sm:$0xff] %v11264_v46  ;;  %v3432_v46 = vrot.slane %v8019_v52, 6 }
 0x257   : > { %2337 = vrot.lane.b32.xlu0 %v2280_v45, %s9101_s13  ;;  %v11271_v22 = vpop.permute.xlu1 %2131  ;;  %v2289_v31 = vsel %vm1222_vm4, %v2287_v44, %v2288_v26  ;;  %v8015_v44 = vld [vmem:[#allocation2 + $0x1a8] sm:$0xff] }
 0x258   : > { %15791 = vst [vmem:[#allocation250_spill] sm:$0xff] %v11271_v22  ;;  %v3429_v22 = vrot.slane %v8015_v44, 6 }
 0x259   : > { %v11273_v55 = vpop.permute.xlu0 %2129  ;;  %2343 = vrot.lane.b32.xlu1 %v2282_v28, %s9101_s13  ;;  %v2290_v28 = vrot.slane %v10858_v16, 6 }
 0x25a   : > { %15792 = vst [vmem:[#allocation251_spill] sm:$0xff] %v11273_v55  ;;  %v11303_v55 = vld [vmem:[#allocation2 + $0x1b0] sm:$0xff] }
 0x25b   : > { %2341 = vrot.lane.b32.xlu0 %v2283_v57, %s9101_s13  ;;  %v11280_v56 = vpop.permute.xlu1 %2183  ;;  %v3426_v57 = vrot.slane %v8011_v33, 6  ;;  %15794 = vst [vmem:[#allocation253_spill] sm:$0xff] %v11303_v55 }
 0x25d   : > { %v11282_v32 = vpop.permute.xlu0 %2181  ;;  %2347 = vrot.lane.b32.xlu1 %v2285_v50, %s9101_s13  ;;  %v2292_v50 = vsel %vm1222_vm4, %v2290_v28, %v2291_v5 }
 0x25f   : > { %2345 = vrot.lane.b32.xlu0 %v2286_v8, %s9101_s13  ;;  %v11289_v45 = vpop.permute.xlu1 %2187 }
 0x261   : > { %v11291_v51 = vpop.permute.xlu0 %2185  ;;  %2351 = vrot.lane.b32.xlu1 %v2288_v26, %s9101_s13  ;;  %v3428_v26 = vsel %vm1222_vm4, %v3426_v57, %v3427_v29 }
 0x263   : > { %2349 = vrot.lane.b32.xlu0 %v2289_v31, %s9101_s13  ;;  %v11299_v8 = vpop.permute.xlu1 %2191  ;;  %v3430_v31 = vrot.slane %v11303_v55, 6  ;;  %v15862_v55 = vld [vmem:[#allocation66_spill] sm:$0xff] }
 0x265   : > { %v11301_v16 = vpop.permute.xlu0 %2189  ;;  %2355 = vrot.lane.b32.xlu1 %v2291_v5, %s9101_s13  ;;  %v3431_v5 = vsel %vm1222_vm4, %v3429_v22, %v3430_v31 }
 0x266   : > { %15793 = vst [vmem:[#allocation252_spill] sm:$0xff] %v11301_v16 }
 0x267   : > { %2353 = vrot.lane.b32.xlu0 %v2292_v50, %s9101_s13  ;;  %v11309_v28 = vpop.permute.xlu1 %2195  ;;  %v3433_v50 = vrot.slane %v11313_v17, 6 }
 0x268   : > { %15795 = vst [vmem:[#allocation254_spill] sm:$0xff] %v11309_v28 }
 0x269   : > { %v11311_v33 = vpop.permute.xlu0 %2193  ;;  %3476 = vrot.lane.b32.xlu1 %v3428_v26, %s9091_s17  ;;  %v3434_v26 = vsel %vm1222_vm4, %v3432_v46, %v3433_v50 }
 0x26a   : > { %15796 = vst [vmem:[#allocation255_spill] sm:$0xff] %v11311_v33  ;;  %v15861_v33 = vld [vmem:[#allocation205_spill] sm:$0xff] }
 0x26b   : > { %3474 = vrot.lane.b32.xlu0 %v3426_v57, %s9091_s17  ;;  %v11319_v29 = vpop.permute.xlu1 %2199  ;;  %v3436_v57 = vrot.slane %v11323_v63, 6  ;;  %v15838_v63 = vld [vmem:[#allocation182_spill] sm:$0xff] }
 0x26c   : > { %15798 = vst [vmem:[#allocation257_spill] sm:$0xff] %v11319_v29  ;;  %v15848_v29 = vld [vmem:[#allocation196_spill] sm:$0xff] }
 0x26d   : > { %v11321_v44 = vpop.permute.xlu0 %2197  ;;  %3480 = vrot.lane.b32.xlu1 %v3431_v5, %s9091_s17  ;;  %v3437_v5 = vsel %vm1222_vm4, %v3435_v62, %v3436_v57  ;;  %v8962_v57 = vld [vmem:[#allocation2 + $0x270] sm:$0xff] }
 0x26e   : > { %15799 = vst [vmem:[#allocation258_spill] sm:$0xff] %v11321_v44  ;;  %v11351_v4 = vsel %vm361_vm0, %v8962_v57, %v15807_v48  ;;  %v15813_v57 = vld [vmem:[#allocation38_spill] sm:$0xff]  ;;  %v15847_v44 = vld [vmem:[#allocation57_spill] sm:$0xff] }
 0x26f   : > { %3478 = vrot.lane.b32.xlu0 %v3429_v22, %s9091_s17  ;;  %v11329_v31 = vpop.permute.xlu1 %2203  ;;  %v3439_v22 = vrot.slane %v11333_v42, 6  ;;  %v2359_v48 = vsel %vm361_vm0, %v8965_v24, %v15813_v57  ;;  %v8970_v24 = vld [vmem:[#allocation2 + $0x2d0] sm:$0xff] }
 0x270   : > { %15801 = vst [vmem:[#allocation260_spill] sm:$0xff] %v11329_v31  ;;  %v11385_v57 = vsel %vm361_vm0, %v8970_v24, %v10165_v9  ;;  %v8973_v9 = vld [vmem:[#allocation2 + $0x2e8] sm:$0xff]  ;;  %v15836_v31 = vld [vmem:[#allocation183_spill] sm:$0xff] }
 0x271   : > { %v11331_v52 = vpop.permute.xlu0 %2201  ;;  %3484 = vrot.lane.b32.xlu1 %v3434_v26, %s9091_s17  ;;  %v3440_v26 = vsel %vm1222_vm4, %v3438_v11, %v3439_v22  ;;  %v8035_v22 = vld [vmem:[#allocation2 + $0x248] sm:$0xff] }
 0x272   : > { %15802 = vst [vmem:[#allocation261_spill] sm:$0xff] %v11331_v52  ;;  %v15835_v52 = vld [vmem:[#allocation50_spill] sm:$0xff] }
 0x273   : > { %3482 = vrot.lane.b32.xlu0 %v3432_v46, %s9091_s17  ;;  %v11339_v50 = vpop.permute.xlu1 %2207  ;;  %v3442_v46 = vrot.slane %v11343_v18, 6  ;;  %v15819_v18 = vld [vmem:[#allocation162_spill] sm:$0xff] }
 0x274   : > { %15804 = vst [vmem:[#allocation263_spill] sm:$0xff] %v11339_v50 }
 0x275   : > { %v11341_v60 = vpop.permute.xlu0 %2205  ;;  %3488 = vrot.lane.b32.xlu1 %v3437_v5, %s9091_s17  ;;  %v11359_v5 = vsel %vm361_vm0, %v8964_v40, %v15809_v43  ;;  %v11375_v43 = vsel %vm361_vm0, %v8967_v38, %v15814_v59  ;;  %v8968_v40 = vld [vmem:[#allocation2 + $0x268] sm:$0xff]  ;;  %v3445_v38 = vrot.slane %v11365_v47, 6  ;;  %v11412_v47 = vld [vmem:[#allocation2 + $0x270] sm:$0xff] }
 0x276   : > { %15805 = vst [vmem:[#allocation264_spill] sm:$0xff] %v11341_v60  ;;  %v2365_v7 = vsel %vm361_vm0, %v8968_v40, %v10153_v1  ;;  %v8972_v1 = vld [vmem:[#allocation2 + $0x2f0] sm:$0xff] }
 0x277   : > { %3486 = vrot.lane.b32.xlu0 %v3435_v62, %s9091_s17  ;;  %v11361_v62 = vpop.permute.xlu1 %2211  ;;  %v2392_v59 = vsel %vm361_vm0, %v8972_v1, %v10177_v53  ;;  %v15815_v40 = vld [vmem:[#allocation41_spill] sm:$0xff]  ;;  %v2404_v53 = vsel %vm361_vm0, %v15821_v54, %v15820_v21  ;;  %v15831_v54 = vld [vmem:[#allocation48_spill] sm:$0xff] }
 0x278   : > { %15810 = vst [vmem:[#allocation34_spill] sm:$0xff] %v11361_v62  ;;  %v2389_v24 = vsel %vm361_vm0, %v8973_v9, %v15815_v40  ;;  %v15816_v62 = vld [vmem:[#allocation42_spill] sm:$0xff]  ;;  %v8039_v1 = vld [vmem:[#allocation2 + $0x268] sm:$0xff]  ;;  %15824 = vst [vmem:[#allocation41_spill] sm:$0xff] %v11412_v47 }
 0x279   : > { %v11363_v3 = vpop.permute.xlu0 %2209  ;;  %3492 = vrot.lane.b32.xlu1 %v3440_v26, %s9091_s17  ;;  %v2398_v19 = vsel %vm361_vm0, %v15817_v2, %v15816_v62  ;;  %v15818_v26 = vld [vmem:[#allocation43_spill] sm:$0xff]  ;;  %v15825_v9 = vld [vmem:[#allocation45_spill] sm:$0xff]  ;;  %v15827_v62 = vld [vmem:[#allocation46_spill] sm:$0xff] }
 0x27a   : > { %15811 = vst [vmem:[#allocation35_spill] sm:$0xff] %v11363_v3  ;;  %v11381_v3 = vsel %vm361_vm0, %v8969_v15, %v10155_v12  ;;  %v3443_v12 = vsel %vm1222_vm4, %v3441_v35, %v3442_v46  ;;  %v3444_v15 = vrot.slane %v8035_v22, 6  ;;  %v15826_v40 = vld [vmem:[#allocation165_spill] sm:$0xff]  ;;  %v15832_v21 = vld [vmem:[#allocation176_spill] sm:$0xff] }
 0x27b   : > { %3490 = vrot.lane.b32.xlu0 %v3438_v11, %s9091_s17  ;;  %v2395_v11 = vsel %vm361_vm0, %v15819_v18, %v15818_v26  ;;  %v11408_v46 = vpop.permute.xlu1 %2215  ;;  %v2401_v60 = vsel %vm361_vm0, %v15826_v40, %v15825_v9  ;;  %v15828_v2 = vld [vmem:[#allocation173_spill] sm:$0xff]  ;;  %v15829_v18 = vld [vmem:[#allocation47_spill] sm:$0xff]  ;;  %v15830_v26 = vld [vmem:[#allocation172_spill] sm:$0xff]  ;;  %v2422_v9 = vsel %vm361_vm0, %v15836_v31, %v15835_v52 }
 0x27c   : > { %15822 = vst [vmem:[#allocation38_spill] sm:$0xff] %v11408_v46  ;;  %v2410_v50 = vsel %vm361_vm0, %v15828_v2, %v15827_v62  ;;  %v2407_v42 = vsel %vm361_vm0, %v15830_v26, %v15829_v18  ;;  %v2416_v46 = vsel %vm361_vm0, %v15832_v21, %v15831_v54  ;;  %v15837_v40 = vld [vmem:[#allocation51_spill] sm:$0xff]  ;;  %v15839_v2 = vld [vmem:[#allocation52_spill] sm:$0xff]  ;;  %v15840_v18 = vld [vmem:[#allocation186_spill] sm:$0xff]  ;;  %v3446_v54 = vsel %vm1222_vm4, %v3444_v15, %v3445_v38 }
 0x27d   : > { %v11410_v22 = vpop.permute.xlu0 %2213  ;;  %v2419_v62 = vsel %vm361_vm0, %v15838_v63, %v15837_v40  ;;  %3496 = vrot.lane.b32.xlu1 %v3443_v12, %s9091_s17  ;;  %v2428_v26 = vsel %vm361_vm0, %v15840_v18, %v15839_v2  ;;  %v15841_v21 = vld [vmem:[#allocation53_spill] sm:$0xff]  ;;  %v15845_v12 = vld [vmem:[#allocation55_spill] sm:$0xff]  ;;  %v2440_v2 = vsel %vm361_vm0, %v15848_v29, %v15847_v44  ;;  %v15859_v44 = vld [vmem:[#allocation206_spill] sm:$0xff] }
 0x27e   : > { %15823 = vst [vmem:[#allocation40_spill] sm:$0xff] %v11410_v22  ;;  %v15833_v22 = vld [vmem:[#allocation49_spill] sm:$0xff]  ;;  %v15858_v29 = vld [vmem:[#allocation63_spill] sm:$0xff] }
 0x27f   : > { %v2413_v25 = vsel %vm361_vm0, %v15834_v23, %v15833_v22  ;;  %3494 = vrot.lane.b32.xlu0 %v3441_v35, %s9091_s17  ;;  %v3447_v23 = vrot.slane %v8039_v1, 6  ;;  %v3448_v22 = vrot.slane %v11412_v47, 6  ;;  %v15842_v31 = vld [vmem:[#allocation185_spill] sm:$0xff]  ;;  %v2431_v35 = vsel %vm361_vm0, %v15846_v36, %v15845_v12  ;;  %v11454_v38 = vpop.permute.xlu1 %2219  ;;  %v15857_v12 = vld [vmem:[#allocation202_spill] sm:$0xff] }
 0x280   : > { %v2425_v52 = vsel %vm361_vm0, %v15842_v31, %v15841_v21  ;;  %v15844_v63 = vld [vmem:[#allocation193_spill] sm:$0xff]  ;;  %15849 = vst [vmem:[#allocation42_spill] sm:$0xff] %v11454_v38  ;;  %v15852_v21 = vld [vmem:[#allocation58_spill] sm:$0xff]  ;;  %v15853_v31 = vld [vmem:[#allocation195_spill] sm:$0xff]  ;;  %v2452_v38 = vsel %vm361_vm0, %v15859_v44, %v15858_v29 }
 0x281   : > { %v2434_v40 = vsel %vm361_vm0, %v15844_v63, %v15843_v58  ;;  %v11456_v1 = vpop.permute.xlu0 %2217  ;;  %v8043_v18 = vld [vmem:[#allocation2 + $0x288] sm:$0xff]  ;;  %v11458_v47 = vld [vmem:[#allocation2 + $0x290] sm:$0xff]  ;;  %v2437_v17 = vsel %vm361_vm0, %v15853_v31, %v15852_v21  ;;  %v15855_v63 = vld [vmem:[#allocation203_spill] sm:$0xff]  ;;  %v2457_v21 = vsel %vm2453_vm8, %v11355_v10, %v15862_v55  ;;  %3500 = vrot.lane.b32.xlu1 %v3446_v54, %s9091_s17 }
 0x282   : > { %15850 = vst [vmem:[#allocation163_spill] sm:$0xff] %v11456_v1  ;;  %15851 = vst [vmem:[#allocation43_spill] sm:$0xff] %v11458_v47  ;;  %v15854_v58 = vld [vmem:[#allocation60_spill] sm:$0xff]  ;;  %v15856_v36 = vld [vmem:[#allocation61_spill] sm:$0xff] }
 0x283   : > { %v2446_v13 = vsel %vm361_vm0, %v15855_v63, %v15854_v58  ;;  %v2443_v39 = vsel %vm361_vm0, %v15857_v12, %v15856_v36  ;;  %v15860_v1 = vld [vmem:[#allocation64_spill] sm:$0xff]  ;;  %v15863_v31 = vld [vmem:[#allocation67_spill] sm:$0xff]  ;;  %3498 = vrot.lane.b32.xlu0 %v3444_v15, %s9091_s17  ;;  %v15864_v58 = vld [vmem:[#allocation69_spill] sm:$0xff]  ;;  %v3449_v36 = vsel %vm1222_vm4, %v3447_v23, %v3448_v22  ;;  %v3450_v12 = vrot.slane %v8043_v18, 6  ;;  %v11498_v44 = vpop.permute.xlu1 %2223 }
 0x284   : > { %v2449_v28 = vsel %vm361_vm0, %v15861_v33, %v15860_v1  ;;  %v2455_v41 = vsel %vm2453_vm8, %v2359_v48, %v15863_v31  ;;  %v2461_v63 = vsel %vm2453_vm8, %v11351_v4, %v15864_v58  ;;  %v3451_v33 = vrot.slane %v11458_v47, 6  ;;  %v15865_v1 = vld [vmem:[#allocation70_spill] sm:$0xff]  ;;  %v15866_v10 = vld [vmem:[#allocation72_spill] sm:$0xff]  ;;  %v15867_v48 = vld [vmem:[#allocation73_spill] sm:$0xff]  ;;  %15869 = vst [vmem:[#allocation162_spill] sm:$0xff] %v11498_v44 }
 0x285   : > { %v2459_v29 = vsel %vm2453_vm8, %v2365_v7, %v15865_v1  ;;  %v2465_v55 = vsel %vm2453_vm8, %v11359_v5, %v15866_v10  ;;  %v2463_v15 = vsel %vm2453_vm8, %v11375_v43, %v15867_v48  ;;  %v15868_v54 = vld [vmem:[#allocation74_spill] sm:$0xff]  ;;  %v11500_v22 = vpop.permute.xlu0 %2221  ;;  %v8047_v18 = vld [vmem:[#allocation2 + $0x2a8] sm:$0xff]  ;;  %v15872_v7 = vld [vmem:[#allocation75_spill] sm:$0xff]  ;;  %3504 = vrot.lane.b32.xlu1 %v3449_v36, %s9091_s17 }
 0x286   : > { %v2469_v4 = vsel %vm2453_vm8, %v11371_v37, %v15868_v54  ;;  %15870 = vst [vmem:[#allocation44_spill] sm:$0xff] %v11500_v22  ;;  %v11502_v31 = vld [vmem:[#allocation2 + $0x2b0] sm:$0xff]  ;;  %v2467_v58 = vsel %vm2453_vm8, %v11381_v3, %v15872_v7  ;;  %v15873_v5 = vld [vmem:[#allocation76_spill] sm:$0xff]  ;;  %v15876_v54 = vld [vmem:[#allocation79_spill] sm:$0xff]  ;;  %v2479_v3 = vsel %vm2453_vm8, %v2395_v11, %v15878_v0  ;;  %v3452_v7 = vsel %vm1222_vm4, %v3450_v12, %v3451_v33 }
 0x287   : > { %15871 = vst [vmem:[#allocation166_spill] sm:$0xff] %v11502_v31  ;;  %v2473_v1 = vsel %vm2453_vm8, %v11385_v57, %v15873_v5  ;;  %v15874_v43 = vld [vmem:[#allocation77_spill] sm:$0xff]  ;;  %v15875_v37 = vld [vmem:[#allocation78_spill] sm:$0xff]  ;;  %v11517_v22 = vsel %vm2453_vm8, %v2389_v24, %v15876_v54  ;;  %v15877_v44 = vld [vmem:[#allocation80_spill] sm:$0xff]  ;;  %3502 = vrot.lane.b32.xlu0 %v3447_v23, %s9091_s17  ;;  %v3454_v5 = vrot.slane %v11502_v31, 6  ;;  %v11537_v36 = vpop.permute.xlu1 %2227 }
 0x288   : > { %v2471_v10 = vsel %vm2453_vm8, %v11389_v20, %v15874_v43  ;;  %v2477_v48 = vsel %vm2453_vm8, %v2392_v59, %v15875_v37  ;;  %v2481_v47 = vsel %vm2453_vm8, %v2398_v19, %v15877_v44  ;;  %v15879_v57 = vld [vmem:[#allocation82_spill] sm:$0xff]  ;;  %v3453_v59 = vrot.slane %v8047_v18, 6  ;;  %v15880_v24 = vld [vmem:[#allocation83_spill] sm:$0xff]  ;;  %v15882_v44 = vld [vmem:[#allocation84_spill] sm:$0xff]  ;;  %15884 = vst [vmem:[#allocation45_spill] sm:$0xff] %v11537_v36 }
 0x289   : > { %v2485_v20 = vsel %vm2453_vm8, %v2404_v53, %v15879_v57  ;;  %v2483_v43 = vsel %vm2453_vm8, %v2401_v60, %v15880_v24  ;;  %v15881_v37 = vld [vmem:[#allocation10_spill] sm:$0xff]  ;;  %v2487_v0 = vsel %vm2453_vm8, %v2407_v42, %v15882_v44  ;;  %v15883_v11 = vld [vmem:[#allocation11_spill] sm:$0xff]  ;;  %v11539_v53 = vpop.permute.xlu0 %2225  ;;  %v8051_v33 = vld [vmem:[#allocation2 + $0x2c8] sm:$0xff]  ;;  %3508 = vrot.lane.b32.xlu1 %v3452_v7, %s9091_s17 }
 0x28a   : > { %v2489_v19 = vsel %vm2453_vm8, %v2410_v50, %v15881_v37  ;;  %v2493_v23 = vsel %vm2453_vm8, %v2416_v46, %v15883_v11  ;;  %15885 = vst [vmem:[#allocation165_spill] sm:$0xff] %v11539_v53  ;;  %v11541_v18 = vld [vmem:[#allocation2 + $0x2d0] sm:$0xff]  ;;  %v15888_v50 = vld [vmem:[#allocation16_spill] sm:$0xff]  ;;  %v15891_v53 = vld [vmem:[#allocation19_spill] sm:$0xff] }
 0x28b   : > { %v15886_v54 = vld [vmem:[#allocation13_spill] sm:$0xff]  ;;  %v15887_v60 = vld [vmem:[#allocation14_spill] sm:$0xff]  ;;  %v2495_v37 = vsel %vm2453_vm8, %v2419_v62, %v15888_v50  ;;  %v2505_v36 = vsel %vm2453_vm8, %v2434_v40, %v15891_v53  ;;  %3506 = vrot.lane.b32.xlu0 %v3450_v12, %s9091_s17  ;;  %v3455_v62 = vsel %vm1222_vm4, %v3453_v59, %v3454_v5  ;;  %v15895_v53 = vld [vmem:[#allocation88_spill] sm:$0xff]  ;;  %v11577_v50 = vpop.permute.xlu1 %2231 }
 0x28c   : > { %v2491_v57 = vsel %vm2453_vm8, %v2413_v25, %v15886_v54  ;;  %v2497_v24 = vsel %vm2453_vm8, %v2422_v9, %v15887_v60  ;;  %v15889_v42 = vld [vmem:[#allocation18_spill] sm:$0xff]  ;;  %v15890_v46 = vld [vmem:[#allocation85_spill] sm:$0xff]  ;;  %v15894_v54 = vld [vmem:[#allocation87_spill] sm:$0xff]  ;;  %15898 = vst [vmem:[#allocation46_spill] sm:$0xff] %v11577_v50 }
 0x28d   : > { %v2501_v44 = vsel %vm2453_vm8, %v2428_v26, %v15889_v42  ;;  %v11553_v11 = vsel %vm2453_vm8, %v2425_v52, %v15890_v46  ;;  %v15892_v31 = vld [vmem:[#allocation21_spill] sm:$0xff]  ;;  %v15893_v25 = vld [vmem:[#allocation86_spill] sm:$0xff]  ;;  %v3456_v26 = vrot.slane %v8051_v33, 6  ;;  %v3457_v52 = vrot.slane %v11541_v18, 6  ;;  %v15900_v42 = vld [vmem:[#allocation91_spill] sm:$0xff]  ;;  %3512 = vrot.lane.b32.xlu1 %v3455_v62, %s9091_s17 }
 0x28e   : > { %v11559_v16 = vsel %vm2453_vm8, %v2431_v35, %v15892_v31  ;;  %v2509_v9 = vsel %vm2453_vm8, %v2440_v2, %v15893_v25  ;;  %v2507_v40 = vsel %vm2453_vm8, %v2437_v17, %v15894_v54  ;;  %v2513_v35 = vsel %vm2453_vm8, %v2446_v13, %v15895_v53  ;;  %v15896_v31 = vld [vmem:[#allocation89_spill] sm:$0xff]  ;;  %v15897_v7 = vld [vmem:[#allocation90_spill] sm:$0xff]  ;;  %v11579_v2 = vpop.permute.xlu0 %2229  ;;  %v15901_v46 = vld [vmem:[#allocation92_spill] sm:$0xff] }
 0x28f   : > { %v2511_v60 = vsel %vm2453_vm8, %v2443_v39, %v15896_v31  ;;  %v11575_v12 = vsel %vm2453_vm8, %v2452_v38, %v15897_v7  ;;  %15899 = vst [vmem:[#allocation173_spill] sm:$0xff] %v11579_v2  ;;  %v8055_v5 = vld [vmem:[#allocation2 + $0x2e8] sm:$0xff]  ;;  %v11581_v33 = vld [vmem:[#allocation2 + $0x2f0] sm:$0xff]  ;;  %v2515_v17 = vsel %vm2453_vm8, %v2449_v28, %v15900_v42  ;;  %v2522_v13 = vsel %vm2518_vm9, %v2457_v21, %v15901_v46  ;;  %v15905_v7 = vld [vmem:[#allocation95_spill] sm:$0xff] }
 0x290   : > { %v15902_v25 = vld [vmem:[#allocation94_spill] sm:$0xff]  ;;  %v15903_v54 = vld [vmem:[#allocation93_spill] sm:$0xff]  ;;  %v15904_v53 = vld [vmem:[#allocation96_spill] sm:$0xff]  ;;  %v2524_v2 = vsel %vm2518_vm9, %v2459_v29, %v15905_v7  ;;  %3510 = vrot.lane.b32.xlu0 %v3453_v59, %s9091_s17  ;;  %v3459_v42 = vrot.slane %v8055_v5, 6 }
 0x291   : > { %v11589_v39 = vsel %vm2518_vm9, %v2461_v63, %v15902_v25  ;;  %v2520_v38 = vsel %vm2518_vm9, %v2455_v41, %v15903_v54  ;;  %v11595_v31 = vsel %vm2518_vm9, %v2465_v55, %v15904_v53  ;;  %v15906_v50 = vld [vmem:[#allocation97_spill] sm:$0xff]  ;;  %v15907_v21 = vld [vmem:[#allocation98_spill] sm:$0xff]  ;;  %v3458_v41 = vsel %vm1222_vm4, %v3456_v26, %v3457_v52  ;;  %v15908_v46 = vld [vmem:[#allocation100_spill] sm:$0xff]  ;;  %v11627_v52 = vpop.permute.xlu1 %2235 }
 0x292   : > { %v11601_v28 = vsel %vm2518_vm9, %v2463_v15, %v15906_v50  ;;  %v11607_v63 = vsel %vm2518_vm9, %v2469_v4, %v15907_v21  ;;  %v3460_v55 = vrot.slane %v11581_v33, 6  ;;  %v11613_v29 = vsel %vm2518_vm9, %v2473_v1, %v15908_v46  ;;  %v15909_v25 = vld [vmem:[#allocation102_spill] sm:$0xff]  ;;  %v15910_v62 = vld [vmem:[#allocation99_spill] sm:$0xff]  ;;  %v15911_v53 = vld [vmem:[#allocation101_spill] sm:$0xff]  ;;  %v11629_v5 = vpop.permute.xlu0 %2233  ;;  %3516 = vrot.lane.b32.xlu1 %v3458_v41, %s9091_s17 }
 0x293   : > { %v11617_v15 = vsel %vm2518_vm9, %v2477_v48, %v15909_v25  ;;  %v11621_v59 = vsel %vm2518_vm9, %v2467_v58, %v15910_v62  ;;  %v11625_v4 = vsel %vm2518_vm9, %v2471_v10, %v15911_v53  ;;  %15912 = vst [vmem:[#allocation47_spill] sm:$0xff] %v11629_v5  ;;  %v8059_v21 = vld [vmem:[#allocation2 + $0x308] sm:$0xff]  ;;  %v11631_v50 = vld [vmem:[#allocation2 + $0x310] sm:$0xff]  ;;  %v15916_v58 = vld [vmem:[#allocation103_spill] sm:$0xff] }
 0x294   : > { %15913 = vst [vmem:[#allocation172_spill] sm:$0xff] %v11631_v50  ;;  %v15914_v1 = vld [vmem:[#allocation104_spill] sm:$0xff]  ;;  %v15915_v48 = vld [vmem:[#allocation25_spill] sm:$0xff]  ;;  %v11644_v10 = vsel %vm2518_vm9, %v11517_v22, %v15916_v58  ;;  %v15918_v7 = vld [vmem:[#allocation27_spill] sm:$0xff]  ;;  %3514 = vrot.lane.b32.xlu0 %v3456_v26, %s9091_s17 }
 0x295   : > { %v11635_v46 = vsel %vm2518_vm9, %v2481_v47, %v15914_v1  ;;  %v11639_v25 = vsel %vm2518_vm9, %v2485_v20, %v15915_v48  ;;  %v15917_v53 = vld [vmem:[#allocation105_spill] sm:$0xff]  ;;  %v11652_v54 = vsel %vm2518_vm9, %v2489_v19, %v15918_v7  ;;  %v15919_v47 = vld [vmem:[#allocation106_spill] sm:$0xff]  ;;  %v15920_v20 = vld [vmem:[#allocation107_spill] sm:$0xff]  ;;  %v3461_v19 = vsel %vm1222_vm4, %v3459_v42, %v3460_v55  ;;  %v11686_v55 = vpop.permute.xlu1 %2239 }
 0x296   : > { %v11648_v62 = vsel %vm2518_vm9, %v2479_v3, %v15917_v53  ;;  %v11656_v1 = vsel %vm2518_vm9, %v2483_v43, %v15919_v47  ;;  %v11660_v48 = vsel %vm2518_vm9, %v2487_v0, %v15920_v20  ;;  %v15921_v22 = vld [vmem:[#allocation29_spill] sm:$0xff]  ;;  %v3462_v7 = vrot.slane %v8059_v21, 6  ;;  %v15922_v58 = vld [vmem:[#allocation31_spill] sm:$0xff]  ;;  %v15923_v47 = vld [vmem:[#allocation110_spill] sm:$0xff]  ;;  %15926 = vst [vmem:[#allocation48_spill] sm:$0xff] %v11686_v55  ;;  %v11688_v21 = vpop.permute.xlu0 %2237  ;;  %3520 = vrot.lane.b32.xlu1 %v3461_v19, %s9091_s17 }
 0x297   : > { %v11666_v3 = vsel %vm2518_vm9, %v2493_v23, %v15921_v22  ;;  %v3463_v53 = vrot.slane %v11631_v50, 6  ;;  %v11672_v43 = vsel %vm2518_vm9, %v2497_v24, %v15922_v58  ;;  %v11676_v0 = vsel %vm2518_vm9, %v2501_v44, %v15923_v47  ;;  %v15924_v41 = vld [vmem:[#allocation108_spill] sm:$0xff]  ;;  %v15925_v20 = vld [vmem:[#allocation109_spill] sm:$0xff]  ;;  %15927 = vst [vmem:[#allocation176_spill] sm:$0xff] %v11688_v21  ;;  %v15930_v44 = vld [vmem:[#allocation115_spill] sm:$0xff] }
 0x298   : > { %v11680_v26 = vsel %vm2518_vm9, %v2491_v57, %v15924_v41  ;;  %v11684_v23 = vsel %vm2518_vm9, %v2495_v37, %v15925_v20  ;;  %v8063_v22 = vld [vmem:[#allocation2 + $0x328] sm:$0xff]  ;;  %v11690_v50 = vld [vmem:[#allocation2 + $0x330] sm:$0xff]  ;;  %v11698_v47 = vsel %vm2518_vm9, %v2509_v9, %v15930_v44  ;;  %v15931_v57 = vld [vmem:[#allocation111_spill] sm:$0xff]  ;;  %3518 = vrot.lane.b32.xlu0 %v3459_v42, %s9091_s17 }
 0x299   : > { %15928 = vst [vmem:[#allocation49_spill] sm:$0xff] %v11690_v50  ;;  %v15929_v24 = vld [vmem:[#allocation112_spill] sm:$0xff]  ;;  %v11703_v37 = vsel %vm2518_vm9, %v11553_v11, %v15931_v57  ;;  %v15932_v20 = vld [vmem:[#allocation113_spill] sm:$0xff]  ;;  %v15933_v21 = vld [vmem:[#allocation118_spill] sm:$0xff]  ;;  %v3465_v11 = vrot.slane %v8063_v22, 6  ;;  %v11739_v57 = vpop.permute.xlu1 %2243 }
 0x29a   : > { %v11694_v58 = vsel %vm2518_vm9, %v2505_v36, %v15929_v24  ;;  %v11708_v41 = vsel %vm2518_vm9, %v11559_v16, %v15932_v20  ;;  %v11712_v55 = vsel %vm2518_vm9, %v2513_v35, %v15933_v21  ;;  %v15934_v36 = vld [vmem:[#allocation116_spill] sm:$0xff]  ;;  %v15935_v9 = vld [vmem:[#allocation119_spill] sm:$0xff]  ;;  %v3464_v16 = vsel %vm1222_vm4, %v3462_v7, %v3463_v53  ;;  %v15936_v21 = vld [vmem:[#allocation121_spill] sm:$0xff]  ;;  %15940 = vst [vmem:[#allocation175_spill] sm:$0xff] %v11739_v57  ;;  %v11741_v53 = vpop.permute.xlu0 %2241 }
 0x29b   : > { %v11716_v24 = vsel %vm2518_vm9, %v2507_v40, %v15934_v36  ;;  %v11720_v44 = vsel %vm2518_vm9, %v2511_v60, %v15935_v9  ;;  %v3466_v35 = vrot.slane %v11690_v50, 6  ;;  %v11729_v40 = vsel %vm2518_vm9, %v11575_v12, %v15936_v21  ;;  %v15937_v36 = vld [vmem:[#allocation124_spill] sm:$0xff]  ;;  %v15938_v9 = vld [vmem:[#allocation125_spill] sm:$0xff]  ;;  %v15939_v19 = vld [vmem:[#allocation122_spill] sm:$0xff]  ;;  %15941 = vst [vmem:[#allocation50_spill] sm:$0xff] %v11741_v53  ;;  %3524 = vrot.lane.b32.xlu1 %v3464_v16, %s9091_s17 }
 0x29c   : > { %v2587_v60 = vsel %vm2583_vm10, %v2522_v13, %v15937_v36  ;;  %v2585_v20 = vsel %vm2583_vm10, %v2520_v38, %v15938_v9  ;;  %v11737_v42 = vsel %vm2518_vm9, %v2515_v17, %v15939_v19  ;;  %v8067_v22 = vld [vmem:[#allocation2 + $0x348] sm:$0xff]  ;;  %v11743_v50 = vld [vmem:[#allocation2 + $0x350] sm:$0xff]  ;;  %v15942_v5 = vld [vmem:[#allocation127_spill] sm:$0xff]  ;;  %3522 = vrot.lane.b32.xlu0 %v3462_v7, %s9091_s17 }
 0x29d   : > { %v2591_v12 = vsel %vm2583_vm10, %v11589_v39, %v15942_v5  ;;  %v15943_v21 = vld [vmem:[#allocation128_spill] sm:$0xff]  ;;  %v15944_v36 = vld [vmem:[#allocation158_spill] sm:$0xff]  ;;  %v15946_v19 = vld [vmem:[#allocation159_spill] sm:$0xff]  ;;  %v3467_v39 = vsel %vm1222_vm4, %v3465_v11, %v3466_v35  ;;  %v3468_v5 = vrot.slane %v8067_v22, 6 }
 0x29e   : > { %v2589_v13 = vsel %vm2583_vm10, %v2524_v2, %v15943_v21  ;;  %v2652_v38 = vsel %vm2648_vm11, %v2587_v60, %v15944_v36  ;;  %v15945_v17 = vld [vmem:[#allocation130_spill] sm:$0xff]  ;;  %v2650_v53 = vsel %vm2648_vm11, %v2585_v20, %v15946_v19  ;;  %v3469_v60 = vrot.slane %v11743_v50, 6  ;;  %v15948_v19 = vld [vmem:[#allocation160_spill] sm:$0xff]  ;;  %v2296_v21 = vpop.permute.xlu1 %2295  ;;  %v15949_v22 = vld [vmem:[#allocation161_spill] sm:$0xff] }
 0x29f   : > { %v2595_v9 = vsel %vm2583_vm10, %v11595_v31, %v15945_v17  ;;  %v2717_v57 = vsel %vm2713_vm12, %v2652_v38, %v11125_v34  ;;  %v2715_v2 = vsel %vm2713_vm12, %v2650_v53, %v11127_v30  ;;  %v15947_v31 = vld [vmem:[#allocation131_spill] sm:$0xff]  ;;  %v2656_v34 = vsel %vm2648_vm11, %v2591_v12, %v15948_v19  ;;  %v2294_v30 = vpop.permute.xlu0 %2293  ;;  %v8071_v53 = vld [vmem:[#allocation2 + $0x368] sm:$0xff]  ;;  %v11774_v35 = vld [vmem:[#allocation2 + $0x370] sm:$0xff]  ;;  %3528 = vrot.lane.b32.xlu1 %v3467_v39, %s9091_s17 }
 0x2a0   : > { %v2593_v20 = vsel %vm2583_vm10, %v11601_v28, %v15947_v31  ;;  %v2782_v16 = vsel %vm2778_vm13, %v2717_v57, %v11280_v56  ;;  %v2780_v7 = vsel %vm2778_vm13, %v2715_v2, %v11282_v32  ;;  %v2654_v36 = vsel %vm2648_vm11, %v2589_v13, %v15949_v22  ;;  %3526 = vrot.lane.b32.xlu0 %v3465_v11, %s9091_s17  ;;  %v15950_v31 = vld [vmem:[#allocation132_spill] sm:$0xff] }
 0x2a1   : > { %v2847_v38 = vsel %vm2843_vm14, %v2782_v16, %v2296_v21  ;;  %v2845_v28 = vsel %vm2843_vm14, %v2780_v7, %v2294_v30  ;;  %v2721_v12 = vsel %vm2713_vm12, %v2656_v34, %v11143_v61  ;;  %v2719_v32 = vsel %vm2713_vm12, %v2654_v36, %v11145_v49  ;;  %v8013_v49 = vld [vmem:[#allocation2 + $0x198] sm:$0xff]  ;;  %v15951_v7 = vld [vmem:[#allocation133_spill] sm:$0xff]  ;;  %v15952_v21 = vld [vmem:[#allocation168_spill] sm:$0xff] }
 0x2a2   : > { %v2942_v56 = vrot.slane %v2847_v38, 1  ;;  %v2941_v57 = vrot.slane %v2845_v28, 1  ;;  %v3470_v13 = vsel %vm1222_vm4, %v3468_v5, %v3469_v60  ;;  %v3471_v17 = vrot.slane %v8071_v53, 6  ;;  %v2300_v11 = vpop.permute.xlu1 %2299 }
 0x2a3   : > { %v3472_v2 = vrot.slane %v11774_v35, 6  ;;  %v2599_v19 = vsel %vm2583_vm10, %v11607_v63, %v15950_v31  ;;  %v2786_v61 = vsel %vm2778_vm13, %v2721_v12, %v11289_v45  ;;  %v2784_v39 = vsel %vm2778_vm13, %v2719_v32, %v11291_v51  ;;  %v2298_v34 = vpop.permute.xlu0 %2297  ;;  %v15953_v45 = vld [vmem:[#allocation169_spill] sm:$0xff]  ;;  %3532 = vrot.lane.b32.xlu1 %v3470_v13, %s9091_s17 }
 0x2a4   : > { %v2943_v16 = vsel %vm2940_vm15, %v2941_v57, %v2942_v56  ;;  %v2597_v60 = vsel %vm2583_vm10, %v11621_v59, %v15951_v7  ;;  %v2660_v30 = vsel %vm2648_vm11, %v2595_v9, %v15952_v21  ;;  %v2851_v63 = vsel %vm2843_vm14, %v2786_v61, %v2300_v11  ;;  %3530 = vrot.lane.b32.xlu0 %v3468_v5, %s9091_s17  ;;  %v15954_v56 = vld [vmem:[#allocation134_spill] sm:$0xff]  ;;  %v15955_v57 = vld [vmem:[#allocation252_spill] sm:$0xff]  ;;  %v15956_v61 = vld [vmem:[#allocation135_spill] sm:$0xff] }
 0x2a5   : > { %v2849_v53 = vsel %vm2843_vm14, %v2784_v39, %v2298_v34  ;;  %8596 = vmatprep.mubr.msk.bf16.mxu1 %vm3013_vm2, %v2943_v16  ;;  %v2658_v51 = vsel %vm2648_vm11, %v2593_v20, %v15953_v45  ;;  %v2725_v22 = vsel %vm2713_vm12, %v2660_v30, %v11154_v14  ;;  %v2945_v36 = vrot.slane %v2851_v63, 1  ;;  %v15959_v16 = vld [vmem:[#allocation226_spill] sm:$0xff]  ;;  %v15961_v63 = vld [vmem:[#allocation253_spill] sm:$0xff] }
 0x2a6   : > { %v2944_v38 = vrot.slane %v2849_v53, 1  ;;  %v2723_v59 = vsel %vm2713_vm12, %v2658_v51, %v11156_v6  ;;  %v3473_v9 = vsel %vm1222_vm4, %v3471_v17, %v3472_v2  ;;  %v3554_v28 = vrot.slane %v11293_v27, 4  ;;  %v2304_v13 = vpop.permute.xlu1 %2303  ;;  %v8017_v6 = vld [vmem:[#allocation2 + $0x1b8] sm:$0xff]  ;;  %v15962_v51 = vld [vmem:[#allocation136_spill] sm:$0xff] }
 0x2a7   : > { %v3555_v12 = vrot.slane %v8013_v49, 4  ;;  %v2603_v20 = vsel %vm2583_vm10, %v11613_v29, %v15954_v56  ;;  %v2790_v14 = vsel %vm2778_vm13, %v2725_v22, %v11299_v8  ;;  %v2788_v32 = vsel %vm2778_vm13, %v2723_v59, %v15955_v57  ;;  %v2302_v31 = vpop.permute.xlu0 %2301  ;;  %v15957_v2 = vld [vmem:[#allocation170_spill] sm:$0xff]  ;;  %v15958_v8 = vld [vmem:[#allocation171_spill] sm:$0xff]  ;;  %3536 = vrot.lane.b32.xlu1 %v3473_v9, %s9091_s17  ;;  %v15965_v57 = vld [vmem:[#allocation137_spill] sm:$0xff] }
 0x2a8   : > { %v2946_v5 = vsel %vm2940_vm15, %v2944_v38, %v2945_v36  ;;  %v2601_v27 = vsel %vm2583_vm10, %v11625_v4, %v15956_v61  ;;  %v2664_v39 = vsel %vm2648_vm11, %v2599_v19, %v15957_v2  ;;  %v2855_v29 = vsel %vm2843_vm14, %v2790_v14, %v2304_v13  ;;  %3534 = vrot.lane.b32.xlu0 %v3471_v17, %s9091_s17  ;;  %v15960_v4 = vld [vmem:[#allocation227_spill] sm:$0xff]  ;;  %v15963_v22 = vld [vmem:[#allocation254_spill] sm:$0xff]  ;;  %v15968_v61 = vld [vmem:[#allocation228_spill] sm:$0xff] }
 0x2a9   : > { %v2853_v11 = vsel %vm2843_vm14, %v2788_v32, %v2302_v31  ;;  %8597 = vmatmul.mubr.msk.bf16.vlgmr.msra.gmra.mrb[36].mxu1 %vm3013_vm2, %v2946_v5  ;;  %v2662_v34 = vsel %vm2648_vm11, %v2597_v60, %v15958_v8  ;;  %v2729_v49 = vsel %vm2713_vm12, %v2664_v39, %v15959_v16  ;;  %v2948_v7 = vrot.slane %v2855_v29, 1  ;;  %v15964_v38 = vld [vmem:[#allocation255_spill] sm:$0xff]  ;;  %v15966_v32 = vld [vmem:[#allocation178_spill] sm:$0xff]  ;;  %v15970_v8 = vld [vmem:[#allocation256_spill] sm:$0xff] }
 0x2aa   : > { %v2947_v21 = vrot.slane %v2853_v11, 1  ;;  %v2727_v19 = vsel %vm2713_vm12, %v2662_v34, %v15960_v4  ;;  %v3556_v30 = vsel %vm856_vm5, %v3554_v28, %v3555_v12  ;;  %v3557_v53 = vrot.slane %v15961_v63, 4  ;;  %v2308_v9 = vpop.permute.xlu1 %2307  ;;  %v8021_v14 = vld [vmem:[#allocation2 + $0x1d8] sm:$0xff] }
 0x2ab   : > { %v3558_v45 = vrot.slane %v8017_v6, 4  ;;  %v2607_v60 = vsel %vm2583_vm10, %v11617_v15, %v15962_v51  ;;  %v2794_v36 = vsel %vm2778_vm13, %v2729_v49, %v15963_v22  ;;  %v2792_v59 = vsel %vm2778_vm13, %v2727_v19, %v15964_v38  ;;  %v2306_v17 = vpop.permute.xlu0 %2305  ;;  %v15967_v31 = vld [vmem:[#allocation179_spill] sm:$0xff]  ;;  %3604 = vrot.lane.b32.xlu1 %v3556_v30, %s9092_s18  ;;  %v15971_v49 = vld [vmem:[#allocation138_spill] sm:$0xff] }
 0x2ac   : > { %v2949_v56 = vsel %vm2940_vm15, %v2947_v21, %v2948_v7  ;;  %v2605_v12 = vsel %vm2583_vm10, %v11644_v10, %v15965_v57  ;;  %v2668_v5 = vsel %vm2648_vm11, %v2603_v20, %v15966_v32  ;;  %v2859_v15 = vsel %vm2843_vm14, %v2794_v36, %v2308_v9  ;;  %3602 = vrot.lane.b32.xlu0 %v3554_v28, %s9092_s18  ;;  %v15969_v10 = vld [vmem:[#allocation229_spill] sm:$0xff]  ;;  %v15973_v4 = vld [vmem:[#allocation258_spill] sm:$0xff]  ;;  %v15974_v22 = vld [vmem:[#allocation139_spill] sm:$0xff] }
 0x2ad   : > { %v2857_v13 = vsel %vm2843_vm14, %v2792_v59, %v2306_v17  ;;  %8600 = vmatprep.mubr.msk.bf16.mxu1 %vm3013_vm2, %v2949_v56  ;;  %v2666_v6 = vsel %vm2648_vm11, %v2601_v27, %v15967_v31  ;;  %v2733_v2 = vsel %vm2713_vm12, %v2668_v5, %v15968_v61  ;;  %v2951_v39 = vrot.slane %v2859_v15, 1  ;;  %v15972_v7 = vld [vmem:[#allocation257_spill] sm:$0xff]  ;;  %v8025_v51 = vld [vmem:[#allocation2 + $0x1f8] sm:$0xff]  ;;  %v15975_v36 = vld [vmem:[#allocation180_spill] sm:$0xff] }
 0x2ae   : > { %v2950_v29 = vrot.slane %v2857_v13, 1  ;;  %v2731_v20 = vsel %vm2713_vm12, %v2666_v6, %v15969_v10  ;;  %v3559_v11 = vsel %vm856_vm5, %v3557_v53, %v3558_v45  ;;  %v3560_v34 = vrot.slane %v15970_v8, 4  ;;  %v2312_v30 = vpop.permute.xlu1 %2311  ;;  %v15976_v9 = vld [vmem:[#allocation181_spill] sm:$0xff]  ;;  %v15977_v56 = vld [vmem:[#allocation230_spill] sm:$0xff]  ;;  %v15979_v15 = vld [vmem:[#allocation259_spill] sm:$0xff] }
 0x2af   : > { %v3561_v16 = vrot.slane %v8021_v14, 4  ;;  %v2611_v27 = vsel %vm2583_vm10, %v11635_v46, %v15971_v49  ;;  %v2798_v21 = vsel %vm2778_vm13, %v2733_v2, %v15972_v7  ;;  %v2796_v19 = vsel %vm2778_vm13, %v2731_v20, %v15973_v4  ;;  %v2310_v28 = vpop.permute.xlu0 %2309  ;;  %3608 = vrot.lane.b32.xlu1 %v3559_v11, %s9092_s18  ;;  %v15980_v6 = vld [vmem:[#allocation140_spill] sm:$0xff]  ;;  %v8029_v11 = vld [vmem:[#allocation2 + $0x218] sm:$0xff]  ;;  %v15983_v8 = vld [vmem:[#allocation141_spill] sm:$0xff] }
 0x2b0   : > { %v2952_v63 = vsel %vm2940_vm15, %v2950_v29, %v2951_v39  ;;  %v2609_v45 = vsel %vm2583_vm10, %v11648_v62, %v15974_v22  ;;  %v2672_v38 = vsel %vm2648_vm11, %v2607_v60, %v15975_v36  ;;  %v2863_v46 = vsel %vm2843_vm14, %v2798_v21, %v2312_v30  ;;  %3606 = vrot.lane.b32.xlu0 %v3557_v53, %s9092_s18  ;;  %v15978_v62 = vld [vmem:[#allocation231_spill] sm:$0xff]  ;;  %v15981_v61 = vld [vmem:[#allocation260_spill] sm:$0xff]  ;;  %v15982_v39 = vld [vmem:[#allocation261_spill] sm:$0xff] }
 0x2b1   : > { %v2861_v59 = vsel %vm2843_vm14, %v2796_v19, %v2310_v28  ;;  %8601 = vmatmul.mubr.msk.bf16.gmra.mrb[40].mxu1 %vm3013_vm2, %v2952_v63  ;;  %v2670_v17 = vsel %vm2648_vm11, %v2605_v12, %v15976_v9  ;;  %v2737_v14 = vsel %vm2713_vm12, %v2672_v38, %v15977_v56  ;;  %v2954_v57 = vrot.slane %v2863_v46, 1  ;;  %v15984_v49 = vld [vmem:[#allocation188_spill] sm:$0xff]  ;;  %v15985_v4 = vld [vmem:[#allocation189_spill] sm:$0xff]  ;;  %v15988_v36 = vld [vmem:[#allocation262_spill] sm:$0xff] }
 0x2b2   : > { %v2953_v32 = vrot.slane %v2861_v59, 1  ;;  %v2735_v60 = vsel %vm2713_vm12, %v2670_v17, %v15978_v62  ;;  %v3562_v5 = vsel %vm856_vm5, %v3560_v34, %v3561_v16  ;;  %v3563_v13 = vrot.slane %v15979_v15, 4  ;;  %v2316_v10 = vpop.permute.xlu1 %2315  ;;  %v15986_v30 = vld [vmem:[#allocation232_spill] sm:$0xff]  ;;  %v15989_v59 = vld [vmem:[#allocation142_spill] sm:$0xff]  ;;  %v15990_v9 = vld [vmem:[#allocation263_spill] sm:$0xff] }
 0x2b3   : > { %v3564_v31 = vrot.slane %v8025_v51, 4  ;;  %v2615_v12 = vsel %vm2583_vm10, %v11639_v25, %v15980_v6  ;;  %v2802_v2 = vsel %vm2778_vm13, %v2737_v14, %v15981_v61  ;;  %v2800_v29 = vsel %vm2778_vm13, %v2735_v60, %v15982_v39  ;;  %v2314_v53 = vpop.permute.xlu0 %2313  ;;  %3612 = vrot.lane.b32.xlu1 %v3562_v5, %s9092_s18  ;;  %v15991_v56 = vld [vmem:[#allocation264_spill] sm:$0xff]  ;;  %v8033_v62 = vld [vmem:[#allocation2 + $0x238] sm:$0xff] }
 0x2b4   : > { %v2955_v20 = vsel %vm2940_vm15, %v2953_v32, %v2954_v57  ;;  %v2613_v16 = vsel %vm2583_vm10, %v11656_v1, %v15983_v8  ;;  %v2676_v7 = vsel %vm2648_vm11, %v2611_v27, %v15984_v49  ;;  %v2867_v25 = vsel %vm2843_vm14, %v2802_v2, %v2316_v10  ;;  %3610 = vrot.lane.b32.xlu0 %v3560_v34, %s9092_s18  ;;  %v15987_v1 = vld [vmem:[#allocation233_spill] sm:$0xff]  ;;  %v15992_v60 = vld [vmem:[#allocation143_spill] sm:$0xff]  ;;  %v15993_v15 = vld [vmem:[#allocation190_spill] sm:$0xff] }
 0x2b5   : > { %v2865_v21 = vsel %vm2843_vm14, %v2800_v29, %v2314_v53  ;;  %8604 = vmatprep.mubr.msk.bf16.mxu1 %vm3013_vm2, %v2955_v20  ;;  %v2674_v19 = vsel %vm2648_vm11, %v2609_v45, %v15985_v4  ;;  %v2741_v28 = vsel %vm2713_vm12, %v2676_v7, %v15986_v30  ;;  %v2957_v63 = vrot.slane %v2867_v25, 1  ;;  %v15994_v61 = vld [vmem:[#allocation191_spill] sm:$0xff]  ;;  %v15995_v39 = vld [vmem:[#allocation234_spill] sm:$0xff]  ;;  %v15998_v7 = vld [vmem:[#allocation144_spill] sm:$0xff] }
 0x2b6   : > { %v2956_v51 = vrot.slane %v2865_v21, 1  ;;  %v2739_v27 = vsel %vm2713_vm12, %v2674_v19, %v15987_v1  ;;  %v3565_v22 = vsel %vm856_vm5, %v3563_v13, %v3564_v31  ;;  %v3566_v38 = vrot.slane %v15988_v36, 4  ;;  %v2320_v57 = vpop.permute.xlu1 %2319  ;;  %v15999_v25 = vld [vmem:[#allocation34_spill] sm:$0xff]  ;;  %v16000_v4 = vld [vmem:[#allocation35_spill] sm:$0xff] }
 0x2b7   : > { %v3567_v46 = vrot.slane %v8029_v11, 4  ;;  %v2619_v45 = vsel %vm2583_vm10, %v11652_v54, %v15989_v59  ;;  %v2806_v17 = vsel %vm2778_vm13, %v2741_v28, %v15990_v9  ;;  %v2804_v14 = vsel %vm2778_vm13, %v2739_v27, %v15991_v56  ;;  %v2318_v34 = vpop.permute.xlu0 %2317  ;;  %3616 = vrot.lane.b32.xlu1 %v3565_v22, %s9092_s18  ;;  %v15997_v11 = vld [vmem:[#allocation265_spill] sm:$0xff]  ;;  %v16002_v27 = vld [vmem:[#allocation198_spill] sm:$0xff]  ;;  %v16004_v9 = vld [vmem:[#allocation236_spill] sm:$0xff] }
 0x2b8   : > { %v2958_v32 = vsel %vm2940_vm15, %v2956_v51, %v2957_v63  ;;  %v2617_v5 = vsel %vm2583_vm10, %v11660_v48, %v15992_v60  ;;  %v2680_v31 = vsel %vm2648_vm11, %v2615_v12, %v15993_v15  ;;  %v2871_v54 = vsel %vm2843_vm14, %v2806_v17, %v2320_v57  ;;  %3614 = vrot.lane.b32.xlu0 %v3563_v13, %s9092_s18  ;;  %v15996_v48 = vld [vmem:[#allocation235_spill] sm:$0xff]  ;;  %v16001_v51 = vld [vmem:[#allocation145_spill] sm:$0xff]  ;;  %v16007_v60 = vld [vmem:[#allocation146_spill] sm:$0xff] }
 0x2b9   : > { %v2869_v6 = vsel %vm2843_vm14, %v2804_v14, %v2318_v34  ;;  %8605 = vmatmul.mubr.msk.bf16.gmra.mrb[44].mxu1 %vm3013_vm2, %v2958_v32  ;;  %v2678_v2 = vsel %vm2648_vm11, %v2613_v16, %v15994_v61  ;;  %v2745_v29 = vsel %vm2713_vm12, %v2680_v31, %v15995_v39  ;;  %v2960_v10 = vrot.slane %v2871_v54, 1  ;;  %v8037_v63 = vld [vmem:[#allocation2 + $0x258] sm:$0xff]  ;;  %v16006_v34 = vld [vmem:[#allocation37_spill] sm:$0xff]  ;;  %v16009_v54 = vld [vmem:[#allocation40_spill] sm:$0xff] }
 0x2ba   : > { %v2959_v53 = vrot.slane %v2869_v6, 1  ;;  %v2743_v12 = vsel %vm2713_vm12, %v2678_v2, %v15996_v48  ;;  %v3568_v20 = vsel %vm856_vm5, %v3566_v38, %v3567_v46  ;;  %v3569_v8 = vrot.slane %v15997_v11, 4  ;;  %v2324_v30 = vpop.permute.xlu1 %2323  ;;  %v16003_v46 = vld [vmem:[#allocation199_spill] sm:$0xff]  ;;  %v16008_v15 = vld [vmem:[#allocation38_spill] sm:$0xff] }
 0x2bb   : > { %v3570_v49 = vrot.slane %v8033_v62, 4  ;;  %v2623_v16 = vsel %vm2583_vm10, %v11666_v3, %v15998_v7  ;;  %v2810_v21 = vsel %vm2778_vm13, %v2745_v29, %v15999_v25  ;;  %v2808_v19 = vsel %vm2778_vm13, %v2743_v12, %v16000_v4  ;;  %v2322_v13 = vpop.permute.xlu0 %2321  ;;  %3620 = vrot.lane.b32.xlu1 %v3568_v20, %s9092_s18  ;;  %v8041_v39 = vld [vmem:[#allocation2 + $0x278] sm:$0xff]  ;;  %v16012_v20 = vld [vmem:[#allocation201_spill] sm:$0xff] }
 0x2bc   : > { %v2961_v28 = vsel %vm2940_vm15, %v2959_v53, %v2960_v10  ;;  %v2621_v1 = vsel %vm2583_vm10, %v11680_v26, %v16001_v51  ;;  %v2684_v22 = vsel %vm2648_vm11, %v2619_v45, %v16002_v27  ;;  %v2875_v3 = vsel %vm2843_vm14, %v2810_v21, %v2324_v30  ;;  %3618 = vrot.lane.b32.xlu0 %v3566_v38, %s9092_s18  ;;  %v16005_v26 = vld [vmem:[#allocation237_spill] sm:$0xff]  ;;  %v16010_v29 = vld [vmem:[#allocation147_spill] sm:$0xff]  ;;  %v16011_v53 = vld [vmem:[#allocation200_spill] sm:$0xff] }
 0x2bd   : > { %v2873_v36 = vsel %vm2843_vm14, %v2808_v19, %v2322_v13  ;;  %8608 = vmatprep.mubr.msk.bf16.mxu1 %vm3013_vm2, %v2961_v28  ;;  %v2682_v59 = vsel %vm2648_vm11, %v2617_v5, %v16003_v46  ;;  %v2749_v17 = vsel %vm2713_vm12, %v2684_v22, %v16004_v9  ;;  %v2963_v56 = vrot.slane %v2875_v3, 1  ;;  %v16015_v19 = vld [vmem:[#allocation41_spill] sm:$0xff]  ;;  %v16016_v28 = vld [vmem:[#allocation148_spill] sm:$0xff]  ;;  %v16017_v51 = vld [vmem:[#allocation42_spill] sm:$0xff] }
 0x2be   : > { %v2962_v14 = vrot.slane %v2873_v36, 1  ;;  %v2747_v45 = vsel %vm2713_vm12, %v2682_v59, %v16005_v26  ;;  %v3571_v57 = vsel %vm856_vm5, %v3569_v8, %v3570_v49  ;;  %v3572_v32 = vrot.slane %v16006_v34, 4  ;;  %v2328_v61 = vpop.permute.xlu1 %2327  ;;  %v16013_v49 = vld [vmem:[#allocation238_spill] sm:$0xff]  ;;  %v16018_v27 = vld [vmem:[#allocation163_spill] sm:$0xff]  ;;  %v16019_v59 = vld [vmem:[#allocation149_spill] sm:$0xff] }
 0x2bf   : > { %v3573_v62 = vrot.slane %v8037_v63, 4  ;;  %v2627_v5 = vsel %vm2583_vm10, %v11672_v43, %v16007_v60  ;;  %v2814_v31 = vsel %vm2778_vm13, %v2749_v17, %v16008_v15  ;;  %v2812_v6 = vsel %vm2778_vm13, %v2747_v45, %v16009_v54  ;;  %v2326_v38 = vpop.permute.xlu0 %2325  ;;  %3624 = vrot.lane.b32.xlu1 %v3571_v57, %s9092_s18  ;;  %v8045_v46 = vld [vmem:[#allocation2 + $0x298] sm:$0xff]  ;;  %v16020_v17 = vld [vmem:[#allocation208_spill] sm:$0xff]  ;;  %v16021_v26 = vld [vmem:[#allocation209_spill] sm:$0xff] }
 0x2c0   : > { %v2964_v2 = vsel %vm2940_vm15, %v2962_v14, %v2963_v56  ;;  %v2625_v10 = vsel %vm2583_vm10, %v11684_v23, %v16010_v29  ;;  %v2688_v48 = vsel %vm2648_vm11, %v2623_v16, %v16011_v53  ;;  %v2879_v43 = vsel %vm2843_vm14, %v2814_v31, %v2328_v61  ;;  %3622 = vrot.lane.b32.xlu0 %v3569_v8, %s9092_s18  ;;  %v16014_v23 = vld [vmem:[#allocation239_spill] sm:$0xff]  ;;  %v16022_v57 = vld [vmem:[#allocation240_spill] sm:$0xff]  ;;  %v16025_v61 = vld [vmem:[#allocation150_spill] sm:$0xff] }
 0x2c1   : > { %v2877_v12 = vsel %vm2843_vm14, %v2812_v6, %v2326_v38  ;;  %8609 = vmatmul.mubr.msk.bf16.gmra.mrb[48].mxu1 %vm3013_vm2, %v2964_v2  ;;  %v2686_v11 = vsel %vm2648_vm11, %v2621_v1, %v16012_v20  ;;  %v2753_v7 = vsel %vm2713_vm12, %v2688_v48, %v16013_v49  ;;  %v2966_v25 = vrot.slane %v2879_v43, 1  ;;  %v16024_v31 = vld [vmem:[#allocation43_spill] sm:$0xff]  ;;  %v16026_v2 = vld [vmem:[#allocation162_spill] sm:$0xff]  ;;  %v16027_v29 = vld [vmem:[#allocation44_spill] sm:$0xff] }
 0x2c2   : > { %v2965_v21 = vrot.slane %v2877_v12, 1  ;;  %v2751_v16 = vsel %vm2713_vm12, %v2686_v11, %v16014_v23  ;;  %v3574_v4 = vsel %vm856_vm5, %v3572_v32, %v3573_v62  ;;  %v3575_v30 = vrot.slane %v16015_v19, 4  ;;  %v2332_v3 = vpop.permute.xlu1 %2331  ;;  %v8049_v43 = vld [vmem:[#allocation2 + $0x2b8] sm:$0xff] }
 0x2c3   : > { %v3576_v13 = vrot.slane %v8041_v39, 4  ;;  %v2631_v63 = vsel %vm2583_vm10, %v11676_v0, %v16016_v28  ;;  %v2818_v1 = vsel %vm2778_vm13, %v2753_v7, %v16017_v51  ;;  %v2816_v22 = vsel %vm2778_vm13, %v2751_v16, %v16018_v27  ;;  %v2330_v8 = vpop.permute.xlu0 %2329  ;;  %3628 = vrot.lane.b32.xlu1 %v3574_v4, %s9092_s18  ;;  %v16028_v12 = vld [vmem:[#allocation151_spill] sm:$0xff]  ;;  %v16029_v11 = vld [vmem:[#allocation210_spill] sm:$0xff]  ;;  %v16034_v27 = vld [vmem:[#allocation152_spill] sm:$0xff] }
 0x2c4   : > { %v2967_v36 = vsel %vm2940_vm15, %v2965_v21, %v2966_v25  ;;  %v2629_v9 = vsel %vm2583_vm10, %v11703_v37, %v16019_v59  ;;  %v2692_v56 = vsel %vm2648_vm11, %v2627_v5, %v16020_v17  ;;  %v2883_v0 = vsel %vm2843_vm14, %v2818_v1, %v2332_v3  ;;  %3626 = vrot.lane.b32.xlu0 %v3572_v32, %s9092_s18  ;;  %v16023_v37 = vld [vmem:[#allocation241_spill] sm:$0xff]  ;;  %v16030_v25 = vld [vmem:[#allocation211_spill] sm:$0xff]  ;;  %v16031_v23 = vld [vmem:[#allocation242_spill] sm:$0xff] }
 0x2c5   : > { %v2881_v14 = vsel %vm2843_vm14, %v2816_v22, %v2330_v8  ;;  %8612 = vmatprep.mubr.msk.bf16.mxu1 %vm3013_vm2, %v2967_v36  ;;  %v2690_v45 = vsel %vm2648_vm11, %v2625_v10, %v16021_v26  ;;  %v2757_v34 = vsel %vm2713_vm12, %v2692_v56, %v16022_v57  ;;  %v2969_v62 = vrot.slane %v2883_v0, 1  ;;  %v16035_v3 = vld [vmem:[#allocation45_spill] sm:$0xff]  ;;  %v8053_v17 = vld [vmem:[#allocation2 + $0x2d8] sm:$0xff] }
 0x2c6   : > { %v2968_v60 = vrot.slane %v2881_v14, 1  ;;  %v2755_v5 = vsel %vm2713_vm12, %v2690_v45, %v16023_v37  ;;  %v3577_v15 = vsel %vm856_vm5, %v3575_v30, %v3576_v13  ;;  %v3578_v54 = vrot.slane %v16024_v31, 4  ;;  %v2336_v53 = vpop.permute.xlu1 %2335  ;;  %v16036_v36 = vld [vmem:[#allocation165_spill] sm:$0xff]  ;;  %v16038_v14 = vld [vmem:[#allocation214_spill] sm:$0xff]  ;;  %v16039_v57 = vld [vmem:[#allocation215_spill] sm:$0xff] }
 0x2c7   : > { %v3579_v6 = vrot.slane %v8045_v46, 4  ;;  %v2635_v38 = vsel %vm2583_vm10, %v11694_v58, %v16025_v61  ;;  %v2822_v39 = vsel %vm2778_vm13, %v2757_v34, %v16026_v2  ;;  %v2820_v10 = vsel %vm2778_vm13, %v2755_v5, %v16027_v29  ;;  %v2334_v32 = vpop.permute.xlu0 %2333  ;;  %3632 = vrot.lane.b32.xlu1 %v3577_v15, %s9092_s18  ;;  %v16037_v56 = vld [vmem:[#allocation153_spill] sm:$0xff] }
 0x2c8   : > { %v2970_v48 = vsel %vm2940_vm15, %v2968_v60, %v2969_v62  ;;  %v2633_v20 = vsel %vm2583_vm10, %v11708_v41, %v16028_v12  ;;  %v2696_v49 = vsel %vm2648_vm11, %v2631_v63, %v16029_v11  ;;  %v2887_v58 = vsel %vm2843_vm14, %v2822_v39, %v2336_v53  ;;  %3630 = vrot.lane.b32.xlu0 %v3575_v30, %s9092_s18  ;;  %v16032_v41 = vld [vmem:[#allocation243_spill] sm:$0xff]  ;;  %v16033_v63 = vld [vmem:[#allocation166_spill] sm:$0xff]  ;;  %v16040_v62 = vld [vmem:[#allocation244_spill] sm:$0xff] }
 0x2c9   : > { %v2885_v7 = vsel %vm2843_vm14, %v2820_v10, %v2334_v32  ;;  %8613 = vmatmul.mubr.msk.bf16.gmra.mrb[52].mxu1 %vm3013_vm2, %v2970_v48  ;;  %v2694_v21 = vsel %vm2648_vm11, %v2629_v9, %v16030_v25  ;;  %v2761_v16 = vsel %vm2713_vm12, %v2696_v49, %v16031_v23  ;;  %v2972_v4 = vrot.slane %v2887_v58, 1  ;;  %v16043_v39 = vld [vmem:[#allocation46_spill] sm:$0xff]  ;;  %v16044_v10 = vld [vmem:[#allocation173_spill] sm:$0xff]  ;;  %v16045_v12 = vld [vmem:[#allocation155_spill] sm:$0xff] }
 0x2ca   : > { %v2971_v19 = vrot.slane %v2885_v7, 1  ;;  %v2759_v13 = vsel %vm2713_vm12, %v2694_v21, %v16032_v41  ;;  %v3580_v28 = vsel %vm856_vm5, %v3578_v54, %v3579_v6  ;;  %v3581_v51 = vrot.slane %v16033_v63, 4  ;;  %v2340_v59 = vpop.permute.xlu1 %2339  ;;  %v16047_v58 = vld [vmem:[#allocation217_spill] sm:$0xff]  ;;  %v16048_v25 = vld [vmem:[#allocation246_spill] sm:$0xff] }
 0x2cb   : > { %v3582_v1 = vrot.slane %v8049_v43, 4  ;;  %v2639_v22 = vsel %vm2583_vm10, %v11698_v47, %v16034_v27  ;;  %v2826_v8 = vsel %vm2778_vm13, %v2761_v16, %v16035_v3  ;;  %v2824_v46 = vsel %vm2778_vm13, %v2759_v13, %v16036_v36  ;;  %v2338_v30 = vpop.permute.xlu0 %2337  ;;  %3636 = vrot.lane.b32.xlu1 %v3580_v28, %s9092_s18  ;;  %v8057_v43 = vld [vmem:[#allocation2 + $0x2f8] sm:$0xff]  ;;  %v16050_v28 = vld [vmem:[#allocation156_spill] sm:$0xff] }
 0x2cc   : > { %v2973_v9 = vsel %vm2940_vm15, %v2971_v19, %v2972_v4  ;;  %v2637_v0 = vsel %vm2583_vm10, %v11716_v24, %v16037_v56  ;;  %v2700_v26 = vsel %vm2648_vm11, %v2635_v38, %v16038_v14  ;;  %v2891_v47 = vsel %vm2843_vm14, %v2826_v8, %v2340_v59  ;;  %3634 = vrot.lane.b32.xlu0 %v3578_v54, %s9092_s18  ;;  %v16041_v24 = vld [vmem:[#allocation245_spill] sm:$0xff]  ;;  %v16042_v38 = vld [vmem:[#allocation154_spill] sm:$0xff]  ;;  %v16051_v27 = vld [vmem:[#allocation47_spill] sm:$0xff] }
 0x2cd   : > { %v2889_v45 = vsel %vm2843_vm14, %v2824_v46, %v2338_v30  ;;  %8616 = vmatprep.mubr.msk.bf16.mxu1 %vm3013_vm2, %v2973_v9  ;;  %v2698_v34 = vsel %vm2648_vm11, %v2633_v20, %v16039_v57  ;;  %v2765_v60 = vsel %vm2713_vm12, %v2700_v26, %v16040_v62  ;;  %v2975_v37 = vrot.slane %v2891_v47, 1  ;;  %v16046_v20 = vld [vmem:[#allocation216_spill] sm:$0xff]  ;;  %v12108_v36 = vld [vmem:[#allocation2 + $0x318] sm:$0xff]  ;;  %v16052_v46 = vld [vmem:[#allocation157_spill] sm:$0xff] }
 0x2ce   : > { %v2974_v5 = vrot.slane %v2889_v45, 1  ;;  %v2763_v15 = vsel %vm2713_vm12, %v2698_v34, %v16041_v24  ;;  %v3583_v31 = vsel %vm856_vm5, %v3581_v51, %v3582_v1  ;;  %v3584_v6 = vrot.slane %v11541_v18, 4  ;;  %v2344_v32 = vpop.permute.xlu1 %2343  ;;  %v16053_v59 = vld [vmem:[#allocation220_spill] sm:$0xff]  ;;  %v16054_v9 = vld [vmem:[#allocation221_spill] sm:$0xff] }
 0x2cf   : > { %v3585_v61 = vrot.slane %v8053_v17, 4  ;;  %v2643_v2 = vsel %vm2583_vm10, %v11712_v55, %v16042_v38  ;;  %v2830_v29 = vsel %vm2778_vm13, %v2765_v60, %v16043_v39  ;;  %v2828_v53 = vsel %vm2778_vm13, %v2763_v15, %v16044_v10  ;;  %v2342_v54 = vpop.permute.xlu0 %2341  ;;  %3640 = vrot.lane.b32.xlu1 %v3583_v31, %s9092_s18  ;;  %v16055_v56 = vld [vmem:[#allocation248_spill] sm:$0xff]  ;;  %v16058_v60 = vld [vmem:[#allocation222_spill] sm:$0xff]  ;;  %v16061_v39 = vld [vmem:[#allocation223_spill] sm:$0xff] }
 0x2d0   : > { %v2976_v48 = vsel %vm2940_vm15, %v2974_v5, %v2975_v37  ;;  %v2641_v18 = vsel %vm2583_vm10, %v11720_v44, %v16045_v12  ;;  %v2704_v11 = vsel %vm2648_vm11, %v2639_v22, %v16046_v20  ;;  %v2895_v55 = vsel %vm2843_vm14, %v2830_v29, %v2344_v32  ;;  %3638 = vrot.lane.b32.xlu0 %v3581_v51, %s9092_s18  ;;  %v16049_v44 = vld [vmem:[#allocation247_spill] sm:$0xff]  ;;  %v16057_v57 = vld [vmem:[#allocation172_spill] sm:$0xff] }
 0x2d1   : > { %v2893_v49 = vsel %vm2843_vm14, %v2828_v53, %v2342_v54  ;;  %8617 = vmatmul.mubr.msk.bf16.gmra.mrb[56].mxu1 %vm3013_vm2, %v2976_v48  ;;  %v2702_v7 = vsel %vm2648_vm11, %v2637_v0, %v16047_v58  ;;  %v2769_v21 = vsel %vm2713_vm12, %v2704_v11, %v16048_v25  ;;  %v2978_v23 = vrot.slane %v2895_v55, 1  ;;  %v16059_v5 = vld [vmem:[#allocation48_spill] sm:$0xff]  ;;  %v931_v32 = vld [vmem:[%s15353_s8] sm:$0x1]  ;;  %v1010_v54 = vpop.f32.mrb[0].mxu1  ;;  %v16062_v48 = vld [vmem:[#allocation250_spill] sm:$0xff] }
 0x2d2   : > { %v2977_v16 = vrot.slane %v2893_v49, 1  ;;  %v2767_v4 = vsel %vm2713_vm12, %v2702_v7, %v16049_v44  ;;  %v3586_v19 = vsel %vm856_vm5, %v3584_v6, %v3585_v61  ;;  %v3587_v41 = vrot.slane %v11581_v33, 4  ;;  %v2348_v3 = vpop.permute.xlu1 %2347  ;;  %v16060_v15 = vld [vmem:[#allocation176_spill] sm:$0xff]  ;;  %v8555_v11 = vpop.f32.mrb[1].mxu1  ;;  %v16063_v55 = vld [vmem:[#allocation251_spill] sm:$0xff]  ;;  %v16064_v7 = vld [vmem:[#allocation49_spill] sm:$0xff] }
 0x2d3   : > { %v3588_v13 = vrot.slane %v8057_v43, 4  ;;  %v2647_v63 = vsel %vm2583_vm10, %v11729_v40, %v16050_v28  ;;  %v2834_v1 = vsel %vm2778_vm13, %v2769_v21, %v11627_v52  ;;  %v2832_v22 = vsel %vm2778_vm13, %v2767_v4, %v16051_v27  ;;  %v2346_v51 = vpop.permute.xlu0 %2345  ;;  %3644 = vrot.lane.b32.xlu1 %v3586_v19, %s9092_s18  ;;  %v16066_v44 = vld [vmem:[#allocation50_spill] sm:$0xff]  ;;  %v12168_v27 = vpop.f32.mrb[4].mxu1 }
 0x2d4   : > { %v2979_v8 = vsel %vm2940_vm15, %v2977_v16, %v2978_v23  ;;  %v2645_v33 = vsel %vm2583_vm10, %v11737_v42, %v16052_v46  ;;  %v2708_v30 = vsel %vm2648_vm11, %v2643_v2, %v16053_v59  ;;  %v2899_v40 = vsel %vm2843_vm14, %v2834_v1, %v2348_v3  ;;  %3642 = vrot.lane.b32.xlu0 %v3584_v6, %s9092_s18  ;;  %v16056_v42 = vld [vmem:[#allocation249_spill] sm:$0xff]  ;;  %v12136_v2 = vld [vmem:[#allocation2 + $0x338] sm:$0xff] }
 0x2d5   : > { %v2897_v52 = vsel %vm2843_vm14, %v2832_v22, %v2346_v51  ;;  %8620 = vmatprep.mubr.msk.bf16.mxu1 %vm3013_vm2, %v2979_v8  ;;  %v2706_v17 = vsel %vm2648_vm11, %v2641_v18, %v16054_v9  ;;  %v2773_v0 = vsel %vm2713_vm12, %v2708_v30, %v16055_v56  ;;  %v2981_v14 = vrot.slane %v2899_v40, 1  ;;  %v16065_v23 = vld [vmem:[#allocation175_spill] sm:$0xff]  ;;  %16067 = vst [vmem:[#allocation183_spill] sm:$0xff] %v12168_v27  ;;  %v12172_v51 = vpop.f32.mrb[5].mxu1 }
 0x2d6   : > { %v2980_v26 = vrot.slane %v2897_v52, 1  ;;  %v2771_v47 = vsel %vm2713_vm12, %v2706_v17, %v16056_v42  ;;  %v3589_v45 = vsel %vm856_vm5, %v3587_v41, %v3588_v13  ;;  %v3590_v34 = vrot.slane %v16057_v57, 4  ;;  %v2352_v61 = vpop.permute.xlu1 %2351  ;;  %v12162_v28 = vld [vmem:[#allocation2 + $0x358] sm:$0xff]  ;;  %16068 = vst [vmem:[#allocation51_spill] sm:$0xff] %v12172_v51  ;;  %v12179_v59 = vpop.f32.mrb[6].mxu1 }
 0x2d7   : > { %v15502_v62 = vrot.slane %v12108_v36, 4  ;;  %v2712_v37 = vsel %vm2648_vm11, %v2647_v63, %v16058_v60  ;;  %v2838_v24 = vsel %vm2778_vm13, %v2773_v0, %v16059_v5  ;;  %v2836_v31 = vsel %vm2778_vm13, %v2771_v47, %v16060_v15  ;;  %v2350_v6 = vpop.permute.xlu0 %2349  ;;  %3648 = vrot.lane.b32.xlu1 %v3589_v45, %s9092_s18  ;;  %16069 = vst [vmem:[#allocation182_spill] sm:$0xff] %v12179_v59  ;;  %v12186_v9 = vld [vmem:[#allocation2 + $0x378] sm:$0xff]  ;;  %v12189_v17 = vpop.f32.mrb[7].mxu1 }
 0x2d8   : > { %v2982_v38 = vsel %vm2940_vm15, %v2980_v26, %v2981_v14  ;;  %v2710_v29 = vsel %vm2648_vm11, %v2645_v33, %v16061_v39  ;;  %v2903_v10 = vsel %vm2843_vm14, %v2838_v24, %v2352_v61  ;;  %v2901_v53 = vsel %vm2843_vm14, %v2836_v31, %v2350_v6  ;;  %3646 = vrot.lane.b32.xlu0 %v3587_v41, %s9092_s18  ;;  %v12193_v56 = vpop.f32.mrb[8].mxu1  ;;  %v7851_v6 = vld [vmem:[#allocation2 + $0x320] sm:$0xff] }
 0x2d9   : > { %8621 = vmatmul.mubr.msk.bf16.gmra.mrb[60].mxu1 %vm3013_vm2, %v2982_v38  ;;  %v2777_v43 = vsel %vm2713_vm12, %v2712_v37, %v16062_v48  ;;  %v2984_v12 = vrot.slane %v2903_v10, 1  ;;  %v2983_v18 = vrot.slane %v2901_v53, 1  ;;  %v1014_v20 = vadd.f32 %v1010_v54, %v931_v32  ;;  %16070 = vst [vmem:[#allocation52_spill] sm:$0xff] %v12189_v17  ;;  %16071 = vst [vmem:[#allocation186_spill] sm:$0xff] %v12193_v56  ;;  %v12200_v42 = vpop.f32.mrb[9].mxu1  ;;  %v7847_v38 = vld [vmem:[#allocation2 + $0x300] sm:$0xff] }
 0x2da   : > { %v2775_v49 = vsel %vm2713_vm12, %v2710_v29, %v16063_v55  ;;  %v3592_v58 = vsel %vm856_vm5, %v3590_v34, %v15502_v62  ;;  %v3593_v25 = vrot.slane %v16064_v7, 4  ;;  %v15501_v21 = vrot.slane %v12136_v2, 4  ;;  %v2356_v19 = vpop.permute.xlu1 %2355  ;;  %16072 = vst [vmem:[#allocation53_spill] sm:$0xff] %v12200_v42  ;;  %v12206_v57 = vpop.f32.mrb[10].mxu1  ;;  %v12233_v39 = vld [vmem:[%s15348_s3] sm:$0xf] }
 0x2db   : > { %v2842_v16 = vsel %vm2778_vm13, %v2777_v43, %v16065_v23  ;;  %v2840_v4 = vsel %vm2778_vm13, %v2775_v49, %v16066_v44  ;;  %v2354_v41 = vpop.permute.xlu0 %2353  ;;  %v2985_v13 = vsel %vm2940_vm15, %v2983_v18, %v2984_v12  ;;  %1016 = vst.msk [vmem:[#allocation3] sm:$0x1] %vm1015_vm3, %v1014_v20  ;;  %3652 = vrot.lane.b32.xlu1 %v3592_v58, %s9092_s18  ;;  %v3596_v46 = vrot.slane %v11743_v50, 4  ;;  %v12212_v60 = vpop.f32.mrb[11].mxu1  ;;  %v7859_v12 = vld [vmem:[#allocation2 + $0x360] sm:$0xff] }
 0x2dc   : > { %v2907_v63 = vsel %vm2843_vm14, %v2842_v16, %v2356_v19  ;;  %v2905_v1 = vsel %vm2843_vm14, %v2840_v4, %v2354_v41  ;;  %8624 = vmatprep.mubr.msk.bf16.mxu1 %vm3013_vm2, %v2985_v13  ;;  %3650 = vrot.lane.b32.xlu0 %v3590_v34, %s9092_s18  ;;  %v3595_v8 = vsel %vm856_vm5, %v3593_v25, %v15501_v21  ;;  %v15500_v33 = vrot.slane %v12162_v28, 4  ;;  %v12217_v37 = vpop.f32.mrb[12].mxu1  ;;  %v7855_v18 = vld [vmem:[#allocation2 + $0x340] sm:$0xff] }
 0x2dd   : > { %v2987_v22 = vrot.slane %v2907_v63, 1  ;;  %v2986_v3 = vrot.slane %v2905_v1, 1  ;;  %v1169_v50 = vlaneseq  ;;  %v3599_v14 = vrot.slane %v11774_v35, 4  ;;  %16075 = vst [vmem:[#allocation193_spill] sm:$0xff] %v12206_v57  ;;  %16077 = vst [vmem:[#allocation192_spill] sm:$0xff] %v12212_v60  ;;  %v12224_v31 = vpop.f32.mrb[13].mxu1 }
 0x2de   : > { %v12181_v30 = vpop.permute.xlu1 %3476  ;;  %v3598_v0 = vsel %vm856_vm5, %v3596_v46, %v15500_v33  ;;  %v15499_v26 = vrot.slane %v12186_v9, 4  ;;  %16078 = vst [vmem:[#allocation57_spill] sm:$0xff] %v12217_v37  ;;  %16081 = vst [vmem:[#allocation195_spill] sm:$0xff] %v12224_v31  ;;  %v12228_v61 = vpop.f32.mrb[14].mxu1  ;;  %v7867_v16 = vld [vmem:[#allocation2 + $0x3a0] sm:$0xff] }
 0x2df   : > { %v12183_v40 = vpop.permute.xlu0 %3474  ;;  %v2988_v52 = vsel %vm2940_vm15, %v2986_v3, %v2987_v22  ;;  %3656 = vrot.lane.b32.xlu1 %v3595_v8, %s9092_s18  ;;  %v12210_v34 = vshrl.u32 %v1169_v50, 7  ;;  %16082 = vst [vmem:[#allocation60_spill] sm:$0xff] %v12228_v61  ;;  %v12235_v29 = vpop.f32.mrb[15].mxu1  ;;  %v7863_v44 = vld [vmem:[#allocation2 + $0x380] sm:$0xff] }
 0x2e0   : > { %3654 = vrot.lane.b32.xlu0 %v3593_v25, %s9092_s18  ;;  %v3601_v35 = vsel %vm856_vm5, %v3599_v14, %v15499_v26  ;;  %16083 = vst [vmem:[#allocation203_spill] sm:$0xff] %v12235_v29  ;;  %v8572_v54 = vpop.f32.mrb[16].mxu1  ;;  %v7875_v8 = vld [vmem:[#allocation2 + $0x3e0] sm:$0xff] }
 0x2e1   : > { %8625 = vmatmul.mubr.msk.bf16.gmra.mrb[64].mxu1 %vm3013_vm2, %v2988_v52  ;;  %16076 = vst [vmem:[#allocation55_spill] sm:$0xff] %v12210_v34  ;;  %v1171_v15 = vsub.s32 0, %v12210_v34  ;;  %v1308_v43 = vpop.f32.mrb[17].mxu1  ;;  %v12345_v62 = vld [vmem:[#allocation2 + $0x4e0] sm:$0xff] }
 0x2e2   : > { %v12202_v47 = vpop.permute.xlu1 %3480  ;;  %v8573_v11 = vpop.f32.mrb[18].mxu1 }
 0x2e3   : > { %16073 = vst [vmem:[#allocation185_spill] sm:$0xff] %v12202_v47  ;;  %v12204_v45 = vpop.permute.xlu0 %3478  ;;  %3660 = vrot.lane.b32.xlu1 %v3598_v0, %s9092_s18  ;;  %v12242_v32 = vrot.slane %v12233_v39, %v1171_v15  ;;  %v1311_v7 = vpop.f32.mrb[19].mxu1 }
 0x2e4   : > { %16074 = vst [vmem:[#allocation54_spill] sm:$0xff] %v12204_v45  ;;  %3658 = vrot.lane.b32.xlu0 %v3596_v46, %s9092_s18  ;;  %v8576_v23 = vpop.f32.mrb[20].mxu1  ;;  %v7871_v46 = vld [vmem:[#allocation2 + $0x3c0] sm:$0xff] }
 0x2e5   : > { %16086 = vst [vmem:[#allocation63_spill] sm:$0xff] %v12242_v32  ;;  %v12247_v48 = vadd.f32 %v8572_v54, %v12242_v32  ;;  %v12250_v20 = vadd.f32 %v1308_v43, %v12242_v32  ;;  %v12257_v58 = vadd.f32 %v8573_v11, %v12242_v32  ;;  %v12262_v25 = vadd.f32 %v1311_v7, %v12242_v32  ;;  %v1324_v19 = vpop.f32.mrb[21].mxu1  ;;  %v7883_v54 = vld [vmem:[#allocation2 + $0x420] sm:$0xff] }
 0x2e6   : > { %v12219_v5 = vpop.permute.xlu1 %3484  ;;  %v12265_v4 = vadd.f32 %v8576_v23, %v12242_v32  ;;  %v12272_v63 = vadd.f32 %v1324_v19, %v12242_v32  ;;  %v8577_v1 = vpop.f32.mrb[22].mxu1  ;;  %v7879_v43 = vld [vmem:[#allocation2 + $0x400] sm:$0xff] }
 0x2e7   : > { %16079 = vst [vmem:[#allocation196_spill] sm:$0xff] %v12219_v5  ;;  %v12221_v24 = vpop.permute.xlu0 %3482  ;;  %3664 = vrot.lane.b32.xlu1 %v3601_v35, %s9092_s18  ;;  %16087 = vst [vmem:[#allocation206_spill] sm:$0xff] %v12247_v48  ;;  %v12277_v22 = vadd.f32 %v8577_v1, %v12242_v32  ;;  %v1327_v3 = vpop.f32.mrb[23].mxu1  ;;  %v7891_v1 = vld [vmem:[#allocation2 + $0x460] sm:$0xff] }
 0x2e8   : > { %16080 = vst [vmem:[#allocation58_spill] sm:$0xff] %v12221_v24  ;;  %3662 = vrot.lane.b32.xlu0 %v3599_v14, %s9092_s18  ;;  %16088 = vst [vmem:[#allocation64_spill] sm:$0xff] %v12250_v20  ;;  %v12280_v52 = vadd.f32 %v1327_v3, %v12242_v32  ;;  %v8580_v50 = vpop.f32.mrb[24].mxu1  ;;  %v7887_v3 = vld [vmem:[#allocation2 + $0x440] sm:$0xff] }
 0x2e9   : > { %16091 = vst [vmem:[#allocation67_spill] sm:$0xff] %v12257_v58  ;;  %16092 = vst [vmem:[#allocation69_spill] sm:$0xff] %v12262_v25  ;;  %v12287_v35 = vadd.f32 %v8580_v50, %v12242_v32  ;;  %v1340_v15 = vpop.f32.mrb[25].mxu1 }
 0x2ea   : > { %v12237_v10 = vpop.permute.xlu1 %3488  ;;  %16093 = vst [vmem:[#allocation70_spill] sm:$0xff] %v12265_v4  ;;  %16096 = vst [vmem:[#allocation74_spill] sm:$0xff] %v12272_v63 }
 0x2eb   : > { %16084 = vst [vmem:[#allocation61_spill] sm:$0xff] %v12237_v10  ;;  %v12239_v53 = vpop.permute.xlu0 %3486  ;;  %3684 = vrot.lane.b32.xlu1 %v7851_v6, %s9093_s19  ;;  %16097 = vst [vmem:[#allocation75_spill] sm:$0xff] %v12277_v22  ;;  %v12292_v6 = vadd.f32 %v1340_v15, %v12242_v32 }
 0x2ec   : > { %16085 = vst [vmem:[#allocation202_spill] sm:$0xff] %v12239_v53  ;;  %3682 = vrot.lane.b32.xlu0 %v7847_v38, %s9093_s19  ;;  %16098 = vst [vmem:[#allocation76_spill] sm:$0xff] %v12280_v52  ;;  %v8581_v38 = vpop.f32.mrb[26].mxu1  ;;  %v8122_v53 = vld [vmem:[#allocation2 + $0x600] sm:$0xff] }
 0x2ed   : > { %16101 = vst [vmem:[#allocation79_spill] sm:$0xff] %v12287_v35  ;;  %16102 = vst [vmem:[#allocation80_spill] sm:$0xff] %v12292_v6  ;;  %v16129_v35 = vld [vmem:[#allocation5_spill] sm:$0xff] }
 0x2ee   : > { %v12252_v55 = vpop.permute.xlu1 %3492 }
 0x2ef   : > { %16089 = vst [vmem:[#allocation205_spill] sm:$0xff] %v12252_v55  ;;  %v12254_v49 = vpop.permute.xlu0 %3490  ;;  %3688 = vrot.lane.b32.xlu1 %v7859_v12, %s9093_s19  ;;  %v12295_v12 = vadd.f32 %v8581_v38, %v12242_v32  ;;  %v12820_v55 = vld [vmem:[#allocation2 + $0x5c8] sm:$0xff] }
 0x2f0   : > { %16090 = vst [vmem:[#allocation66_spill] sm:$0xff] %v12254_v49  ;;  %3686 = vrot.lane.b32.xlu0 %v7855_v18, %s9093_s19  ;;  %v1343_v18 = vpop.f32.mrb[27].mxu1  ;;  %v12790_v49 = vld [vmem:[#allocation2 + $0x580] sm:$0xff] }
 0x2f1   : > { %16103 = vst [vmem:[#allocation81_spill] sm:$0xff] %v12295_v12  ;;  %v12302_v23 = vadd.f32 %v1343_v18, %v12242_v32  ;;  %v16128_v12 = vld [vmem:[#allocation23_spill] sm:$0xff] }
 0x2f2   : > { %v12267_v41 = vpop.permute.xlu1 %3496 }
 0x2f3   : > { %16094 = vst [vmem:[#allocation72_spill] sm:$0xff] %v12267_v41  ;;  %v12269_v13 = vpop.permute.xlu0 %3494  ;;  %3692 = vrot.lane.b32.xlu1 %v7867_v16, %s9093_s19  ;;  %16106 = vst [vmem:[#allocation10_spill] sm:$0xff] %v12302_v23  ;;  %v8584_v16 = vpop.f32.mrb[28].mxu1  ;;  %v16130_v23 = vrot.slane %v16129_v35, 6  ;;  %v16139_v35 = vld [vmem:[#allocation7_spill] sm:$0xff] }
 0x2f4   : > { %16095 = vst [vmem:[#allocation73_spill] sm:$0xff] %v12269_v13  ;;  %3690 = vrot.lane.b32.xlu0 %v7863_v44, %s9093_s19  ;;  %v12307_v44 = vadd.f32 %v8584_v16, %v12242_v32  ;;  %v1356_v19 = vpop.f32.mrb[29].mxu1  ;;  %v12324_v16 = vld [vmem:[#allocation2 + $0x4a0] sm:$0xff] }
 0x2f6   : > { %v12282_v0 = vpop.permute.xlu1 %3500  ;;  %16107 = vst [vmem:[#allocation84_spill] sm:$0xff] %v12307_v44  ;;  %v16123_v44 = vld [vmem:[#allocation22_spill] sm:$0xff] }
 0x2f7   : > { %16099 = vst [vmem:[#allocation77_spill] sm:$0xff] %v12282_v0  ;;  %v12284_v14 = vpop.permute.xlu0 %3498  ;;  %3696 = vrot.lane.b32.xlu1 %v7875_v8, %s9093_s19  ;;  %v12310_v8 = vadd.f32 %v1356_v19, %v12242_v32  ;;  %v12326_v19 = vld [vmem:[#allocation2 + $0x480] sm:$0xff] }
 0x2f8   : > { %16100 = vst [vmem:[#allocation78_spill] sm:$0xff] %v12284_v14  ;;  %3694 = vrot.lane.b32.xlu0 %v7871_v46, %s9093_s19  ;;  %v8585_v46 = vpop.f32.mrb[30].mxu1 }
 0x2f9   : > { %16108 = vst [vmem:[#allocation11_spill] sm:$0xff] %v12310_v8  ;;  %v12317_v38 = vadd.f32 %v8585_v46, %v12242_v32 }
 0x2fa   : > { %v12297_v11 = vpop.permute.xlu1 %3504 }
 0x2fb   : > { %16104 = vst [vmem:[#allocation82_spill] sm:$0xff] %v12297_v11  ;;  %v12299_v7 = vpop.permute.xlu0 %3502  ;;  %3700 = vrot.lane.b32.xlu1 %v7883_v54, %s9093_s19  ;;  %16111 = vst [vmem:[#allocation16_spill] sm:$0xff] %v12317_v38  ;;  %v1359_v54 = vpop.f32.mrb[31].mxu1  ;;  %v7910_v11 = vld [vmem:[#allocation2 + $0x4f8] sm:$0xff] }
 0x2fc   : > { %16105 = vst [vmem:[#allocation83_spill] sm:$0xff] %v12299_v7  ;;  %3698 = vrot.lane.b32.xlu0 %v7879_v43, %s9093_s19  ;;  %v12322_v43 = vadd.f32 %v1359_v54, %v12242_v32  ;;  %v8588_v18 = vpop.f32.mrb[32].mxu1 }
 0x2fd   : > { %v12329_v26 = vadd.f32 %v8588_v18, %v12242_v32  ;;  %v1372_v33 = vpop.f32.mrb[33].mxu1 }
 0x2fe   : > { %v12312_v50 = vpop.permute.xlu1 %3508  ;;  %16112 = vst [vmem:[#allocation18_spill] sm:$0xff] %v12322_v43 }
 0x2ff   : > { %16109 = vst [vmem:[#allocation13_spill] sm:$0xff] %v12312_v50  ;;  %v12314_v15 = vpop.permute.xlu0 %3506  ;;  %3704 = vrot.lane.b32.xlu1 %v7891_v1, %s9093_s19  ;;  %16113 = vst [vmem:[#allocation85_spill] sm:$0xff] %v12329_v26  ;;  %v12336_v1 = vadd.f32 %v1372_v33, %v12242_v32  ;;  %v12347_v26 = vld [vmem:[#allocation2 + $0x4c0] sm:$0xff] }
 0x300   : > { %16110 = vst [vmem:[#allocation14_spill] sm:$0xff] %v12314_v15  ;;  %3702 = vrot.lane.b32.xlu0 %v7887_v3, %s9093_s19  ;;  %v8589_v3 = vpop.f32.mrb[34].mxu1 }
 0x301   : > { %16116 = vst [vmem:[#allocation86_spill] sm:$0xff] %v12336_v1  ;;  %v12343_v54 = vadd.f32 %v8589_v3, %v12242_v32  ;;  %v1375_v18 = vpop.f32.mrb[35].mxu1 }
 0x302   : > { %v12331_v21 = vpop.permute.xlu1 %3512  ;;  %v12350_v38 = vadd.f32 %v1375_v18, %v12242_v32  ;;  %v16124_v18 = vld [vmem:[#allocation4_spill] sm:$0xff] }
 0x303   : > { %16114 = vst [vmem:[#allocation19_spill] sm:$0xff] %v12331_v21  ;;  %v12333_v46 = vpop.permute.xlu0 %3510  ;;  %3708 = vrot.lane.b32.xlu1 %v12324_v16, %s9093_s19  ;;  %16117 = vst [vmem:[#allocation87_spill] sm:$0xff] %v12343_v54 }
 0x304   : > { %16115 = vst [vmem:[#allocation21_spill] sm:$0xff] %v12333_v46  ;;  %3706 = vrot.lane.b32.xlu0 %v12326_v19, %s9093_s19  ;;  %16118 = vst [vmem:[#allocation88_spill] sm:$0xff] %v12350_v38  ;;  %v16125_v38 = vrot.slane %v16124_v18, 6 }
 0x306   : > { %v12352_v33 = vpop.permute.xlu1 %3516 }
 0x307   : > { %16119 = vst [vmem:[#allocation89_spill] sm:$0xff] %v12352_v33  ;;  %v12354_v1 = vpop.permute.xlu0 %3514  ;;  %3712 = vrot.lane.b32.xlu1 %v12345_v62, %s9093_s19 }
 0x308   : > { %16120 = vst [vmem:[#allocation90_spill] sm:$0xff] %v12354_v1  ;;  %3710 = vrot.lane.b32.xlu0 %v12347_v26, %s9093_s19 }
 0x30a   : > { %v12360_v3 = vpop.permute.xlu1 %3520 }
 0x30b   : > { %16121 = vst [vmem:[#allocation91_spill] sm:$0xff] %v12360_v3  ;;  %v12362_v54 = vpop.permute.xlu0 %3518  ;;  %3716 = vrot.lane.b32.xlu1 %v16123_v44, %s9096_s22  ;;  %v16133_v44 = vld [vmem:[#allocation24_spill] sm:$0xff] }
 0x30c   : > { %16122 = vst [vmem:[#allocation92_spill] sm:$0xff] %v12362_v54  ;;  %3714 = vrot.lane.b32.xlu0 %v16125_v38, %s9096_s22  ;;  %v16134_v38 = vld [vmem:[#allocation6_spill] sm:$0xff] }
 0x30d   : > { %v16135_v18 = vrot.slane %v16134_v38, 6  ;;  %v16144_v38 = vld [vmem:[#allocation8_spill] sm:$0xff] }
 0x30e   : > { %v12369_v43 = vpop.permute.xlu1 %3524 }
 0x30f   : > { %16126 = vst [vmem:[#allocation94_spill] sm:$0xff] %v12369_v43  ;;  %v12371_v8 = vpop.permute.xlu0 %3522  ;;  %3720 = vrot.lane.b32.xlu1 %v16128_v12, %s9096_s22  ;;  %v16138_v12 = vld [vmem:[#allocation26_spill] sm:$0xff]  ;;  %v16200_v43 = vld [vmem:[#allocation164_spill] sm:$0xff] }
 0x310   : > { %16127 = vst [vmem:[#allocation96_spill] sm:$0xff] %v12371_v8  ;;  %3718 = vrot.lane.b32.xlu0 %v16130_v23, %s9096_s22  ;;  %v16140_v23 = vrot.slane %v16139_v35, 6  ;;  %v16147_v35 = vld [vmem:[#allocation9_spill] sm:$0xff]  ;;  %v16199_v8 = vrot.slane %v12108_v36, 4 }
 0x312   : > { %v12378_v6 = vpop.permute.xlu1 %3528 }
 0x313   : > { %16131 = vst [vmem:[#allocation98_spill] sm:$0xff] %v12378_v6  ;;  %v12380_v22 = vpop.permute.xlu0 %3526  ;;  %3724 = vrot.lane.b32.xlu1 %v16133_v44, %s9096_s22  ;;  %v16143_v44 = vld [vmem:[#allocation28_spill] sm:$0xff] }
 0x314   : > { %16132 = vst [vmem:[#allocation100_spill] sm:$0xff] %v12380_v22  ;;  %3722 = vrot.lane.b32.xlu0 %v16135_v18, %s9096_s22  ;;  %v16145_v18 = vrot.slane %v16144_v38, 6  ;;  %v16152_v38 = vld [vmem:[#allocation12_spill] sm:$0xff] }
 0x316   : > { %v12387_v4 = vpop.permute.xlu1 %3532 }
 0x317   : > { %16136 = vst [vmem:[#allocation102_spill] sm:$0xff] %v12387_v4  ;;  %v12389_v52 = vpop.permute.xlu0 %3530  ;;  %3728 = vrot.lane.b32.xlu1 %v16138_v12, %s9096_s22  ;;  %v16146_v12 = vld [vmem:[#allocation30_spill] sm:$0xff] }
 0x318   : > { %16137 = vst [vmem:[#allocation104_spill] sm:$0xff] %v12389_v52  ;;  %3726 = vrot.lane.b32.xlu0 %v16140_v23, %s9096_s22  ;;  %v16148_v23 = vrot.slane %v16147_v35, 6  ;;  %v16157_v35 = vld [vmem:[#allocation15_spill] sm:$0xff] }
 0x31a   : > { %v12396_v63 = vpop.permute.xlu1 %3536 }
 0x31b   : > { %16141 = vst [vmem:[#allocation25_spill] sm:$0xff] %v12396_v63  ;;  %v12398_v58 = vpop.permute.xlu0 %3534  ;;  %3732 = vrot.lane.b32.xlu1 %v16143_v44, %s9096_s22  ;;  %v16151_v44 = vld [vmem:[#allocation32_spill] sm:$0xff] }
 0x31c   : > { %16142 = vst [vmem:[#allocation27_spill] sm:$0xff] %v12398_v58  ;;  %3730 = vrot.lane.b32.xlu0 %v16145_v18, %s9096_s22  ;;  %v16153_v18 = vrot.slane %v16152_v38, 6  ;;  %v16162_v38 = vld [vmem:[#allocation17_spill] sm:$0xff] }
 0x31e   : > { %v12405_v48 = vpop.permute.xlu1 %3604 }
 0x31f   : > { %v12407_v25 = vpop.permute.xlu0 %3602  ;;  %3736 = vrot.lane.b32.xlu1 %v16146_v12, %s9096_s22  ;;  %v16156_v12 = vld [vmem:[#allocation33_spill] sm:$0xff] }
 0x320   : > { %3734 = vrot.lane.b32.xlu0 %v16148_v23, %s9096_s22  ;;  %v16158_v23 = vrot.slane %v16157_v35, 6  ;;  %v16167_v35 = vld [vmem:[#allocation20_spill] sm:$0xff] }
 0x322   : > { %v12414_v20 = vpop.permute.xlu1 %3608 }
 0x323   : > { %16149 = vst [vmem:[#allocation29_spill] sm:$0xff] %v12414_v20  ;;  %v12416_v61 = vpop.permute.xlu0 %3606  ;;  %3740 = vrot.lane.b32.xlu1 %v16151_v44, %s9096_s22  ;;  %v16161_v44 = vld [vmem:[#allocation36_spill] sm:$0xff] }
 0x324   : > { %16150 = vst [vmem:[#allocation31_spill] sm:$0xff] %v12416_v61  ;;  %3738 = vrot.lane.b32.xlu0 %v16153_v18, %s9096_s22  ;;  %v16163_v18 = vrot.slane %v16162_v38, 6  ;;  %v16172_v38 = vld [vmem:[#allocation56_spill] sm:$0xff] }
 0x326   : > { %v12423_v37 = vpop.permute.xlu1 %3612 }
 0x327   : > { %16154 = vst [vmem:[#allocation110_spill] sm:$0xff] %v12423_v37  ;;  %v12425_v29 = vpop.permute.xlu0 %3610  ;;  %3744 = vrot.lane.b32.xlu1 %v16156_v12, %s9096_s22  ;;  %v16166_v12 = vld [vmem:[#allocation39_spill] sm:$0xff] }
 0x328   : > { %16155 = vst [vmem:[#allocation112_spill] sm:$0xff] %v12425_v29  ;;  %3742 = vrot.lane.b32.xlu0 %v16158_v23, %s9096_s22  ;;  %v16168_v23 = vrot.slane %v16167_v35, 6  ;;  %v16177_v35 = vld [vmem:[#allocation59_spill] sm:$0xff] }
 0x32a   : > { %v12432_v31 = vpop.permute.xlu1 %3616 }
 0x32b   : > { %16159 = vst [vmem:[#allocation115_spill] sm:$0xff] %v12432_v31  ;;  %v12434_v60 = vpop.permute.xlu0 %3614  ;;  %3748 = vrot.lane.b32.xlu1 %v16161_v44, %s9096_s22  ;;  %v16171_v44 = vld [vmem:[#allocation114_spill] sm:$0xff] }
 0x32c   : > { %16160 = vst [vmem:[#allocation118_spill] sm:$0xff] %v12434_v60  ;;  %3746 = vrot.lane.b32.xlu0 %v16163_v18, %s9096_s22  ;;  %v16173_v18 = vrot.slane %v16172_v38, 6  ;;  %v16182_v38 = vld [vmem:[#allocation62_spill] sm:$0xff]  ;;  %v8123_v60 = vld [vmem:[#allocation2 + $0x608] sm:$0xff] }
 0x32e   : > { %v12441_v57 = vpop.permute.xlu1 %3620 }
 0x32f   : > { %16164 = vst [vmem:[#allocation121_spill] sm:$0xff] %v12441_v57  ;;  %v12443_v42 = vpop.permute.xlu0 %3618  ;;  %3752 = vrot.lane.b32.xlu1 %v16166_v12, %s9096_s22  ;;  %v16176_v12 = vld [vmem:[#allocation117_spill] sm:$0xff] }
 0x330   : > { %16165 = vst [vmem:[#allocation124_spill] sm:$0xff] %v12443_v42  ;;  %3750 = vrot.lane.b32.xlu0 %v16168_v23, %s9096_s22  ;;  %v16178_v23 = vrot.slane %v16177_v35, 6  ;;  %v16187_v35 = vld [vmem:[#allocation65_spill] sm:$0xff] }
 0x331   : > { %v12788_v42 = vld [vmem:[#allocation2 + $0x588] sm:$0xff] }
 0x332   : > { %v12450_v56 = vpop.permute.xlu1 %3624 }
 0x333   : > { %16169 = vst [vmem:[#allocation125_spill] sm:$0xff] %v12450_v56  ;;  %v12452_v59 = vpop.permute.xlu0 %3622  ;;  %3756 = vrot.lane.b32.xlu1 %v16171_v44, %s9096_s22  ;;  %v16181_v44 = vld [vmem:[#allocation120_spill] sm:$0xff] }
 0x334   : > { %16170 = vst [vmem:[#allocation127_spill] sm:$0xff] %v12452_v59  ;;  %3754 = vrot.lane.b32.xlu0 %v16173_v18, %s9096_s22  ;;  %v16183_v18 = vrot.slane %v16182_v38, 6  ;;  %v16192_v38 = vld [vmem:[#allocation68_spill] sm:$0xff] }
 0x335   : > { %v8090_v56 = vld [vmem:[#allocation2 + $0x500] sm:$0xff] }
 0x336   : > { %v12459_v17 = vpop.permute.xlu1 %3628 }
 0x337   : > { %16174 = vst [vmem:[#allocation128_spill] sm:$0xff] %v12459_v17  ;;  %v12461_v51 = vpop.permute.xlu0 %3626  ;;  %3760 = vrot.lane.b32.xlu1 %v16176_v12, %s9096_s22  ;;  %v16186_v12 = vld [vmem:[#allocation123_spill] sm:$0xff] }
 0x338   : > { %16175 = vst [vmem:[#allocation158_spill] sm:$0xff] %v12461_v51  ;;  %3758 = vrot.lane.b32.xlu0 %v16178_v23, %s9096_s22  ;;  %v16188_v23 = vrot.slane %v16187_v35, 6  ;;  %v16197_v35 = vld [vmem:[#allocation71_spill] sm:$0xff] }
 0x33a   : > { %v12468_v27 = vpop.permute.xlu1 %3632 }
 0x33b   : > { %16179 = vst [vmem:[#allocation130_spill] sm:$0xff] %v12468_v27  ;;  %v12470_v32 = vpop.permute.xlu0 %3630  ;;  %3764 = vrot.lane.b32.xlu1 %v16181_v44, %s9096_s22  ;;  %v16191_v44 = vld [vmem:[#allocation126_spill] sm:$0xff] }
 0x33c   : > { %16180 = vst [vmem:[#allocation159_spill] sm:$0xff] %v12470_v32  ;;  %3762 = vrot.lane.b32.xlu0 %v16183_v18, %s9096_s22  ;;  %v16193_v18 = vrot.slane %v16192_v38, 6 }
 0x33e   : > { %v12477_v58 = vpop.permute.xlu1 %3636 }
 0x33f   : > { %16184 = vst [vmem:[#allocation131_spill] sm:$0xff] %v12477_v58  ;;  %v12479_v63 = vpop.permute.xlu0 %3634  ;;  %3768 = vrot.lane.b32.xlu1 %v16186_v12, %s9096_s22  ;;  %v16196_v12 = vld [vmem:[#allocation129_spill] sm:$0xff] }
 0x340   : > { %16185 = vst [vmem:[#allocation160_spill] sm:$0xff] %v12479_v63  ;;  %3766 = vrot.lane.b32.xlu0 %v16188_v23, %s9096_s22  ;;  %v16198_v23 = vrot.slane %v16197_v35, 6 }
 0x342   : > { %v12486_v52 = vpop.permute.xlu1 %3640 }
 0x343   : > { %16189 = vst [vmem:[#allocation161_spill] sm:$0xff] %v12486_v52  ;;  %v12488_v4 = vpop.permute.xlu0 %3638  ;;  %3772 = vrot.lane.b32.xlu1 %v16191_v44, %s9096_s22  ;;  %v3795_v44 = vsel %vm856_vm5, %v16200_v43, %v16199_v8  ;;  %v16207_v8 = vrot.slane %v12162_v28, 4 }
 0x344   : > { %16190 = vst [vmem:[#allocation132_spill] sm:$0xff] %v12488_v4  ;;  %3770 = vrot.lane.b32.xlu0 %v16193_v18, %s9096_s22  ;;  %v16203_v18 = vrot.slane %v12136_v2, 4 }
 0x346   : > { %v12495_v22 = vpop.permute.xlu1 %3644 }
 0x347   : > { %16194 = vst [vmem:[#allocation133_spill] sm:$0xff] %v12495_v22  ;;  %v12497_v6 = vpop.permute.xlu0 %3642  ;;  %3776 = vrot.lane.b32.xlu1 %v16196_v12, %s9096_s22  ;;  %v16204_v12 = vld [vmem:[#allocation167_spill] sm:$0xff] }
 0x348   : > { %16195 = vst [vmem:[#allocation168_spill] sm:$0xff] %v12497_v6  ;;  %3774 = vrot.lane.b32.xlu0 %v16198_v23, %s9096_s22  ;;  %v3797_v35 = vsel %vm856_vm5, %v16204_v12, %v16203_v18  ;;  %v16211_v18 = vrot.slane %v12186_v9, 4 }
 0x34a   : > { %v12508_v54 = vpop.permute.xlu1 %3648 }
 0x34b   : > { %16201 = vst [vmem:[#allocation169_spill] sm:$0xff] %v12508_v54  ;;  %v12510_v38 = vpop.permute.xlu0 %3646  ;;  %3828 = vrot.lane.b32.xlu1 %v3795_v44, %s9097_s23  ;;  %v16208_v44 = vld [vmem:[#allocation174_spill] sm:$0xff] }
 0x34c   : > { %16202 = vst [vmem:[#allocation134_spill] sm:$0xff] %v12510_v38  ;;  %3826 = vrot.lane.b32.xlu0 %v16200_v43, %s9097_s23  ;;  %v3799_v38 = vsel %vm856_vm5, %v16208_v44, %v16207_v8  ;;  %v7866_v54 = vld [vmem:[#allocation2 + $0x398] sm:$0xff] }
 0x34d   : > { %v7870_v8 = vld [vmem:[#allocation2 + $0x3b8] sm:$0xff] }
 0x34e   : > { %v12519_v23 = vpop.permute.xlu1 %3652 }
 0x34f   : > { %16205 = vst [vmem:[#allocation252_spill] sm:$0xff] %v12519_v23  ;;  %v12521_v36 = vpop.permute.xlu0 %3650  ;;  %3832 = vrot.lane.b32.xlu1 %v3797_v35, %s9097_s23  ;;  %v16212_v35 = vld [vmem:[#allocation177_spill] sm:$0xff] }
 0x350   : > { %16206 = vst [vmem:[#allocation135_spill] sm:$0xff] %v12521_v36  ;;  %3830 = vrot.lane.b32.xlu0 %v16204_v12, %s9097_s23  ;;  %v3801_v12 = vsel %vm856_vm5, %v16212_v35, %v16211_v18  ;;  %v3802_v36 = vrot.slane %v7866_v54, 4  ;;  %v7874_v18 = vld [vmem:[#allocation2 + $0x3d8] sm:$0xff] }
 0x351   : > { %v16218_v54 = vld [vmem:[#allocation187_spill] sm:$0xff] }
 0x352   : > { %v12530_v43 = vpop.permute.xlu1 %3656 }
 0x353   : > { %16209 = vst [vmem:[#allocation170_spill] sm:$0xff] %v12530_v43  ;;  %v12532_v2 = vpop.permute.xlu0 %3654  ;;  %3836 = vrot.lane.b32.xlu1 %v3799_v38, %s9097_s23  ;;  %v16215_v38 = vld [vmem:[#allocation184_spill] sm:$0xff] }
 0x354   : > { %16210 = vst [vmem:[#allocation171_spill] sm:$0xff] %v12532_v2  ;;  %3834 = vrot.lane.b32.xlu0 %v16208_v44, %s9097_s23  ;;  %v3803_v2 = vsel %vm856_vm5, %v16215_v38, %v3802_v36  ;;  %v3804_v44 = vrot.slane %v7870_v8, 4  ;;  %v7878_v36 = vld [vmem:[#allocation2 + $0x3f8] sm:$0xff] }
 0x355   : > { %v16220_v8 = vld [vmem:[#allocation194_spill] sm:$0xff] }
 0x356   : > { %v12541_v28 = vpop.permute.xlu1 %3660 }
 0x357   : > { %16213 = vst [vmem:[#allocation226_spill] sm:$0xff] %v12541_v28  ;;  %v12543_v23 = vpop.permute.xlu0 %3658  ;;  %3840 = vrot.lane.b32.xlu1 %v3801_v12, %s9097_s23  ;;  %v3805_v12 = vsel %vm856_vm5, %v16218_v54, %v3804_v44  ;;  %v7882_v44 = vld [vmem:[#allocation2 + $0x418] sm:$0xff] }
 0x358   : > { %16214 = vst [vmem:[#allocation227_spill] sm:$0xff] %v12543_v23  ;;  %3838 = vrot.lane.b32.xlu0 %v16212_v35, %s9097_s23  ;;  %v3806_v23 = vrot.slane %v7874_v18, 4  ;;  %v16221_v18 = vld [vmem:[#allocation197_spill] sm:$0xff]  ;;  %v3810_v6 = vrot.slane %v7882_v44, 4  ;;  %v16223_v44 = vld [vmem:[#allocation207_spill] sm:$0xff] }
 0x35a   : > { %v12550_v43 = vpop.permute.xlu1 %3664 }
 0x35b   : > { %16216 = vst [vmem:[#allocation253_spill] sm:$0xff] %v12550_v43  ;;  %v12552_v9 = vpop.permute.xlu0 %3662  ;;  %3844 = vrot.lane.b32.xlu1 %v3803_v2, %s9097_s23  ;;  %v3807_v2 = vsel %vm856_vm5, %v16220_v8, %v3806_v23  ;;  %v7886_v23 = vld [vmem:[#allocation2 + $0x438] sm:$0xff] }
 0x35c   : > { %16217 = vst [vmem:[#allocation136_spill] sm:$0xff] %v12552_v9  ;;  %3842 = vrot.lane.b32.xlu0 %v16215_v38, %s9097_s23  ;;  %v3808_v9 = vrot.slane %v7878_v36, 4  ;;  %v16222_v36 = vld [vmem:[#allocation204_spill] sm:$0xff]  ;;  %v3812_v1 = vrot.slane %v7886_v23, 4 }
 0x35d   : > { %v16226_v23 = vld [vmem:[#allocation212_spill] sm:$0xff] }
 0x35e   : > { %v12559_v28 = vpop.permute.xlu1 %3684 }
 0x35f   : > { %16219 = vst [vmem:[#allocation254_spill] sm:$0xff] %v12559_v28  ;;  %v12561_v35 = vpop.permute.xlu0 %3682  ;;  %3848 = vrot.lane.b32.xlu1 %v3805_v12, %s9097_s23  ;;  %v3809_v12 = vsel %vm856_vm5, %v16221_v18, %v3808_v9  ;;  %v7890_v9 = vld [vmem:[#allocation2 + $0x458] sm:$0xff] }
 0x360   : > { %3846 = vrot.lane.b32.xlu0 %v16218_v54, %s9097_s23  ;;  %v3814_v33 = vrot.slane %v7890_v9, 4  ;;  %v2996_v9 = vsub.s32 1, %v12210_v34  ;;  %v8991_v34 = vld [vmem:[#allocation2 + $0x3b8] sm:$0xff] }
 0x362   : > { %v12568_v43 = vpop.permute.xlu1 %3688 }
 0x363   : > { %v12570_v38 = vpop.permute.xlu0 %3686  ;;  %3852 = vrot.lane.b32.xlu1 %v3807_v2, %s9097_s23  ;;  %v3811_v2 = vsel %vm856_vm5, %v16222_v36, %v3810_v6  ;;  %v7894_v6 = vld [vmem:[#allocation2 + $0x478] sm:$0xff] }
 0x364   : > { %3850 = vrot.lane.b32.xlu0 %v16220_v8, %s9097_s23  ;;  %v3816_v52 = vrot.slane %v7894_v6, 4  ;;  %v7902_v6 = vld [vmem:[#allocation2 + $0x4b8] sm:$0xff] }
 0x365   : > { %v3820_v15 = vrot.slane %v7902_v6, 4 }
 0x366   : > { %v12577_v3 = vpop.permute.xlu1 %3692 }
 0x367   : > { %v12579_v54 = vpop.permute.xlu0 %3690  ;;  %3856 = vrot.lane.b32.xlu1 %v3809_v12, %s9097_s23  ;;  %v3813_v12 = vsel %vm856_vm5, %v16223_v44, %v3812_v1  ;;  %v7898_v1 = vld [vmem:[#allocation2 + $0x498] sm:$0xff] }
 0x368   : > { %3854 = vrot.lane.b32.xlu0 %v16221_v18, %s9097_s23 }
 0x36a   : > { %v12586_v22 = vpop.permute.xlu1 %3696 }
 0x36b   : > { %v12588_v8 = vpop.permute.xlu0 %3694  ;;  %3860 = vrot.lane.b32.xlu1 %v3811_v2, %s9097_s23  ;;  %v3815_v2 = vsel %vm856_vm5, %v16226_v23, %v3814_v33 }
 0x36c   : > { %3858 = vrot.lane.b32.xlu0 %v16222_v36, %s9097_s23 }
 0x36e   : > { %v12595_v4 = vpop.permute.xlu1 %3700 }
 0x36f   : > { %16224 = vst [vmem:[#allocation255_spill] sm:$0xff] %v12595_v4  ;;  %v12597_v18 = vpop.permute.xlu0 %3698  ;;  %3864 = vrot.lane.b32.xlu1 %v3813_v12, %s9097_s23  ;;  %v16229_v12 = vld [vmem:[#allocation213_spill] sm:$0xff]  ;;  %v8979_v4 = vld [vmem:[#allocation2 + $0x338] sm:$0xff] }
 0x370   : > { %16225 = vst [vmem:[#allocation137_spill] sm:$0xff] %v12597_v18  ;;  %3862 = vrot.lane.b32.xlu0 %v16223_v44, %s9097_s23  ;;  %v3817_v58 = vsel %vm856_vm5, %v16229_v12, %v3816_v52  ;;  %v3818_v44 = vrot.slane %v7898_v1, 4  ;;  %v7906_v1 = vld [vmem:[#allocation2 + $0x4d8] sm:$0xff]  ;;  %v5644_v37 = vrot.slane %v8979_v4, 2  ;;  %v8920_v4 = vld [vmem:[%s15347_s2 + $0x28] sm:$0xff]  }
 0x371   : > { %8666 = vmatprep.subr.bf16.mxu1 %v8920_v4 }
 0x372   : > { %v12604_v63 = vpop.permute.xlu1 %3704  ;;  %8667 = vmatpush3.bf16.msra.mxu1 %v8920_v4  ;;  %v8229_v4 = vld [vmem:[#allocation2 + $0x558] sm:$0xff] }
 0x373   : > { %16227 = vst [vmem:[#allocation178_spill] sm:$0xff] %v12604_v63  ;;  %v12606_v36 = vpop.permute.xlu0 %3702  ;;  %3868 = vrot.lane.b32.xlu1 %v3815_v2, %s9097_s23  ;;  %v12622_v2 = vrot.slane %v12233_v39, %v2996_v9  ;;  %v16235_v9 = vld [vmem:[#allocation219_spill] sm:$0xff] }
 0x374   : > { %16228 = vst [vmem:[#allocation179_spill] sm:$0xff] %v12606_v36  ;;  %3866 = vrot.lane.b32.xlu0 %v16226_v23, %s9097_s23  ;;  %v16232_v23 = vld [vmem:[#allocation218_spill] sm:$0xff]  ;;  %v12822_v36 = vld [vmem:[#allocation2 + $0x5c0] sm:$0xff] }
 0x375   : > { %v3819_v21 = vsel %vm856_vm5, %v16232_v23, %v3818_v44  ;;  %v3822_v44 = vrot.slane %v7906_v1, 4 }
 0x376   : > { %v12614_v46 = vpop.permute.xlu1 %3708 }
 0x377   : > { %16230 = vst [vmem:[#allocation228_spill] sm:$0xff] %v12614_v46  ;;  %v12616_v33 = vpop.permute.xlu0 %3706  ;;  %3872 = vrot.lane.b32.xlu1 %v3817_v58, %s9097_s23 }
 0x378   : > { %16231 = vst [vmem:[#allocation229_spill] sm:$0xff] %v12616_v33  ;;  %3870 = vrot.lane.b32.xlu0 %v16229_v12, %s9097_s23  ;;  %v3821_v12 = vsel %vm856_vm5, %v16235_v9, %v3820_v15 }
 0x37a   : > { %v12626_v50 = vpop.permute.xlu1 %3712 }
 0x37b   : > { %16233 = vst [vmem:[#allocation256_spill] sm:$0xff] %v12626_v50  ;;  %v12628_v52 = vpop.permute.xlu0 %3710  ;;  %3876 = vrot.lane.b32.xlu1 %v3819_v21, %s9097_s23 }
 0x37c   : > { %16234 = vst [vmem:[#allocation138_spill] sm:$0xff] %v12628_v52  ;;  %v8598_v32 = vpop.f32.mrb[36].mxu1  ;;  %3874 = vrot.lane.b32.xlu0 %v16232_v23, %s9097_s23  ;;  %v16236_v23 = vld [vmem:[#allocation224_spill] sm:$0xff] }
 0x37d   : > { %v3108_v7 = vadd.f32 %v8598_v32, %v12622_v2  ;;  %v3099_v27 = vpop.f32.mrb[37].mxu1  ;;  %v3823_v1 = vsel %vm856_vm5, %v16236_v23, %v3822_v44  ;;  %v16241_v44 = vld [vmem:[#allocation225_spill] sm:$0xff] }
 0x37e   : > { %v3100_v39 = vadd.f32 %v3099_v27, %v12622_v2  ;;  %v8599_v58 = vpop.f32.mrb[38].mxu1  ;;  %v12638_v52 = vpop.permute.xlu1 %3716 }
 0x37f   : > { %v3111_v6 = vadd.f32 %v8599_v58, %v12622_v2  ;;  %v3102_v50 = vpop.f32.mrb[39].mxu1  ;;  %v12641_v51 = vpop.permute.xlu0 %3714  ;;  %v3228_v21 = vmax.f32 %v3108_v7, 0.0  ;;  %3880 = vrot.lane.b32.xlu1 %v3821_v12, %s9097_s23  ;;  %v3824_v58 = vrot.slane %v7910_v11, 4 }
 0x380   : > { %v3103_v32 = vadd.f32 %v3102_v50, %v12622_v2  ;;  %3878 = vrot.lane.b32.xlu0 %v16235_v9, %s9097_s23  ;;  %v3226_v27 = vmax.f32 %v3100_v39, 0.0 }
 0x381   : > { %v3229_v14 = vmax.f32 %v3111_v6, 0.0 }
 0x382   : > { %v3227_v15 = vmax.f32 %v3103_v32, 0.0  ;;  %v12650_v0 = vpop.permute.xlu1 %3720  ;;  %v3825_v32 = vsel %vm856_vm5, %v16241_v44, %v3824_v58 }
 0x383   : > { %v12648_v17 = vpack.i.bf16 %v3229_v14, %v3228_v21  ;;  %16238 = vst [vmem:[#allocation258_spill] sm:$0xff] %v12650_v0  ;;  %v12654_v7 = vpop.permute.xlu0 %3718  ;;  %3884 = vrot.lane.b32.xlu1 %v3823_v1, %s9097_s23 }
 0x384   : > { %v8602_v50 = vpop.f32.mrb[40].mxu1  ;;  %v12652_v46 = vpack.i.bf16 %v3227_v15, %v3226_v27  ;;  %16240 = vst [vmem:[#allocation180_spill] sm:$0xff] %v12654_v7  ;;  %3882 = vrot.lane.b32.xlu0 %v16236_v23, %s9097_s23 }
 0x385   : > { %16237 = vst [vmem:[#allocation257_spill] sm:$0xff] %v12648_v17  ;;  %v3124_v12 = vadd.f32 %v8602_v50, %v12622_v2  ;;  %v3115_v6 = vpop.f32.mrb[41].mxu1 }
 0x386   : > { %16239 = vst [vmem:[#allocation139_spill] sm:$0xff] %v12652_v46  ;;  %v3116_v9 = vadd.f32 %v3115_v6, %v12622_v2  ;;  %v8603_v11 = vpop.f32.mrb[42].mxu1  ;;  %v12665_v27 = vpop.permute.xlu1 %3724 }
 0x387   : > { %v3127_v14 = vadd.f32 %v8603_v11, %v12622_v2  ;;  %v3118_v39 = vpop.f32.mrb[43].mxu1  ;;  %16242 = vst [vmem:[#allocation181_spill] sm:$0xff] %v12665_v27  ;;  %v3232_v15 = vmax.f32 %v3124_v12, 0.0  ;;  %v12667_v17 = vpop.permute.xlu0 %3722  ;;  %3888 = vrot.lane.b32.xlu1 %v3825_v32, %s9097_s23  ;;  %v12674_v11 = vld [vmem:[#allocation2 + $0x488] sm:$0xff] }
 0x388   : > { %v3119_v21 = vadd.f32 %v3118_v39, %v12622_v2  ;;  %16243 = vst [vmem:[#allocation230_spill] sm:$0xff] %v12667_v17  ;;  %v3230_v6 = vmax.f32 %v3116_v9, 0.0  ;;  %3886 = vrot.lane.b32.xlu0 %v16241_v44, %s9097_s23 }
 0x389   : > { %v3233_v50 = vmax.f32 %v3127_v14, 0.0 }
 0x38a   : > { %v3231_v1 = vmax.f32 %v3119_v21, 0.0  ;;  %v12678_v39 = vpop.permute.xlu1 %3728 }
 0x38b   : > { %v12672_v23 = vpack.i.bf16 %v3233_v50, %v3232_v15  ;;  %16246 = vst [vmem:[#allocation140_spill] sm:$0xff] %v12678_v39  ;;  %v12680_v12 = vpop.permute.xlu0 %3726  ;;  %3924 = vrot.lane.b32.xlu1 %v12674_v11, %s9098_s24  ;;  %v12689_v50 = vld [vmem:[#allocation2 + $0x4a8] sm:$0xff] }
 0x38c   : > { %v12676_v58 = vpack.i.bf16 %v3231_v1, %v3230_v6  ;;  %v8606_v46 = vpop.f32.mrb[44].mxu1  ;;  %16247 = vst [vmem:[#allocation260_spill] sm:$0xff] %v12680_v12  ;;  %3922 = vrot.lane.b32.xlu0 %v12326_v19, %s9098_s24 }
 0x38d   : > { %16244 = vst [vmem:[#allocation231_spill] sm:$0xff] %v12672_v23  ;;  %v3140_v14 = vadd.f32 %v8606_v46, %v12622_v2  ;;  %v3131_v9 = vpop.f32.mrb[45].mxu1 }
 0x38e   : > { %16245 = vst [vmem:[#allocation259_spill] sm:$0xff] %v12676_v58  ;;  %v3132_v21 = vadd.f32 %v3131_v9, %v12622_v2  ;;  %v8607_v44 = vpop.f32.mrb[46].mxu1  ;;  %v12692_v1 = vpop.permute.xlu1 %3732 }
 0x38f   : > { %v3143_v32 = vadd.f32 %v8607_v44, %v12622_v2  ;;  %v3134_v15 = vpop.f32.mrb[47].mxu1  ;;  %16248 = vst [vmem:[#allocation261_spill] sm:$0xff] %v12692_v1  ;;  %v3236_v46 = vmax.f32 %v3140_v14, 0.0  ;;  %v12694_v58 = vpop.permute.xlu0 %3730  ;;  %3928 = vrot.lane.b32.xlu1 %v12689_v50, %s9098_s24  ;;  %v12702_v44 = vld [vmem:[#allocation2 + $0x4c8] sm:$0xff] }
 0x390   : > { %v3135_v6 = vadd.f32 %v3134_v15, %v12622_v2  ;;  %16249 = vst [vmem:[#allocation141_spill] sm:$0xff] %v12694_v58  ;;  %v3234_v9 = vmax.f32 %v3132_v21, 0.0  ;;  %3926 = vrot.lane.b32.xlu0 %v12324_v16, %s9098_s24  ;;  %v12758_v58 = vld [vmem:[#allocation2 + $0x540] sm:$0xff] }
 0x391   : > { %v3237_v23 = vmax.f32 %v3143_v32, 0.0 }
 0x392   : > { %v3235_v33 = vmax.f32 %v3135_v6, 0.0  ;;  %v12706_v15 = vpop.permute.xlu1 %3736 }
 0x393   : > { %v12700_v19 = vpack.i.bf16 %v3237_v23, %v3236_v46  ;;  %16252 = vst [vmem:[#allocation232_spill] sm:$0xff] %v12706_v15  ;;  %v12708_v32 = vpop.permute.xlu0 %3734  ;;  %3932 = vrot.lane.b32.xlu1 %v12702_v44, %s9098_s24  ;;  %v12717_v46 = vld [vmem:[#allocation2 + $0x4e8] sm:$0xff] }
 0x394   : > { %v12704_v59 = vpack.i.bf16 %v3235_v33, %v3234_v9  ;;  %v8610_v14 = vpop.f32.mrb[48].mxu1  ;;  %16253 = vst [vmem:[#allocation233_spill] sm:$0xff] %v12708_v32  ;;  %3930 = vrot.lane.b32.xlu0 %v12347_v26, %s9098_s24 }
 0x395   : > { %16250 = vst [vmem:[#allocation188_spill] sm:$0xff] %v12700_v19  ;;  %v3156_v21 = vadd.f32 %v8610_v14, %v12622_v2  ;;  %v3147_v6 = vpop.f32.mrb[49].mxu1 }
 0x396   : > { %16251 = vst [vmem:[#allocation189_spill] sm:$0xff] %v12704_v59  ;;  %v3148_v13 = vadd.f32 %v3147_v6, %v12622_v2  ;;  %v8611_v16 = vpop.f32.mrb[50].mxu1  ;;  %v12720_v19 = vpop.permute.xlu1 %3740 }
 0x397   : > { %v3159_v33 = vadd.f32 %v8611_v16, %v12622_v2  ;;  %v3150_v23 = vpop.f32.mrb[51].mxu1  ;;  %16254 = vst [vmem:[#allocation262_spill] sm:$0xff] %v12720_v19  ;;  %v3240_v14 = vmax.f32 %v3156_v21, 0.0  ;;  %v12722_v32 = vpop.permute.xlu0 %3738  ;;  %3936 = vrot.lane.b32.xlu1 %v12717_v46, %s9098_s24  ;;  %v12730_v16 = vld [vmem:[#allocation2 + $0x508] sm:$0xff] }
 0x398   : > { %v3151_v9 = vadd.f32 %v3150_v23, %v12622_v2  ;;  %16255 = vst [vmem:[#allocation142_spill] sm:$0xff] %v12722_v32  ;;  %v3238_v6 = vmax.f32 %v3148_v13, 0.0  ;;  %3934 = vrot.lane.b32.xlu0 %v12345_v62, %s9098_s24 }
 0x399   : > { %v3241_v59 = vmax.f32 %v3159_v33, 0.0 }
 0x39a   : > { %v3239_v15 = vmax.f32 %v3151_v9, 0.0  ;;  %v12734_v19 = vpop.permute.xlu1 %3744 }
 0x39b   : > { %v12728_v26 = vpack.i.bf16 %v3241_v59, %v3240_v14  ;;  %16258 = vst [vmem:[#allocation143_spill] sm:$0xff] %v12734_v19  ;;  %v12736_v33 = vpop.permute.xlu0 %3742  ;;  %3940 = vrot.lane.b32.xlu1 %v12730_v16, %s9098_s24  ;;  %v12744_v14 = vld [vmem:[#allocation2 + $0x528] sm:$0xff] }
 0x39c   : > { %v12732_v23 = vpack.i.bf16 %v3239_v15, %v3238_v6  ;;  %v8614_v21 = vpop.f32.mrb[52].mxu1  ;;  %16259 = vst [vmem:[#allocation190_spill] sm:$0xff] %v12736_v33  ;;  %3938 = vrot.lane.b32.xlu0 %v8090_v56, %s9098_s24  ;;  %v8094_v6 = vld [vmem:[#allocation2 + $0x520] sm:$0xff] }
 0x39d   : > { %16256 = vst [vmem:[#allocation263_spill] sm:$0xff] %v12728_v26  ;;  %v3172_v13 = vadd.f32 %v8614_v21, %v12622_v2  ;;  %v3163_v9 = vpop.f32.mrb[53].mxu1 }
 0x39e   : > { %16257 = vst [vmem:[#allocation264_spill] sm:$0xff] %v12732_v23  ;;  %v3164_v32 = vadd.f32 %v3163_v9, %v12622_v2  ;;  %v8615_v62 = vpop.f32.mrb[54].mxu1  ;;  %v12747_v23 = vpop.permute.xlu1 %3748 }
 0x39f   : > { %v3175_v59 = vadd.f32 %v8615_v62, %v12622_v2  ;;  %v3166_v15 = vpop.f32.mrb[55].mxu1  ;;  %16260 = vst [vmem:[#allocation191_spill] sm:$0xff] %v12747_v23  ;;  %v3244_v21 = vmax.f32 %v3172_v13, 0.0  ;;  %v12749_v19 = vpop.permute.xlu0 %3746  ;;  %3944 = vrot.lane.b32.xlu1 %v12744_v14, %s9098_s24  ;;  %v12756_v62 = vld [vmem:[#allocation2 + $0x548] sm:$0xff] }
 0x3a0   : > { %v3167_v26 = vadd.f32 %v3166_v15, %v12622_v2  ;;  %16261 = vst [vmem:[#allocation234_spill] sm:$0xff] %v12749_v19  ;;  %v3242_v9 = vmax.f32 %v3164_v32, 0.0  ;;  %3942 = vrot.lane.b32.xlu0 %v8094_v6, %s9098_s24 }
 0x3a1   : > { %v3245_v33 = vmax.f32 %v3175_v59, 0.0 }
 0x3a2   : > { %v3243_v41 = vmax.f32 %v3167_v26, 0.0  ;;  %v12762_v23 = vpop.permute.xlu1 %3752 }
 0x3a3   : > { %v12754_v56 = vpack.i.bf16 %v3245_v33, %v3244_v21  ;;  %16264 = vst [vmem:[#allocation144_spill] sm:$0xff] %v12762_v23  ;;  %v12764_v59 = vpop.permute.xlu0 %3750  ;;  %3948 = vrot.lane.b32.xlu1 %v12756_v62, %s9098_s24  ;;  %v12773_v21 = vld [vmem:[#allocation2 + $0x568] sm:$0xff] }
 0x3a4   : > { %v12760_v15 = vpack.i.bf16 %v3243_v41, %v3242_v9  ;;  %v8618_v13 = vpop.f32.mrb[56].mxu1  ;;  %16265 = vst [vmem:[#allocation34_spill] sm:$0xff] %v12764_v59  ;;  %3946 = vrot.lane.b32.xlu0 %v12758_v58, %s9098_s24  ;;  %v12775_v9 = vld [vmem:[#allocation2 + $0x560] sm:$0xff] }
 0x3a5   : > { %16262 = vst [vmem:[#allocation235_spill] sm:$0xff] %v12754_v56  ;;  %v3188_v32 = vadd.f32 %v8618_v13, %v12622_v2  ;;  %v3179_v26 = vpop.f32.mrb[57].mxu1 }
 0x3a6   : > { %16263 = vst [vmem:[#allocation265_spill] sm:$0xff] %v12760_v15  ;;  %v3180_v19 = vadd.f32 %v3179_v26, %v12622_v2  ;;  %v8619_v33 = vpop.f32.mrb[58].mxu1  ;;  %v12778_v13 = vpop.permute.xlu1 %3756 }
 0x3a7   : > { %v3191_v41 = vadd.f32 %v8619_v33, %v12622_v2  ;;  %v3182_v6 = vpop.f32.mrb[59].mxu1  ;;  %16266 = vst [vmem:[#allocation35_spill] sm:$0xff] %v12778_v13  ;;  %v3248_v23 = vmax.f32 %v3188_v32, 0.0  ;;  %v12780_v56 = vpop.permute.xlu0 %3754  ;;  %3952 = vrot.lane.b32.xlu1 %v12773_v21, %s9098_s24 }
 0x3a8   : > { %v3183_v59 = vadd.f32 %v3182_v6, %v12622_v2  ;;  %16267 = vst [vmem:[#allocation145_spill] sm:$0xff] %v12780_v56  ;;  %v3246_v15 = vmax.f32 %v3180_v19, 0.0  ;;  %3950 = vrot.lane.b32.xlu0 %v12775_v9, %s9098_s24 }
 0x3a9   : > { %v3249_v26 = vmax.f32 %v3191_v41, 0.0 }
 0x3aa   : > { %v3247_v1 = vmax.f32 %v3183_v59, 0.0  ;;  %v12794_v32 = vpop.permute.xlu1 %3760 }
 0x3ab   : > { %v12786_v33 = vpack.i.bf16 %v3249_v26, %v3248_v23  ;;  %16270 = vst [vmem:[#allocation236_spill] sm:$0xff] %v12794_v32  ;;  %v12796_v56 = vpop.permute.xlu0 %3758  ;;  %3956 = vrot.lane.b32.xlu1 %v12788_v42, %s9098_s24  ;;  %v12805_v26 = vld [vmem:[#allocation2 + $0x5a8] sm:$0xff]  ;;  %v12807_v32 = vld [vmem:[#allocation2 + $0x5a0] sm:$0xff] }
 0x3ac   : > { %v12792_v6 = vpack.i.bf16 %v3247_v1, %v3246_v15  ;;  %v8622_v41 = vpop.f32.mrb[60].mxu1  ;;  %16271 = vst [vmem:[#allocation237_spill] sm:$0xff] %v12796_v56  ;;  %3954 = vrot.lane.b32.xlu0 %v12790_v49, %s9098_s24 }
 0x3ad   : > { %16268 = vst [vmem:[#allocation198_spill] sm:$0xff] %v12786_v33  ;;  %v3204_v19 = vadd.f32 %v8622_v41, %v12622_v2  ;;  %v3195_v59 = vpop.f32.mrb[61].mxu1 }
 0x3ae   : > { %16269 = vst [vmem:[#allocation199_spill] sm:$0xff] %v12792_v6  ;;  %v3196_v13 = vadd.f32 %v3195_v59, %v12622_v2  ;;  %v8623_v23 = vpop.f32.mrb[62].mxu1  ;;  %v12810_v41 = vpop.permute.xlu1 %3764 }
 0x3af   : > { %v3207_v1 = vadd.f32 %v8623_v23, %v12622_v2  ;;  %v3198_v15 = vpop.f32.mrb[63].mxu1  ;;  %16272 = vst [vmem:[#allocation37_spill] sm:$0xff] %v12810_v41  ;;  %v3252_v33 = vmax.f32 %v3204_v19, 0.0  ;;  %v12812_v6 = vpop.permute.xlu0 %3762  ;;  %3960 = vrot.lane.b32.xlu1 %v12805_v26, %s9098_s24 }
 0x3b0   : > { %v3199_v56 = vadd.f32 %v3198_v15, %v12622_v2  ;;  %16273 = vst [vmem:[#allocation146_spill] sm:$0xff] %v12812_v6  ;;  %v3250_v63 = vmax.f32 %v3196_v13, 0.0  ;;  %3958 = vrot.lane.b32.xlu0 %v12807_v32, %s9098_s24 }
 0x3b1   : > { %v3253_v59 = vmax.f32 %v3207_v1, 0.0 }
 0x3b2   : > { %v3251_v57 = vmax.f32 %v3199_v56, 0.0  ;;  %v12826_v19 = vpop.permute.xlu1 %3768 }
 0x3b3   : > { %v12818_v23 = vpack.i.bf16 %v3253_v59, %v3252_v33  ;;  %16276 = vst [vmem:[#allocation147_spill] sm:$0xff] %v12826_v19  ;;  %v12828_v6 = vpop.permute.xlu0 %3766  ;;  %3964 = vrot.lane.b32.xlu1 %v12820_v55, %s9098_s24  ;;  %v12837_v59 = vld [vmem:[#allocation2 + $0x5e8] sm:$0xff]  ;;  %v12839_v19 = vld [vmem:[#allocation2 + $0x5e0] sm:$0xff] }
 0x3b4   : > { %v12824_v15 = vpack.i.bf16 %v3251_v57, %v3250_v63  ;;  %v8626_v1 = vpop.f32.mrb[64].mxu1  ;;  %16277 = vst [vmem:[#allocation200_spill] sm:$0xff] %v12828_v6  ;;  %3962 = vrot.lane.b32.xlu0 %v12822_v36, %s9098_s24 }
 0x3b5   : > { %16274 = vst [vmem:[#allocation38_spill] sm:$0xff] %v12818_v23  ;;  %v3220_v56 = vadd.f32 %v8626_v1, %v12622_v2  ;;  %v3211_v13 = vpop.f32.mrb[65].mxu1 }
 0x3b6   : > { %16275 = vst [vmem:[#allocation40_spill] sm:$0xff] %v12824_v15  ;;  %v3212_v41 = vadd.f32 %v3211_v13, %v12622_v2  ;;  %v8627_v33 = vpop.f32.mrb[66].mxu1  ;;  %v12842_v1 = vpop.permute.xlu1 %3772 }
 0x3b7   : > { %v3223_v57 = vadd.f32 %v8627_v33, %v12622_v2  ;;  %v3214_v63 = vpop.f32.mrb[67].mxu1  ;;  %16278 = vst [vmem:[#allocation201_spill] sm:$0xff] %v12842_v1  ;;  %v3256_v23 = vmax.f32 %v3220_v56, 0.0  ;;  %v12844_v15 = vpop.permute.xlu0 %3770  ;;  %3968 = vrot.lane.b32.xlu1 %v12837_v59, %s9098_s24 }
 0x3b8   : > { %v3215_v6 = vadd.f32 %v3214_v63, %v12622_v2  ;;  %16279 = vst [vmem:[#allocation238_spill] sm:$0xff] %v12844_v15  ;;  %v3254_v12 = vmax.f32 %v3212_v41, 0.0  ;;  %3966 = vrot.lane.b32.xlu0 %v12839_v19, %s9098_s24  ;;  %v8126_v41 = vld [vmem:[#allocation2 + $0x620] sm:$0xff] }
 0x3b9   : > { %v3257_v13 = vmax.f32 %v3223_v57, 0.0 }
 0x3ba   : > { %v3255_v39 = vmax.f32 %v3215_v6, 0.0  ;;  %v12854_v2 = vpop.permute.xlu1 %3776  ;;  %v8127_v6 = vld [vmem:[#allocation2 + $0x628] sm:$0xff] }
 0x3bb   : > { %v12850_v33 = vpack.i.bf16 %v3257_v13, %v3256_v23  ;;  %16282 = vst [vmem:[#allocation148_spill] sm:$0xff] %v12854_v2  ;;  %v12856_v56 = vpop.permute.xlu0 %3774  ;;  %3972 = vrot.lane.b32.xlu1 %v8123_v60, %s9098_s24  ;;  %v8076_v13 = vld [vmem:[#allocation2 + $0x490] sm:$0xff]  ;;  %v4002_v60 = vrot.slane %v12674_v11, 6  ;;  %v8134_v2 = vld [vmem:[#allocation2 + $0x660] sm:$0xff] }
 0x3bc   : > { %v12852_v31 = vpack.i.bf16 %v3255_v39, %v3254_v12  ;;  %16283 = vst [vmem:[#allocation42_spill] sm:$0xff] %v12856_v56  ;;  %3970 = vrot.lane.b32.xlu0 %v8122_v53, %s9098_s24  ;;  %v8131_v39 = vld [vmem:[#allocation2 + $0x648] sm:$0xff]  ;;  %v8130_v12 = vld [vmem:[#allocation2 + $0x640] sm:$0xff]  ;;  %v4003_v15 = vrot.slane %v8076_v13, 6  ;;  %v8084_v11 = vld [vmem:[#allocation2 + $0x4d0] sm:$0xff]  ;;  %v4008_v13 = vrot.slane %v12702_v44, 6 }
 0x3bd   : > { %16280 = vst [vmem:[#allocation239_spill] sm:$0xff] %v12850_v33  ;;  %v8135_v53 = vld [vmem:[#allocation2 + $0x668] sm:$0xff]  ;;  %v4005_v33 = vrot.slane %v12689_v50, 6  ;;  %v8088_v50 = vld [vmem:[#allocation2 + $0x4f0] sm:$0xff] }
 0x3be   : > { %16281 = vst [vmem:[#allocation41_spill] sm:$0xff] %v12852_v31  ;;  %v12860_v57 = vpop.permute.xlu1 %3828  ;;  %v8092_v44 = vld [vmem:[#allocation2 + $0x510] sm:$0xff] }
 0x3bf   : > { %v12862_v63 = vpop.permute.xlu0 %3826  ;;  %3976 = vrot.lane.b32.xlu1 %v8127_v6, %s9098_s24  ;;  %v8080_v6 = vld [vmem:[#allocation2 + $0x4b0] sm:$0xff] }
 0x3c0   : > { %3974 = vrot.lane.b32.xlu0 %v8126_v41, %s9098_s24  ;;  %v4006_v31 = vrot.slane %v8080_v6, 6 }
 0x3c2   : > { %v12866_v23 = vpop.permute.xlu1 %3832 }
 0x3c3   : > { %16284 = vst [vmem:[#allocation163_spill] sm:$0xff] %v12866_v23  ;;  %v12868_v56 = vpop.permute.xlu0 %3830  ;;  %3980 = vrot.lane.b32.xlu1 %v8131_v39, %s9098_s24  ;;  %v4004_v39 = vsel %vm1222_vm4, %v4002_v60, %v4003_v15  ;;  %v4011_v15 = vrot.slane %v12717_v46, 6  ;;  %v8096_v46 = vld [vmem:[#allocation2 + $0x530] sm:$0xff]  ;;  %v8249_v23 = vld [vmem:[#allocation2 + $0x5f8] sm:$0xff] }
 0x3c4   : > { %16285 = vst [vmem:[#allocation149_spill] sm:$0xff] %v12868_v56  ;;  %3978 = vrot.lane.b32.xlu0 %v8130_v12, %s9098_s24  ;;  %v8245_v56 = vld [vmem:[#allocation2 + $0x5d8] sm:$0xff] }
 0x3c5   : > { %v6005_v0 = vrot.slane %v8245_v56, 2 }
 0x3c6   : > { %v12873_v1 = vpop.permute.xlu1 %3836 }
 0x3c7   : > { %16286 = vst [vmem:[#allocation208_spill] sm:$0xff] %v12873_v1  ;;  %v12875_v41 = vpop.permute.xlu0 %3834  ;;  %3984 = vrot.lane.b32.xlu1 %v8135_v53, %s9098_s24  ;;  %v4007_v53 = vsel %vm1222_vm4, %v4005_v33, %v4006_v31  ;;  %v4014_v31 = vrot.slane %v12730_v16, 6  ;;  %v12915_v16 = vld [vmem:[#allocation2 + $0x550] sm:$0xff] }
 0x3c8   : > { %16287 = vst [vmem:[#allocation209_spill] sm:$0xff] %v12875_v41  ;;  %3982 = vrot.lane.b32.xlu0 %v8134_v2, %s9098_s24  ;;  %v4009_v41 = vrot.slane %v8084_v11, 6 }
 0x3ca   : > { %v12881_v12 = vpop.permute.xlu1 %3840  ;;  %v4010_v6 = vsel %vm1222_vm4, %v4008_v13, %v4009_v41  ;;  %v4017_v41 = vrot.slane %v12744_v14, 6 }
 0x3cb   : > { %16288 = vst [vmem:[#allocation240_spill] sm:$0xff] %v12881_v12  ;;  %v12883_v10 = vpop.permute.xlu0 %3838  ;;  %4052 = vrot.lane.b32.xlu1 %v4004_v39, %s9100_s20  ;;  %v4012_v39 = vrot.slane %v8088_v50, 6  ;;  %v8165_v12 = vld [vmem:[#allocation2 + $0xd8] sm:$0xff] }
 0x3cc   : > { %16289 = vst [vmem:[#allocation241_spill] sm:$0xff] %v12883_v10  ;;  %4050 = vrot.lane.b32.xlu0 %v4002_v60, %s9100_s20 }
 0x3cd   : > { %v4013_v11 = vsel %vm1222_vm4, %v4011_v15, %v4012_v39 }
 0x3ce   : > { %v12889_v2 = vpop.permute.xlu1 %3844 }
 0x3cf   : > { %16290 = vst [vmem:[#allocation43_spill] sm:$0xff] %v12889_v2  ;;  %v12891_v1 = vpop.permute.xlu0 %3842  ;;  %4056 = vrot.lane.b32.xlu1 %v4007_v53, %s9100_s20  ;;  %v4015_v53 = vrot.slane %v8092_v44, 6  ;;  %v4020_v44 = vrot.slane %v12756_v62, 6  ;;  %v12969_v2 = vld [vmem:[#allocation2 + $0xe8] sm:$0xff] }
 0x3d0   : > { %16291 = vst [vmem:[#allocation150_spill] sm:$0xff] %v12891_v1  ;;  %4054 = vrot.lane.b32.xlu0 %v4005_v33, %s9100_s20 }
 0x3d1   : > { %v4016_v50 = vsel %vm1222_vm4, %v4014_v31, %v4015_v53  ;;  %v12926_v53 = vld [vmem:[#allocation2 + $0x570] sm:$0xff] }
 0x3d2   : > { %v12897_v60 = vpop.permute.xlu1 %3848 }
 0x3d3   : > { %16292 = vst [vmem:[#allocation162_spill] sm:$0xff] %v12897_v60  ;;  %v12899_v10 = vpop.permute.xlu0 %3846  ;;  %4060 = vrot.lane.b32.xlu1 %v4010_v6, %s9100_s20  ;;  %v4018_v6 = vrot.slane %v8096_v46, 6 }
 0x3d4   : > { %16293 = vst [vmem:[#allocation44_spill] sm:$0xff] %v12899_v10  ;;  %4058 = vrot.lane.b32.xlu0 %v4008_v13, %s9100_s20  ;;  %v12959_v10 = vld [vmem:[#allocation2 + $0xc8] sm:$0xff] }
 0x3d6   : > { %v12905_v33 = vpop.permute.xlu1 %3852 }
 0x3d7   : > { %16294 = vst [vmem:[#allocation151_spill] sm:$0xff] %v12905_v33  ;;  %v12907_v1 = vpop.permute.xlu0 %3850  ;;  %4064 = vrot.lane.b32.xlu1 %v4013_v11, %s9100_s20  ;;  %v4019_v11 = vsel %vm1222_vm4, %v4017_v41, %v4018_v6  ;;  %v12937_v6 = vld [vmem:[#allocation2 + $0x590] sm:$0xff] }
 0x3d8   : > { %16295 = vst [vmem:[#allocation210_spill] sm:$0xff] %v12907_v1  ;;  %4062 = vrot.lane.b32.xlu0 %v4011_v15, %s9100_s20  ;;  %v4021_v15 = vrot.slane %v12915_v16, 6 }
 0x3da   : > { %v12913_v13 = vpop.permute.xlu1 %3856 }
 0x3db   : > { %16296 = vst [vmem:[#allocation211_spill] sm:$0xff] %v12913_v13  ;;  %v12917_v39 = vpop.permute.xlu0 %3854  ;;  %4068 = vrot.lane.b32.xlu1 %v4016_v50, %s9100_s20  ;;  %v4023_v50 = vrot.slane %v12773_v21, 6 }
 0x3dc   : > { %16297 = vst [vmem:[#allocation242_spill] sm:$0xff] %v12917_v39  ;;  %4066 = vrot.lane.b32.xlu0 %v4014_v31, %s9100_s20  ;;  %v4022_v31 = vsel %vm1222_vm4, %v4020_v44, %v4021_v15  ;;  %v4024_v39 = vrot.slane %v12926_v53, 6  ;;  %v12948_v15 = vld [vmem:[#allocation2 + $0x5b0] sm:$0xff] }
 0x3de   : > { %v12924_v14 = vpop.permute.xlu1 %3860 }
 0x3df   : > { %16298 = vst [vmem:[#allocation243_spill] sm:$0xff] %v12924_v14  ;;  %v12928_v46 = vpop.permute.xlu0 %3858  ;;  %4072 = vrot.lane.b32.xlu1 %v4019_v11, %s9100_s20  ;;  %v4026_v11 = vrot.slane %v12788_v42, 6 }
 0x3e0   : > { %16299 = vst [vmem:[#allocation166_spill] sm:$0xff] %v12928_v46  ;;  %4070 = vrot.lane.b32.xlu0 %v4017_v41, %s9100_s20  ;;  %v4025_v41 = vsel %vm1222_vm4, %v4023_v50, %v4024_v39  ;;  %v4027_v46 = vrot.slane %v12937_v6, 6  ;;  %v8164_v39 = vld [vmem:[#allocation2 + $0xd0] sm:$0xff] }
 0x3e2   : > { %v12935_v13 = vpop.permute.xlu1 %3864 }
 0x3e3   : > { %16300 = vst [vmem:[#allocation152_spill] sm:$0xff] %v12935_v13  ;;  %v12939_v1 = vpop.permute.xlu0 %3862  ;;  %4076 = vrot.lane.b32.xlu1 %v4022_v31, %s9100_s20  ;;  %v4029_v31 = vrot.slane %v12805_v26, 6 }
 0x3e4   : > { %16301 = vst [vmem:[#allocation45_spill] sm:$0xff] %v12939_v1  ;;  %4074 = vrot.lane.b32.xlu0 %v4020_v44, %s9100_s20  ;;  %v4028_v44 = vsel %vm1222_vm4, %v4026_v11, %v4027_v46  ;;  %v4030_v1 = vrot.slane %v12948_v15, 6  ;;  %v8168_v46 = vld [vmem:[#allocation2 + $0xf0] sm:$0xff] }
 0x3e6   : > { %v12946_v14 = vpop.permute.xlu1 %3868 }
 0x3e7   : > { %16302 = vst [vmem:[#allocation165_spill] sm:$0xff] %v12946_v14  ;;  %v12950_v33 = vpop.permute.xlu0 %3866  ;;  %4080 = vrot.lane.b32.xlu1 %v4025_v41, %s9100_s20  ;;  %v4031_v41 = vsel %vm1222_vm4, %v4029_v31, %v4030_v1 }
 0x3e8   : > { %16303 = vst [vmem:[#allocation153_spill] sm:$0xff] %v12950_v33  ;;  %4078 = vrot.lane.b32.xlu0 %v4023_v50, %s9100_s20  ;;  %v5288_v50 = vrot.slane %v8164_v39, 1  ;;  %v5287_v33 = vrot.slane %v12959_v10, 1 }
 0x3ea   : > { %v12957_v13 = vpop.permute.xlu1 %3872 }
 0x3eb   : > { %16304 = vst [vmem:[#allocation214_spill] sm:$0xff] %v12957_v13  ;;  %v12961_v14 = vpop.permute.xlu0 %3870  ;;  %4084 = vrot.lane.b32.xlu1 %v4028_v44, %s9100_s20  ;;  %v5289_v44 = vsel %vm2940_vm15, %v5287_v33, %v5288_v50  ;;  %v8169_v33 = vld [vmem:[#allocation2 + $0xf8] sm:$0xff] }
 0x3ec   : > { %16305 = vst [vmem:[#allocation215_spill] sm:$0xff] %v12961_v14  ;;  %4082 = vrot.lane.b32.xlu0 %v4026_v11, %s9100_s20  ;;  %v5291_v14 = vrot.slane %v8168_v46, 1  ;;  %v5290_v11 = vrot.slane %v12969_v2, 1 }
 0x3ee   : > { %v12967_v60 = vpop.permute.xlu1 %3876 }
 0x3ef   : > { %16306 = vst [vmem:[#allocation244_spill] sm:$0xff] %v12967_v60  ;;  %v12971_v13 = vpop.permute.xlu0 %3874  ;;  %4088 = vrot.lane.b32.xlu1 %v4031_v41, %s9100_s20  ;;  %v5417_v60 = vrot.slane %v8165_v12, 2  ;;  %v5416_v41 = vrot.slane %v8164_v39, 2  ;;  %v8974_v39 = vld [vmem:[#allocation2 + $0x310] sm:$0xff] }
 0x3f0   : > { %16307 = vst [vmem:[#allocation245_spill] sm:$0xff] %v12971_v13  ;;  %4086 = vrot.lane.b32.xlu0 %v4029_v31, %s9100_s20  ;;  %v5292_v13 = vsel %vm2940_vm15, %v5290_v11, %v5291_v14  ;;  %v5529_v11 = vrot.slane %v8974_v39, 1  ;;  %v5640_v24 = vrot.slane %v8974_v39, 2 }
 0x3f2   : > { %v12977_v1 = vpop.permute.xlu1 %3880 }
 0x3f3   : > { %16308 = vst [vmem:[#allocation154_spill] sm:$0xff] %v12977_v1  ;;  %v12979_v17 = vpop.permute.xlu0 %3878  ;;  %5337 = vrot.lane.b32.xlu1 %v5288_v50, %s9091_s17  ;;  %v5420_v1 = vrot.slane %v8169_v33, 2  ;;  %v5419_v50 = vrot.slane %v8168_v46, 2  ;;  %v8977_v33 = vld [vmem:[#allocation2 + $0x328] sm:$0xff] }
 0x3f4   : > { %16309 = vst [vmem:[#allocation46_spill] sm:$0xff] %v12979_v17  ;;  %5335 = vrot.lane.b32.xlu0 %v5289_v44, %s9091_s17  ;;  %v5418_v17 = vsel %vm5415_vm6, %v5416_v41, %v5417_v60  ;;  %v8976_v41 = vld [vmem:[#allocation2 + $0x330] sm:$0xff] }
 0x3f5   : > { %v5421_v12 = vsel %vm5415_vm6, %v5419_v50, %v5420_v1 }
 0x3f6   : > { %v12984_v27 = vpop.permute.xlu1 %3884 }
 0x3f7   : > { %16310 = vst [vmem:[#allocation173_spill] sm:$0xff] %v12984_v27  ;;  %v12986_v31 = vpop.permute.xlu0 %3882  ;;  %5341 = vrot.lane.b32.xlu1 %v5291_v14, %s9091_s17 }
 0x3f8   : > { %16311 = vst [vmem:[#allocation155_spill] sm:$0xff] %v12986_v31  ;;  %5339 = vrot.lane.b32.xlu0 %v5292_v13, %s9091_s17  ;;  %v8975_v31 = vld [vmem:[#allocation2 + $0x308] sm:$0xff] }
 0x3f9   : > { %v5528_v14 = vrot.slane %v8975_v31, 1 }
 0x3fa   : > { %v12991_v29 = vpop.permute.xlu1 %3888 }
 0x3fb   : > { %16312 = vst [vmem:[#allocation216_spill] sm:$0xff] %v12991_v29  ;;  %v12993_v44 = vpop.permute.xlu0 %3886  ;;  %5466 = vrot.lane.b32.xlu1 %v5417_v60, %s9092_s18  ;;  %v5530_v46 = vsel %vm2940_vm15, %v5528_v14, %v5529_v11  ;;  %v5532_v60 = vrot.slane %v8976_v41, 1  ;;  %v8978_v29 = vld [vmem:[#allocation2 + $0x318] sm:$0xff] }
 0x3fc   : > { %16313 = vst [vmem:[#allocation217_spill] sm:$0xff] %v12993_v44  ;;  %5464 = vrot.lane.b32.xlu0 %v5418_v17, %s9092_s18  ;;  %v5531_v17 = vrot.slane %v8977_v33, 1 }
 0x3fe   : > { %v12998_v27 = vpop.permute.xlu1 %3924  ;;  %v5533_v31 = vsel %vm2940_vm15, %v5531_v17, %v5532_v60  ;;  %v5864_v17 = vrot.slane %v12756_v62, 1 }
 0x3ff   : > { %v13000_v13 = vpop.permute.xlu0 %3922  ;;  %5470 = vrot.lane.b32.xlu1 %v5420_v1, %s9092_s18  ;;  %v5641_v1 = vrot.slane %v8978_v29, 2 }
 0x400   : > { %5468 = vrot.lane.b32.xlu0 %v5421_v12, %s9092_s18 }
 0x401   : > { %v5642_v33 = vsel %vm5415_vm6, %v5640_v24, %v5641_v1 }
 0x402   : > { %v13005_v44 = vpop.permute.xlu1 %3928 }
 0x403   : > { %16314 = vst [vmem:[#allocation246_spill] sm:$0xff] %v13005_v44  ;;  %v13007_v50 = vpop.permute.xlu0 %3926  ;;  %5578 = vrot.lane.b32.xlu1 %v5529_v11, %s9096_s22  ;;  %v5643_v11 = vrot.slane %v8976_v41, 2 }
 0x404   : > { %16315 = vst [vmem:[#allocation247_spill] sm:$0xff] %v13007_v50  ;;  %5576 = vrot.lane.b32.xlu0 %v5530_v46, %s9096_s22 }
 0x405   : > { %v5645_v29 = vsel %vm5415_vm6, %v5643_v11, %v5644_v37  ;;  %v5868_v11 = vrot.slane %v12926_v53, 1 }
 0x406   : > { %v13012_v12 = vpop.permute.xlu1 %3932 }
 0x407   : > { %16316 = vst [vmem:[#allocation156_spill] sm:$0xff] %v13012_v12  ;;  %v13014_v14 = vpop.permute.xlu0 %3930  ;;  %5582 = vrot.lane.b32.xlu1 %v5532_v60, %s9096_s22  ;;  %v8990_v12 = vld [vmem:[#allocation2 + $0x398] sm:$0xff] }
 0x408   : > { %16317 = vst [vmem:[#allocation47_spill] sm:$0xff] %v13014_v14  ;;  %5580 = vrot.lane.b32.xlu0 %v5533_v31, %s9096_s22 }
 0x40a   : > { %v13019_v5 = vpop.permute.xlu1 %3936 }
 0x40b   : > { %16318 = vst [vmem:[#allocation157_spill] sm:$0xff] %v13019_v5  ;;  %v13021_v46 = vpop.permute.xlu0 %3934  ;;  %5690 = vrot.lane.b32.xlu1 %v5641_v1, %s9097_s23  ;;  %v8921_v1 = vld [vmem:[%s15347_s2 + $0x30] sm:$0xff]  }
 0x40c   : > { %16319 = vst [vmem:[#allocation220_spill] sm:$0xff] %v13021_v46  ;;  %5688 = vrot.lane.b32.xlu0 %v5642_v33, %s9097_s23  ;;  %8668 = vmatprep.subr.bf16.mxu1 %v8921_v1 }
 0x40d   : > { %8669 = vmatpush3.bf16.msra.mxu1 %v8921_v1 }
 0x40e   : > { %v13026_v39 = vpop.permute.xlu1 %3940 }
 0x40f   : > { %16320 = vst [vmem:[#allocation221_spill] sm:$0xff] %v13026_v39  ;;  %v13028_v60 = vpop.permute.xlu0 %3938  ;;  %5694 = vrot.lane.b32.xlu1 %v5644_v37, %s9097_s23  ;;  %v5865_v37 = vrot.slane %v12915_v16, 1 }
 0x410   : > { %16321 = vst [vmem:[#allocation248_spill] sm:$0xff] %v13028_v60  ;;  %5692 = vrot.lane.b32.xlu0 %v5645_v29, %s9097_s23 }
 0x412   : > { %v13032_v24 = vpop.permute.xlu1 %3944 }
 0x413   : > { %16322 = vst [vmem:[#allocation249_spill] sm:$0xff] %v13032_v24  ;;  %v13037_v41 = vpop.permute.xlu0 %3942  ;;  %5786 = vrot.lane.b32.xlu1 %v12756_v62, %s9098_s24  ;;  %v5866_v62 = vsel %vm2940_vm15, %v5864_v17, %v5865_v37  ;;  %v5993_v17 = vrot.slane %v8229_v4, 2 }
 0x414   : > { %16323 = vst [vmem:[#allocation172_spill] sm:$0xff] %v13037_v41  ;;  %5784 = vrot.lane.b32.xlu0 %v12758_v58, %s9098_s24  ;;  %v5867_v58 = vrot.slane %v12773_v21, 1  ;;  %v5992_v41 = vrot.slane %v12915_v16, 2  ;;  %v8172_v16 = vld [vmem:[#allocation2 + $0x110] sm:$0xff] }
 0x416   : > { %v13045_v31 = vpop.permute.xlu1 %3948 }
 0x417   : > { %16324 = vst [vmem:[#allocation222_spill] sm:$0xff] %v13045_v31  ;;  %v13050_v33 = vpop.permute.xlu0 %3946  ;;  %5790 = vrot.lane.b32.xlu1 %v12773_v21, %s9098_s24 }
 0x418   : > { %16325 = vst [vmem:[#allocation48_spill] sm:$0xff] %v13050_v33  ;;  %5788 = vrot.lane.b32.xlu0 %v12775_v9, %s9098_s24  ;;  %v8922_v33 = vld [vmem:[%s15347_s2 + $0x38] ss:$0 sps:$4 sm:$0x33]   ;;  %v5869_v9 = vsel %vm2940_vm15, %v5867_v58, %v5868_v11  ;;  %v5995_v58 = vrot.slane %v12926_v53, 2  ;;  %v13092_v53 = vld [vmem:[#allocation2 + $0x128] sm:$0xff] }
 0x419   : > { %v6770_v21 = vsel %vm1222_vm4, %v8922_v33, 0  ;;  %8719 = vmatprep.subr.msk.bf16.mxu1 %vm1222_vm4, %v8922_v33 }
 0x41a   : > { %v13059_v29 = vpop.permute.xlu1 %3952  ;;  %8671 = vmatpush3.bf16.msra.mxu1 %v6770_v21  ;;  %v5294_v21 = vrot.slane %v8172_v16, 1 }
 0x41b   : > { %16326 = vst [vmem:[#allocation176_spill] sm:$0xff] %v13059_v29  ;;  %v13064_v31 = vpop.permute.xlu0 %3950  ;;  %5914 = vrot.lane.b32.xlu1 %v5865_v37, %s9100_s20  ;;  %v8233_v29 = vld [vmem:[#allocation2 + $0x578] sm:$0xff]  ;;  %v5994_v37 = vsel %vm5415_vm6, %v5992_v41, %v5993_v17 }
 0x41c   : > { %16327 = vst [vmem:[#allocation223_spill] sm:$0xff] %v13064_v31  ;;  %5912 = vrot.lane.b32.xlu0 %v5866_v62, %s9100_s20  ;;  %v5996_v62 = vrot.slane %v8233_v29, 2  ;;  %v13082_v31 = vld [vmem:[#allocation2 + $0x108] sm:$0xff]  ;;  %v8176_v29 = vld [vmem:[#allocation2 + $0x130] sm:$0xff] }
 0x41d   : > { %v5425_v39 = vrot.slane %v8176_v29, 2 }
 0x41e   : > { %v13072_v1 = vpop.permute.xlu1 %3956 }
 0x41f   : > { %16328 = vst [vmem:[#allocation250_spill] sm:$0xff] %v13072_v1  ;;  %v13074_v24 = vpop.permute.xlu0 %3954  ;;  %5918 = vrot.lane.b32.xlu1 %v5868_v11, %s9100_s20  ;;  %v5997_v11 = vsel %vm5415_vm6, %v5995_v58, %v5996_v62 }
 0x420   : > { %16329 = vst [vmem:[#allocation251_spill] sm:$0xff] %v13074_v24  ;;  %5916 = vrot.lane.b32.xlu0 %v5869_v9, %s9100_s20  ;;  %v5293_v9 = vrot.slane %v13082_v31, 1  ;;  %v8173_v24 = vld [vmem:[#allocation2 + $0x118] sm:$0xff] }
 0x422   : > { %v13080_v4 = vpop.permute.xlu1 %3960 }
 0x423   : > { %16330 = vst [vmem:[#allocation49_spill] sm:$0xff] %v13080_v4  ;;  %v13084_v33 = vpop.permute.xlu0 %3958  ;;  %6042 = vrot.lane.b32.xlu1 %v5993_v17, %s9101_s13  ;;  %v5295_v17 = vsel %vm2940_vm15, %v5293_v9, %v5294_v21 }
 0x424   : > { %16331 = vst [vmem:[#allocation175_spill] sm:$0xff] %v13084_v33  ;;  %6040 = vrot.lane.b32.xlu0 %v5994_v37, %s9101_s13  ;;  %v5297_v33 = vrot.slane %v8176_v29, 1  ;;  %v5296_v37 = vrot.slane %v13092_v53, 1 }
 0x426   : > { %v13090_v41 = vpop.permute.xlu1 %3964 }
 0x427   : > { %16332 = vst [vmem:[#allocation50_spill] sm:$0xff] %v13090_v41  ;;  %v13094_v4 = vpop.permute.xlu0 %3962  ;;  %6046 = vrot.lane.b32.xlu1 %v5996_v62, %s9101_s13  ;;  %v5423_v41 = vrot.slane %v8173_v24, 2  ;;  %v5422_v62 = vrot.slane %v8172_v16, 2  ;;  %v8980_v16 = vld [vmem:[#allocation2 + $0x350] sm:$0xff] }
 0x428   : > { %16333 = vst [vmem:[#allocation22_spill] sm:$0xff] %v13094_v4  ;;  %6044 = vrot.lane.b32.xlu0 %v5997_v11, %s9101_s13  ;;  %v5298_v4 = vsel %vm2940_vm15, %v5296_v37, %v5297_v33  ;;  %v8177_v11 = vld [vmem:[#allocation2 + $0x138] sm:$0xff]  ;;  %v5535_v37 = vrot.slane %v8980_v16, 1 }
 0x42a   : > { %v13100_v58 = vpop.permute.xlu1 %3968 }
 0x42b   : > { %16334 = vst [vmem:[#allocation4_spill] sm:$0xff] %v13100_v58  ;;  %v13102_v1 = vpop.permute.xlu0 %3966  ;;  %5345 = vrot.lane.b32.xlu1 %v5294_v21, %s9091_s17  ;;  %v5424_v58 = vsel %vm5415_vm6, %v5422_v62, %v5423_v41  ;;  %v8982_v62 = vld [vmem:[#allocation2 + $0x370] sm:$0xff] }
 0x42c   : > { %16335 = vst [vmem:[#allocation23_spill] sm:$0xff] %v13102_v1  ;;  %5343 = vrot.lane.b32.xlu0 %v5295_v17, %s9091_s17  ;;  %v5426_v1 = vrot.slane %v8177_v11, 2  ;;  %v8983_v11 = vld [vmem:[#allocation2 + $0x368] sm:$0xff] }
 0x42e   : > { %v13107_v60 = vpop.permute.xlu1 %3972  ;;  %v5427_v24 = vsel %vm5415_vm6, %v5425_v39, %v5426_v1 }
 0x42f   : > { %16336 = vst [vmem:[#allocation5_spill] sm:$0xff] %v13107_v60  ;;  %v13109_v9 = vpop.permute.xlu0 %3970  ;;  %5349 = vrot.lane.b32.xlu1 %v5297_v33, %s9091_s17 }
 0x430   : > { %16337 = vst [vmem:[#allocation24_spill] sm:$0xff] %v13109_v9  ;;  %5347 = vrot.lane.b32.xlu0 %v5298_v4, %s9091_s17  ;;  %v8981_v9 = vld [vmem:[#allocation2 + $0x348] sm:$0xff] }
 0x431   : > { %v5534_v33 = vrot.slane %v8981_v9, 1 }
 0x432   : > { %v13114_v21 = vpop.permute.xlu1 %3976 }
 0x433   : > { %16338 = vst [vmem:[#allocation6_spill] sm:$0xff] %v13114_v21  ;;  %v13116_v17 = vpop.permute.xlu0 %3974  ;;  %5474 = vrot.lane.b32.xlu1 %v5423_v41, %s9092_s18  ;;  %v5536_v29 = vsel %vm2940_vm15, %v5534_v33, %v5535_v37  ;;  %v5538_v41 = vrot.slane %v8982_v62, 1 }
 0x434   : > { %16339 = vst [vmem:[#allocation26_spill] sm:$0xff] %v13116_v17  ;;  %5472 = vrot.lane.b32.xlu0 %v5424_v58, %s9092_s18  ;;  %v5537_v58 = vrot.slane %v8983_v11, 1 }
 0x436   : > { %v13121_v60 = vpop.permute.xlu1 %3980  ;;  %v5539_v9 = vsel %vm2940_vm15, %v5537_v58, %v5538_v41  ;;  %v5870_v58 = vrot.slane %v12788_v42, 1 }
 0x437   : > { %16340 = vst [vmem:[#allocation7_spill] sm:$0xff] %v13121_v60  ;;  %v13123_v4 = vpop.permute.xlu0 %3978  ;;  %5478 = vrot.lane.b32.xlu1 %v5426_v1, %s9092_s18  ;;  %v5646_v60 = vrot.slane %v8980_v16, 2 }
 0x438   : > { %16341 = vst [vmem:[#allocation28_spill] sm:$0xff] %v13123_v4  ;;  %5476 = vrot.lane.b32.xlu0 %v5427_v24, %s9092_s18  ;;  %v8984_v4 = vld [vmem:[#allocation2 + $0x358] sm:$0xff] }
 0x439   : > { %v5647_v1 = vrot.slane %v8984_v4, 2 }
 0x43a   : > { %v13128_v17 = vpop.permute.xlu1 %3984 }
 0x43b   : > { %16342 = vst [vmem:[#allocation8_spill] sm:$0xff] %v13128_v17  ;;  %v13130_v39 = vpop.permute.xlu0 %3982  ;;  %5586 = vrot.lane.b32.xlu1 %v5535_v37, %s9096_s22  ;;  %v5648_v11 = vsel %vm5415_vm6, %v5646_v60, %v5647_v1  ;;  %v5649_v37 = vrot.slane %v8982_v62, 2 }
 0x43c   : > { %16343 = vst [vmem:[#allocation30_spill] sm:$0xff] %v13130_v39  ;;  %5584 = vrot.lane.b32.xlu0 %v5536_v29, %s9096_s22  ;;  %v8985_v39 = vld [vmem:[#allocation2 + $0x378] sm:$0xff] }
 0x43d   : > { %v5650_v17 = vrot.slane %v8985_v39, 2  ;;  %v5871_v39 = vrot.slane %v12937_v6, 1 }
 0x43e   : > { %v13135_v24 = vpop.permute.xlu1 %4052 }
 0x43f   : > { %v13137_v33 = vpop.permute.xlu0 %4050  ;;  %5590 = vrot.lane.b32.xlu1 %v5538_v41, %s9096_s22  ;;  %v5651_v16 = vsel %vm5415_vm6, %v5649_v37, %v5650_v17 }
 0x440   : > { %16344 = vst [vmem:[#allocation9_spill] sm:$0xff] %v13137_v33  ;;  %5588 = vrot.lane.b32.xlu0 %v5539_v9, %s9096_s22  ;;  %v8166_v33 = vld [vmem:[#allocation2 + $0xe0] sm:$0xff] }
 0x442   : > { %v13142_v21 = vpop.permute.xlu1 %4056 }
 0x443   : > { %16345 = vst [vmem:[#allocation32_spill] sm:$0xff] %v13142_v21  ;;  %v13144_v29 = vpop.permute.xlu0 %4054  ;;  %5698 = vrot.lane.b32.xlu1 %v5647_v1, %s9097_s23 }
 0x444   : > { %16346 = vst [vmem:[#allocation12_spill] sm:$0xff] %v13144_v29  ;;  %5696 = vrot.lane.b32.xlu0 %v5648_v11, %s9097_s23  ;;  %v5872_v11 = vsel %vm2940_vm15, %v5870_v58, %v5871_v39  ;;  %v5656_v29 = vrot.slane %v8991_v34, 2  ;;  %v8244_v34 = vld [vmem:[#allocation2 + $0x5d0] sm:$0xff] }
 0x445   : > { %v6004_v61 = vrot.slane %v8244_v34, 2 }
 0x446   : > { %v13149_v4 = vpop.permute.xlu1 %4060 }
 0x447   : > { %16347 = vst [vmem:[#allocation33_spill] sm:$0xff] %v13149_v4  ;;  %v13151_v41 = vpop.permute.xlu0 %4058  ;;  %5702 = vrot.lane.b32.xlu1 %v5650_v17, %s9097_s23  ;;  %v5873_v17 = vrot.slane %v12805_v26, 1 }
 0x448   : > { %16348 = vst [vmem:[#allocation15_spill] sm:$0xff] %v13151_v41  ;;  %5700 = vrot.lane.b32.xlu0 %v5651_v16, %s9097_s23  ;;  %v8987_v41 = vld [vmem:[#allocation2 + $0x388] sm:$0xff] }
 0x44a   : > { %v13155_v60 = vpop.permute.xlu1 %4064 }
 0x44b   : > { %16349 = vst [vmem:[#allocation36_spill] sm:$0xff] %v13155_v60  ;;  %v13157_v62 = vpop.permute.xlu0 %4062  ;;  %5794 = vrot.lane.b32.xlu1 %v12788_v42, %s9098_s24  ;;  %v8237_v42 = vld [vmem:[#allocation2 + $0x598] sm:$0xff] }
 0x44c   : > { %16350 = vst [vmem:[#allocation17_spill] sm:$0xff] %v13157_v62  ;;  %5792 = vrot.lane.b32.xlu0 %v12790_v49, %s9098_s24  ;;  %v5874_v49 = vrot.slane %v12948_v15, 1 }
 0x44e   : > { %v13165_v9 = vpop.permute.xlu1 %4068 }
 0x44f   : > { %16351 = vst [vmem:[#allocation39_spill] sm:$0xff] %v13165_v9  ;;  %v13167_v1 = vpop.permute.xlu0 %4066  ;;  %5798 = vrot.lane.b32.xlu1 %v12805_v26, %s9098_s24  ;;  %v5999_v9 = vrot.slane %v8237_v42, 2  ;;  %v8241_v26 = vld [vmem:[#allocation2 + $0x5b8] sm:$0xff]  ;;  %v13194_v42 = vld [vmem:[#allocation2 + $0x148] sm:$0xff] }
 0x450   : > { %16352 = vst [vmem:[#allocation20_spill] sm:$0xff] %v13167_v1  ;;  %5796 = vrot.lane.b32.xlu0 %v12807_v32, %s9098_s24  ;;  %v5875_v1 = vsel %vm2940_vm15, %v5873_v17, %v5874_v49  ;;  %v5998_v32 = vrot.slane %v12937_v6, 2  ;;  %v8180_v17 = vld [vmem:[#allocation2 + $0x150] sm:$0xff] }
 0x452   : > { %v13176_v37 = vpop.permute.xlu1 %4072 }
 0x453   : > { %16353 = vst [vmem:[#allocation114_spill] sm:$0xff] %v13176_v37  ;;  %v13178_v16 = vpop.permute.xlu0 %4070  ;;  %5922 = vrot.lane.b32.xlu1 %v5871_v39, %s9100_s20  ;;  %v6002_v37 = vrot.slane %v8241_v26, 2  ;;  %v6001_v39 = vrot.slane %v12948_v15, 2  ;;  %v8184_v26 = vld [vmem:[#allocation2 + $0x170] sm:$0xff]  ;;  %v13204_v15 = vld [vmem:[#allocation2 + $0x168] sm:$0xff] }
 0x454   : > { %16354 = vst [vmem:[#allocation56_spill] sm:$0xff] %v13178_v16  ;;  %5920 = vrot.lane.b32.xlu0 %v5872_v11, %s9100_s20  ;;  %v6000_v16 = vsel %vm5415_vm6, %v5998_v32, %v5999_v9  ;;  %v5431_v5 = vrot.slane %v8184_v26, 2 }
 0x456   : > { %v13184_v62 = vpop.permute.xlu1 %4076 }
 0x457   : > { %16355 = vst [vmem:[#allocation117_spill] sm:$0xff] %v13184_v62  ;;  %v13186_v58 = vpop.permute.xlu0 %4074  ;;  %5926 = vrot.lane.b32.xlu1 %v5874_v49, %s9100_s20  ;;  %v6003_v49 = vsel %vm5415_vm6, %v6001_v39, %v6002_v37  ;;  %v8181_v62 = vld [vmem:[#allocation2 + $0x158] sm:$0xff] }
 0x458   : > { %16356 = vst [vmem:[#allocation59_spill] sm:$0xff] %v13186_v58  ;;  %5924 = vrot.lane.b32.xlu0 %v5875_v1, %s9100_s20  ;;  %v5300_v58 = vrot.slane %v8180_v17, 1  ;;  %v5299_v1 = vrot.slane %v13194_v42, 1 }
 0x45a   : > { %v13192_v11 = vpop.permute.xlu1 %4080 }
 0x45b   : > { %16357 = vst [vmem:[#allocation120_spill] sm:$0xff] %v13192_v11  ;;  %v13196_v6 = vpop.permute.xlu0 %4078  ;;  %6050 = vrot.lane.b32.xlu1 %v5999_v9, %s9101_s13  ;;  %v5301_v9 = vsel %vm2940_vm15, %v5299_v1, %v5300_v58 }
 0x45c   : > { %16358 = vst [vmem:[#allocation62_spill] sm:$0xff] %v13196_v6  ;;  %6048 = vrot.lane.b32.xlu0 %v6000_v16, %s9101_s13  ;;  %v5303_v6 = vrot.slane %v8184_v26, 1  ;;  %v5302_v16 = vrot.slane %v13204_v15, 1 }
 0x45e   : > { %v13202_v32 = vpop.permute.xlu1 %4084 }
 0x45f   : > { %16359 = vst [vmem:[#allocation123_spill] sm:$0xff] %v13202_v32  ;;  %v13206_v11 = vpop.permute.xlu0 %4082  ;;  %6054 = vrot.lane.b32.xlu1 %v6002_v37, %s9101_s13  ;;  %v5429_v32 = vrot.slane %v8181_v62, 2  ;;  %v5428_v37 = vrot.slane %v8180_v17, 2  ;;  %v8986_v17 = vld [vmem:[#allocation2 + $0x390] sm:$0xff] }
 0x460   : > { %16360 = vst [vmem:[#allocation65_spill] sm:$0xff] %v13206_v11  ;;  %6052 = vrot.lane.b32.xlu0 %v6003_v49, %s9101_s13  ;;  %v5304_v11 = vsel %vm2940_vm15, %v5302_v16, %v5303_v6  ;;  %v8185_v49 = vld [vmem:[#allocation2 + $0x178] sm:$0xff]  ;;  %v5541_v16 = vrot.slane %v8986_v17, 1  ;;  %v5652_v18 = vrot.slane %v8986_v17, 2 }
 0x462   : > { %v13212_v39 = vpop.permute.xlu1 %4088 }
 0x463   : > { %16361 = vst [vmem:[#allocation126_spill] sm:$0xff] %v13212_v39  ;;  %v13214_v60 = vpop.permute.xlu0 %4086  ;;  %5353 = vrot.lane.b32.xlu1 %v5300_v58, %s9091_s17  ;;  %v5430_v39 = vsel %vm5415_vm6, %v5428_v37, %v5429_v32  ;;  %v8988_v37 = vld [vmem:[#allocation2 + $0x3b0] sm:$0xff] }
 0x464   : > { %16362 = vst [vmem:[#allocation68_spill] sm:$0xff] %v13214_v60  ;;  %5351 = vrot.lane.b32.xlu0 %v5301_v9, %s9091_s17  ;;  %v5432_v60 = vrot.slane %v8185_v49, 2  ;;  %v8989_v49 = vld [vmem:[#allocation2 + $0x3a8] sm:$0xff] }
 0x466   : > { %v13219_v46 = vpop.permute.xlu1 %5337  ;;  %v5433_v62 = vsel %vm5415_vm6, %v5431_v5, %v5432_v60 }
 0x467   : > { %v13221_v1 = vpop.permute.xlu0 %5335  ;;  %5357 = vrot.lane.b32.xlu1 %v5303_v6, %s9091_s17  ;;  %v5540_v6 = vrot.slane %v8987_v41, 1 }
 0x468   : > { %5355 = vrot.lane.b32.xlu0 %v5304_v11, %s9091_s17 }
 0x469   : > { %v5542_v26 = vsel %vm2940_vm15, %v5540_v6, %v5541_v16 }
 0x46a   : > { %v13226_v58 = vpop.permute.xlu1 %5341 }
 0x46b   : > { %v13228_v9 = vpop.permute.xlu0 %5339  ;;  %5482 = vrot.lane.b32.xlu1 %v5429_v32, %s9092_s18  ;;  %v5544_v32 = vrot.slane %v8988_v37, 1  ;;  %v6115_v56 = vsel %vm361_vm0, %v12969_v2, %v13226_v58 }
 0x46c   : > { %5480 = vrot.lane.b32.xlu0 %v5430_v39, %s9092_s18  ;;  %v5543_v39 = vrot.slane %v8989_v49, 1 }
 0x46e   : > { %v13233_v4 = vpop.permute.xlu1 %5466  ;;  %v5545_v41 = vsel %vm2940_vm15, %v5543_v39, %v5544_v32 }
 0x46f   : > { %v13235_v11 = vpop.permute.xlu0 %5464  ;;  %5486 = vrot.lane.b32.xlu1 %v5432_v60, %s9092_s18  ;;  %v5653_v60 = vrot.slane %v8990_v12, 2 }
 0x470   : > { %5484 = vrot.lane.b32.xlu0 %v5433_v62, %s9092_s18 }
 0x471   : > { %v5654_v49 = vsel %vm5415_vm6, %v5652_v18, %v5653_v60 }
 0x472   : > { %v13240_v14 = vpop.permute.xlu1 %5470 }
 0x473   : > { %v13242_v5 = vpop.permute.xlu0 %5468  ;;  %5594 = vrot.lane.b32.xlu1 %v5541_v16, %s9096_s22  ;;  %v5655_v16 = vrot.slane %v8988_v37, 2 }
 0x474   : > { %5592 = vrot.lane.b32.xlu0 %v5542_v26, %s9096_s22 }
 0x475   : > { %v5657_v12 = vsel %vm5415_vm6, %v5655_v16, %v5656_v29 }
 0x476   : > { %v13247_v62 = vpop.permute.xlu1 %5578 }
 0x477   : > { %v13249_v6 = vpop.permute.xlu0 %5576  ;;  %5598 = vrot.lane.b32.xlu1 %v5544_v32, %s9096_s22  ;;  %v5876_v32 = vrot.slane %v12820_v55, 1 }
 0x478   : > { %5596 = vrot.lane.b32.xlu0 %v5545_v41, %s9096_s22  ;;  %v5877_v41 = vrot.slane %v8244_v34, 1  ;;  %v13299_v34 = vld [vmem:[#allocation2 + $0x190] sm:$0xff] }
 0x47a   : > { %v13254_v21 = vpop.permute.xlu1 %5582 }
 0x47b   : > { %v13256_v26 = vpop.permute.xlu0 %5580  ;;  %5706 = vrot.lane.b32.xlu1 %v5653_v60, %s9097_s23 }
 0x47c   : > { %5704 = vrot.lane.b32.xlu0 %v5654_v49, %s9097_s23  ;;  %v8248_v49 = vld [vmem:[#allocation2 + $0x5f0] sm:$0xff] }
 0x47d   : > { %v5880_v50 = vrot.slane %v8248_v49, 1  ;;  %v6007_v45 = vrot.slane %v8248_v49, 2  ;;  %v13301_v49 = vld [vmem:[#allocation2 + $0x188] sm:$0xff] }
 0x47e   : > { %v5691_v17 = vpop.permute.xlu1 %5690 }
 0x47f   : > { %v5689_v39 = vpop.permute.xlu0 %5688  ;;  %5710 = vrot.lane.b32.xlu1 %v5656_v29, %s9097_s23  ;;  %v5879_v29 = vrot.slane %v12837_v59, 1 }
 0x480   : > { %5708 = vrot.lane.b32.xlu0 %v5657_v12, %s9097_s23  ;;  %v5878_v12 = vsel %vm2940_vm15, %v5876_v32, %v5877_v41  ;;  %v6008_v32 = vrot.slane %v8249_v23, 2  ;;  %v16363_v23 = vld [vmem:[#allocation93_spill] sm:$0xff] }
 0x481   : > { %v5881_v7 = vsel %vm2940_vm15, %v5879_v29, %v5880_v50 }
 0x482   : > { %v13263_v18 = vpop.permute.xlu1 %5694 }
 0x483   : > { %v13265_v37 = vpop.permute.xlu0 %5692  ;;  %5802 = vrot.lane.b32.xlu1 %v12820_v55, %s9098_s24  ;;  %v8162_v55 = vld [vmem:[#allocation2 + $0xc0] sm:$0xff] }
 0x484   : > { %5800 = vrot.lane.b32.xlu0 %v12822_v36, %s9098_s24  ;;  %v6106_v20 = vsel %vm361_vm0, %v8162_v55, %v13221_v1 }
 0x485   : > { %v6201_v29 = vsel %vm2453_vm8, %v6106_v20, %v13235_v11  ;;  %v6112_v20 = vsel %vm361_vm0, %v8166_v33, %v13228_v9  ;;  %v5306_v9 = vrot.slane %v13299_v34, 1  ;;  %v5305_v11 = vrot.slane %v13301_v49, 1 }
 0x486   : > { %v5787_v60 = vpop.permute.xlu1 %5786  ;;  %v6264_v2 = vsel %vm2518_vm9, %v6201_v29, %v12561_v35  ;;  %v8192_v29 = vld [vmem:[#allocation2 + $0x1b0] sm:$0xff] }
 0x487   : > { %v5785_v16 = vpop.permute.xlu0 %5784  ;;  %5806 = vrot.lane.b32.xlu1 %v12837_v59, %s9098_s24 }
 0x488   : > { %5804 = vrot.lane.b32.xlu0 %v12839_v19, %s9098_s24  ;;  %v6109_v19 = vsel %vm361_vm0, %v12959_v10, %v13219_v46  ;;  %v6006_v10 = vsel %vm5415_vm6, %v6004_v61, %v6005_v0  ;;  %v6207_v61 = vsel %vm2453_vm8, %v6115_v56, %v13240_v14 }
 0x489   : > { %v6203_v47 = vsel %vm2453_vm8, %v6109_v19, %v13233_v4  ;;  %v6009_v4 = vsel %vm5415_vm6, %v6007_v45, %v6008_v32  ;;  %v6205_v45 = vsel %vm2453_vm8, %v6112_v20, %v13242_v5 }
 0x48a   : > { %v5791_v44 = vpop.permute.xlu1 %5790  ;;  %v6265_v46 = vsel %vm2518_vm9, %v6203_v47, %v16363_v23 }
 0x48b   : > { %v5789_v36 = vpop.permute.xlu0 %5788  ;;  %5930 = vrot.lane.b32.xlu1 %v5877_v41, %s9100_s20 }
 0x48c   : > { %5928 = vrot.lane.b32.xlu0 %v5878_v12, %s9100_s20 }
 0x48e   : > { %v5915_v59 = vpop.permute.xlu1 %5914 }
 0x48f   : > { %v5913_v41 = vpop.permute.xlu0 %5912  ;;  %5934 = vrot.lane.b32.xlu1 %v5880_v50, %s9100_s20  ;;  %v6297_v50 = vsel %vm2583_vm10, %v6264_v2, %v13249_v6  ;;  %v5309_v2 = vrot.slane %v8192_v29, 1 }
 0x490   : > { %5932 = vrot.lane.b32.xlu0 %v5881_v7, %s9100_s20  ;;  %v6299_v7 = vsel %vm2583_vm10, %v6265_v46, %v13247_v62  ;;  %v6361_v14 = vsel %vm2648_vm11, %v6297_v50, %v5689_v39  ;;  %v16364_v62 = vld [vmem:[#allocation95_spill] sm:$0xff]  ;;  %v6266_v39 = vsel %vm2518_vm9, %v6205_v45, %v12559_v28 }
 0x491   : > { %v6363_v58 = vsel %vm2648_vm11, %v6299_v7, %v5691_v17  ;;  %v6267_v5 = vsel %vm2518_vm9, %v6207_v61, %v16364_v62  ;;  %v6425_v12 = vsel %vm2713_vm12, %v6361_v14, %v5785_v16  ;;  %v6301_v16 = vsel %vm2583_vm10, %v6266_v39, %v13256_v26 }
 0x492   : > { %v5919_v1 = vpop.permute.xlu1 %5918  ;;  %v6427_v33 = vsel %vm2713_vm12, %v6363_v58, %v5787_v60  ;;  %v6489_v60 = vsel %vm2778_vm13, %v6425_v12, %v5913_v41  ;;  %v6365_v41 = vsel %vm2648_vm11, %v6301_v16, %v13265_v37  ;;  %v5307_v61 = vsel %vm2940_vm15, %v5305_v11, %v5306_v9  ;;  %v8189_v58 = vld [vmem:[#allocation2 + $0x198] sm:$0xff] }
 0x493   : > { %v5917_v47 = vpop.permute.xlu0 %5916  ;;  %6058 = vrot.lane.b32.xlu1 %v6005_v0, %s9101_s13  ;;  %v6491_v6 = vsel %vm2778_vm13, %v6427_v33, %v5915_v59  ;;  %v6303_v0 = vsel %vm2583_vm10, %v6267_v5, %v13254_v21  ;;  %v6429_v26 = vsel %vm2713_vm12, %v6365_v41, %v5789_v36  ;;  %v5435_v33 = vrot.slane %v8189_v58, 2 }
 0x494   : > { %6056 = vrot.lane.b32.xlu0 %v6006_v10, %s9101_s13  ;;  %v13332_v10 = vld [vmem:[#allocation2 + $0x1a8] sm:$0xff]  ;;  %v6367_v59 = vsel %vm2648_vm11, %v6303_v0, %v13263_v18  ;;  %v5434_v11 = vrot.slane %v13299_v34, 2  ;;  %v5437_v39 = vrot.slane %v8192_v29, 2 }
 0x495   : > { %v6431_v46 = vsel %vm2713_vm12, %v6367_v59, %v5791_v44  ;;  %v5308_v45 = vrot.slane %v13332_v10, 1  ;;  %v8993_v59 = vld [vmem:[#allocation2 + $0x3c8] sm:$0xff] }
 0x496   : > { %v6043_v17 = vpop.permute.xlu1 %6042  ;;  %v6495_v7 = vsel %vm2778_vm13, %v6431_v46, %v5919_v1  ;;  %v8994_v46 = vld [vmem:[#allocation2 + $0x3f0] sm:$0xff] }
 0x497   : > { %v6555_v55 = vsel %vm2843_vm14, %v6491_v6, %v6043_v17  ;;  %v6041_v19 = vpop.permute.xlu0 %6040  ;;  %6062 = vrot.lane.b32.xlu1 %v6008_v32, %s9101_s13  ;;  %v6493_v32 = vsel %vm2778_vm13, %v6429_v26, %v5917_v47  ;;  %v5310_v47 = vsel %vm2940_vm15, %v5308_v45, %v5309_v2  ;;  %v8193_v6 = vld [vmem:[#allocation2 + $0x1b8] sm:$0xff]  ;;  %v5436_v17 = vsel %vm5415_vm6, %v5434_v11, %v5435_v33 }
 0x498   : > { %v6649_v56 = vrot.slane %v6555_v55, 3  ;;  %v6553_v21 = vsel %vm2843_vm14, %v6489_v60, %v6041_v19  ;;  %6060 = vrot.lane.b32.xlu0 %v6009_v4, %s9101_s13  ;;  %v5438_v0 = vrot.slane %v8193_v6, 2  ;;  %v8992_v19 = vld [vmem:[#allocation2 + $0x3d0] sm:$0xff]  ;;  %v8996_v45 = vld [vmem:[#allocation2 + $0x3d8] sm:$0xff]  ;;  %v8251_v6 = vld [vmem:[#allocation2 + $0x608] sm:$0xff] }
 0x499   : > { %v6648_v20 = vrot.slane %v6553_v21, 3  ;;  %v5547_v16 = vrot.slane %v8992_v19, 1 }
 0x49a   : > { %v6047_v18 = vpop.permute.xlu1 %6046  ;;  %v5439_v55 = vsel %vm5415_vm6, %v5437_v39, %v5438_v0 }
 0x49b   : > { %v6559_v4 = vsel %vm2843_vm14, %v6495_v7, %v6047_v18  ;;  %v6045_v50 = vpop.permute.xlu0 %6044  ;;  %v6650_v37 = vsel %vm1523_vm1, %v6648_v20, %v6649_v56  ;;  %5361 = vrot.lane.b32.xlu1 %v5306_v9, %s9091_s17  ;;  %v5546_v56 = vrot.slane %v8993_v59, 1  ;;  %v5550_v20 = vrot.slane %v8994_v46, 1 }
 0x49c   : > { %v6652_v44 = vrot.slane %v6559_v4, 3  ;;  %v6557_v14 = vsel %vm2843_vm14, %v6493_v32, %v6045_v50  ;;  %8672 = vmatprep.mubr.msk.bf16.mxu1 %vm3013_vm2, %v6650_v37  ;;  %5359 = vrot.lane.b32.xlu0 %v5307_v61, %s9091_s17  ;;  %v8995_v61 = vld [vmem:[#allocation2 + $0x3e8] sm:$0xff]  ;;  %v5659_v32 = vrot.slane %v8996_v45, 2  ;;  %v5658_v4 = vrot.slane %v8992_v19, 2 }
 0x49d   : > { %v6651_v36 = vrot.slane %v6557_v14, 3  ;;  %v5548_v41 = vsel %vm2940_vm15, %v5546_v56, %v5547_v16  ;;  %v5549_v26 = vrot.slane %v8995_v61, 1  ;;  %v8255_v19 = vld [vmem:[#allocation2 + $0x628] sm:$0xff]  ;;  %v8254_v56 = vld [vmem:[#allocation2 + $0x620] sm:$0xff] }
 0x49e   : > { %v13355_v1 = vpop.permute.xlu1 %5345  ;;  %v5660_v58 = vsel %vm5415_vm6, %v5658_v4, %v5659_v32  ;;  %v5885_v61 = vrot.slane %v8255_v19, 1  ;;  %v8253_v4 = vld [vmem:[#allocation2 + $0x618] sm:$0xff] }
 0x49f   : > { %v6653_v5 = vsel %vm1523_vm1, %v6651_v36, %v6652_v44  ;;  %v13360_v12 = vpop.permute.xlu0 %5343  ;;  %5365 = vrot.lane.b32.xlu1 %v5309_v2, %s9091_s17  ;;  %v5551_v2 = vsel %vm2940_vm15, %v5549_v26, %v5550_v20  ;;  %v8997_v44 = vld [vmem:[#allocation2 + $0x3f8] sm:$0xff]  ;;  %v5661_v36 = vrot.slane %v8994_v46, 2 }
 0x4a0   : > { %8673 = vmatmul.mubr.msk.bf16.vlgmr.msra.gmra.mrb[68].mxu1 %vm3013_vm2, %v6653_v5  ;;  %5363 = vrot.lane.b32.xlu0 %v5310_v47, %s9091_s17  ;;  %v5662_v14 = vrot.slane %v8997_v44, 2  ;;  %v8257_v44 = vld [vmem:[#allocation2 + $0x638] sm:$0xff] }
 0x4a1   : > { %v6014_v28 = vrot.slane %v8257_v44, 2 }
 0x4a2   : > { %v13365_v9 = vpop.permute.xlu1 %5349  ;;  %v5663_v11 = vsel %vm5415_vm6, %v5661_v36, %v5662_v14 }
 0x4a3   : > { %v13368_v60 = vpop.permute.xlu0 %5347  ;;  %5490 = vrot.lane.b32.xlu1 %v5435_v33, %s9092_s18 }
 0x4a4   : > { %5488 = vrot.lane.b32.xlu0 %v5436_v17, %s9092_s18 }
 0x4a6   : > { %v13372_v34 = vpop.permute.xlu1 %5474 }
 0x4a7   : > { %v13375_v21 = vpop.permute.xlu0 %5472  ;;  %5494 = vrot.lane.b32.xlu1 %v5438_v0, %s9092_s18  ;;  %v8250_v0 = vld [vmem:[#allocation2 + $0x600] sm:$0xff] }
 0x4a8   : > { %5492 = vrot.lane.b32.xlu0 %v5439_v55, %s9092_s18  ;;  %v8252_v55 = vld [vmem:[#allocation2 + $0x610] sm:$0xff] }
 0x4aa   : > { %v13379_v29 = vpop.permute.xlu1 %5478 }
 0x4ab   : > { %v13382_v7 = vpop.permute.xlu0 %5476  ;;  %5602 = vrot.lane.b32.xlu1 %v5547_v16, %s9096_s22  ;;  %v5882_v16 = vrot.slane %v8251_v6, 1 }
 0x4ac   : > { %5600 = vrot.lane.b32.xlu0 %v5548_v41, %s9096_s22  ;;  %v5883_v41 = vrot.slane %v8252_v55, 1 }
 0x4ae   : > { %v13386_v18 = vpop.permute.xlu1 %5586 }
 0x4af   : > { %v13389_v50 = vpop.permute.xlu0 %5584  ;;  %5606 = vrot.lane.b32.xlu1 %v5550_v20, %s9096_s22  ;;  %v8256_v20 = vld [vmem:[#allocation2 + $0x630] sm:$0xff] }
 0x4b0   : > { %5604 = vrot.lane.b32.xlu0 %v5551_v2, %s9096_s22  ;;  %v5884_v2 = vsel %vm2940_vm15, %v5882_v16, %v5883_v41  ;;  %v5886_v45 = vrot.slane %v8256_v20, 1 }
 0x4b2   : > { %v13393_v37 = vpop.permute.xlu1 %5590 }
 0x4b3   : > { %v13396_v47 = vpop.permute.xlu0 %5588  ;;  %5714 = vrot.lane.b32.xlu1 %v5659_v32, %s9097_s23 }
 0x4b4   : > { %5712 = vrot.lane.b32.xlu0 %v5660_v58, %s9097_s23  ;;  %v8170_v58 = vld [vmem:[#allocation2 + $0x100] sm:$0xff] }
 0x4b6   : > { %v5699_v33 = vpop.permute.xlu1 %5698 }
 0x4b7   : > { %v5697_v5 = vpop.permute.xlu0 %5696  ;;  %5718 = vrot.lane.b32.xlu1 %v5662_v14, %s9097_s23  ;;  %v6121_v14 = vsel %vm361_vm0, %v13082_v31, %v13355_v1  ;;  %v6013_v31 = vrot.slane %v8256_v20, 2  ;;  %v6127_v1 = vsel %vm361_vm0, %v13092_v53, %v13365_v9 }
 0x4b8   : > { %5716 = vrot.lane.b32.xlu0 %v5663_v11, %s9097_s23  ;;  %v5887_v11 = vsel %vm2940_vm15, %v5885_v61, %v5886_v45  ;;  %v6211_v16 = vsel %vm2453_vm8, %v6121_v14, %v13372_v34  ;;  %v6215_v20 = vsel %vm2453_vm8, %v6127_v1, %v13379_v29 }
 0x4ba   : > { %v13403_v17 = vpop.permute.xlu1 %5702 }
 0x4bb   : > { %v13405_v39 = vpop.permute.xlu0 %5700  ;;  %5810 = vrot.lane.b32.xlu1 %v8251_v6, %s9098_s24  ;;  %v6011_v6 = vrot.slane %v8253_v4, 2  ;;  %v13436_v4 = vld [vmem:[#allocation2 + $0x1d0] sm:$0xff] }
 0x4bc   : > { %5808 = vrot.lane.b32.xlu0 %v8250_v0, %s9098_s24  ;;  %v6010_v0 = vrot.slane %v8252_v55, 2  ;;  %v16365_v55 = vld [vmem:[#allocation97_spill] sm:$0xff] }
 0x4be   : > { %v5795_v59 = vpop.permute.xlu1 %5794  ;;  %v6012_v34 = vsel %vm5415_vm6, %v6010_v0, %v6011_v6  ;;  %v5312_v0 = vrot.slane %v13436_v4, 1 }
 0x4bf   : > { %v5793_v46 = vpop.permute.xlu0 %5792  ;;  %5814 = vrot.lane.b32.xlu1 %v8255_v19, %s9098_s24  ;;  %v6118_v19 = vsel %vm361_vm0, %v8170_v58, %v13360_v12  ;;  %v6269_v12 = vsel %vm2518_vm9, %v6211_v16, %v16365_v55  ;;  %v13438_v58 = vld [vmem:[#allocation2 + $0x1c8] sm:$0xff] }
 0x4c0   : > { %5812 = vrot.lane.b32.xlu0 %v8254_v56, %s9098_s24 }
 0x4c2   : > { %v13411_v26 = vpop.permute.xlu1 %5798 }
 0x4c3   : > { %v13414_v32 = vpop.permute.xlu0 %5796  ;;  %5938 = vrot.lane.b32.xlu1 %v5883_v41, %s9100_s20  ;;  %v8174_v41 = vld [vmem:[#allocation2 + $0x120] sm:$0xff] }
 0x4c4   : > { %5936 = vrot.lane.b32.xlu0 %v5884_v2, %s9100_s20  ;;  %v6209_v2 = vsel %vm2453_vm8, %v6118_v19, %v13375_v21  ;;  %v6124_v21 = vsel %vm361_vm0, %v8174_v41, %v13368_v60  ;;  %v6015_v60 = vsel %vm5415_vm6, %v6013_v31, %v6014_v28  ;;  %v5311_v19 = vrot.slane %v13438_v58, 1  ;;  %v8077_v41 = vld [vmem:[#allocation2 + $0x498] sm:$0xff] }
 0x4c5   : > { %v6268_v53 = vsel %vm2518_vm9, %v6209_v2, %v12570_v38  ;;  %v6213_v44 = vsel %vm2453_vm8, %v6124_v21, %v13382_v7  ;;  %v16366_v7 = vld [vmem:[#allocation99_spill] sm:$0xff]  ;;  %v8998_v2 = vld [vmem:[#allocation2 + $0x490] sm:$0xff] }
 0x4c6   : > { %v5923_v36 = vpop.permute.xlu1 %5922  ;;  %v6305_v14 = vsel %vm2583_vm10, %v6268_v53, %v13389_v50  ;;  %v6271_v16 = vsel %vm2518_vm9, %v6215_v20, %v16366_v7  ;;  %v4130_v31 = vrot.slane %v8998_v2, 4  ;;  %v6270_v1 = vsel %vm2518_vm9, %v6213_v44, %v12568_v43 }
 0x4c7   : > { %v5921_v56 = vpop.permute.xlu0 %5920  ;;  %5942 = vrot.lane.b32.xlu1 %v5886_v45, %s9100_s20  ;;  %v6307_v45 = vsel %vm2583_vm10, %v6269_v12, %v13386_v18  ;;  %v6369_v29 = vsel %vm2648_vm11, %v6305_v14, %v5697_v5  ;;  %v8923_v5 = vld [vmem:[%s15347_s2 + $0x14] sm:$0xff]   ;;  %v4131_v44 = vrot.slane %v8077_v41, 4  ;;  %v8925_v41 = vld [vmem:[%s15347_s2 + $0x24] ss:$0 sps:$4 sm:$0x33]  }
 0x4c8   : > { %5940 = vrot.lane.b32.xlu0 %v5887_v11, %s9100_s20  ;;  %v6371_v11 = vsel %vm2648_vm11, %v6307_v45, %v5699_v33  ;;  %v6433_v50 = vsel %vm2713_vm12, %v6369_v29, %v5793_v46  ;;  %8628 = vmatprep.subr.bf16.mxu0 %v8923_v5 }
 0x4c9   : > { %v6435_v18 = vsel %vm2713_vm12, %v6371_v11, %v5795_v59  ;;  %v6311_v59 = vsel %vm2583_vm10, %v6271_v16, %v13393_v37  ;;  %v6497_v12 = vsel %vm2778_vm13, %v6433_v50, %v5921_v56  ;;  %8629 = vmatpush3.bf16.msra.mxu0 %v8923_v5  ;;  %v13494_v16 = vld [vmem:[#allocation2 + $0x1e8] sm:$0xff]  ;;  %v8197_v5 = vld [vmem:[#allocation2 + $0x1d8] sm:$0xff] }
 0x4ca   : > { %v5927_v61 = vpop.permute.xlu1 %5926  ;;  %v6499_v33 = vsel %vm2778_vm13, %v6435_v18, %v5923_v36  ;;  %v6309_v36 = vsel %vm2583_vm10, %v6270_v1, %v13396_v47  ;;  %v6375_v21 = vsel %vm2648_vm11, %v6311_v59, %v13403_v17  ;;  %v8200_v18 = vld [vmem:[#allocation2 + $0x1f0] sm:$0xff]  ;;  %v4924_v59 = vsel %vm1222_vm4, %v8925_v41, 0 }
 0x4cb   : > { %v5925_v9 = vpop.permute.xlu0 %5924  ;;  %6066 = vrot.lane.b32.xlu1 %v6011_v6, %s9101_s13  ;;  %v6373_v37 = vsel %vm2648_vm11, %v6309_v36, %v13405_v39  ;;  %v6439_v56 = vsel %vm2713_vm12, %v6375_v21, %v13411_v26  ;;  %v8924_v39 = vld [vmem:[%s15347_s2 + $0x1c] sm:$0xff]  }
 0x4cc   : > { %6064 = vrot.lane.b32.xlu0 %v6012_v34, %s9101_s13  ;;  %v6437_v47 = vsel %vm2713_vm12, %v6373_v37, %v13414_v32  ;;  %v6503_v17 = vsel %vm2778_vm13, %v6439_v56, %v5927_v61  ;;  %8630 = vmatprep.subr.bf16.mxu0 %v8924_v39  ;;  %v8081_v36 = vld [vmem:[#allocation2 + $0x4b8] sm:$0xff] }
 0x4cd   : > { %v6501_v11 = vsel %vm2778_vm13, %v6437_v47, %v5925_v9  ;;  %v4132_v9 = vsel %vm856_vm5, %v4130_v31, %v4131_v44  ;;  %8631 = vmatpush3.bf16.msra.mxu0 %v8924_v39  ;;  %v8201_v44 = vld [vmem:[#allocation2 + $0x1f8] sm:$0xff] }
 0x4ce   : > { %v6051_v6 = vpop.permute.xlu1 %6050  ;;  %8718 = vmatprep.subr.msk.bf16.mxu0 %vm1222_vm4, %v8925_v41 }
 0x4cf   : > { %v6563_v46 = vsel %vm2843_vm14, %v6499_v33, %v6051_v6  ;;  %v6049_v34 = vpop.permute.xlu0 %6048  ;;  %6070 = vrot.lane.b32.xlu1 %v6014_v28, %s9101_s13  ;;  %v5313_v28 = vsel %vm2940_vm15, %v5311_v19, %v5312_v0  ;;  %v5315_v33 = vrot.slane %v8200_v18, 1  ;;  %v5314_v6 = vrot.slane %v13494_v16, 1 }
 0x4d0   : > { %v6655_v20 = vrot.slane %v6563_v46, 3  ;;  %v6561_v45 = vsel %vm2843_vm14, %v6497_v12, %v6049_v34  ;;  %6068 = vrot.lane.b32.xlu0 %v6015_v60, %s9101_s13  ;;  %v5441_v46 = vrot.slane %v8197_v5, 2  ;;  %v5440_v34 = vrot.slane %v13436_v4, 2 }
 0x4d1   : > { %v6654_v53 = vrot.slane %v6561_v45, 3  ;;  %v5316_v12 = vsel %vm2940_vm15, %v5314_v6, %v5315_v33  ;;  %8633 = vmatpush3.bf16.msra.mxu0 %v4924_v59  ;;  %v9003_v6 = vld [vmem:[#allocation2 + $0x428] sm:$0xff] }
 0x4d2   : > { %v6055_v14 = vpop.permute.xlu1 %6054  ;;  %v5442_v56 = vsel %vm5415_vm6, %v5440_v34, %v5441_v46  ;;  %v5555_v41 = vrot.slane %v9003_v6, 1 }
 0x4d3   : > { %v6567_v26 = vsel %vm2843_vm14, %v6503_v17, %v6055_v14  ;;  %v6053_v29 = vpop.permute.xlu0 %6052  ;;  %v6656_v60 = vsel %vm1523_vm1, %v6654_v53, %v6655_v20  ;;  %5369 = vrot.lane.b32.xlu1 %v5312_v0, %s9091_s17  ;;  %v8999_v20 = vld [vmem:[#allocation2 + $0x4b0] sm:$0xff]  ;;  %v5444_v17 = vrot.slane %v8201_v44, 2  ;;  %v5443_v14 = vrot.slane %v8200_v18, 2 }
 0x4d4   : > { %v6658_v32 = vrot.slane %v6567_v26, 3  ;;  %v6565_v61 = vsel %vm2843_vm14, %v6501_v11, %v6053_v29  ;;  %8676 = vmatprep.mubr.msk.bf16.mxu1 %vm3013_vm2, %v6656_v60  ;;  %5367 = vrot.lane.b32.xlu0 %v5313_v28, %s9091_s17  ;;  %v4133_v45 = vrot.slane %v8999_v20, 4  ;;  %v9000_v26 = vld [vmem:[#allocation2 + $0x410] sm:$0xff]  ;;  %v9001_v60 = vld [vmem:[#allocation2 + $0x408] sm:$0xff] }
 0x4d5   : > { %v6657_v19 = vrot.slane %v6565_v61, 3  ;;  %v5445_v11 = vsel %vm5415_vm6, %v5443_v14, %v5444_v17  ;;  %v5553_v29 = vrot.slane %v9000_v26, 1  ;;  %v5664_v34 = vrot.slane %v9000_v26, 2  ;;  %v8259_v26 = vld [vmem:[#allocation2 + $0x648] sm:$0xff] }
 0x4d6   : > { %v13501_v50 = vpop.permute.xlu1 %5353 }
 0x4d7   : > { %v13507_v2 = vpop.permute.xlu0 %5351  ;;  %v6659_v0 = vsel %vm1523_vm1, %v6657_v19, %v6658_v32  ;;  %4180 = vrot.lane.b32.xlu1 %v4132_v9, %s9101_s13  ;;  %v5552_v32 = vrot.slane %v9001_v60, 1  ;;  %v9002_v9 = vld [vmem:[#allocation2 + $0x430] sm:$0xff]  ;;  %v8258_v60 = vld [vmem:[#allocation2 + $0x640] sm:$0xff]  ;;  %v6133_v6 = vsel %vm361_vm0, %v13194_v42, %v13501_v50 }
 0x4d8   : > { %8677 = vmatmul.mubr.msk.bf16.gmra.mrb[72].mxu1 %vm3013_vm2, %v6659_v0  ;;  %4178 = vrot.lane.b32.xlu0 %v4130_v31, %s9101_s13  ;;  %v4134_v31 = vrot.slane %v8081_v36, 4  ;;  %v5667_v44 = vrot.slane %v9002_v9, 2 }
 0x4d9   : > { %v5554_v19 = vsel %vm2940_vm15, %v5552_v32, %v5553_v29 }
 0x4da   : > { %v13515_v1 = vpop.permute.xlu1 %5357  ;;  %v4135_v4 = vsel %vm856_vm5, %v4133_v45, %v4134_v31  ;;  %v9005_v31 = vld [vmem:[#allocation2 + $0x438] sm:$0xff] }
 0x4db   : > { %v13519_v21 = vpop.permute.xlu0 %5355  ;;  %5373 = vrot.lane.b32.xlu1 %v5315_v33, %s9091_s17  ;;  %v5556_v33 = vrot.slane %v9002_v9, 1  ;;  %v8178_v9 = vld [vmem:[#allocation2 + $0x140] sm:$0xff]  ;;  %v6139_v50 = vsel %vm361_vm0, %v13204_v15, %v13515_v1 }
 0x4dc   : > { %5371 = vrot.lane.b32.xlu0 %v5316_v12, %s9091_s17  ;;  %v9004_v12 = vld [vmem:[#allocation2 + $0x418] sm:$0xff] }
 0x4dd   : > { %v5557_v59 = vsel %vm2940_vm15, %v5555_v41, %v5556_v33  ;;  %v5888_v41 = vrot.slane %v8259_v26, 1 }
 0x4de   : > { %v13523_v37 = vpop.permute.xlu1 %5482 }
 0x4df   : > { %v13526_v53 = vpop.permute.xlu0 %5480  ;;  %5498 = vrot.lane.b32.xlu1 %v5441_v46, %s9092_s18  ;;  %v5665_v46 = vrot.slane %v9004_v12, 2  ;;  %v8262_v12 = vld [vmem:[#allocation2 + $0x660] sm:$0xff] }
 0x4e0   : > { %5496 = vrot.lane.b32.xlu0 %v5442_v56, %s9092_s18  ;;  %v5668_v56 = vrot.slane %v9005_v31, 2 }
 0x4e2   : > { %v13531_v47 = vpop.permute.xlu1 %5486  ;;  %v5669_v14 = vsel %vm5415_vm6, %v5667_v44, %v5668_v56  ;;  %v8182_v44 = vld [vmem:[#allocation2 + $0x160] sm:$0xff] }
 0x4e3   : > { %v13533_v28 = vpop.permute.xlu0 %5484  ;;  %4184 = vrot.lane.b32.xlu1 %v4135_v4, %s9101_s13 }
 0x4e4   : > { %4182 = vrot.lane.b32.xlu0 %v4133_v45, %s9101_s13  ;;  %v5666_v45 = vsel %vm5415_vm6, %v5664_v34, %v5665_v46  ;;  %v6130_v34 = vsel %vm361_vm0, %v8178_v9, %v13507_v2  ;;  %v16367_v2 = vld [vmem:[#allocation101_spill] sm:$0xff] }
 0x4e6   : > { %v13537_v39 = vpop.permute.xlu1 %5594 }
 0x4e7   : > { %v13540_v61 = vpop.permute.xlu0 %5592  ;;  %5502 = vrot.lane.b32.xlu1 %v5444_v17, %s9092_s18 }
 0x4e8   : > { %5500 = vrot.lane.b32.xlu0 %v5445_v11, %s9092_s18 }
 0x4ea   : > { %v13544_v18 = vpop.permute.xlu1 %5598 }
 0x4eb   : > { %v13547_v0 = vpop.permute.xlu0 %5596  ;;  %5610 = vrot.lane.b32.xlu1 %v5553_v29, %s9096_s22 }
 0x4ec   : > { %5608 = vrot.lane.b32.xlu0 %v5554_v19, %s9096_s22  ;;  %v8260_v19 = vld [vmem:[#allocation2 + $0x650] sm:$0xff] }
 0x4ee   : > { %v5707_v5 = vpop.permute.xlu1 %5706 }
 0x4ef   : > { %v5705_v36 = vpop.permute.xlu0 %5704  ;;  %5614 = vrot.lane.b32.xlu1 %v5556_v33, %s9096_s22  ;;  %v8263_v33 = vld [vmem:[#allocation2 + $0x668] sm:$0xff] }
 0x4f0   : > { %5612 = vrot.lane.b32.xlu0 %v5557_v59, %s9096_s22  ;;  %v5891_v42 = vrot.slane %v8263_v33, 1 }
 0x4f2   : > { %v13554_v20 = vpop.permute.xlu1 %5710 }
 0x4f3   : > { %v13557_v4 = vpop.permute.xlu0 %5708  ;;  %5722 = vrot.lane.b32.xlu1 %v5665_v46, %s9097_s23  ;;  %v5889_v46 = vrot.slane %v8260_v19, 1 }
 0x4f4   : > { %5720 = vrot.lane.b32.xlu0 %v5666_v45, %s9097_s23  ;;  %v6219_v45 = vsel %vm2453_vm8, %v6133_v6, %v13523_v37  ;;  %v8261_v6 = vld [vmem:[#allocation2 + $0x658] sm:$0xff] }
 0x4f6   : > { %v5803_v17 = vpop.permute.xlu1 %5802 }
 0x4f7   : > { %v5801_v11 = vpop.permute.xlu0 %5800  ;;  %5726 = vrot.lane.b32.xlu1 %v5668_v56, %s9097_s23  ;;  %v13573_v56 = vld [vmem:[#allocation2 + $0x670] sm:$0xff] }
 0x4f8   : > { %5724 = vrot.lane.b32.xlu0 %v5669_v14, %s9097_s23  ;;  %v6217_v14 = vsel %vm2453_vm8, %v6130_v34, %v13526_v53  ;;  %v5892_v9 = vrot.slane %v13573_v56, 1  ;;  %v6136_v53 = vsel %vm361_vm0, %v8182_v44, %v13519_v21  ;;  %v6016_v44 = vrot.slane %v8260_v19, 2 }
 0x4f9   : > { %v6272_v15 = vsel %vm2518_vm9, %v6217_v14, %v12579_v54  ;;  %v6221_v34 = vsel %vm2453_vm8, %v6136_v53, %v13533_v28  ;;  %v16368_v14 = vld [vmem:[#allocation103_spill] sm:$0xff] }
 0x4fa   : > { %v5807_v29 = vpop.permute.xlu1 %5806 }
 0x4fb   : > { %v5805_v32 = vpop.permute.xlu0 %5804  ;;  %5818 = vrot.lane.b32.xlu1 %v8259_v26, %s9098_s24  ;;  %v6273_v26 = vsel %vm2518_vm9, %v6219_v45, %v16367_v2 }
 0x4fc   : > { %5816 = vrot.lane.b32.xlu0 %v8258_v60, %s9098_s24  ;;  %v5890_v60 = vsel %vm2940_vm15, %v5888_v41, %v5889_v46  ;;  %v6313_v41 = vsel %vm2583_vm10, %v6272_v15, %v13540_v61 }
 0x4fd   : > { %v6377_v21 = vsel %vm2648_vm11, %v6313_v41, %v5705_v36  ;;  %v6274_v36 = vsel %vm2518_vm9, %v6221_v34, %v12577_v3  ;;  %v6019_v41 = vrot.slane %v13573_v56, 2 }
 0x4fe   : > { %v5931_v59 = vpop.permute.xlu1 %5930  ;;  %v6441_v28 = vsel %vm2713_vm12, %v6377_v21, %v5801_v11  ;;  %v6317_v11 = vsel %vm2583_vm10, %v6274_v36, %v13547_v0  ;;  %v8204_v21 = vld [vmem:[#allocation2 + $0x210] sm:$0xff] }
 0x4ff   : > { %v5929_v31 = vpop.permute.xlu0 %5928  ;;  %5822 = vrot.lane.b32.xlu1 %v8263_v33, %s9098_s24  ;;  %v6223_v33 = vsel %vm2453_vm8, %v6139_v50, %v13531_v47 }
 0x500   : > { %5820 = vrot.lane.b32.xlu0 %v8262_v12, %s9098_s24  ;;  %v6315_v12 = vsel %vm2583_vm10, %v6273_v26, %v13537_v39  ;;  %v6017_v39 = vrot.slane %v8261_v6, 2  ;;  %v6275_v50 = vsel %vm2518_vm9, %v6223_v33, %v16368_v14  ;;  %v8265_v6 = vld [vmem:[#allocation2 + $0x678] sm:$0xff] }
 0x501   : > { %v6379_v45 = vsel %vm2648_vm11, %v6315_v12, %v5707_v5  ;;  %v5893_v5 = vsel %vm2940_vm15, %v5891_v42, %v5892_v9  ;;  %v6020_v34 = vrot.slane %v8265_v6, 2  ;;  %v8208_v6 = vld [vmem:[#allocation2 + $0x230] sm:$0xff] }
 0x502   : > { %v5935_v37 = vpop.permute.xlu1 %5934  ;;  %v6443_v47 = vsel %vm2713_vm12, %v6379_v45, %v5803_v17  ;;  %v6505_v17 = vsel %vm2778_vm13, %v6441_v28, %v5929_v31  ;;  %v6018_v12 = vsel %vm5415_vm6, %v6016_v44, %v6017_v39 }
 0x503   : > { %v5933_v1 = vpop.permute.xlu0 %5932  ;;  %5946 = vrot.lane.b32.xlu1 %v5889_v46, %s9100_s20  ;;  %v6507_v26 = vsel %vm2778_vm13, %v6443_v47, %v5931_v59  ;;  %v6319_v46 = vsel %vm2583_vm10, %v6275_v50, %v13544_v18  ;;  %v6381_v18 = vsel %vm2648_vm11, %v6317_v11, %v13557_v4  ;;  %v8203_v47 = vld [vmem:[#allocation2 + $0x208] sm:$0xff] }
 0x504   : > { %5944 = vrot.lane.b32.xlu0 %v5890_v60, %s9100_s20  ;;  %v6383_v59 = vsel %vm2648_vm11, %v6319_v46, %v13554_v20  ;;  %v6445_v0 = vsel %vm2713_vm12, %v6381_v18, %v5805_v32  ;;  %v5317_v28 = vrot.slane %v8203_v47, 1  ;;  %v8207_v11 = vld [vmem:[#allocation2 + $0x228] sm:$0xff] }
 0x505   : > { %v6447_v31 = vsel %vm2713_vm12, %v6383_v59, %v5807_v29  ;;  %v5320_v18 = vrot.slane %v8207_v11, 1 }
 0x506   : > { %v6059_v61 = vpop.permute.xlu1 %6058  ;;  %v6511_v15 = vsel %vm2778_vm13, %v6447_v31, %v5935_v37  ;;  %v6021_v37 = vsel %vm5415_vm6, %v6019_v41, %v6020_v34 }
 0x507   : > { %v6571_v19 = vsel %vm2843_vm14, %v6507_v26, %v6059_v61  ;;  %v6057_v60 = vpop.permute.xlu0 %6056  ;;  %5950 = vrot.lane.b32.xlu1 %v5892_v9, %s9100_s20  ;;  %v6509_v9 = vsel %vm2778_vm13, %v6445_v0, %v5933_v1  ;;  %v5318_v1 = vrot.slane %v8204_v21, 1  ;;  %v8085_v26 = vld [vmem:[#allocation2 + $0x4d8] sm:$0xff] }
 0x508   : > { %v6661_v53 = vrot.slane %v6571_v19, 3  ;;  %v6569_v42 = vsel %vm2843_vm14, %v6505_v17, %v6057_v60  ;;  %5948 = vrot.lane.b32.xlu0 %v5893_v5, %s9100_s20  ;;  %v4137_v36 = vrot.slane %v8085_v26, 4 }
 0x509   : > { %v6660_v33 = vrot.slane %v6569_v42, 3  ;;  %v5319_v19 = vsel %vm2940_vm15, %v5317_v28, %v5318_v1  ;;  %v5321_v42 = vrot.slane %v8208_v6, 1 }
 0x50a   : > { %v6063_v20 = vpop.permute.xlu1 %6062 }
 0x50b   : > { %v6575_v45 = vsel %vm2843_vm14, %v6511_v15, %v6063_v20  ;;  %v6061_v4 = vpop.permute.xlu0 %6060  ;;  %v6662_v29 = vsel %vm1523_vm1, %v6660_v33, %v6661_v53  ;;  %6074 = vrot.lane.b32.xlu1 %v6017_v39, %s9101_s13  ;;  %v9006_v39 = vld [vmem:[#allocation2 + $0x4d0] sm:$0xff]  ;;  %v8205_v33 = vld [vmem:[#allocation2 + $0x218] sm:$0xff]  ;;  %v5322_v0 = vsel %vm2940_vm15, %v5320_v18, %v5321_v42  ;;  %v5446_v20 = vrot.slane %v8204_v21, 2 }
 0x50c   : > { %v6664_v50 = vrot.slane %v6575_v45, 3  ;;  %v6573_v44 = vsel %vm2843_vm14, %v6509_v9, %v6061_v4  ;;  %8680 = vmatprep.mubr.msk.bf16.mxu1 %vm3013_vm2, %v6662_v29  ;;  %6072 = vrot.lane.b32.xlu0 %v6018_v12, %s9101_s13  ;;  %v4136_v46 = vrot.slane %v9006_v39, 4  ;;  %v5447_v15 = vrot.slane %v8205_v33, 2  ;;  %v9007_v9 = vld [vmem:[#allocation2 + $0x4f0] sm:$0xff]  ;;  %v9011_v33 = vld [vmem:[#allocation2 + $0x468] sm:$0xff] }
 0x50d   : > { %v6663_v32 = vrot.slane %v6573_v44, 3  ;;  %v4139_v45 = vrot.slane %v9007_v9, 4  ;;  %v8209_v44 = vld [vmem:[#allocation2 + $0x238] sm:$0xff]  ;;  %v9008_v39 = vld [vmem:[#allocation2 + $0x450] sm:$0xff] }
 0x50e   : > { %v13635_v56 = vpop.permute.xlu1 %5361  ;;  %v4138_v59 = vsel %vm856_vm5, %v4136_v46, %v4137_v36  ;;  %v5448_v47 = vsel %vm5415_vm6, %v5446_v20, %v5447_v15  ;;  %v9009_v36 = vld [vmem:[#allocation2 + $0x448] sm:$0xff]  ;;  %v9012_v9 = vld [vmem:[#allocation2 + $0x458] sm:$0xff] }
 0x50f   : > { %v13638_v61 = vpop.permute.xlu0 %5359  ;;  %v6665_v5 = vsel %vm1523_vm1, %v6663_v32, %v6664_v50  ;;  %6078 = vrot.lane.b32.xlu1 %v6020_v34, %s9101_s13  ;;  %v8089_v34 = vld [vmem:[#allocation2 + $0x4f8] sm:$0xff] }
 0x510   : > { %8681 = vmatmul.mubr.msk.bf16.gmra.mrb[76].mxu1 %vm3013_vm2, %v6665_v5  ;;  %6076 = vrot.lane.b32.xlu0 %v6021_v37, %s9101_s13  ;;  %v4140_v4 = vrot.slane %v8089_v34, 4  ;;  %v5450_v37 = vrot.slane %v8209_v44, 2 }
 0x512   : > { %v13644_v17 = vpop.permute.xlu1 %5365  ;;  %v4141_v21 = vsel %vm856_vm5, %v4139_v45, %v4140_v4  ;;  %v5670_v4 = vrot.slane %v9008_v39, 2 }
 0x513   : > { %v13647_v60 = vpop.permute.xlu0 %5363  ;;  %5377 = vrot.lane.b32.xlu1 %v5318_v1, %s9091_s17  ;;  %v5449_v1 = vrot.slane %v8208_v6, 2 }
 0x514   : > { %5375 = vrot.lane.b32.xlu0 %v5319_v19, %s9091_s17  ;;  %v5558_v19 = vrot.slane %v9009_v36, 1  ;;  %v8186_v36 = vld [vmem:[#allocation2 + $0x180] sm:$0xff] }
 0x515   : > { %v5451_v5 = vsel %vm5415_vm6, %v5449_v1, %v5450_v37 }
 0x516   : > { %v13652_v53 = vpop.permute.xlu1 %5490 }
 0x517   : > { %v13654_v31 = vpop.permute.xlu0 %5488  ;;  %4188 = vrot.lane.b32.xlu1 %v4138_v59, %s9101_s13 }
 0x518   : > { %4186 = vrot.lane.b32.xlu0 %v4136_v46, %s9101_s13  ;;  %v5559_v46 = vrot.slane %v9008_v39, 1  ;;  %v6145_v39 = vsel %vm361_vm0, %v13301_v49, %v13635_v56  ;;  %v6151_v49 = vsel %vm361_vm0, %v13332_v10, %v13644_v17  ;;  %v16369_v56 = vld [vmem:[#allocation105_spill] sm:$0xff] }
 0x519   : > { %v9014_v10 = vld [vmem:[#allocation2 + $0x188] sm:$0xff] }
 0x51a   : > { %v13658_v12 = vpop.permute.xlu1 %5494  ;;  %v5560_v6 = vsel %vm2940_vm15, %v5558_v19, %v5559_v46  ;;  %v4247_v17 = vsel %vm361_vm0, %v9014_v10, %v12181_v30  ;;  %v8271_v30 = vld [vmem:[#allocation2 + $0x6a8] sm:$0xff] }
 0x51b   : > { %v13661_v41 = vpop.permute.xlu0 %5492  ;;  %5381 = vrot.lane.b32.xlu1 %v5321_v42, %s9091_s17  ;;  %v9010_v42 = vld [vmem:[#allocation2 + $0x470] sm:$0xff]  ;;  %v5897_v10 = vrot.slane %v8271_v30, 1 }
 0x51c   : > { %5379 = vrot.lane.b32.xlu0 %v5322_v0, %s9091_s17  ;;  %v5562_v18 = vrot.slane %v9010_v42, 1  ;;  %v5561_v0 = vrot.slane %v9011_v33, 1  ;;  %v6227_v33 = vsel %vm2453_vm8, %v6145_v39, %v13652_v53 }
 0x51e   : > { %v13665_v29 = vpop.permute.xlu1 %5602  ;;  %v5563_v34 = vsel %vm2940_vm15, %v5561_v0, %v5562_v18  ;;  %v8190_v0 = vld [vmem:[#allocation2 + $0x1a0] sm:$0xff] }
 0x51f   : > { %v13668_v50 = vpop.permute.xlu0 %5600  ;;  %5506 = vrot.lane.b32.xlu1 %v5447_v15, %s9092_s18  ;;  %v6148_v53 = vsel %vm361_vm0, %v8190_v0, %v13647_v60 }
 0x520   : > { %5504 = vrot.lane.b32.xlu0 %v5448_v47, %s9092_s18 }
 0x522   : > { %v13673_v32 = vpop.permute.xlu1 %5606 }
 0x523   : > { %v13675_v28 = vpop.permute.xlu0 %5604  ;;  %4192 = vrot.lane.b32.xlu1 %v4141_v21, %s9101_s13 }
 0x524   : > { %4190 = vrot.lane.b32.xlu0 %v4139_v45, %s9101_s13  ;;  %v5671_v45 = vrot.slane %v9012_v9, 2  ;;  %v8267_v9 = vld [vmem:[#allocation2 + $0x688] sm:$0xff] }
 0x526   : > { %v5715_v26 = vpop.permute.xlu1 %5714  ;;  %v5672_v21 = vsel %vm5415_vm6, %v5670_v4, %v5671_v45  ;;  %v8266_v4 = vld [vmem:[#allocation2 + $0x680] sm:$0xff] }
 0x527   : > { %v5713_v11 = vpop.permute.xlu0 %5712  ;;  %5510 = vrot.lane.b32.xlu1 %v5450_v37, %s9092_s18  ;;  %v9013_v37 = vld [vmem:[#allocation2 + $0x478] sm:$0xff] }
 0x528   : > { %5508 = vrot.lane.b32.xlu0 %v5451_v5, %s9092_s18  ;;  %v5674_v1 = vrot.slane %v9013_v37, 2  ;;  %v5673_v5 = vrot.slane %v9010_v42, 2 }
 0x52a   : > { %v13682_v59 = vpop.permute.xlu1 %5718 }
 0x52b   : > { %v13685_v15 = vpop.permute.xlu0 %5716  ;;  %5618 = vrot.lane.b32.xlu1 %v5559_v46, %s9096_s22 }
 0x52c   : > { %5616 = vrot.lane.b32.xlu0 %v5560_v6, %s9096_s22  ;;  %v5675_v6 = vsel %vm5415_vm6, %v5673_v5, %v5674_v1  ;;  %v13720_v5 = vld [vmem:[#allocation2 + $0x690] sm:$0xff] }
 0x52e   : > { %v5811_v20 = vpop.permute.xlu1 %5810 }
 0x52f   : > { %v5809_v47 = vpop.permute.xlu0 %5808  ;;  %5622 = vrot.lane.b32.xlu1 %v5562_v18, %s9096_s22  ;;  %v6142_v18 = vsel %vm361_vm0, %v8186_v36, %v13638_v61  ;;  %v6277_v61 = vsel %vm2518_vm9, %v6227_v33, %v16369_v56  ;;  %v6229_v36 = vsel %vm2453_vm8, %v6148_v53, %v13661_v41  ;;  %v16370_v33 = vld [vmem:[#allocation106_spill] sm:$0xff] }
 0x530   : > { %5620 = vrot.lane.b32.xlu0 %v5563_v34, %s9096_s22  ;;  %v6225_v34 = vsel %vm2453_vm8, %v6142_v18, %v13654_v31  ;;  %v6231_v31 = vsel %vm2453_vm8, %v6151_v49, %v13658_v12  ;;  %v5894_v18 = vrot.slane %v8267_v9, 1  ;;  %v5895_v49 = vrot.slane %v13720_v5, 1 }
 0x531   : > { %v6276_v37 = vsel %vm2518_vm9, %v6225_v34, %v12588_v8  ;;  %v6279_v41 = vsel %vm2518_vm9, %v6231_v31, %v16370_v33  ;;  %v8270_v34 = vld [vmem:[#allocation2 + $0x6a0] sm:$0xff] }
 0x532   : > { %v5815_v44 = vpop.permute.xlu1 %5814  ;;  %v6321_v60 = vsel %vm2583_vm10, %v6276_v37, %v13668_v50 }
 0x533   : > { %v5813_v46 = vpop.permute.xlu0 %5812  ;;  %5730 = vrot.lane.b32.xlu1 %v5671_v45, %s9097_s23  ;;  %v6385_v39 = vsel %vm2648_vm11, %v6321_v60, %v5713_v11  ;;  %v6278_v11 = vsel %vm2518_vm9, %v6229_v36, %v12586_v22  ;;  %v5896_v36 = vsel %vm2940_vm15, %v5894_v18, %v5895_v49 }
 0x534   : > { %5728 = vrot.lane.b32.xlu0 %v5672_v21, %s9097_s23  ;;  %v6323_v21 = vsel %vm2583_vm10, %v6277_v61, %v13665_v29  ;;  %v4341_v29 = vsel %vm2453_vm8, %v4247_v17, %v12405_v48  ;;  %v6449_v50 = vsel %vm2713_vm12, %v6385_v39, %v5809_v47  ;;  %v6327_v48 = vsel %vm2583_vm10, %v6279_v41, %v13673_v32  ;;  %v8010_v32 = vld [vmem:[#allocation2 + $0x180] sm:$0xff] }
 0x535   : > { %v6387_v12 = vsel %vm2648_vm11, %v6323_v21, %v5715_v26  ;;  %v6325_v47 = vsel %vm2583_vm10, %v6278_v11, %v13675_v28 }
 0x536   : > { %v5939_v19 = vpop.permute.xlu1 %5938 }
 0x537   : > { %v5937_v42 = vpop.permute.xlu0 %5936  ;;  %5734 = vrot.lane.b32.xlu1 %v5674_v1, %s9097_s23 }
 0x538   : > { %5732 = vrot.lane.b32.xlu0 %v5675_v6, %s9097_s23  ;;  %v6451_v6 = vsel %vm2713_vm12, %v6387_v12, %v5811_v20  ;;  %v6513_v20 = vsel %vm2778_vm13, %v6449_v50, %v5937_v42  ;;  %v6389_v42 = vsel %vm2648_vm11, %v6325_v47, %v13685_v15 }
 0x539   : > { %v6515_v26 = vsel %vm2778_vm13, %v6451_v6, %v5939_v19  ;;  %v6391_v19 = vsel %vm2648_vm11, %v6327_v48, %v13682_v59  ;;  %v6453_v28 = vsel %vm2713_vm12, %v6389_v42, %v5813_v46  ;;  %v8269_v6 = vld [vmem:[#allocation2 + $0x698] sm:$0xff]  ;;  %v9015_v42 = vld [vmem:[#allocation2 + $0x1a8] sm:$0xff] }
 0x53a   : > { %v5943_v45 = vpop.permute.xlu1 %5942  ;;  %v6455_v21 = vsel %vm2713_vm12, %v6391_v19, %v5815_v44  ;;  %v8273_v48 = vld [vmem:[#allocation2 + $0x6b8] sm:$0xff] }
 0x53b   : > { %v5941_v1 = vpop.permute.xlu0 %5940  ;;  %5826 = vrot.lane.b32.xlu1 %v8267_v9, %s9098_s24  ;;  %v6519_v17 = vsel %vm2778_vm13, %v6455_v21, %v5943_v45  ;;  %v16372_v21 = vld [vmem:[#allocation185_spill] sm:$0xff] }
 0x53c   : > { %5824 = vrot.lane.b32.xlu0 %v8266_v4, %s9098_s24  ;;  %v13746_v4 = vld [vmem:[#allocation2 + $0x6b0] sm:$0xff]  ;;  %v6517_v12 = vsel %vm2778_vm13, %v6453_v28, %v5941_v1  ;;  %v4404_v1 = vsel %vm2518_vm9, %v4341_v29, %v16363_v23 }
 0x53d   : > { %v5898_v60 = vrot.slane %v13746_v4, 1 }
 0x53e   : > { %v6067_v0 = vpop.permute.xlu1 %6066 }
 0x53f   : > { %v6579_v9 = vsel %vm2843_vm14, %v6515_v26, %v6067_v0  ;;  %v6065_v61 = vpop.permute.xlu0 %6064  ;;  %5830 = vrot.lane.b32.xlu1 %v8271_v30, %s9098_s24  ;;  %v4244_v30 = vsel %vm361_vm0, %v8010_v32, %v12183_v40  ;;  %v5899_v26 = vsel %vm2940_vm15, %v5897_v10, %v5898_v60  ;;  %v6023_v0 = vrot.slane %v8269_v6, 2 }
 0x540   : > { %v6667_v53 = vrot.slane %v6579_v9, 3  ;;  %v6577_v31 = vsel %vm2843_vm14, %v6513_v20, %v6065_v61  ;;  %5828 = vrot.lane.b32.xlu0 %v8270_v34, %s9098_s24  ;;  %v4339_v45 = vsel %vm2453_vm8, %v4244_v30, %v12407_v25  ;;  %v6022_v34 = vrot.slane %v13720_v5, 2  ;;  %v16371_v61 = vld [vmem:[#allocation9_spill] sm:$0xff] }
 0x541   : > { %v6666_v37 = vrot.slane %v6577_v31, 3  ;;  %v4403_v50 = vsel %vm2518_vm9, %v4339_v45, %v12561_v35  ;;  %v6026_v9 = vrot.slane %v8273_v48, 2  ;;  %v9016_v30 = vld [vmem:[#allocation2 + $0x510] sm:$0xff]  ;;  %v16375_v45 = vld [vmem:[#allocation31_spill] sm:$0xff] }
 0x542   : > { %v6071_v59 = vpop.permute.xlu1 %6070  ;;  %v4451_v25 = vsel %vm2583_vm10, %v4403_v50, %v12641_v51  ;;  %v8216_v48 = vld [vmem:[#allocation2 + $0x270] sm:$0xff] }
 0x543   : > { %v6583_v39 = vsel %vm2843_vm14, %v6519_v17, %v6071_v59  ;;  %v6069_v15 = vpop.permute.xlu0 %6068  ;;  %v6668_v44 = vsel %vm1523_vm1, %v6666_v37, %v6667_v53  ;;  %5954 = vrot.lane.b32.xlu1 %v5895_v49, %s9100_s20  ;;  %v4453_v49 = vsel %vm2583_vm10, %v4404_v1, %v12638_v52  ;;  %v4515_v11 = vsel %vm2648_vm11, %v4451_v25, %v12862_v63  ;;  %v13806_v53 = vld [vmem:[#allocation2 + $0x250] sm:$0xff]  ;;  %v8014_v37 = vld [vmem:[#allocation2 + $0x1a0] sm:$0xff] }
 0x544   : > { %v6670_v41 = vrot.slane %v6583_v39, 3  ;;  %v6581_v46 = vsel %vm2843_vm14, %v6517_v12, %v6069_v15  ;;  %8684 = vmatprep.mubr.msk.bf16.mxu1 %vm3013_vm2, %v6668_v44  ;;  %5952 = vrot.lane.b32.xlu0 %v5896_v36, %s9100_s20  ;;  %v4517_v35 = vsel %vm2648_vm11, %v4453_v49, %v12860_v57  ;;  %v4579_v51 = vsel %vm2713_vm12, %v4515_v11, %v13000_v13  ;;  %v8211_v13 = vld [vmem:[#allocation2 + $0x248] sm:$0xff]  ;;  %v8093_v36 = vld [vmem:[#allocation2 + $0x518] sm:$0xff] }
 0x545   : > { %v6669_v18 = vrot.slane %v6581_v46, 3  ;;  %v4581_v52 = vsel %vm2713_vm12, %v4517_v35, %v12998_v27  ;;  %v6024_v57 = vsel %vm5415_vm6, %v6022_v34, %v6023_v0  ;;  %v6025_v63 = vrot.slane %v13746_v4, 2  ;;  %v16374_v44 = vld [vmem:[#allocation54_spill] sm:$0xff]  ;;  %v8215_v35 = vld [vmem:[#allocation2 + $0x268] sm:$0xff] }
 0x546   : > { %v13777_v40 = vpop.permute.xlu1 %5369  ;;  %v4645_v5 = vsel %vm2778_vm13, %v4581_v52, %v13135_v24  ;;  %v4643_v47 = vsel %vm2778_vm13, %v4579_v51, %v16371_v61  ;;  %v4253_v4 = vsel %vm361_vm0, %v9015_v42, %v16372_v21  ;;  %v5324_v17 = vrot.slane %v13806_v53, 1  ;;  %v16377_v49 = vld [vmem:[#allocation258_spill] sm:$0xff]  ;;  %v16378_v11 = vld [vmem:[#allocation180_spill] sm:$0xff]  ;;  %v16379_v51 = vld [vmem:[#allocation163_spill] sm:$0xff] }
 0x547   : > { %v13785_v23 = vpop.permute.xlu0 %5367  ;;  %v6671_v29 = vsel %vm1523_vm1, %v6669_v18, %v6670_v41  ;;  %5958 = vrot.lane.b32.xlu1 %v5898_v60, %s9100_s20  ;;  %v6027_v28 = vsel %vm5415_vm6, %v6025_v63, %v6026_v9  ;;  %v5323_v59 = vrot.slane %v8211_v13, 1  ;;  %v16373_v60 = vld [vmem:[#allocation29_spill] sm:$0xff]  ;;  %v4250_v6 = vsel %vm361_vm0, %v8014_v37, %v16374_v44  ;;  %v16382_v61 = vld [vmem:[#allocation247_spill] sm:$0xff] }
 0x548   : > { %8685 = vmatmul.mubr.msk.bf16.gmra.mrb[80].mxu1 %vm3013_vm2, %v6671_v29  ;;  %5956 = vrot.lane.b32.xlu0 %v5899_v26, %s9100_s20  ;;  %v4345_v12 = vsel %vm2453_vm8, %v4253_v4, %v16373_v60  ;;  %v4142_v41 = vrot.slane %v9016_v30, 4  ;;  %v4143_v46 = vrot.slane %v8093_v36, 4  ;;  %v4343_v1 = vsel %vm2453_vm8, %v4250_v6, %v16375_v45  ;;  %v8213_v37 = vld [vmem:[#allocation2 + $0x258] sm:$0xff] }
 0x549   : > { %v4407_v18 = vsel %vm2518_vm9, %v4345_v12, %v16364_v62  ;;  %v5325_v26 = vsel %vm2940_vm15, %v5323_v59, %v5324_v17  ;;  %v5453_v12 = vrot.slane %v8213_v37, 2  ;;  %v8097_v44 = vld [vmem:[#allocation2 + $0x538] sm:$0xff] }
 0x54a   : > { %v4181_v20 = vpop.permute.xlu1 %4180  ;;  %v4457_v25 = vsel %vm2583_vm10, %v4407_v18, %v16377_v49  ;;  %v4144_v63 = vsel %vm856_vm5, %v4142_v41, %v4143_v46  ;;  %v9017_v46 = vld [vmem:[#allocation2 + $0x530] sm:$0xff]  ;;  %v4146_v45 = vrot.slane %v8097_v44, 4 }
 0x54b   : > { %v4709_v19 = vsel %vm2843_vm14, %v4645_v5, %v4181_v20  ;;  %v4179_v27 = vpop.permute.xlu0 %4178  ;;  %6082 = vrot.lane.b32.xlu1 %v6023_v0, %s9101_s13  ;;  %v16376_v0 = vld [vmem:[#allocation254_spill] sm:$0xff]  ;;  %v4521_v62 = vsel %vm2648_vm11, %v4457_v25, %v16379_v51  ;;  %v16380_v5 = vld [vmem:[#allocation149_spill] sm:$0xff]  ;;  %v5455_v25 = vrot.slane %v8216_v48, 2 }
 0x54c   : > { %v4803_v31 = vrot.slane %v4709_v19, 6  ;;  %v4707_v32 = vsel %vm2843_vm14, %v4643_v47, %v4179_v27  ;;  %6080 = vrot.lane.b32.xlu0 %v6024_v57, %s9101_s13  ;;  %v4406_v34 = vsel %vm2518_vm9, %v4343_v1, %v16376_v0  ;;  %v16381_v57 = vld [vmem:[#allocation246_spill] sm:$0xff]  ;;  %v16383_v19 = vld [vmem:[#allocation32_spill] sm:$0xff] }
 0x54d   : > { %v4802_v24 = vrot.slane %v4707_v32, 6  ;;  %v4455_v52 = vsel %vm2583_vm10, %v4406_v34, %v16378_v11  ;;  %v5326_v32 = vrot.slane %v8215_v35, 1  ;;  %v9018_v51 = vld [vmem:[#allocation2 + $0x490] sm:$0xff] }
 0x54e   : > { %v13813_v10 = vpop.permute.xlu1 %5373  ;;  %v4519_v20 = vsel %vm2648_vm11, %v4455_v52, %v16380_v5  ;;  %v9019_v5 = vld [vmem:[#allocation2 + $0x488] sm:$0xff] }
 0x54f   : > { %v13819_v39 = vpop.permute.xlu0 %5371  ;;  %v4804_v15 = vsel %vm1222_vm4, %v4802_v24, %v4803_v31  ;;  %6086 = vrot.lane.b32.xlu1 %v6026_v9, %s9101_s13  ;;  %v4585_v9 = vsel %vm2713_vm12, %v4521_v62, %v16381_v57  ;;  %v4583_v47 = vsel %vm2713_vm12, %v4519_v20, %v16382_v61  ;;  %v5327_v31 = vrot.slane %v8216_v48, 1  ;;  %v16384_v24 = vld [vmem:[#allocation12_spill] sm:$0xff] }
 0x550   : > { %8634 = vmatprep.mubr.msk.bf16.mxu0 %vm3013_vm2, %v4804_v15  ;;  %6084 = vrot.lane.b32.xlu0 %v6027_v28, %s9101_s13  ;;  %v4649_v27 = vsel %vm2778_vm13, %v4585_v9, %v16383_v19  ;;  %v4647_v42 = vsel %vm2778_vm13, %v4583_v47, %v16384_v24  ;;  %v5452_v15 = vrot.slane %v13806_v53, 2  ;;  %v8217_v53 = vld [vmem:[#allocation2 + $0x278] sm:$0xff]  ;;  %v5565_v62 = vrot.slane %v9018_v51, 1  ;;  %v9021_v47 = vld [vmem:[#allocation2 + $0x4a8] sm:$0xff] }
 0x551   : > { %v5328_v60 = vsel %vm2940_vm15, %v5326_v32, %v5327_v31  ;;  %v5456_v49 = vrot.slane %v8217_v53, 2  ;;  %v5564_v20 = vrot.slane %v9019_v5, 1  ;;  %v5567_v19 = vrot.slane %v9021_v47, 1 }
 0x552   : > { %v13831_v50 = vpop.permute.xlu1 %5498  ;;  %v5454_v18 = vsel %vm5415_vm6, %v5452_v15, %v5453_v12 }
 0x553   : > { %v13838_v29 = vpop.permute.xlu0 %5496  ;;  %5385 = vrot.lane.b32.xlu1 %v5324_v17, %s9091_s17  ;;  %v5457_v52 = vsel %vm5415_vm6, %v5455_v25, %v5456_v49  ;;  %v5566_v9 = vsel %vm2940_vm15, %v5564_v20, %v5565_v62  ;;  %v8198_v20 = vld [vmem:[#allocation2 + $0x1e0] sm:$0xff] }
 0x554   : > { %5383 = vrot.lane.b32.xlu0 %v5325_v26, %s9091_s17 }
 0x556   : > { %v4185_v13 = vpop.permute.xlu1 %4184 }
 0x557   : > { %v4713_v21 = vsel %vm2843_vm14, %v4649_v27, %v4185_v13  ;;  %v4183_v4 = vpop.permute.xlu0 %4182  ;;  %4196 = vrot.lane.b32.xlu1 %v4144_v63, %s9101_s13  ;;  %v9020_v63 = vld [vmem:[#allocation2 + $0x4b0] sm:$0xff]  ;;  %v16385_v13 = vld [vmem:[#allocation55_spill] sm:$0xff] }
 0x558   : > { %v4806_v28 = vrot.slane %v4713_v21, 6  ;;  %v4711_v17 = vsel %vm2843_vm14, %v4647_v42, %v4183_v4  ;;  %4194 = vrot.lane.b32.xlu0 %v4142_v41, %s9101_s13  ;;  %v4145_v41 = vrot.slane %v9017_v46, 4  ;;  %v5568_v61 = vrot.slane %v9020_v63, 1  ;;  %v9022_v42 = vld [vmem:[#allocation2 + $0x498] sm:$0xff] }
 0x559   : > { %v4805_v59 = vrot.slane %v4711_v17, 6  ;;  %v5677_v21 = vrot.slane %v9022_v42, 2  ;;  %v5676_v4 = vrot.slane %v9018_v51, 2  ;;  %v5679_v44 = vrot.slane %v9020_v63, 2  ;;  %v16386_v42 = vld [vmem:[#allocation107_spill] sm:$0xff] }
 0x55a   : > { %v13861_v36 = vpop.permute.xlu1 %5502  ;;  %v4147_v0 = vsel %vm856_vm5, %v4145_v41, %v4146_v45  ;;  %v5569_v24 = vsel %vm2940_vm15, %v5567_v19, %v5568_v61 }
 0x55b   : > { %v13865_v6 = vpop.permute.xlu0 %5500  ;;  %v4807_v30 = vsel %vm1222_vm4, %v4805_v59, %v4806_v28  ;;  %5389 = vrot.lane.b32.xlu1 %v5327_v31, %s9091_s17  ;;  %v6704_v31 = vsub.s32 3, %v16385_v13  ;;  %v9023_v28 = vld [vmem:[%s15348_s3] sm:$0xf] }
 0x55c   : > { %8635 = vmatmul.mubr.msk.bf16.vlgmr.msra.gmra.mrb[4].mxu0 %vm3013_vm2, %v4807_v30  ;;  %5387 = vrot.lane.b32.xlu0 %v5328_v60, %s9091_s17  ;;  %v5678_v60 = vsel %vm5415_vm6, %v5676_v4, %v5677_v21 }
 0x55d   : > { %v13909_v17 = vrot.slane %v9023_v28, %v6704_v31  ;;  %v8274_v28 = vld [vmem:[#allocation2 + $0x6c0] sm:$0xff] }
 0x55e   : > { %v13871_v1 = vpop.permute.xlu1 %5610 }
 0x55f   : > { %v13874_v26 = vpop.permute.xlu0 %5608  ;;  %5514 = vrot.lane.b32.xlu1 %v5453_v12, %s9092_s18  ;;  %v9024_v12 = vld [vmem:[#allocation2 + $0x4b8] sm:$0xff] }
 0x560   : > { %5512 = vrot.lane.b32.xlu0 %v5454_v18, %s9092_s18  ;;  %v5680_v15 = vrot.slane %v9024_v12, 2 }
 0x562   : > { %v13879_v34 = vpop.permute.xlu1 %5614 }
 0x563   : > { %v13881_v35 = vpop.permute.xlu0 %5612  ;;  %4200 = vrot.lane.b32.xlu1 %v4147_v0, %s9101_s13 }
 0x564   : > { %4198 = vrot.lane.b32.xlu0 %v4145_v41, %s9101_s13  ;;  %v8194_v41 = vld [vmem:[#allocation2 + $0x1c0] sm:$0xff] }
 0x565   : > { %v6154_v5 = vsel %vm361_vm0, %v8194_v41, %v13785_v23  ;;  %v6163_v23 = vsel %vm361_vm0, %v13494_v16, %v13813_v10  ;;  %v16388_v41 = vld [vmem:[#allocation196_spill] sm:$0xff] }
 0x566   : > { %v13885_v11 = vpop.permute.xlu1 %5722  ;;  %v6233_v47 = vsel %vm2453_vm8, %v6154_v5, %v13838_v29 }
 0x567   : > { %v13888_v57 = vpop.permute.xlu0 %5720  ;;  %5518 = vrot.lane.b32.xlu1 %v5456_v49, %s9092_s18  ;;  %v6157_v49 = vsel %vm361_vm0, %v13438_v58, %v13777_v40 }
 0x568   : > { %5516 = vrot.lane.b32.xlu0 %v5457_v52, %s9092_s18 }
 0x56a   : > { %v13892_v48 = vpop.permute.xlu1 %5726 }
 0x56b   : > { %v13895_v27 = vpop.permute.xlu0 %5724  ;;  %5626 = vrot.lane.b32.xlu1 %v5565_v62, %s9096_s22  ;;  %v5681_v62 = vsel %vm5415_vm6, %v5679_v44, %v5680_v15 }
 0x56c   : > { %5624 = vrot.lane.b32.xlu0 %v5566_v9, %s9096_s22  ;;  %v6235_v9 = vsel %vm2453_vm8, %v6157_v49, %v13831_v50  ;;  %v6160_v50 = vsel %vm361_vm0, %v8198_v20, %v13819_v39  ;;  %v13952_v39 = vld [vmem:[#allocation2 + $0x6d0] sm:$0xff] }
 0x56e   : > { %v13900_v32 = vpop.permute.xlu1 %5818 }
 0x56f   : > { %v13903_v37 = vpop.permute.xlu0 %5816  ;;  %5630 = vrot.lane.b32.xlu1 %v5568_v61, %s9096_s22 }
 0x570   : > { %5628 = vrot.lane.b32.xlu0 %v5569_v24, %s9096_s22  ;;  %v8275_v24 = vld [vmem:[#allocation2 + $0x6c8] sm:$0xff] }
 0x572   : > { %v13912_v59 = vpop.permute.xlu1 %5822 }
 0x573   : > { %v13915_v30 = vpop.permute.xlu0 %5820  ;;  %v8674_v46 = vpop.f32.mrb[68].mxu1  ;;  %5738 = vrot.lane.b32.xlu1 %v5677_v21, %s9097_s23  ;;  %v6281_v21 = vsel %vm2518_vm9, %v6235_v9, %v16386_v42  ;;  %v8278_v9 = vld [vmem:[#allocation2 + $0x6e0] sm:$0xff] }
 0x574   : > { %v6815_v45 = vadd.f32 %v8674_v46, %v13909_v17  ;;  %v6806_v18 = vpop.f32.mrb[69].mxu1  ;;  %5736 = vrot.lane.b32.xlu0 %v5678_v60, %s9097_s23  ;;  %v6239_v60 = vsel %vm2453_vm8, %v6163_v23, %v13861_v36  ;;  %v6331_v12 = vsel %vm2583_vm10, %v6281_v21, %v13871_v1  ;;  %v9025_v46 = vld [vmem:[#allocation2 + $0x1c8] sm:$0xff] }
 0x575   : > { %v6807_v53 = vadd.f32 %v6806_v18, %v13909_v17  ;;  %v8675_v0 = vpop.f32.mrb[70].mxu1  ;;  %v6237_v18 = vsel %vm2453_vm8, %v6160_v50, %v13865_v6  ;;  %v6395_v1 = vsel %vm2648_vm11, %v6331_v12, %v13885_v11  ;;  %v8279_v6 = vld [vmem:[#allocation2 + $0x6e8] sm:$0xff] }
 0x576   : > { %v6818_v25 = vadd.f32 %v8675_v0, %v13909_v17  ;;  %v6809_v52 = vpop.f32.mrb[71].mxu1  ;;  %v5947_v51 = vpop.permute.xlu1 %5946  ;;  %v6935_v58 = vmax.f32 %v6815_v45, 0.0  ;;  %v4259_v45 = vsel %vm361_vm0, %v9025_v46, %v16388_v41 }
 0x577   : > { %v6810_v63 = vadd.f32 %v6809_v52, %v13909_v17  ;;  %v5945_v61 = vpop.permute.xlu0 %5944  ;;  %5742 = vrot.lane.b32.xlu1 %v5680_v15, %s9097_s23  ;;  %v6933_v19 = vmax.f32 %v6807_v53, 0.0  ;;  %v16387_v15 = vld [vmem:[#allocation137_spill] sm:$0xff]  ;;  %v16389_v53 = vld [vmem:[#allocation110_spill] sm:$0xff]  ;;  %v5900_v52 = vrot.slane %v8275_v24, 1 }
 0x578   : > { %v6936_v40 = vmax.f32 %v6818_v25, 0.0  ;;  %5740 = vrot.lane.b32.xlu0 %v5681_v62, %s9097_s23  ;;  %v6280_v44 = vsel %vm2518_vm9, %v6233_v47, %v16387_v15  ;;  %v4349_v0 = vsel %vm2453_vm8, %v4259_v45, %v16389_v53  ;;  %v6459_v25 = vsel %vm2713_vm12, %v6395_v1, %v13900_v32  ;;  %v16390_v62 = vld [vmem:[#allocation108_spill] sm:$0xff]  ;;  %v16391_v32 = vld [vmem:[#allocation255_spill] sm:$0xff] }
 0x579   : > { %v6934_v31 = vmax.f32 %v6810_v63, 0.0  ;;  %v6329_v36 = vsel %vm2583_vm10, %v6280_v44, %v13874_v26  ;;  %v6283_v26 = vsel %vm2518_vm9, %v6239_v60, %v16390_v62  ;;  %v6523_v5 = vsel %vm2778_vm13, %v6459_v25, %v5947_v51  ;;  %v8277_v45 = vld [vmem:[#allocation2 + $0x6d8] sm:$0xff] }
 0x57a   : > { %v13942_v29 = vpack.i.bf16 %v6936_v40, %v6935_v58  ;;  %v5951_v4 = vpop.permute.xlu1 %5950  ;;  %v6393_v49 = vsel %vm2648_vm11, %v6329_v36, %v13888_v57  ;;  %v5901_v63 = vrot.slane %v13952_v39, 1  ;;  %v6335_v57 = vsel %vm2583_vm10, %v6283_v26, %v13879_v34  ;;  %v8018_v34 = vld [vmem:[#allocation2 + $0x1c0] sm:$0xff] }
 0x57b   : > { %v13950_v16 = vpack.i.bf16 %v6934_v31, %v6933_v19  ;;  %v5949_v10 = vpop.permute.xlu0 %5948  ;;  %5834 = vrot.lane.b32.xlu1 %v8275_v24, %s9098_s24  ;;  %v6457_v11 = vsel %vm2713_vm12, %v6393_v49, %v13903_v37  ;;  %v6282_v47 = vsel %vm2518_vm9, %v6237_v18, %v16391_v32  ;;  %v13982_v31 = vld [vmem:[#allocation2 + $0x6f0] sm:$0xff]  ;;  %v6399_v51 = vsel %vm2648_vm11, %v6335_v57, %v13892_v48  ;;  %v8281_v57 = vld [vmem:[#allocation2 + $0x6f8] sm:$0xff] }
 0x57c   : > { %5832 = vrot.lane.b32.xlu0 %v8274_v28, %s9098_s24  ;;  %v6521_v58 = vsel %vm2778_vm13, %v6457_v11, %v5945_v61  ;;  %v6333_v37 = vsel %vm2583_vm10, %v6282_v47, %v13881_v35  ;;  %v6463_v50 = vsel %vm2713_vm12, %v6399_v51, %v13912_v59  ;;  %v5903_v28 = vrot.slane %v8279_v6, 1  ;;  %v16392_v18 = vld [vmem:[#allocation58_spill] sm:$0xff]  ;;  %v16396_v47 = vld [vmem:[#allocation208_spill] sm:$0xff] }
 0x57d   : > { %v6397_v61 = vsel %vm2648_vm11, %v6333_v37, %v13895_v27  ;;  %v6527_v48 = vsel %vm2778_vm13, %v6463_v50, %v5951_v4  ;;  %v5902_v12 = vsel %vm2940_vm15, %v5900_v52, %v5901_v63  ;;  %v5904_v44 = vrot.slane %v13982_v31, 1  ;;  %v16393_v4 = vld [vmem:[#allocation112_spill] sm:$0xff]  ;;  %v16399_v37 = vld [vmem:[#allocation47_spill] sm:$0xff] }
 0x57e   : > { %v6075_v20 = vpop.permute.xlu1 %6074  ;;  %v6461_v35 = vsel %vm2713_vm12, %v6397_v61, %v13915_v30  ;;  %v4256_v36 = vsel %vm361_vm0, %v8018_v34, %v16392_v18  ;;  %v6029_v26 = vrot.slane %v8277_v45, 2  ;;  %v6028_v11 = vrot.slane %v13952_v39, 2  ;;  %v16398_v39 = vld [vmem:[#allocation156_spill] sm:$0xff]  ;;  %v16402_v45 = vld [vmem:[#allocation61_spill] sm:$0xff] }
 0x57f   : > { %v6587_v40 = vsel %vm2843_vm14, %v6523_v5, %v6075_v20  ;;  %v6073_v19 = vpop.permute.xlu0 %6072  ;;  %5838 = vrot.lane.b32.xlu1 %v8279_v6, %s9098_s24  ;;  %v6525_v46 = vsel %vm2778_vm13, %v6461_v35, %v5949_v10  ;;  %v4347_v53 = vsel %vm2453_vm8, %v4256_v36, %v16393_v4  ;;  %v4410_v10 = vsel %vm2518_vm9, %v4349_v0, %v16365_v55  ;;  %v16394_v5 = vld [vmem:[#allocation181_spill] sm:$0xff]  ;;  %v8022_v18 = vld [vmem:[#allocation2 + $0x1e0] sm:$0xff] }
 0x580   : > { %v6673_v24 = vrot.slane %v6587_v40, 3  ;;  %v6585_v23 = vsel %vm2843_vm14, %v6521_v58, %v6073_v19  ;;  %5836 = vrot.lane.b32.xlu0 %v8278_v9, %s9098_s24  ;;  %v4409_v25 = vsel %vm2518_vm9, %v4347_v53, %v12570_v38  ;;  %v5905_v6 = vsel %vm2940_vm15, %v5903_v28, %v5904_v44  ;;  %v16395_v9 = vld [vmem:[#allocation230_spill] sm:$0xff]  ;;  %v16397_v58 = vld [vmem:[#allocation209_spill] sm:$0xff]  ;;  %v16401_v28 = vld [vmem:[#allocation15_spill] sm:$0xff] }
 0x581   : > { %v6672_v21 = vrot.slane %v6585_v23, 3  ;;  %v4461_v20 = vsel %vm2583_vm10, %v4410_v10, %v16394_v5  ;;  %v6030_v61 = vsel %vm5415_vm6, %v6028_v11, %v6029_v26  ;;  %v6032_v50 = vrot.slane %v8281_v57, 2  ;;  %v8101_v53 = vld [vmem:[#allocation2 + $0x558] sm:$0xff]  ;;  %v9027_v5 = vld [vmem:[#allocation2 + $0x550] sm:$0xff] }
 0x582   : > { %v6079_v60 = vpop.permute.xlu1 %6078  ;;  %v4525_v38 = vsel %vm2648_vm11, %v4461_v20, %v16396_v47  ;;  %v16403_v10 = vld [vmem:[#allocation115_spill] sm:$0xff]  ;;  %v4148_v20 = vrot.slane %v9027_v5, 4 }
 0x583   : > { %v6591_v27 = vsel %vm2843_vm14, %v6527_v48, %v6079_v60  ;;  %v6077_v41 = vpop.permute.xlu0 %6076  ;;  %v6674_v59 = vsel %vm1523_vm1, %v6672_v21, %v6673_v24  ;;  %5962 = vrot.lane.b32.xlu1 %v5901_v63, %s9100_s20  ;;  %v4459_v63 = vsel %vm2583_vm10, %v4409_v25, %v16395_v9  ;;  %v4589_v19 = vsel %vm2713_vm12, %v4525_v38, %v16398_v39  ;;  %v16400_v24 = vld [vmem:[#allocation33_spill] sm:$0xff] }
 0x584   : > { %v6676_v1 = vrot.slane %v6591_v27, 3  ;;  %v6589_v30 = vsel %vm2843_vm14, %v6525_v46, %v6077_v41  ;;  %8688 = vmatprep.mubr.msk.bf16.mxu1 %vm3013_vm2, %v6674_v59  ;;  %5960 = vrot.lane.b32.xlu0 %v5902_v12, %s9100_s20  ;;  %v4523_v40 = vsel %vm2648_vm11, %v4459_v63, %v16397_v58  ;;  %v4653_v23 = vsel %vm2778_vm13, %v4589_v19, %v16400_v24  ;;  %v14044_v12 = vld [vmem:[#allocation2 + $0x290] sm:$0xff]  ;;  %v9026_v59 = vld [vmem:[#allocation2 + $0x1e8] sm:$0xff] }
 0x585   : > { %v6675_v49 = vrot.slane %v6589_v30, 3  ;;  %v4587_v51 = vsel %vm2713_vm12, %v4523_v40, %v16399_v37  ;;  %v6031_v21 = vrot.slane %v13982_v31, 2  ;;  %v4265_v31 = vsel %vm361_vm0, %v9026_v59, %v16402_v45  ;;  %v16405_v63 = vld [vmem:[#allocation118_spill] sm:$0xff]  ;;  %v16406_v40 = vld [vmem:[#allocation140_spill] sm:$0xff]  ;;  %v16413_v59 = vld [vmem:[#allocation17_spill] sm:$0xff] }
 0x586   : > { %v14015_v52 = vpop.permute.xlu1 %5377  ;;  %v4651_v35 = vsel %vm2778_vm13, %v4587_v51, %v16401_v28  ;;  %v5330_v30 = vrot.slane %v14044_v12, 1  ;;  %v4149_v9 = vrot.slane %v8101_v53, 4  ;;  %v8224_v37 = vld [vmem:[#allocation2 + $0x2b0] sm:$0xff]  ;;  %v8223_v51 = vld [vmem:[#allocation2 + $0x2a8] sm:$0xff] }
 0x587   : > { %v14023_v55 = vpop.permute.xlu0 %5375  ;;  %v6677_v0 = vsel %vm1523_vm1, %v6675_v49, %v6676_v1  ;;  %5966 = vrot.lane.b32.xlu1 %v5904_v44, %s9100_s20  ;;  %v8219_v44 = vld [vmem:[#allocation2 + $0x288] sm:$0xff]  ;;  %v6033_v1 = vsel %vm5415_vm6, %v6031_v21, %v6032_v50  ;;  %v4353_v49 = vsel %vm2453_vm8, %v4265_v31, %v16403_v10 }
 0x588   : > { %8689 = vmatmul.mubr.msk.bf16.gmra.mrb[84].mxu1 %vm3013_vm2, %v6677_v0  ;;  %5964 = vrot.lane.b32.xlu0 %v5905_v6, %s9100_s20  ;;  %v5329_v4 = vrot.slane %v8219_v44, 1  ;;  %v4413_v57 = vsel %vm2518_vm9, %v4353_v49, %v16366_v7  ;;  %v16407_v24 = vld [vmem:[#allocation260_spill] sm:$0xff]  ;;  %v16410_v21 = vld [vmem:[#allocation157_spill] sm:$0xff]  ;;  %v4150_v28 = vsel %vm856_vm5, %v4148_v20, %v4149_v9 }
 0x589   : > { %v4465_v39 = vsel %vm2583_vm10, %v4413_v57, %v16406_v40 }
 0x58a   : > { %v4189_v34 = vpop.permute.xlu1 %4188  ;;  %v5331_v38 = vsel %vm2940_vm15, %v5329_v4, %v5330_v30 }
 0x58b   : > { %v4717_v48 = vsel %vm2843_vm14, %v4653_v23, %v4189_v34  ;;  %v4187_v60 = vpop.permute.xlu0 %4186  ;;  %6090 = vrot.lane.b32.xlu1 %v6029_v26, %s9101_s13  ;;  %v16404_v26 = vld [vmem:[#allocation202_spill] sm:$0xff]  ;;  %v16408_v34 = vld [vmem:[#allocation240_spill] sm:$0xff] }
 0x58c   : > { %v4809_v46 = vrot.slane %v4717_v48, 6  ;;  %v4715_v27 = vsel %vm2843_vm14, %v4651_v35, %v4187_v60  ;;  %6088 = vrot.lane.b32.xlu0 %v6030_v61, %s9101_s13  ;;  %v4262_v11 = vsel %vm361_vm0, %v8022_v18, %v16404_v26  ;;  %v4529_v7 = vsel %vm2648_vm11, %v4465_v39, %v16408_v34  ;;  %v16409_v61 = vld [vmem:[#allocation241_spill] sm:$0xff]  ;;  %v16411_v35 = vld [vmem:[#allocation220_spill] sm:$0xff] }
 0x58d   : > { %v4808_v41 = vrot.slane %v4715_v27, 6  ;;  %v4351_v0 = vsel %vm2453_vm8, %v4262_v11, %v16405_v63  ;;  %v16412_v60 = vld [vmem:[#allocation36_spill] sm:$0xff]  ;;  %v5333_v27 = vrot.slane %v8224_v37, 1  ;;  %v5458_v26 = vrot.slane %v14044_v12, 2  ;;  %v8105_v11 = vld [vmem:[#allocation2 + $0x578] sm:$0xff]  ;;  %v9028_v63 = vld [vmem:[#allocation2 + $0x570] sm:$0xff] }
 0x58e   : > { %v14051_v36 = vpop.permute.xlu1 %5381  ;;  %v4412_v58 = vsel %vm2518_vm9, %v4351_v0, %v12568_v43  ;;  %v4593_v43 = vsel %vm2713_vm12, %v4529_v7, %v16410_v21  ;;  %v4152_v0 = vrot.slane %v8105_v11, 4  ;;  %v8225_v12 = vld [vmem:[#allocation2 + $0x2b8] sm:$0xff]  ;;  %v9030_v21 = vld [vmem:[#allocation2 + $0x4c8] sm:$0xff] }
 0x58f   : > { %v14057_v25 = vpop.permute.xlu0 %5379  ;;  %v4810_v6 = vsel %vm1222_vm4, %v4808_v41, %v4809_v46  ;;  %6094 = vrot.lane.b32.xlu1 %v6032_v50, %s9101_s13  ;;  %v4463_v23 = vsel %vm2583_vm10, %v4412_v58, %v16407_v24  ;;  %v4657_v44 = vsel %vm2778_vm13, %v4593_v43, %v16412_v60  ;;  %v5332_v41 = vrot.slane %v8223_v51, 1 }
 0x590   : > { %8638 = vmatprep.mubr.msk.bf16.mxu0 %vm3013_vm2, %v4810_v6  ;;  %6092 = vrot.lane.b32.xlu0 %v6033_v1, %s9101_s13  ;;  %v4527_v50 = vsel %vm2648_vm11, %v4463_v23, %v16409_v61  ;;  %v8221_v1 = vld [vmem:[#allocation2 + $0x298] sm:$0xff]  ;;  %v5462_v51 = vrot.slane %v8225_v12, 2  ;;  %v5461_v24 = vrot.slane %v8224_v37, 2  ;;  %v9029_v61 = vld [vmem:[#allocation2 + $0x4d0] sm:$0xff]  ;;  %v5570_v43 = vrot.slane %v9030_v21, 1 }
 0x591   : > { %v4591_v48 = vsel %vm2713_vm12, %v4527_v50, %v16411_v35  ;;  %v5334_v49 = vsel %vm2940_vm15, %v5332_v41, %v5333_v27  ;;  %v5459_v6 = vrot.slane %v8221_v1, 2  ;;  %v5571_v50 = vrot.slane %v9029_v61, 1 }
 0x592   : > { %v14069_v47 = vpop.permute.xlu1 %5506  ;;  %v4655_v45 = vsel %vm2778_vm13, %v4591_v48, %v16413_v59  ;;  %v5463_v7 = vsel %vm5415_vm6, %v5461_v24, %v5462_v51  ;;  %v9031_v48 = vld [vmem:[#allocation2 + $0x4f0] sm:$0xff]  ;;  %v9034_v24 = vld [vmem:[#allocation2 + $0x4f8] sm:$0xff] }
 0x593   : > { %v14076_v19 = vpop.permute.xlu0 %5504  ;;  %5393 = vrot.lane.b32.xlu1 %v5330_v30, %s9091_s17  ;;  %v5572_v35 = vsel %vm2940_vm15, %v5570_v43, %v5571_v50  ;;  %v5574_v60 = vrot.slane %v9031_v48, 1  ;;  %v8202_v43 = vld [vmem:[#allocation2 + $0x200] sm:$0xff] }
 0x594   : > { %5391 = vrot.lane.b32.xlu0 %v5331_v38, %s9091_s17  ;;  %v5460_v38 = vsel %vm5415_vm6, %v5458_v26, %v5459_v6  ;;  %v5682_v26 = vrot.slane %v9029_v61, 2  ;;  %v5685_v61 = vrot.slane %v9031_v48, 2 }
 0x596   : > { %v4193_v46 = vpop.permute.xlu1 %4192 }
 0x597   : > { %v4721_v31 = vsel %vm2843_vm14, %v4657_v44, %v4193_v46  ;;  %v4191_v18 = vpop.permute.xlu0 %4190  ;;  %4204 = vrot.lane.b32.xlu1 %v4150_v28, %s9101_s13  ;;  %v9032_v44 = vld [vmem:[#allocation2 + $0x4e8] sm:$0xff] }
 0x598   : > { %v4812_v30 = vrot.slane %v4721_v31, 6  ;;  %v4719_v4 = vsel %vm2843_vm14, %v4655_v45, %v4191_v18  ;;  %4202 = vrot.lane.b32.xlu0 %v4148_v20, %s9101_s13  ;;  %v4151_v20 = vrot.slane %v9028_v63, 4  ;;  %v5573_v46 = vrot.slane %v9032_v44, 1 }
 0x599   : > { %v4811_v53 = vrot.slane %v4719_v4, 6 }
 0x59a   : > { %v14099_v10 = vpop.permute.xlu1 %5510  ;;  %v4153_v40 = vsel %vm856_vm5, %v4151_v20, %v4152_v0 }
 0x59b   : > { %v14103_v5 = vpop.permute.xlu0 %5508  ;;  %v4813_v9 = vsel %vm1222_vm4, %v4811_v53, %v4812_v30  ;;  %5397 = vrot.lane.b32.xlu1 %v5333_v27, %s9091_s17  ;;  %v5575_v53 = vsel %vm2940_vm15, %v5573_v46, %v5574_v60 }
 0x59c   : > { %8639 = vmatmul.mubr.msk.bf16.gmra.mrb[8].mxu0 %vm3013_vm2, %v4813_v9  ;;  %5395 = vrot.lane.b32.xlu0 %v5334_v49, %s9091_s17  ;;  %v9033_v49 = vld [vmem:[#allocation2 + $0x4d8] sm:$0xff] }
 0x59e   : > { %v14109_v57 = vpop.permute.xlu1 %5618 }
 0x59f   : > { %v14112_v58 = vpop.permute.xlu0 %5616  ;;  %5522 = vrot.lane.b32.xlu1 %v5459_v6, %s9092_s18  ;;  %v5683_v6 = vrot.slane %v9033_v49, 2  ;;  %v8282_v49 = vld [vmem:[#allocation2 + $0x700] sm:$0xff] }
 0x5a0   : > { %5520 = vrot.lane.b32.xlu0 %v5460_v38, %s9092_s18 }
 0x5a2   : > { %v14117_v39 = vpop.permute.xlu1 %5622 }
 0x5a3   : > { %v14119_v23 = vpop.permute.xlu0 %5620  ;;  %4208 = vrot.lane.b32.xlu1 %v4153_v40, %s9101_s13 }
 0x5a4   : > { %4206 = vrot.lane.b32.xlu0 %v4151_v20, %s9101_s13 }
 0x5a6   : > { %v14123_v34 = vpop.permute.xlu1 %5730 }
 0x5a7   : > { %v14126_v28 = vpop.permute.xlu0 %5728  ;;  %5526 = vrot.lane.b32.xlu1 %v5462_v51, %s9092_s18  ;;  %v5684_v51 = vsel %vm5415_vm6, %v5682_v26, %v5683_v6  ;;  %v16415_v26 = vld [vmem:[#allocation179_spill] sm:$0xff] }
 0x5a8   : > { %5524 = vrot.lane.b32.xlu0 %v5463_v7, %s9092_s18  ;;  %v5686_v7 = vrot.slane %v9034_v24, 2  ;;  %s9102_s18 = smov 64  }
 0x5aa   : > { %v14130_v37 = vpop.permute.xlu1 %5734  ;;  %v5687_v46 = vsel %vm5415_vm6, %v5685_v61, %v5686_v7 }
 0x5ab   : > { %v14133_v27 = vpop.permute.xlu0 %5732  ;;  %v8678_v41 = vpop.f32.mrb[72].mxu1  ;;  %5634 = vrot.lane.b32.xlu1 %v5571_v50, %s9096_s22 }
 0x5ac   : > { %v6831_v59 = vadd.f32 %v8678_v41, %v13909_v17  ;;  %v6822_v45 = vpop.f32.mrb[73].mxu1  ;;  %5632 = vrot.lane.b32.xlu0 %v5572_v35, %s9096_s22  ;;  %v9035_v35 = vld [vmem:[#allocation2 + $0x208] sm:$0xff]  ;;  %v6166_v41 = vsel %vm361_vm0, %v8202_v43, %v14023_v55 }
 0x5ad   : > { %v6823_v31 = vadd.f32 %v6822_v45, %v13909_v17  ;;  %v8679_v18 = vpop.f32.mrb[74].mxu1  ;;  %v8206_v45 = vld [vmem:[#allocation2 + $0x220] sm:$0xff] }
 0x5ae   : > { %v6834_v1 = vadd.f32 %v8679_v18, %v13909_v17  ;;  %v6825_v30 = vpop.f32.mrb[75].mxu1  ;;  %v5827_v4 = vpop.permute.xlu1 %5826  ;;  %v6939_v63 = vmax.f32 %v6831_v59, 0.0  ;;  %v8283_v18 = vld [vmem:[#allocation2 + $0x708] sm:$0xff] }
 0x5af   : > { %v6826_v11 = vadd.f32 %v6825_v30, %v13909_v17  ;;  %v5825_v9 = vpop.permute.xlu0 %5824  ;;  %5638 = vrot.lane.b32.xlu1 %v5574_v60, %s9096_s22  ;;  %v6937_v0 = vmax.f32 %v6823_v31, 0.0  ;;  %v6169_v60 = vsel %vm361_vm0, %v9035_v35, %v14015_v52  ;;  %v6241_v31 = vsel %vm2453_vm8, %v6166_v41, %v14076_v19  ;;  %v9036_v52 = vld [vmem:[#allocation2 + $0x228] sm:$0xff]  ;;  %v16418_v35 = vld [vmem:[#allocation111_spill] sm:$0xff] }
 0x5b0   : > { %v6940_v20 = vmax.f32 %v6834_v1, 0.0  ;;  %5636 = vrot.lane.b32.xlu0 %v5575_v53, %s9096_s22  ;;  %v6243_v48 = vsel %vm2453_vm8, %v6169_v60, %v14069_v47  ;;  %v6175_v1 = vsel %vm361_vm0, %v9036_v52, %v14051_v36  ;;  %v16414_v30 = vld [vmem:[#allocation109_spill] sm:$0xff]  ;;  %v6172_v47 = vsel %vm361_vm0, %v8206_v45, %v14057_v25  ;;  %v8286_v41 = vld [vmem:[#allocation2 + $0x720] sm:$0xff]  ;;  %v16419_v45 = vld [vmem:[#allocation178_spill] sm:$0xff] }
 0x5b1   : > { %v6938_v38 = vmax.f32 %v6826_v11, 0.0  ;;  %v6285_v55 = vsel %vm2518_vm9, %v6243_v48, %v16414_v30  ;;  %v6247_v19 = vsel %vm2453_vm8, %v6175_v1, %v14099_v10  ;;  %v6284_v11 = vsel %vm2518_vm9, %v6241_v31, %v16415_v26  ;;  %v9037_v36 = vld [vmem:[#allocation2 + $0x208] sm:$0xff]  ;;  %v14206_v1 = vld [vmem:[#allocation2 + $0x730] sm:$0xff] }
 0x5b2   : > { %v14144_v12 = vpack.i.bf16 %v6940_v20, %v6939_v63  ;;  %v14146_v40 = vpop.permute.xlu1 %5830  ;;  %v14178_v20 = vld [vmem:[#allocation2 + $0x710] sm:$0xff]  ;;  %v6337_v25 = vsel %vm2583_vm10, %v6284_v11, %v14112_v58  ;;  %v5906_v43 = vrot.slane %v8283_v18, 1  ;;  %v6287_v58 = vsel %vm2518_vm9, %v6247_v19, %v16418_v35 }
 0x5b3   : > { %v14149_v50 = vpack.i.bf16 %v6938_v38, %v6937_v0  ;;  %v14151_v21 = vpop.permute.xlu0 %5828  ;;  %5746 = vrot.lane.b32.xlu1 %v5683_v6, %s9097_s23  ;;  %v6339_v6 = vsel %vm2583_vm10, %v6285_v55, %v14109_v57  ;;  %v16416_v0 = vld [vmem:[#allocation205_spill] sm:$0xff]  ;;  %v5907_v48 = vrot.slane %v14178_v20, 1 }
 0x5b4   : > { %5744 = vrot.lane.b32.xlu0 %v5684_v51, %s9097_s23  ;;  %v4271_v38 = vsel %vm361_vm0, %v9037_v36, %v16416_v0  ;;  %v6245_v51 = vsel %vm2453_vm8, %v6172_v47, %v14103_v5  ;;  %v6403_v10 = vsel %vm2648_vm11, %v6339_v6, %v14123_v34  ;;  %v16417_v57 = vld [vmem:[#allocation121_spill] sm:$0xff]  ;;  %v5910_v0 = vrot.slane %v14206_v1, 1 }
 0x5b5   : > { %v4357_v24 = vsel %vm2453_vm8, %v4271_v38, %v16417_v57  ;;  %v6467_v61 = vsel %vm2713_vm12, %v6403_v10, %v5827_v4  ;;  %v8287_v5 = vld [vmem:[#allocation2 + $0x728] sm:$0xff]  ;;  %v6286_v4 = vsel %vm2518_vm9, %v6245_v51, %v16419_v45  ;;  %v5908_v36 = vsel %vm2940_vm15, %v5906_v43, %v5907_v48  ;;  %v16420_v10 = vld [vmem:[#allocation66_spill] sm:$0xff] }
 0x5b6   : > { %v5955_v44 = vpop.permute.xlu1 %5954  ;;  %v5909_v6 = vrot.slane %v8287_v5, 1 }
 0x5b7   : > { %v5953_v59 = vpop.permute.xlu0 %5952  ;;  %5750 = vrot.lane.b32.xlu1 %v5686_v7, %s9097_s23  ;;  %v6401_v7 = vsel %vm2648_vm11, %v6337_v25, %v14126_v28  ;;  %v6531_v34 = vsel %vm2778_vm13, %v6467_v61, %v5955_v44  ;;  %v6343_v28 = vsel %vm2583_vm10, %v6287_v58, %v14117_v39  ;;  %v8026_v39 = vld [vmem:[#allocation2 + $0x200] sm:$0xff]  ;;  %v8285_v25 = vld [vmem:[#allocation2 + $0x718] sm:$0xff] }
 0x5b8   : > { %5748 = vrot.lane.b32.xlu0 %v5687_v46, %s9097_s23  ;;  %v6465_v60 = vsel %vm2713_vm12, %v6401_v7, %v5825_v9  ;;  %v6341_v9 = vsel %vm2583_vm10, %v6286_v4, %v14119_v23  ;;  %v6407_v44 = vsel %vm2648_vm11, %v6343_v28, %v14130_v37  ;;  %v4268_v57 = vsel %vm361_vm0, %v8026_v39, %v16420_v10  ;;  %v16423_v28 = vld [vmem:[#allocation141_spill] sm:$0xff]  ;;  %v16428_v39 = vld [vmem:[#allocation39_spill] sm:$0xff]  ;;  %s8334_s23 = sshll.u32 %s16612_s30, 7 }
 0x5b9   : > { %v6529_v31 = vsel %vm2778_vm13, %v6465_v60, %v5953_v59  ;;  %v6405_v59 = vsel %vm2648_vm11, %v6341_v9, %v14133_v27  ;;  %v6471_v47 = vsel %vm2713_vm12, %v6407_v44, %v14146_v40  ;;  %v5911_v60 = vsel %vm2940_vm15, %v5909_v6, %v5910_v0  ;;  %s15314_s29 = scalar_lea.vmem %s15354_s9, %s8334_s23 }
 0x5ba   : > { %v5959_v53 = vpop.permute.xlu1 %5958  ;;  %v6469_v23 = vsel %vm2713_vm12, %v6405_v59, %v14151_v21 }
 0x5bb   : > { %v5957_v63 = vpop.permute.xlu0 %5956  ;;  %5842 = vrot.lane.b32.xlu1 %v8283_v18, %s9098_s24  ;;  %v6535_v37 = vsel %vm2778_vm13, %v6471_v47, %v5959_v53  ;;  %v16421_v53 = vld [vmem:[#allocation124_spill] sm:$0xff] }
 0x5bc   : > { %5840 = vrot.lane.b32.xlu0 %v8282_v49, %s9098_s24  ;;  %v6533_v38 = vsel %vm2778_vm13, %v6469_v23, %v5957_v63  ;;  %v4355_v61 = vsel %vm2453_vm8, %v4268_v57, %v16421_v53  ;;  %v4416_v63 = vsel %vm2518_vm9, %v4357_v24, %v16367_v2  ;;  %v6037_v23 = vrot.slane %v14206_v1, 2  ;;  %v16430_v1 = vld [vmem:[#allocation72_spill] sm:$0xff] }
 0x5bd   : > { %v8030_v53 = vld [vmem:[#allocation2 + $0x220] sm:$0xff] }
 0x5be   : > { %v6083_v46 = vpop.permute.xlu1 %6082 }
 0x5bf   : > { %v6595_v18 = vsel %vm2843_vm14, %v6531_v34, %v6083_v46  ;;  %v6081_v52 = vpop.permute.xlu0 %6080  ;;  %5846 = vrot.lane.b32.xlu1 %v8287_v5, %s9098_s24  ;;  %v4415_v5 = vsel %vm2518_vm9, %v4355_v61, %v12579_v54  ;;  %v6035_v34 = vrot.slane %v8285_v25, 2  ;;  %v6034_v46 = vrot.slane %v14178_v20, 2  ;;  %v16426_v20 = vld [vmem:[#allocation221_spill] sm:$0xff] }
 0x5c0   : > { %v6679_v55 = vrot.slane %v6595_v18, 3  ;;  %v6593_v49 = vsel %vm2843_vm14, %v6529_v31, %v6081_v52  ;;  %5844 = vrot.lane.b32.xlu0 %v8286_v41, %s9098_s24  ;;  %v16422_v41 = vld [vmem:[#allocation261_spill] sm:$0xff]  ;;  %v4467_v4 = vsel %vm2583_vm10, %v4415_v5, %v16423_v28  ;;  %v8289_v31 = vld [vmem:[#allocation2 + $0x738] sm:$0xff] }
 0x5c1   : > { %v6678_v19 = vrot.slane %v6593_v49, 3  ;;  %v16424_v18 = vld [vmem:[#allocation43_spill] sm:$0xff]  ;;  %v16425_v52 = vld [vmem:[#allocation150_spill] sm:$0xff]  ;;  %v6038_v6 = vrot.slane %v8289_v31, 2  ;;  %v16431_v5 = vld [vmem:[#allocation125_spill] sm:$0xff] }
 0x5c2   : > { %v6087_v11 = vpop.permute.xlu1 %6086  ;;  %v4531_v9 = vsel %vm2648_vm11, %v4467_v4, %v16425_v52  ;;  %v9038_v25 = vld [vmem:[#allocation2 + $0x590] sm:$0xff] }
 0x5c3   : > { %v6599_v27 = vsel %vm2843_vm14, %v6535_v37, %v6087_v11  ;;  %v6085_v51 = vpop.permute.xlu0 %6084  ;;  %v6680_v40 = vsel %vm1523_vm1, %v6678_v19, %v6679_v55  ;;  %5970 = vrot.lane.b32.xlu1 %v5907_v48, %s9100_s20  ;;  %v4469_v48 = vsel %vm2583_vm10, %v4416_v63, %v16422_v41  ;;  %v16427_v55 = vld [vmem:[#allocation248_spill] sm:$0xff]  ;;  %v6036_v19 = vsel %vm5415_vm6, %v6034_v46, %v6035_v34  ;;  %v8109_v37 = vld [vmem:[#allocation2 + $0x598] sm:$0xff]  ;;  %v16432_v41 = vld [vmem:[#allocation73_spill] sm:$0xff] }
 0x5c4   : > { %v6682_v7 = vrot.slane %v6599_v27, 3  ;;  %v6597_v21 = vsel %vm2843_vm14, %v6533_v38, %v6085_v51  ;;  %8692 = vmatprep.mubr.msk.bf16.mxu1 %vm3013_vm2, %v6680_v40  ;;  %5968 = vrot.lane.b32.xlu0 %v5908_v36, %s9100_s20  ;;  %v4533_v54 = vsel %vm2648_vm11, %v4469_v48, %v16424_v18  ;;  %v4595_v49 = vsel %vm2713_vm12, %v4531_v9, %v16427_v55  ;;  %v16429_v11 = vld [vmem:[#allocation20_spill] sm:$0xff]  ;;  %v9040_v4 = vld [vmem:[#allocation2 + $0x5b0] sm:$0xff]  ;;  %v16433_v18 = vld [vmem:[#allocation127_spill] sm:$0xff] }
 0x5c5   : > { %v6681_v43 = vrot.slane %v6597_v21, 3  ;;  %v4597_v44 = vsel %vm2713_vm12, %v4533_v54, %v16426_v20  ;;  %v4659_v36 = vsel %vm2778_vm13, %v4595_v49, %v16429_v11  ;;  %v4154_v10 = vrot.slane %v9038_v25, 4  ;;  %v8116_v20 = vld [vmem:[#allocation2 + $0x5d0] sm:$0xff]  ;;  %v16434_v55 = vld [vmem:[#allocation232_spill] sm:$0xff] }
 0x5c6   : > { %v14239_v58 = vpop.permute.xlu1 %5385  ;;  %v4661_v59 = vsel %vm2778_vm13, %v4597_v44, %v16428_v39  ;;  %v4155_v57 = vrot.slane %v8109_v37, 4  ;;  %v6039_v63 = vsel %vm5415_vm6, %v6037_v23, %v6038_v6  ;;  %v4274_v48 = vsel %vm361_vm0, %v8030_v53, %v16432_v41  ;;  %v16436_v23 = vld [vmem:[#allocation162_spill] sm:$0xff] }
 0x5c7   : > { %v14247_v2 = vpop.permute.xlu0 %5383  ;;  %v6683_v24 = vsel %vm1523_vm1, %v6681_v43, %v6682_v7  ;;  %5974 = vrot.lane.b32.xlu1 %v5910_v0, %s9100_s20  ;;  %v9039_v7 = vld [vmem:[#allocation2 + $0x228] sm:$0xff]  ;;  %v8113_v43 = vld [vmem:[#allocation2 + $0x5b8] sm:$0xff]  ;;  %v4359_v54 = vsel %vm2453_vm8, %v4274_v48, %v16433_v18 }
 0x5c8   : > { %8693 = vmatmul.mubr.msk.bf16.gmra.mrb[88].mxu1 %vm3013_vm2, %v6683_v24  ;;  %5972 = vrot.lane.b32.xlu0 %v5911_v60, %s9100_s20  ;;  %v4277_v21 = vsel %vm361_vm0, %v9039_v7, %v16430_v1  ;;  %v4156_v28 = vsel %vm856_vm5, %v4154_v10, %v4155_v57  ;;  %v4157_v24 = vrot.slane %v9040_v4, 4  ;;  %v4158_v31 = vrot.slane %v8113_v43, 4  ;;  %v8120_v7 = vld [vmem:[#allocation2 + $0x5f0] sm:$0xff]  ;;  %v16441_v1 = vld [vmem:[#allocation56_spill] sm:$0xff]  ;;  %v8117_v4 = vld [vmem:[#allocation2 + $0x5d8] sm:$0xff] }
 0x5c9   : > { %v4361_v60 = vsel %vm2453_vm8, %v4277_v21, %v16431_v5  ;;  %v4418_v44 = vsel %vm2518_vm9, %v4359_v54, %v12577_v3  ;;  %v9042_v5 = vld [vmem:[#allocation2 + $0x5e8] sm:$0xff]  ;;  %v4036_v48 = vrot.slane %v8120_v7, 6 }
 0x5ca   : > { %v4197_v47 = vpop.permute.xlu1 %4196  ;;  %v4419_v52 = vsel %vm2518_vm9, %v4361_v60, %v16368_v14  ;;  %v16437_v14 = vld [vmem:[#allocation44_spill] sm:$0xff]  ;;  %v4035_v60 = vrot.slane %v9042_v5, 6 }
 0x5cb   : > { %v4725_v0 = vsel %vm2843_vm14, %v4661_v59, %v4197_v47  ;;  %v4195_v38 = vpop.permute.xlu0 %4194  ;;  %6098 = vrot.lane.b32.xlu1 %v6035_v34, %s9101_s13  ;;  %v4473_v49 = vsel %vm2583_vm10, %v4419_v52, %v16434_v55  ;;  %v16435_v59 = vld [vmem:[#allocation233_spill] sm:$0xff]  ;;  %v4160_v52 = vrot.slane %v8116_v20, 4  ;;  %v8121_v55 = vld [vmem:[#allocation2 + $0x5f8] sm:$0xff] }
 0x5cc   : > { %v4815_v27 = vrot.slane %v4725_v0, 6  ;;  %v4723_v51 = vsel %vm2843_vm14, %v4659_v36, %v4195_v38  ;;  %6096 = vrot.lane.b32.xlu0 %v6036_v19, %s9101_s13  ;;  %v4471_v47 = vsel %vm2583_vm10, %v4418_v44, %v16435_v59  ;;  %v9041_v19 = vld [vmem:[#allocation2 + $0x5c8] sm:$0xff]  ;;  %v4537_v37 = vsel %vm2648_vm11, %v4473_v49, %v16436_v23 }
 0x5cd   : > { %v4814_v40 = vrot.slane %v4723_v51, 6  ;;  %v4535_v11 = vsel %vm2648_vm11, %v4471_v47, %v16437_v14  ;;  %v16438_v36 = vld [vmem:[#allocation249_spill] sm:$0xff]  ;;  %v4159_v0 = vsel %vm856_vm5, %v4157_v24, %v4158_v31  ;;  %v4033_v38 = vrot.slane %v8116_v20, 6 }
 0x5ce   : > { %v14273_v61 = vpop.permute.xlu1 %5389  ;;  %v4601_v3 = vsel %vm2713_vm12, %v4537_v37, %v16438_v36  ;;  %v4037_v54 = vsel %vm1222_vm4, %v4035_v60, %v4036_v48  ;;  %v4163_v47 = vrot.slane %v8120_v7, 4  ;;  %v9043_v36 = vld [vmem:[#allocation2 + $0x608] sm:$0xff]  ;;  %v14352_v7 = vld [vmem:[#allocation2 + $0x630] sm:$0xff] }
 0x5cf   : > { %v14278_v34 = vpop.permute.xlu0 %5387  ;;  %v4816_v46 = vsel %vm1222_vm4, %v4814_v40, %v4815_v27  ;;  %6102 = vrot.lane.b32.xlu1 %v6038_v6, %s9101_s13  ;;  %v4032_v6 = vrot.slane %v9041_v19, 6  ;;  %v16439_v27 = vld [vmem:[#allocation172_spill] sm:$0xff]  ;;  %v16440_v40 = vld [vmem:[#allocation114_spill] sm:$0xff]  ;;  %v4164_v19 = vrot.slane %v8121_v55, 4 }
 0x5d0   : > { %8642 = vmatprep.mubr.msk.bf16.mxu0 %vm3013_vm2, %v4816_v46  ;;  %6100 = vrot.lane.b32.xlu0 %v6039_v63, %s9101_s13  ;;  %v4599_v51 = vsel %vm2713_vm12, %v4535_v11, %v16439_v27  ;;  %v4665_v25 = vsel %vm2778_vm13, %v4601_v3, %v16440_v40  ;;  %v4038_v3 = vrot.slane %v9043_v36, 6  ;;  %v8129_v36 = vld [vmem:[#allocation2 + $0x638] sm:$0xff] }
 0x5d1   : > { %v4663_v21 = vsel %vm2778_vm13, %v4599_v51, %v16441_v1  ;;  %v4034_v41 = vsel %vm1222_vm4, %v4032_v6, %v4033_v38  ;;  %v4165_v27 = vsel %vm856_vm5, %v4163_v47, %v4164_v19  ;;  %v8926_v1 = vld [vmem:[%s15349_s4 + $0x40] sm:$0xff]  }
 0x5d2   : > { %v14291_v9 = vpop.permute.xlu1 %5514  ;;  %8420 = vmatprep.subr.bf16.mxu0 %v8926_v1  ;;  %v8932_v1 = vld [vmem:[%s15349_s4 + $0x58] sm:$0xff]  }
 0x5d3   : > { %v14297_v39 = vpop.permute.xlu0 %5512  ;;  %4212 = vrot.lane.b32.xlu1 %v4156_v28, %s9101_s13 }
 0x5d4   : > { %4210 = vrot.lane.b32.xlu0 %v4154_v10, %s9101_s13 }
 0x5d6   : > { %v4201_v57 = vpop.permute.xlu1 %4200 }
 0x5d7   : > { %v4729_v53 = vsel %vm2843_vm14, %v4665_v25, %v4201_v57  ;;  %v4199_v63 = vpop.permute.xlu0 %4198  ;;  %4216 = vrot.lane.b32.xlu1 %v4159_v0, %s9101_s13 }
 0x5d8   : > { %v4818_v43 = vrot.slane %v4729_v53, 6  ;;  %v4727_v10 = vsel %vm2843_vm14, %v4663_v21, %v4199_v63  ;;  %4214 = vrot.lane.b32.xlu0 %v4157_v24, %s9101_s13  ;;  %v4161_v24 = vrot.slane %v8117_v4, 4  ;;  %v8927_v63 = vld [vmem:[%s15349_s4] sm:$0xff]   ;;  %v4042_v4 = vrot.slane %v14352_v7, 6 }
 0x5d9   : > { %v4817_v46 = vrot.slane %v4727_v10, 6  ;;  %8421 = vmatpush3.bf16.msra.mxu0 %v8927_v63  ;;  %v14408_v63 = vld [vmem:[#allocation2 + $0x670] sm:$0xff] }
 0x5da   : > { %v14321_v28 = vpop.permute.xlu1 %5518  ;;  %v4162_v59 = vsel %vm856_vm5, %v4160_v52, %v4161_v24  ;;  %v8928_v24 = vld [vmem:[%s15349_s4 + $0x48] sm:$0xff]  }
 0x5db   : > { %v14323_v31 = vpop.permute.xlu0 %5516  ;;  %v4819_v18 = vsel %vm1222_vm4, %v4817_v46, %v4818_v43  ;;  %4092 = vrot.lane.b32.xlu1 %v4034_v41, %s9100_s20  ;;  %v9044_v43 = vld [vmem:[#allocation2 + $0x628] sm:$0xff]  ;;  %8422 = vmatprep.subr.bf16.mxu0 %v8928_v24 }
 0x5dc   : > { %8643 = vmatmul.mubr.msk.bf16.gmra.mrb[12].mxu0 %vm3013_vm2, %v4819_v18  ;;  %4090 = vrot.lane.b32.xlu0 %v4032_v6, %s9100_s20  ;;  %v14339_v6 = vld [vmem:[#allocation2 + $0x610] sm:$0xff]  ;;  %v4041_v10 = vrot.slane %v9044_v43, 6  ;;  %v8933_v43 = vld [vmem:[%s15349_s4 + $0x18] sm:$0xff]  }
 0x5dd   : > { %v4039_v51 = vrot.slane %v14339_v6, 6 }
 0x5de   : > { %v14330_v44 = vpop.permute.xlu1 %5626  ;;  %v4043_v19 = vsel %vm1222_vm4, %v4041_v10, %v4042_v4  ;;  %v9047_v4 = vld [vmem:[#allocation2 + $0x248] sm:$0xff] }
 0x5df   : > { %v14332_v49 = vpop.permute.xlu0 %5624  ;;  %4096 = vrot.lane.b32.xlu1 %v4037_v54, %s9100_s20  ;;  %v4040_v48 = vsel %vm1222_vm4, %v4038_v3, %v4039_v51  ;;  %v4170_v51 = vrot.slane %v8129_v36, 4 }
 0x5e0   : > { %4094 = vrot.lane.b32.xlu0 %v4035_v60, %s9100_s20 }
 0x5e2   : > { %v14337_v23 = vpop.permute.xlu1 %5630 }
 0x5e3   : > { %v14341_v37 = vpop.permute.xlu0 %5628  ;;  %v8682_v20 = vpop.f32.mrb[76].mxu1  ;;  %4220 = vrot.lane.b32.xlu1 %v4162_v59, %s9101_s13 }
 0x5e4   : > { %v6847_v14 = vadd.f32 %v8682_v20, %v13909_v17  ;;  %v6838_v11 = vpop.f32.mrb[77].mxu1  ;;  %4218 = vrot.lane.b32.xlu0 %v4160_v52, %s9101_s13  ;;  %v8125_v52 = vld [vmem:[#allocation2 + $0x618] sm:$0xff]  ;;  %v4166_v20 = vrot.slane %v14339_v6, 4 }
 0x5e5   : > { %v6839_v0 = vadd.f32 %v6838_v11, %v13909_v17  ;;  %v8683_v38 = vpop.f32.mrb[78].mxu1 }
 0x5e6   : > { %v6850_v40 = vadd.f32 %v8683_v38, %v13909_v17  ;;  %v6841_v25 = vpop.f32.mrb[79].mxu1  ;;  %v14350_v57 = vpop.permute.xlu1 %5738  ;;  %v6943_v5 = vmax.f32 %v6847_v14, 0.0  ;;  %v4167_v14 = vrot.slane %v8125_v52, 4  ;;  %v6181_v52 = vsel %vm361_vm0, %v9047_v4, %v14239_v58  ;;  %v8214_v58 = vld [vmem:[#allocation2 + $0x260] sm:$0xff] }
 0x5e7   : > { %v6842_v21 = vadd.f32 %v6841_v25, %v13909_v17  ;;  %v14358_v53 = vpop.permute.xlu0 %5736  ;;  %4224 = vrot.lane.b32.xlu1 %v4165_v27, %s9101_s13  ;;  %v6941_v46 = vmax.f32 %v6839_v0, 0.0  ;;  %v8930_v0 = vld [vmem:[%s15349_s4 + $0x50] sm:$0xff]   ;;  %v6251_v36 = vsel %vm2453_vm8, %v6181_v52, %v14291_v9  ;;  %v9048_v9 = vld [vmem:[#allocation2 + $0x268] sm:$0xff] }
 0x5e8   : > { %v6944_v60 = vmax.f32 %v6850_v40, 0.0  ;;  %4222 = vrot.lane.b32.xlu0 %v4163_v47, %s9101_s13  ;;  %v8929_v47 = vld [vmem:[%s15349_s4 + $0x8] sm:$0xff]   ;;  %v8931_v27 = vld [vmem:[%s15349_s4 + $0x10] sm:$0xff]   ;;  %v4168_v6 = vsel %vm856_vm5, %v4166_v20, %v4167_v14 }
 0x5e9   : > { %v6942_v41 = vmax.f32 %v6842_v21, 0.0  ;;  %8423 = vmatpush3.bf16.msra.mxu0 %v8929_v47  ;;  %v14401_v25 = vld [vmem:[#allocation2 + $0x650] sm:$0xff]  ;;  %v4048_v47 = vrot.slane %v14408_v63, 6 }
 0x5ea   : > { %v14367_v18 = vpack.i.bf16 %v6944_v60, %v6943_v5  ;;  %v14369_v54 = vpop.permute.xlu1 %5742  ;;  %8424 = vmatprep.subr.bf16.mxu0 %v8930_v0  ;;  %v16443_v52 = vld [vmem:[#allocation229_spill] sm:$0xff] }
 0x5eb   : > { %v14374_v55 = vpack.i.bf16 %v6942_v41, %v6941_v46  ;;  %v14376_v59 = vpop.permute.xlu0 %5740  ;;  %4100 = vrot.lane.b32.xlu1 %v4040_v48, %s9100_s20  ;;  %v4045_v46 = vrot.slane %v14401_v25, 6  ;;  %v14417_v41 = vld [vmem:[#allocation2 + $0x668] sm:$0xff] }
 0x5ec   : > { %4098 = vrot.lane.b32.xlu0 %v4038_v3, %s9100_s20  ;;  %v4169_v3 = vrot.slane %v14352_v7, 4  ;;  %v9045_v7 = vld [vmem:[#allocation2 + $0x648] sm:$0xff]  ;;  %v4047_v48 = vrot.slane %v14417_v41, 6 }
 0x5ed   : > { %8425 = vmatpush3.bf16.msra.mxu0 %v8931_v27  ;;  %v4044_v5 = vrot.slane %v9045_v7, 6  ;;  %v8935_v27 = vld [vmem:[%s15349_s4 + $0x20] sm:$0xff]  }
 0x5ee   : > { %v14385_v11 = vpop.permute.xlu1 %5834  ;;  %8426 = vmatprep.subr.bf16.mxu0 %v8932_v1  ;;  %v4171_v60 = vsel %vm856_vm5, %v4169_v3, %v4170_v51 }
 0x5ef   : > { %v14390_v38 = vpop.permute.xlu0 %5832  ;;  %4104 = vrot.lane.b32.xlu1 %v4043_v19, %s9100_s20  ;;  %v8133_v19 = vld [vmem:[#allocation2 + $0x658] sm:$0xff]  ;;  %v4046_v51 = vsel %vm1222_vm4, %v4044_v5, %v4045_v46 }
 0x5f0   : > { %4102 = vrot.lane.b32.xlu0 %v4041_v10, %s9100_s20  ;;  %v8210_v10 = vld [vmem:[#allocation2 + $0x240] sm:$0xff]  ;;  %v4173_v1 = vrot.slane %v8133_v19, 4 }
 0x5f1   : > { %8427 = vmatpush3.bf16.msra.mxu0 %v8933_v43  ;;  %v6178_v14 = vsel %vm361_vm0, %v8210_v10, %v14247_v2  ;;  %v4172_v2 = vrot.slane %v14401_v25, 4  ;;  %v6187_v43 = vsel %vm361_vm0, %v9048_v9, %v14273_v61  ;;  %v16442_v10 = vld [vmem:[#allocation113_spill] sm:$0xff] }
 0x5f2   : > { %v14399_v40 = vpop.permute.xlu1 %5838  ;;  %v6289_v7 = vsel %vm2518_vm9, %v6251_v36, %v16442_v10  ;;  %v6255_v46 = vsel %vm2453_vm8, %v6187_v43, %v14321_v28 }
 0x5f3   : > { %v14406_v21 = vpop.permute.xlu0 %5836  ;;  %4228 = vrot.lane.b32.xlu1 %v4168_v6, %s9101_s13  ;;  %v6249_v6 = vsel %vm2453_vm8, %v6178_v14, %v14297_v39  ;;  %v4049_v39 = vsel %vm1222_vm4, %v4047_v48, %v4048_v47  ;;  %v6347_v61 = vsel %vm2583_vm10, %v6289_v7, %v14330_v44  ;;  %v8937_v47 = vld [vmem:[%s15349_s4 + $0x28] sm:$0xff]  }
 0x5f4   : > { %4226 = vrot.lane.b32.xlu0 %v4166_v20, %s9101_s13  ;;  %v8934_v20 = vld [vmem:[%s15349_s4 + $0x60] sm:$0xff]   ;;  %v6288_v19 = vsel %vm2518_vm9, %v6249_v6, %v16443_v52  ;;  %v6411_v28 = vsel %vm2648_vm11, %v6347_v61, %v14350_v57 }
 0x5f5   : > { %8428 = vmatprep.subr.bf16.mxu0 %v8934_v20  ;;  %v6475_v36 = vsel %vm2713_vm12, %v6411_v28, %v14385_v11  ;;  %v8938_v11 = vld [vmem:[%s15349_s4 + $0x70] sm:$0xff]   ;;  %v16447_v28 = vld [vmem:[#allocation128_spill] sm:$0xff] }
 0x5f6   : > { %v5963_v24 = vpop.permute.xlu1 %5962  ;;  %8429 = vmatpush3.bf16.msra.mxu0 %v8935_v27 }
 0x5f7   : > { %v5961_v0 = vpop.permute.xlu0 %5960  ;;  %4232 = vrot.lane.b32.xlu1 %v4171_v60, %s9101_s13  ;;  %v6184_v60 = vsel %vm361_vm0, %v8214_v58, %v14278_v34  ;;  %v6345_v34 = vsel %vm2583_vm10, %v6288_v19, %v14332_v49  ;;  %v16444_v49 = vld [vmem:[#allocation116_spill] sm:$0xff]  ;;  %v6539_v58 = vsel %vm2778_vm13, %v6475_v36, %v5963_v24  ;;  %v8939_v24 = vld [vmem:[%s15349_s4 + $0x30] sm:$0xff]  }
 0x5f8   : > { %4230 = vrot.lane.b32.xlu0 %v4169_v3, %s9101_s13  ;;  %v8936_v3 = vld [vmem:[%s15349_s4 + $0x68] sm:$0xff]   ;;  %v6253_v14 = vsel %vm2453_vm8, %v6184_v60, %v14323_v31  ;;  %v6409_v44 = vsel %vm2648_vm11, %v6345_v34, %v14358_v53  ;;  %v4174_v31 = vsel %vm856_vm5, %v4172_v2, %v4173_v1  ;;  %v6291_v27 = vsel %vm2518_vm9, %v6255_v46, %v16444_v49  ;;  %v8137_v53 = vld [vmem:[#allocation2 + $0x678] sm:$0xff] }
 0x5f9   : > { %8430 = vmatprep.subr.bf16.mxu0 %v8936_v3  ;;  %v6473_v57 = vsel %vm2713_vm12, %v6409_v44, %v14390_v38  ;;  %v16445_v1 = vld [vmem:[#allocation228_spill] sm:$0xff]  ;;  %v16446_v19 = vld [vmem:[#allocation77_spill] sm:$0xff] }
 0x5fa   : > { %v5967_v4 = vpop.permute.xlu1 %5966  ;;  %8431 = vmatpush3.bf16.msra.mxu0 %v8937_v47  ;;  %v6290_v9 = vsel %vm2518_vm9, %v6253_v14, %v16445_v1  ;;  %v6537_v43 = vsel %vm2778_vm13, %v6473_v57, %v5961_v0  ;;  %v8034_v14 = vld [vmem:[#allocation2 + $0x240] sm:$0xff] }
 0x5fb   : > { %v5965_v20 = vpop.permute.xlu0 %5964  ;;  %4108 = vrot.lane.b32.xlu1 %v4046_v51, %s9100_s20  ;;  %v4175_v51 = vrot.slane %v14408_v63, 4  ;;  %v6349_v63 = vsel %vm2583_vm10, %v6290_v9, %v14341_v37  ;;  %8432 = vmatprep.subr.bf16.mxu0 %v8938_v11  ;;  %v4176_v37 = vrot.slane %v8137_v53, 4  ;;  %v16449_v11 = vld [vmem:[#allocation158_spill] sm:$0xff] }
 0x5fc   : > { %4106 = vrot.lane.b32.xlu0 %v4044_v5, %s9100_s20  ;;  %v6351_v5 = vsel %vm2583_vm10, %v6291_v27, %v14337_v23  ;;  %v6413_v0 = vsel %vm2648_vm11, %v6349_v63, %v14376_v59 }
 0x5fd   : > { %v6415_v3 = vsel %vm2648_vm11, %v6351_v5, %v14369_v54  ;;  %v9049_v54 = vld [vmem:[#allocation2 + $0x248] sm:$0xff]  ;;  %v4177_v53 = vsel %vm856_vm5, %v4175_v51, %v4176_v37 }
 0x5fe   : > { %v6091_v6 = vpop.permute.xlu1 %6090  ;;  %v6479_v46 = vsel %vm2713_vm12, %v6415_v3, %v14399_v40  ;;  %8433 = vmatpush3.bf16.msra.mxu0 %v8939_v24  ;;  %v4283_v47 = vsel %vm361_vm0, %v9049_v54, %v16446_v19  ;;  %v8940_v40 = vld [vmem:[%s15349_s4 + $0x78] sm:$0xff]   ;;  %v16456_v37 = vld [vmem:[#allocation117_spill] sm:$0xff] }
 0x5ff   : > { %v6603_v38 = vsel %vm2843_vm14, %v6539_v58, %v6091_v6  ;;  %v6089_v7 = vpop.permute.xlu0 %6088  ;;  %4112 = vrot.lane.b32.xlu1 %v4049_v39, %s9100_s20  ;;  %v6477_v39 = vsel %vm2713_vm12, %v6413_v0, %v14406_v21  ;;  %v6543_v59 = vsel %vm2778_vm13, %v6479_v46, %v5967_v4  ;;  %v4365_v41 = vsel %vm2453_vm8, %v4283_v47, %v16447_v28  ;;  %v8941_v21 = vld [vmem:[%s15349_s4 + $0x38] sm:$0xff]   ;;  %v16455_v46 = vld [vmem:[#allocation48_spill] sm:$0xff] }
 0x600   : > { %v6685_v60 = vrot.slane %v6603_v38, 3  ;;  %v6601_v23 = vsel %vm2843_vm14, %v6537_v43, %v6089_v7  ;;  %4110 = vrot.lane.b32.xlu0 %v4047_v48, %s9100_s20  ;;  %v6541_v48 = vsel %vm2778_vm13, %v6477_v39, %v5965_v20  ;;  %v16448_v58 = vld [vmem:[#allocation78_spill] sm:$0xff]  ;;  %8434 = vmatprep.subr.bf16.mxu0 %v8940_v40  ;;  %v4422_v9 = vsel %vm2518_vm9, %v4365_v41, %v16369_v56  ;;  %v16452_v3 = vld [vmem:[#allocation151_spill] sm:$0xff]  ;;  %v9050_v41 = vld [vmem:[#allocation2 + $0x268] sm:$0xff] }
 0x601   : > { %v6684_v61 = vrot.slane %v6601_v23, 3  ;;  %v4280_v6 = vsel %vm361_vm0, %v8034_v14, %v16448_v58  ;;  %v16450_v38 = vld [vmem:[#allocation262_spill] sm:$0xff]  ;;  %v16457_v47 = vld [vmem:[#allocation59_spill] sm:$0xff] }
 0x602   : > { %v6095_v34 = vpop.permute.xlu1 %6094  ;;  %v4363_v5 = vsel %vm2453_vm8, %v4280_v6, %v16449_v11  ;;  %8435 = vmatpush3.bf16.msra.mxu0 %v8941_v21  ;;  %v4477_v7 = vsel %vm2583_vm10, %v4422_v9, %v16450_v38  ;;  %v16451_v24 = vld [vmem:[#allocation142_spill] sm:$0xff]  ;;  %v16458_v28 = vld [vmem:[#allocation139_spill] sm:$0xff]  ;;  %v16461_v6 = vld [vmem:[#allocation257_spill] sm:$0xff] }
 0x603   : > { %v6607_v44 = vsel %vm2843_vm14, %v6543_v59, %v6095_v34  ;;  %v6093_v36 = vpop.permute.xlu0 %6092  ;;  %v6686_v27 = vsel %vm1523_vm1, %v6684_v61, %v6685_v60  ;;  %4236 = vrot.lane.b32.xlu1 %v4174_v31, %s9101_s13  ;;  %v4421_v31 = vsel %vm2518_vm9, %v4363_v5, %v12588_v8  ;;  %v4541_v60 = vsel %vm2648_vm11, %v4477_v7, %v16452_v3  ;;  %v16453_v56 = vld [vmem:[#allocation210_spill] sm:$0xff]  ;;  %v16464_v38 = vld [vmem:[#allocation143_spill] sm:$0xff] }
 0x604   : > { %v6688_v4 = vrot.slane %v6607_v44, 3  ;;  %v6605_v57 = vsel %vm2843_vm14, %v6541_v48, %v6093_v36  ;;  %8696 = vmatprep.mubr.msk.bf16.mxu1 %vm3013_vm2, %v6686_v27  ;;  %4234 = vrot.lane.b32.xlu0 %v4172_v2, %s9101_s13  ;;  %v4475_v63 = vsel %vm2583_vm10, %v4421_v31, %v16451_v24  ;;  %v16454_v23 = vld [vmem:[#allocation222_spill] sm:$0xff]  ;;  %v8038_v36 = vld [vmem:[#allocation2 + $0x260] sm:$0xff] }
 0x605   : > { %v6687_v20 = vrot.slane %v6605_v57, 3  ;;  %v4539_v8 = vsel %vm2648_vm11, %v4475_v63, %v16453_v56  ;;  %v4605_v0 = vsel %vm2713_vm12, %v4541_v60, %v16454_v23  ;;  %v16459_v48 = vld [vmem:[#allocation82_spill] sm:$0xff]  ;;  %v16467_v60 = vld [vmem:[#allocation259_spill] sm:$0xff] }
 0x606   : > { %v14535_v43 = vpop.permute.xlu1 %5393  ;;  %v4603_v61 = vsel %vm2713_vm12, %v4539_v8, %v16455_v46  ;;  %v4669_v54 = vsel %vm2778_vm13, %v4605_v0, %v16456_v37  ;;  %v4289_v44 = vsel %vm361_vm0, %v9050_v41, %v16459_v48  ;;  %v16460_v21 = vld [vmem:[#allocation130_spill] sm:$0xff]  ;;  %v16469_v8 = vld [vmem:[#allocation176_spill] sm:$0xff]  ;;  %v16470_v23 = vld [vmem:[#allocation223_spill] sm:$0xff] }
 0x607   : > { %v14541_v25 = vpop.permute.xlu0 %5391  ;;  %v6689_v2 = vsel %vm1523_vm1, %v6687_v20, %v6688_v4  ;;  %4240 = vrot.lane.b32.xlu1 %v4177_v53, %s9101_s13  ;;  %v4667_v14 = vsel %vm2778_vm13, %v4603_v61, %v16457_v47  ;;  %v4369_v4 = vsel %vm2453_vm8, %v4289_v44, %v16460_v21  ;;  %v16463_v53 = vld [vmem:[#allocation159_spill] sm:$0xff]  ;;  %v16465_v24 = vld [vmem:[#allocation190_spill] sm:$0xff]  ;;  %v16471_v46 = vld [vmem:[#allocation120_spill] sm:$0xff] }
 0x608   : > { %8697 = vmatmul.mubr.msk.bf16.gmra.mrb[92].mxu1 %vm3013_vm2, %v6689_v2  ;;  %4238 = vrot.lane.b32.xlu0 %v4175_v51, %s9101_s13  ;;  %v4425_v5 = vsel %vm2518_vm9, %v4369_v4, %v16370_v33  ;;  %v16468_v33 = vld [vmem:[#allocation242_spill] sm:$0xff] }
 0x609   : > { %v4481_v7 = vsel %vm2583_vm10, %v4425_v5, %v16464_v38  ;;  %v16475_v5 = vld [vmem:[#allocation188_spill] sm:$0xff] }
 0x60a   : > { %v4205_v19 = vpop.permute.xlu1 %4204 }
 0x60b   : > { %v4733_v39 = vsel %vm2843_vm14, %v4669_v54, %v4205_v19  ;;  %v4203_v59 = vpop.permute.xlu0 %4202  ;;  %8763 = vrot.lane.b32.xlu1 %v16458_v28, %s9102_s18  ;;  %v16472_v54 = vld [vmem:[#allocation62_spill] sm:$0xff] }
 0x60c   : > { %v4821_v34 = vrot.slane %v4733_v39, 6  ;;  %v4731_v40 = vsel %vm2843_vm14, %v4667_v14, %v4203_v59  ;;  %8758 = vrot.lane.b32.xlu0 %v13950_v16, %s9102_s18  ;;  %v16462_v16 = vld [vmem:[#allocation83_spill] sm:$0xff] }
 0x60d   : > { %v4820_v51 = vrot.slane %v4731_v40, 6  ;;  %v4286_v20 = vsel %vm361_vm0, %v8038_v36, %v16462_v16  ;;  %v16474_v36 = vld [vmem:[#allocation189_spill] sm:$0xff] }
 0x60e   : > { %v14569_v27 = vpop.permute.xlu1 %5397  ;;  %v4367_v11 = vsel %vm2453_vm8, %v4286_v20, %v16463_v53 }
 0x60f   : > { %v14573_v57 = vpop.permute.xlu0 %5395  ;;  %v4822_v58 = vsel %vm1222_vm4, %v4820_v51, %v4821_v34  ;;  %8773 = vrot.lane.b32.xlu1 %v16461_v6, %s9102_s18  ;;  %v4424_v31 = vsel %vm2518_vm9, %v4367_v11, %v12586_v22  ;;  %v16473_v34 = vld [vmem:[#allocation231_spill] sm:$0xff] }
 0x610   : > { %8646 = vmatprep.mubr.msk.bf16.mxu0 %vm3013_vm2, %v4822_v58  ;;  %8768 = vrot.lane.b32.xlu0 %v13942_v29, %s9102_s18  ;;  %v4479_v63 = vsel %vm2583_vm10, %v4424_v31, %v16465_v24  ;;  %v16466_v29 = vld [vmem:[#allocation211_spill] sm:$0xff] }
 0x611   : > { %v4545_v3 = vsel %vm2648_vm11, %v4481_v7, %v16466_v29  ;;  %v4543_v56 = vsel %vm2648_vm11, %v4479_v63, %v16468_v33  ;;  %v16476_v29 = vld [vmem:[#allocation264_spill] sm:$0xff]  ;;  %v16477_v33 = vld [vmem:[#allocation263_spill] sm:$0xff] }
 0x612   : > { %v14587_v9 = vpop.permute.xlu1 %5522  ;;  %v4609_v22 = vsel %vm2713_vm12, %v4545_v3, %v16469_v8  ;;  %v4607_v0 = vsel %vm2713_vm12, %v4543_v56, %v16470_v23 }
 0x613   : > { %v14593_v2 = vpop.permute.xlu0 %5520  ;;  %8783 = vrot.lane.b32.xlu1 %v16467_v60, %s9102_s18  ;;  %v4673_v61 = vsel %vm2778_vm13, %v4609_v22, %v16471_v46  ;;  %v4671_v19 = vsel %vm2778_vm13, %v4607_v0, %v16472_v54 }
 0x614   : > { %8778 = vrot.lane.b32.xlu0 %v14149_v50, %s9102_s18 }
 0x616   : > { %v4209_v37 = vpop.permute.xlu1 %4208 }
 0x617   : > { %v4737_v47 = vsel %vm2843_vm14, %v4673_v61, %v4209_v37  ;;  %v4207_v14 = vpop.permute.xlu0 %4206  ;;  %8793 = vrot.lane.b32.xlu1 %v16473_v34, %s9102_s18  ;;  %v16479_v61 = vld [vmem:[#allocation235_spill] sm:$0xff] }
 0x618   : > { %v4824_v39 = vrot.slane %v4737_v47, 6  ;;  %v4735_v59 = vsel %vm2843_vm14, %v4671_v19, %v4207_v14  ;;  %8788 = vrot.lane.b32.xlu0 %v14144_v12, %s9102_s18  ;;  %v8218_v14 = vld [vmem:[#allocation2 + $0x280] sm:$0xff] }
 0x619   : > { %v4823_v50 = vrot.slane %v4735_v59, 6  ;;  %v9051_v59 = vld [vmem:[#allocation2 + $0x288] sm:$0xff] }
 0x61a   : > { %v14619_v40 = vpop.permute.xlu1 %5526  ;;  %v6193_v34 = vsel %vm361_vm0, %v9051_v59, %v14535_v43 }
 0x61b   : > { %v14621_v28 = vpop.permute.xlu0 %5524  ;;  %v8686_v51 = vpop.f32.mrb[80].mxu1  ;;  %v4825_v41 = vsel %vm1222_vm4, %v4823_v50, %v4824_v39  ;;  %8803 = vrot.lane.b32.xlu1 %v16474_v36, %s9102_s18  ;;  %v16480_v39 = vld [vmem:[#allocation199_spill] sm:$0xff] }
 0x61c   : > { %v6863_v48 = vadd.f32 %v8686_v51, %v13909_v17  ;;  %8647 = vmatmul.mubr.msk.bf16.gmra.mrb[16].mxu0 %vm3013_vm2, %v4825_v41  ;;  %v6854_v44 = vpop.f32.mrb[81].mxu1  ;;  %8798 = vrot.lane.b32.xlu0 %v14374_v55, %s9102_s18  ;;  %v8042_v51 = vld [vmem:[#allocation2 + $0x280] sm:$0xff]  ;;  %v6190_v41 = vsel %vm361_vm0, %v8218_v14, %v14541_v25  ;;  %v9053_v25 = vld [vmem:[#allocation2 + $0x2a8] sm:$0xff] }
 0x61d   : > { %v6855_v21 = vadd.f32 %v6854_v44, %v13909_v17  ;;  %v8687_v4 = vpop.f32.mrb[82].mxu1  ;;  %v8222_v36 = vld [vmem:[#allocation2 + $0x2a0] sm:$0xff] }
 0x61e   : > { %v6866_v12 = vadd.f32 %v8687_v4, %v13909_v17  ;;  %v6857_v58 = vpop.f32.mrb[83].mxu1  ;;  %v5635_v6 = vpop.permute.xlu1 %5634  ;;  %v6947_v53 = vmax.f32 %v6863_v48, 0.0  ;;  %v6259_v48 = vsel %vm2453_vm8, %v6193_v34, %v14587_v9  ;;  %v16481_v4 = vld [vmem:[#allocation198_spill] sm:$0xff]  ;;  %v6199_v9 = vsel %vm361_vm0, %v9053_v25, %v14569_v27  ;;  %v16486_v14 = vld [vmem:[#allocation19_spill] sm:$0xff]  ;;  %v16487_v34 = vld [vmem:[#allocation40_spill] sm:$0xff] }
 0x61f   : > { %v6858_v16 = vadd.f32 %v6857_v58, %v13909_v17  ;;  %v5633_v20 = vpop.permute.xlu0 %5632  ;;  %8813 = vrot.lane.b32.xlu1 %v16475_v5, %s9102_s18  ;;  %v6945_v31 = vmax.f32 %v6855_v21, 0.0  ;;  %v6257_v21 = vsel %vm2453_vm8, %v6190_v41, %v14593_v2  ;;  %v16482_v58 = vld [vmem:[#allocation13_spill] sm:$0xff]  ;;  %v16484_v5 = vld [vmem:[#allocation119_spill] sm:$0xff]  ;;  %v6196_v2 = vsel %vm361_vm0, %v8222_v36, %v14573_v57 }
 0x620   : > { %v6948_v11 = vmax.f32 %v6866_v12, 0.0  ;;  %8808 = vrot.lane.b32.xlu0 %v14367_v18, %s9102_s18  ;;  %v16478_v18 = vld [vmem:[#allocation265_spill] sm:$0xff] }
 0x621   : > { %v6946_v38 = vmax.f32 %v6858_v16, 0.0  ;;  %v9052_v12 = vld [vmem:[#allocation2 + $0x288] sm:$0xff]  ;;  %v16483_v16 = vld [vmem:[#allocation14_spill] sm:$0xff] }
 0x622   : > { %v8827_v7 = vpack.i.bf16 %v6948_v11, %v6947_v53  ;;  %v5639_v24 = vpop.permute.xlu1 %5638  ;;  %v4295_v43 = vsel %vm361_vm0, %v9052_v12, %v16482_v58  ;;  %v4292_v53 = vsel %vm361_vm0, %v8042_v51, %v16483_v16  ;;  %v8046_v11 = vld [vmem:[#allocation2 + $0x2a0] sm:$0xff] }
 0x623   : > { %v8817_v55 = vpack.i.bf16 %v6946_v38, %v6945_v31  ;;  %v14637_v63 = vpop.permute.xlu0 %5636  ;;  %8823 = vrot.lane.b32.xlu1 %v16476_v29, %s9102_s18  ;;  %v6293_v31 = vsel %vm2518_vm9, %v6259_v48, %v16484_v5  ;;  %v16485_v29 = vld [vmem:[#allocation138_spill] sm:$0xff]  ;;  %v16489_v51 = vld [vmem:[#allocation131_spill] sm:$0xff] }
 0x624   : > { %v4373_v41 = vsel %vm2453_vm8, %v4295_v43, %v16489_v51  ;;  %v16498_v51 = vld [vmem:[#allocation41_spill] sm:$0xff] }
 0x625   : > { %8818 = vrot.lane.b32.xlu0 %v8817_v55, %s9102_s18  ;;  %v6355_v55 = vsel %vm2583_vm10, %v6293_v31, %v5635_v6 }
 0x626   : > { %v5747_v3 = vpop.permute.xlu1 %5746 }
 0x627   : > { %v5745_v60 = vpop.permute.xlu0 %5744  ;;  %8833 = vrot.lane.b32.xlu1 %v16477_v33, %s9102_s18  ;;  %v6292_v33 = vsel %vm2518_vm9, %v6257_v21, %v16485_v29  ;;  %v6419_v57 = vsel %vm2648_vm11, %v6355_v55, %v5747_v3  ;;  %v16490_v21 = vld [vmem:[#allocation160_spill] sm:$0xff]  ;;  %v16494_v55 = vld [vmem:[#allocation161_spill] sm:$0xff] }
 0x628   : > { %v6353_v59 = vsel %vm2583_vm10, %v6292_v33, %v5633_v20 }
 0x629   : > { %8828 = vrot.lane.b32.xlu0 %v8827_v7, %s9102_s18  ;;  %v6263_v7 = vsel %vm2453_vm8, %v6199_v9, %v14619_v40  ;;  %v16488_v40 = vld [vmem:[#allocation21_spill] sm:$0xff]  ;;  %v6417_v48 = vsel %vm2648_vm11, %v6353_v59, %v5745_v60 }
 0x62a   : > { %v5751_v56 = vpop.permute.xlu1 %5750  ;;  %v4298_v6 = vsel %vm361_vm0, %v8046_v11, %v16488_v40  ;;  %v16492_v11 = vld [vmem:[#allocation256_spill] sm:$0xff]  ;;  %v16497_v40 = vld [vmem:[#allocation243_spill] sm:$0xff] }
 0x62b   : > { %v14645_v8 = vpop.permute.xlu0 %5748  ;;  %8843 = vrot.lane.b32.xlu1 %v16478_v18, %s9102_s18 }
 0x62e   : > { %v5843_v22 = vpop.permute.xlu1 %5842 }
 0x62f   : > { %v14649_v23 = vpop.f32.mrb[4].mxu0  ;;  %v5841_v0 = vpop.permute.xlu0 %5840  ;;  %8853 = vrot.lane.b32.xlu1 %v16479_v61, %s9102_s18  ;;  %v9054_v61 = vld [vmem:[#allocation2 + $0x2a8] sm:$0xff]  ;;  %v6483_v36 = vsel %vm2713_vm12, %v6419_v57, %v5843_v22 }
 0x630   : > { %v14651_v46 = vpop.f32.mrb[5].mxu0  ;;  %v4301_v27 = vsel %vm361_vm0, %v9054_v61, %v16486_v14  ;;  %v6481_v3 = vsel %vm2713_vm12, %v6417_v48, %v5841_v0  ;;  %v16500_v48 = vld [vmem:[#allocation166_spill] sm:$0xff] }
 0x631   : > { %v14655_v37 = vpop.f32.mrb[6].mxu0 }
 0x632   : > { %v14657_v54 = vpop.f32.mrb[7].mxu0  ;;  %v5847_v19 = vpop.permute.xlu1 %5846 }
 0x633   : > { %v5845_v47 = vpop.permute.xlu0 %5844  ;;  %8863 = vrot.lane.b32.xlu1 %v16480_v39, %s9102_s18  ;;  %v6261_v39 = vsel %vm2453_vm8, %v6196_v2, %v14621_v28  ;;  %v4371_v28 = vsel %vm2453_vm8, %v4292_v53, %v16490_v21  ;;  %v16501_v21 = vld [vmem:[#allocation250_spill] sm:$0xff] }
 0x634   : > { %v6294_v43 = vsel %vm2518_vm9, %v6261_v39, %v16492_v11  ;;  %v16495_v39 = vld [vmem:[#allocation191_spill] sm:$0xff] }
 0x635   : > { %v6357_v53 = vsel %vm2583_vm10, %v6294_v43, %v14637_v63  ;;  %v4377_v63 = vsel %vm2453_vm8, %v4301_v27, %v16494_v55  ;;  %v16503_v43 = vld [vmem:[#allocation123_spill] sm:$0xff] }
 0x636   : > { %v5971_v50 = vpop.permute.xlu1 %5970  ;;  %v16508_v55 = vld [vmem:[#allocation239_spill] sm:$0xff] }
 0x637   : > { %v5969_v44 = vpop.permute.xlu0 %5968  ;;  %8873 = vrot.lane.b32.xlu1 %v16481_v4, %s9102_s18  ;;  %v16491_v4 = vld [vmem:[#allocation122_spill] sm:$0xff]  ;;  %v6547_v12 = vsel %vm2778_vm13, %v6483_v36, %v5971_v50 }
 0x638   : > { %v6295_v20 = vsel %vm2518_vm9, %v6263_v7, %v16491_v4  ;;  %v6545_v60 = vsel %vm2778_vm13, %v6481_v3, %v5969_v44  ;;  %v16493_v50 = vld [vmem:[#allocation38_spill] sm:$0xff]  ;;  %v6421_v44 = vsel %vm2648_vm11, %v6357_v53, %v14645_v8  ;;  %v16505_v53 = vld [vmem:[#allocation65_spill] sm:$0xff] }
 0x639   : > { %v6359_v16 = vsel %vm2583_vm10, %v6295_v20, %v5639_v24  ;;  %v4428_v24 = vsel %vm2518_vm9, %v4373_v41, %v16386_v42  ;;  %v6485_v33 = vsel %vm2713_vm12, %v6421_v44, %v5845_v47 }
 0x63a   : > { %v5975_v38 = vpop.permute.xlu1 %5974  ;;  %v6423_v9 = vsel %vm2648_vm11, %v6359_v16, %v5751_v56  ;;  %v4427_v56 = vsel %vm2518_vm9, %v4371_v28, %v16387_v15  ;;  %v4485_v42 = vsel %vm2583_vm10, %v4428_v24, %v16495_v39  ;;  %v16507_v24 = vld [vmem:[#allocation152_spill] sm:$0xff]  ;;  %v16511_v39 = vld [vmem:[#allocation175_spill] sm:$0xff] }
 0x63b   : > { %v5973_v18 = vpop.permute.xlu0 %5972  ;;  %8883 = vrot.lane.b32.xlu1 %v16487_v34, %s9102_s18  ;;  %v6487_v2 = vsel %vm2713_vm12, %v6423_v9, %v5847_v19  ;;  %v16496_v34 = vld [vmem:[#allocation234_spill] sm:$0xff]  ;;  %v4549_v15 = vsel %vm2648_vm11, %v4485_v42, %v16497_v40 }
 0x63c   : > { %v6551_v61 = vsel %vm2778_vm13, %v6487_v2, %v5975_v38  ;;  %v6549_v59 = vsel %vm2778_vm13, %v6485_v33, %v5973_v18  ;;  %v4483_v27 = vsel %vm2583_vm10, %v4427_v56, %v16496_v34  ;;  %v16499_v18 = vld [vmem:[#allocation132_spill] sm:$0xff]  ;;  %v4613_v28 = vsel %vm2713_vm12, %v4549_v15, %v16501_v21  ;;  %v16510_v33 = vld [vmem:[#allocation49_spill] sm:$0xff] }
 0x63d   : > { %v4375_v41 = vsel %vm2453_vm8, %v4298_v6, %v16499_v18  ;;  %v4547_v36 = vsel %vm2648_vm11, %v4483_v27, %v16500_v48  ;;  %v9055_v18 = vld [vmem:[#allocation2 + $0x2c8] sm:$0xff] }
 0x63e   : > { %v6099_v58 = vpop.permute.xlu1 %6098  ;;  %v4430_v3 = vsel %vm2518_vm9, %v4375_v41, %v16391_v32  ;;  %v16514_v41 = vld [vmem:[#allocation89_spill] sm:$0xff] }
 0x63f   : > { %v6611_v22 = vsel %vm2843_vm14, %v6547_v12, %v6099_v58  ;;  %v6097_v25 = vpop.permute.xlu0 %6096  ;;  %8893 = vrot.lane.b32.xlu1 %v16493_v50, %s9102_s18  ;;  %v4431_v12 = vsel %vm2518_vm9, %v4377_v63, %v16390_v62  ;;  %v16502_v58 = vld [vmem:[#allocation251_spill] sm:$0xff]  ;;  %v16506_v50 = vld [vmem:[#allocation34_spill] sm:$0xff]  ;;  %v16509_v63 = vld [vmem:[#allocation45_spill] sm:$0xff]  ;;  %v4307_v48 = vsel %vm361_vm0, %v9055_v18, %v16514_v41 }
 0x640   : > { %v6691_v31 = vrot.slane %v6611_v22, 3  ;;  %v6609_v0 = vsel %vm2843_vm14, %v6545_v60, %v6097_v25  ;;  %v4611_v16 = vsel %vm2713_vm12, %v4547_v36, %v16502_v58  ;;  %v4677_v60 = vsel %vm2778_vm13, %v4613_v28, %v16503_v43  ;;  %v16504_v22 = vld [vmem:[#allocation144_spill] sm:$0xff]  ;;  %v16515_v28 = vld [vmem:[#allocation133_spill] sm:$0xff]  ;;  %v16516_v58 = vld [vmem:[#allocation90_spill] sm:$0xff] }
 0x641   : > { %v6690_v7 = vrot.slane %v6609_v0, 3  ;;  %v4489_v25 = vsel %vm2583_vm10, %v4431_v12, %v16504_v22  ;;  %v4675_v9 = vsel %vm2778_vm13, %v4611_v16, %v16505_v53  ;;  %v4487_v62 = vsel %vm2583_vm10, %v4430_v3, %v16506_v50  ;;  %v8050_v36 = vld [vmem:[#allocation2 + $0x2c0] sm:$0xff]  ;;  %v9056_v43 = vld [vmem:[#allocation2 + $0x2e8] sm:$0xff]  ;;  %v16530_v41 = vld [vmem:[#allocation214_spill] sm:$0xff] }
 0x642   : > { %v6103_v14 = vpop.permute.xlu1 %6102  ;;  %v4553_v44 = vsel %vm2648_vm11, %v4489_v25, %v16507_v24  ;;  %v4551_v56 = vsel %vm2648_vm11, %v4487_v62, %v16509_v63  ;;  %v4304_v16 = vsel %vm361_vm0, %v8050_v36, %v16516_v58  ;;  %v8054_v22 = vld [vmem:[#allocation2 + $0x2e0] sm:$0xff]  ;;  %v16529_v18 = vld [vmem:[#allocation237_spill] sm:$0xff] }
 0x643   : > { %v6615_v8 = vsel %vm2843_vm14, %v6551_v61, %v6103_v14  ;;  %v6101_v19 = vpop.permute.xlu0 %6100  ;;  %v6692_v57 = vsel %vm1523_vm1, %v6690_v7, %v6691_v31  ;;  %8903 = vrot.lane.b32.xlu1 %v16498_v51, %s9102_s18  ;;  %v4617_v61 = vsel %vm2713_vm12, %v4553_v44, %v16510_v33  ;;  %v4615_v42 = vsel %vm2713_vm12, %v4551_v56, %v16511_v39  ;;  %v16518_v25 = vld [vmem:[#allocation168_spill] sm:$0xff]  ;;  %v16520_v62 = vld [vmem:[#allocation35_spill] sm:$0xff]  ;;  %v16524_v33 = vld [vmem:[#allocation153_spill] sm:$0xff] }
 0x644   : > { %v6694_v47 = vrot.slane %v6615_v8, 3  ;;  %v6613_v38 = vsel %vm2843_vm14, %v6549_v59, %v6101_v19  ;;  %8700 = vmatprep.mubr.msk.bf16.mxu1 %vm3013_vm2, %v6692_v57  ;;  %v16512_v59 = vld [vmem:[#allocation126_spill] sm:$0xff]  ;;  %v16513_v57 = vld [vmem:[#allocation68_spill] sm:$0xff]  ;;  %v4379_v53 = vsel %vm2453_vm8, %v4304_v16, %v16518_v25 }
 0x645   : > { %v6693_v20 = vrot.slane %v6613_v38, 3  ;;  %v4681_v8 = vsel %vm2778_vm13, %v4617_v61, %v16512_v59  ;;  %v4679_v34 = vsel %vm2778_vm13, %v4615_v42, %v16513_v57  ;;  %v4433_v50 = vsel %vm2518_vm9, %v4379_v53, %v16415_v26  ;;  %v16523_v56 = vld [vmem:[#allocation92_spill] sm:$0xff]  ;;  %v16526_v26 = vld [vmem:[#allocation134_spill] sm:$0xff] }
 0x646   : > { %v4213_v6 = vpop.permute.xlu1 %4212 }
 0x647   : > { %v4741_v31 = vsel %vm2843_vm14, %v4677_v60, %v4213_v6  ;;  %v4211_v0 = vpop.permute.xlu0 %4210  ;;  %v6695_v32 = vsel %vm1523_vm1, %v6693_v20, %v6694_v47  ;;  %8913 = vrot.lane.b32.xlu1 %v16508_v55, %s9102_s18  ;;  %v4381_v20 = vsel %vm2453_vm8, %v4307_v48, %v16515_v28  ;;  %v16517_v60 = vld [vmem:[#allocation91_spill] sm:$0xff]  ;;  %v16522_v55 = vld [vmem:[#allocation165_spill] sm:$0xff] }
 0x648   : > { %v4827_v2 = vrot.slane %v4741_v31, 6  ;;  %v4739_v7 = vsel %vm2843_vm14, %v4675_v9, %v4211_v0  ;;  %8701 = vmatmul.mubr.msk.bf16.gmra.mrb[96].mxu1 %vm3013_vm2, %v6695_v32  ;;  %v4313_v6 = vsel %vm361_vm0, %v9056_v43, %v16517_v60  ;;  %v4434_v9 = vsel %vm2518_vm9, %v4381_v20, %v16414_v30  ;;  %v16519_v0 = vld [vmem:[#allocation169_spill] sm:$0xff]  ;;  %v16531_v28 = vld [vmem:[#allocation215_spill] sm:$0xff]  ;;  %v16532_v20 = vld [vmem:[#allocation4_spill] sm:$0xff] }
 0x649   : > { %v4826_v14 = vrot.slane %v4739_v7, 6  ;;  %v4385_v32 = vsel %vm2453_vm8, %v4313_v6, %v16519_v0  ;;  %v4493_v24 = vsel %vm2583_vm10, %v4434_v9, %v16520_v62  ;;  %v4310_v30 = vsel %vm361_vm0, %v8054_v22, %v16523_v56 }
 0x64a   : > { %v4217_v19 = vpop.permute.xlu1 %4216  ;;  %v4557_v63 = vsel %vm2648_vm11, %v4493_v24, %v16522_v55  ;;  %v4383_v42 = vsel %vm2453_vm8, %v4310_v30, %v16526_v26  ;;  %v4437_v59 = vsel %vm2518_vm9, %v4385_v32, %v16418_v35 }
 0x64b   : > { %v4745_v27 = vsel %vm2843_vm14, %v4681_v8, %v4217_v19  ;;  %v4215_v40 = vpop.permute.xlu0 %4214  ;;  %v4828_v15 = vsel %vm1222_vm4, %v4826_v14, %v4827_v2  ;;  %v16521_v2 = vld [vmem:[#allocation145_spill] sm:$0xff]  ;;  %v16525_v14 = vld [vmem:[#allocation50_spill] sm:$0xff] }
 0x64c   : > { %v4830_v47 = vrot.slane %v4745_v27, 6  ;;  %v4743_v38 = vsel %vm2843_vm14, %v4679_v34, %v4215_v40  ;;  %8650 = vmatprep.mubr.msk.bf16.mxu0 %vm3013_vm2, %v4828_v15  ;;  %v4491_v7 = vsel %vm2583_vm10, %v4433_v50, %v16521_v2  ;;  %v4621_v39 = vsel %vm2713_vm12, %v4557_v63, %v16525_v14  ;;  %v16527_v8 = vld [vmem:[#allocation22_spill] sm:$0xff]  ;;  %v16528_v40 = vld [vmem:[#allocation236_spill] sm:$0xff] }
 0x64d   : > { %v4829_v51 = vrot.slane %v4743_v38, 6  ;;  %v4555_v61 = vsel %vm2648_vm11, %v4491_v7, %v16524_v33  ;;  %v4436_v27 = vsel %vm2518_vm9, %v4383_v42, %v16419_v45  ;;  %v4497_v15 = vsel %vm2583_vm10, %v4437_v59, %v16528_v40  ;;  %v9057_v7 = vld [vmem:[#allocation2 + $0x308] sm:$0xff] }
 0x64e   : > { %v4093_v21 = vpop.permute.xlu1 %4092  ;;  %v4619_v19 = vsel %vm2713_vm12, %v4555_v61, %v16527_v8  ;;  %v4495_v35 = vsel %vm2583_vm10, %v4436_v27, %v16529_v18  ;;  %v4561_v48 = vsel %vm2648_vm11, %v4497_v15, %v16530_v41  ;;  %v16535_v33 = vld [vmem:[#allocation252_spill] sm:$0xff]  ;;  %v16537_v15 = vld [vmem:[#allocation98_spill] sm:$0xff] }
 0x64f   : > { %v4091_v3 = vpop.permute.xlu0 %4090  ;;  %v4831_v12 = vsel %vm1222_vm4, %v4829_v51, %v4830_v47  ;;  %v4685_v57 = vsel %vm2778_vm13, %v4621_v39, %v4093_v21  ;;  %v4559_v45 = vsel %vm2648_vm11, %v4495_v35, %v16531_v28  ;;  %v9058_v8 = vld [vmem:[#allocation2 + $0x300] sm:$0xff]  ;;  %v9059_v40 = vld [vmem:[#allocation2 + $0x328] sm:$0xff] }
 0x650   : > { %8651 = vmatmul.mubr.msk.bf16.gmra.mrb[20].mxu0 %vm3013_vm2, %v4831_v12  ;;  %v4683_v47 = vsel %vm2778_vm13, %v4619_v19, %v4091_v3  ;;  %v4625_v12 = vsel %vm2713_vm12, %v4561_v48, %v16532_v20  ;;  %v16533_v3 = vld [vmem:[#allocation23_spill] sm:$0xff]  ;;  %v16536_v19 = vld [vmem:[#allocation96_spill] sm:$0xff]  ;;  %v16539_v48 = vld [vmem:[#allocation170_spill] sm:$0xff] }
 0x651   : > { %v4623_v16 = vsel %vm2713_vm12, %v4559_v45, %v16533_v3  ;;  %v16540_v28 = vld [vmem:[#allocation37_spill] sm:$0xff] }
 0x652   : > { %v4097_v31 = vpop.permute.xlu1 %4096 }
 0x653   : > { %v4095_v44 = vpop.permute.xlu0 %4094  ;;  %v4689_v43 = vsel %vm2778_vm13, %v4625_v12, %v4097_v31 }
 0x654   : > { %v4687_v6 = vsel %vm2778_vm13, %v4623_v16, %v4095_v44  ;;  %v16534_v44 = vld [vmem:[#allocation94_spill] sm:$0xff]  ;;  %v16542_v16 = vld [vmem:[#allocation244_spill] sm:$0xff] }
 0x655   : > { %v4319_v55 = vsel %vm361_vm0, %v9057_v7, %v16534_v44  ;;  %v16548_v7 = vld [vmem:[#allocation147_spill] sm:$0xff] }
 0x656   : > { %v4221_v34 = vpop.permute.xlu1 %4220  ;;  %v4389_v61 = vsel %vm2453_vm8, %v4319_v55, %v16535_v33  ;;  %v16549_v33 = vld [vmem:[#allocation200_spill] sm:$0xff] }
 0x657   : > { %v4749_v38 = vsel %vm2843_vm14, %v4685_v57, %v4221_v34  ;;  %v4219_v51 = vpop.permute.xlu0 %4218  ;;  %v4316_v57 = vsel %vm361_vm0, %v9058_v8, %v16536_v19  ;;  %v4440_v18 = vsel %vm2518_vm9, %v4389_v61, %v16442_v10  ;;  %v9060_v10 = vld [vmem:[#allocation2 + $0x320] sm:$0xff]  ;;  %v16550_v61 = vld [vmem:[#allocation154_spill] sm:$0xff] }
 0x658   : > { %v4833_v36 = vrot.slane %v4749_v38, 6  ;;  %v4747_v21 = vsel %vm2843_vm14, %v4683_v47, %v4219_v51  ;;  %v4325_v47 = vsel %vm361_vm0, %v9059_v40, %v16537_v15  ;;  %v16538_v38 = vld [vmem:[#allocation135_spill] sm:$0xff]  ;;  %v4501_v45 = vsel %vm2583_vm10, %v4440_v18, %v16540_v28 }
 0x659   : > { %v4832_v58 = vrot.slane %v4747_v21, 6  ;;  %v4387_v51 = vsel %vm2453_vm8, %v4316_v57, %v16538_v38 }
 0x65a   : > { %v4225_v60 = vpop.permute.xlu1 %4224  ;;  %v4439_v21 = vsel %vm2518_vm9, %v4387_v51, %v16443_v52 }
 0x65b   : > { %v4753_v22 = vsel %vm2843_vm14, %v4689_v43, %v4225_v60  ;;  %v4223_v25 = vpop.permute.xlu0 %4222  ;;  %v8690_v53 = vpop.f32.mrb[84].mxu1  ;;  %v4834_v9 = vsel %vm1222_vm4, %v4832_v58, %v4833_v36  ;;  %v4393_v36 = vsel %vm2453_vm8, %v4325_v47, %v16539_v48  ;;  %v16541_v58 = vld [vmem:[#allocation146_spill] sm:$0xff]  ;;  %v4565_v43 = vsel %vm2648_vm11, %v4501_v45, %v16542_v16  ;;  %v16543_v60 = vld [vmem:[#allocation100_spill] sm:$0xff] }
 0x65c   : > { %v4836_v0 = vrot.slane %v4753_v22, 6  ;;  %v4751_v32 = vsel %vm2843_vm14, %v4687_v6, %v4223_v25  ;;  %v6879_v50 = vadd.f32 %v8690_v53, %v13909_v17  ;;  %8654 = vmatprep.mubr.msk.bf16.mxu0 %vm3013_vm2, %v4834_v9  ;;  %v6870_v62 = vpop.f32.mrb[85].mxu1  ;;  %v4499_v3 = vsel %vm2583_vm10, %v4439_v21, %v16541_v58  ;;  %v16544_v22 = vld [vmem:[#allocation245_spill] sm:$0xff]  ;;  %v16546_v9 = vld [vmem:[#allocation171_spill] sm:$0xff] }
 0x65d   : > { %v4835_v24 = vrot.slane %v4751_v32, 6  ;;  %v6871_v31 = vadd.f32 %v6870_v62, %v13909_v17  ;;  %v8691_v2 = vpop.f32.mrb[86].mxu1  ;;  %v4322_v6 = vsel %vm361_vm0, %v9060_v10, %v16543_v60  ;;  %v4563_v25 = vsel %vm2648_vm11, %v4499_v3, %v16544_v22  ;;  %v16545_v53 = vld [vmem:[#allocation5_spill] sm:$0xff]  ;;  %v9062_v16 = vld [vmem:[#allocation2 + $0x340] sm:$0xff] }
 0x65e   : > { %v6882_v63 = vadd.f32 %v8691_v2, %v13909_v17  ;;  %v6873_v56 = vpop.f32.mrb[87].mxu1  ;;  %v4101_v30 = vpop.permute.xlu1 %4100  ;;  %v6951_v42 = vmax.f32 %v6879_v50, 0.0  ;;  %v4629_v52 = vsel %vm2713_vm12, %v4565_v43, %v16545_v53  ;;  %v4443_v32 = vsel %vm2518_vm9, %v4393_v36, %v16444_v49  ;;  %v16547_v50 = vld [vmem:[#allocation24_spill] sm:$0xff]  ;;  %v16554_v36 = vld [vmem:[#allocation102_spill] sm:$0xff]  ;;  %v16557_v22 = vld [vmem:[#allocation25_spill] sm:$0xff] }
 0x65f   : > { %v6874_v14 = vadd.f32 %v6873_v56, %v13909_v17  ;;  %v4099_v39 = vpop.permute.xlu0 %4098  ;;  %v4837_v26 = vsel %vm1222_vm4, %v4835_v24, %v4836_v0  ;;  %v6949_v34 = vmax.f32 %v6871_v31, 0.0  ;;  %v4391_v0 = vsel %vm2453_vm8, %v4322_v6, %v16546_v9  ;;  %v16556_v43 = vld [vmem:[#allocation104_spill] sm:$0xff]  ;;  %v16558_v53 = vld [vmem:[#allocation227_spill] sm:$0xff] }
 0x660   : > { %v6952_v59 = vmax.f32 %v6882_v63, 0.0  ;;  %8655 = vmatmul.mubr.msk.bf16.gmra.mrb[24].mxu0 %vm3013_vm2, %v4837_v26  ;;  %v4627_v62 = vsel %vm2713_vm12, %v4563_v25, %v16547_v50  ;;  %v4693_v24 = vsel %vm2778_vm13, %v4629_v52, %v4101_v30  ;;  %v4442_v2 = vsel %vm2518_vm9, %v4391_v0, %v16445_v1  ;;  %v9063_v6 = vld [vmem:[#allocation2 + $0x368] sm:$0xff] }
 0x661   : > { %v6950_v27 = vmax.f32 %v6874_v14, 0.0  ;;  %v4505_v44 = vsel %vm2583_vm10, %v4443_v32, %v16548_v7  ;;  %v4691_v55 = vsel %vm2778_vm13, %v4627_v62, %v4099_v39  ;;  %v4503_v49 = vsel %vm2583_vm10, %v4442_v2, %v16549_v33  ;;  %v16553_v39 = vld [vmem:[#allocation26_spill] sm:$0xff]  ;;  %v16559_v50 = vld [vmem:[#allocation253_spill] sm:$0xff] }
 0x662   : > { %v8847_v35 = vpack.i.bf16 %v6952_v59, %v6951_v42  ;;  %v4105_v41 = vpop.permute.xlu1 %4104  ;;  %v4569_v14 = vsel %vm2648_vm11, %v4505_v44, %v16550_v61  ;;  %v16551_v42 = vld [vmem:[#allocation46_spill] sm:$0xff]  ;;  %v4328_v10 = vsel %vm361_vm0, %v9062_v16, %v16556_v43  ;;  %v4337_v25 = vsel %vm361_vm0, %v9063_v6, %v16557_v22  ;;  %v9064_v44 = vld [vmem:[#allocation2 + $0x360] sm:$0xff]  ;;  %v16563_v33 = vld [vmem:[#allocation173_spill] sm:$0xff] }
 0x663   : > { %v8837_v20 = vpack.i.bf16 %v6950_v27, %v6949_v34  ;;  %v4103_v12 = vpop.permute.xlu0 %4102  ;;  %v4567_v1 = vsel %vm2648_vm11, %v4503_v49, %v16551_v42  ;;  %v16552_v59 = vld [vmem:[#allocation6_spill] sm:$0xff]  ;;  %v4395_v52 = vsel %vm2453_vm8, %v4328_v10, %v16558_v53  ;;  %v4401_v62 = vsel %vm2453_vm8, %v4337_v25, %v16559_v50  ;;  %v16574_v16 = vld [vmem:[#allocation217_spill] sm:$0xff]  ;;  %v16575_v43 = vld [vmem:[#allocation8_spill] sm:$0xff] }
 0x664   : > { %v4633_v8 = vsel %vm2713_vm12, %v4569_v14, %v16552_v59  ;;  %v4631_v57 = vsel %vm2713_vm12, %v4567_v1, %v16553_v39  ;;  %v4858_v61 = vsub.s32 2, %v16385_v13  ;;  %v16564_v14 = vld [vmem:[#allocation136_spill] sm:$0xff]  ;;  %v16567_v1 = vld [vmem:[#allocation155_spill] sm:$0xff]  ;;  %v16577_v53 = vld [vmem:[#allocation30_spill] sm:$0xff] }
 0x665   : > { %8838 = vrot.lane.b32.xlu0 %v8837_v20, %s9102_s18  ;;  %v4697_v34 = vsel %vm2778_vm13, %v4633_v8, %v4105_v41  ;;  %v4695_v40 = vsel %vm2778_vm13, %v4631_v57, %v4103_v12  ;;  %v16555_v41 = vld [vmem:[#allocation226_spill] sm:$0xff]  ;;  %v16568_v8 = vld [vmem:[#allocation7_spill] sm:$0xff]  ;;  %v4449_v57 = vsel %vm2518_vm9, %v4401_v62, %v16491_v4  ;;  %v16569_v13 = vld [vmem:[#allocation28_spill] sm:$0xff] }
 0x666   : > { %v4229_v31 = vpop.permute.xlu1 %4228  ;;  %v16576_v22 = vld [vmem:[#allocation52_spill] sm:$0xff]  ;;  %v16578_v62 = vld [vmem:[#allocation182_spill] sm:$0xff] }
 0x667   : > { %v4757_v63 = vsel %vm2843_vm14, %v4693_v24, %v4229_v31  ;;  %v4227_v56 = vpop.permute.xlu0 %4226  ;;  %v4445_v24 = vsel %vm2518_vm9, %v4395_v52, %v16485_v29  ;;  %v16560_v31 = vld [vmem:[#allocation201_spill] sm:$0xff]  ;;  %v16565_v29 = vld [vmem:[#allocation63_spill] sm:$0xff] }
 0x668   : > { %v4839_v26 = vrot.slane %v4757_v63, 6  ;;  %v4755_v30 = vsel %vm2843_vm14, %v4691_v55, %v4227_v56  ;;  %v16561_v55 = vld [vmem:[#allocation27_spill] sm:$0xff]  ;;  %v16562_v56 = vld [vmem:[#allocation238_spill] sm:$0xff]  ;;  %v1264_v25 = vadd.f32 %v16576_v22, %v16565_v29 }
 0x669   : > { %v4838_v19 = vrot.slane %v4755_v30, 6  ;;  %8848 = vrot.lane.b32.xlu0 %v8847_v35, %s9102_s18  ;;  %v9061_v35 = vld [vmem:[#allocation2 + $0x348] sm:$0xff]  ;;  %v4334_v63 = vsel %vm361_vm0, %v9064_v44, %v16561_v55  ;;  %v16566_v30 = vld [vmem:[#allocation183_spill] sm:$0xff] }
 0x66a   : > { %v4233_v27 = vpop.permute.xlu1 %4232  ;;  %v4331_v21 = vsel %vm361_vm0, %v9061_v35, %v16554_v36  ;;  %v14948_v42 = vadd.f32 %v16566_v30, %v16565_v29  ;;  %v16572_v35 = vld [vmem:[#allocation216_spill] sm:$0xff]  ;;  %v16580_v30 = vld [vmem:[#allocation53_spill] sm:$0xff] }
 0x66b   : > { %v4761_v15 = vsel %vm2843_vm14, %v4697_v34, %v4233_v27  ;;  %v4231_v47 = vpop.permute.xlu0 %4230  ;;  %v4840_v38 = vsel %vm1222_vm4, %v4838_v19, %v4839_v26  ;;  %v4397_v45 = vsel %vm2453_vm8, %v4331_v21, %v16555_v41  ;;  %v4399_v26 = vsel %vm2453_vm8, %v4334_v63, %v16564_v14  ;;  %v9065_v36 = vld [vmem:[%s15348_s3] sm:$0xf] }
 0x66c   : > { %v4842_v51 = vrot.slane %v4761_v15, 6  ;;  %v4759_v18 = vsel %vm2843_vm14, %v4695_v40, %v4231_v47  ;;  %8658 = vmatprep.mubr.msk.bf16.mxu0 %vm3013_vm2, %v4840_v38  ;;  %v4446_v9 = vsel %vm2518_vm9, %v4397_v45, %v16484_v5  ;;  %v4507_v5 = vsel %vm2583_vm10, %v4445_v24, %v16562_v56  ;;  %v16570_v15 = vld [vmem:[#allocation148_spill] sm:$0xff]  ;;  %v16571_v38 = vld [vmem:[#allocation42_spill] sm:$0xff]  ;;  %v16573_v45 = vld [vmem:[#allocation51_spill] sm:$0xff] }
 0x66d   : > { %v4841_v48 = vrot.slane %v4759_v18, 6  ;;  %v4509_v2 = vsel %vm2583_vm10, %v4446_v9, %v16560_v31  ;;  %v4571_v59 = vsel %vm2648_vm11, %v4507_v5, %v16567_v1  ;;  %v4448_v39 = vsel %vm2518_vm9, %v4399_v26, %v16492_v11  ;;  %v16581_v1 = vld [vmem:[#allocation193_spill] sm:$0xff] }
 0x66e   : > { %v4109_v28 = vpop.permute.xlu1 %4108  ;;  %v4573_v49 = vsel %vm2648_vm11, %v4509_v2, %v16563_v33  ;;  %v4635_v34 = vsel %vm2713_vm12, %v4571_v59, %v16569_v13  ;;  %v4513_v47 = vsel %vm2583_vm10, %v4449_v57, %v16570_v15  ;;  %v14972_v21 = vrot.slane %v9065_v36, %v4858_v61 }
 0x66f   : > { %v14913_v20 = vpop.f32.mrb[8].mxu0  ;;  %v4107_v12 = vpop.permute.xlu0 %4106  ;;  %v4843_v58 = vsel %vm1222_vm4, %v4841_v48, %v4842_v51  ;;  %v4637_v19 = vsel %vm2713_vm12, %v4573_v49, %v16568_v8  ;;  %v4511_v51 = vsel %vm2583_vm10, %v4448_v39, %v16571_v38  ;;  %v4577_v4 = vsel %vm2648_vm11, %v4513_v47, %v16572_v35  ;;  %v16582_v38 = vld [vmem:[#allocation192_spill] sm:$0xff] }
 0x670   : > { %v14916_v3 = vpop.f32.mrb[9].mxu0  ;;  %8659 = vmatmul.mubr.msk.bf16.gmra.mrb[28].mxu0 %vm3013_vm2, %v4843_v58  ;;  %v4701_v27 = vsel %vm2778_vm13, %v4637_v19, %v4109_v28  ;;  %v4699_v18 = vsel %vm2778_vm13, %v4635_v34, %v4107_v12  ;;  %v1261_v58 = vadd.f32 %v16573_v45, %v16565_v29  ;;  %v4575_v12 = vsel %vm2648_vm11, %v4511_v51, %v16574_v16 }
 0x671   : > { %v14921_v60 = vpop.f32.mrb[10].mxu0  ;;  %v4641_v10 = vsel %vm2713_vm12, %v4577_v4, %v16575_v43  ;;  %v4639_v52 = vsel %vm2713_vm12, %v4575_v12, %v16577_v53  ;;  %v1272_v24 = vadd.f32 %v16578_v62, %v16565_v29  ;;  %v4961_v63 = vadd.f32 %v14651_v46, %v14972_v21 }
 0x672   : > { %v14929_v0 = vpop.f32.mrb[11].mxu0  ;;  %v4113_v32 = vpop.permute.xlu1 %4112  ;;  %v4964_v56 = vadd.f32 %v14657_v54, %v14972_v21  ;;  %v1389_v33 = vmax.f32 %v14948_v42, 0.0  ;;  %v1387_v49 = vmax.f32 %v1261_v58, 0.0  ;;  %v1388_v26 = vmax.f32 %v1264_v25, 0.0 }
 0x673   : > { %v4111_v7 = vpop.permute.xlu0 %4110  ;;  %v4705_v9 = vsel %vm2778_vm13, %v4641_v10, %v4113_v32  ;;  %v1277_v46 = vadd.f32 %v16580_v30, %v16565_v29  ;;  %v15006_v54 = vadd.f32 %v16581_v1, %v16565_v29  ;;  %v4969_v59 = vadd.f32 %v14649_v23, %v14972_v21  ;;  %v16584_v1 = vld [vmem:[#allocation203_spill] sm:$0xff] }
 0x674   : > { %v4703_v31 = vsel %vm2778_vm13, %v4639_v52, %v4111_v7  ;;  %v16579_v7 = vld [vmem:[#allocation186_spill] sm:$0xff]  ;;  %v4972_v42 = vadd.f32 %v14655_v37, %v14972_v21  ;;  %v5087_v34 = vmax.f32 %v4961_v63, 0.0  ;;  %v1390_v47 = vmax.f32 %v1272_v24, 0.0 }
 0x675   : > { %v15000_v61 = vadd.f32 %v16579_v7, %v16565_v29  ;;  %v1280_v51 = vadd.f32 %v16582_v38, %v16565_v29  ;;  %v5089_v37 = vmax.f32 %v4969_v59, 0.0  ;;  %v4977_v16 = vadd.f32 %v14916_v3, %v14972_v21 }
 0x676   : > { %v4237_v40 = vpop.permute.xlu1 %4236  ;;  %v5090_v36 = vmax.f32 %v4972_v42, 0.0  ;;  %v4980_v12 = vadd.f32 %v14929_v0, %v14972_v21  ;;  %v4985_v52 = vadd.f32 %v14913_v20, %v14972_v21  ;;  %v4988_v0 = vadd.f32 %v14921_v60, %v14972_v21  ;;  %v16583_v60 = vld [vmem:[#allocation195_spill] sm:$0xff] }
 0x677   : > { %v4765_v48 = vsel %vm2843_vm14, %v4701_v27, %v4237_v40  ;;  %v4235_v11 = vpop.permute.xlu0 %4234  ;;  %v5088_v27 = vmax.f32 %v4964_v56, 0.0  ;;  %v1392_v22 = vmax.f32 %v1280_v51, 0.0  ;;  %v1393_v20 = vmax.f32 %v15000_v61, 0.0 }
 0x678   : > { %v4845_v28 = vrot.slane %v4765_v48, 6  ;;  %v4763_v41 = vsel %vm2843_vm14, %v4699_v18, %v4235_v11  ;;  %v5092_v63 = vmax.f32 %v4980_v12, 0.0  ;;  %v1293_v7 = vadd.f32 %v16583_v60, %v16565_v29 }
 0x679   : > { %v4844_v6 = vrot.slane %v4763_v41, 6  ;;  %v1296_v59 = vadd.f32 %v16584_v1, %v16565_v29 }
 0x67a   : > { %v4241_v50 = vpop.permute.xlu1 %4240  ;;  %v1395_v51 = vmax.f32 %v1293_v7, 0.0 }
 0x67b   : > { %v4769_v2 = vsel %vm2843_vm14, %v4705_v9, %v4241_v50  ;;  %v4239_v44 = vpop.permute.xlu0 %4238  ;;  %v4846_v55 = vsel %vm1222_vm4, %v4844_v6, %v4845_v28  ;;  %v1391_v6 = vmax.f32 %v1277_v46, 0.0 }
 0x67c   : > { %v4848_v5 = vrot.slane %v4769_v2, 6  ;;  %v4767_v32 = vsel %vm2843_vm14, %v4703_v31, %v4239_v44  ;;  %8662 = vmatprep.mubr.msk.bf16.mxu0 %vm3013_vm2, %v4846_v55  ;;  %v5091_v55 = vmax.f32 %v4977_v16, 0.0 }
 0x67d   : > { %v4847_v14 = vrot.slane %v4767_v32, 6  ;;  %v1394_v32 = vmax.f32 %v15006_v54, 0.0 }
 0x67e   : > { %v8764_v8 = vpop.permute.xlu1 %8763 }
 0x67f   : > { %v8759_v19 = vpop.permute.xlu0 %8758  ;;  %v8766_v39 = vunpack.i.h.bf16 %v8764_v8  ;;  %v8765_v57 = vunpack.i.l.bf16 %v8764_v8  ;;  %v4849_v13 = vsel %vm1222_vm4, %v4847_v14, %v4848_v5 }
 0x680   : > { %v8761_v40 = vunpack.i.h.bf16 %v8759_v19  ;;  %v8760_v15 = vunpack.i.l.bf16 %v8759_v19  ;;  %8663 = vmatmul.mubr.msk.bf16.gmra.mrb[32].mxu0 %vm3013_vm2, %v4849_v13  ;;  %v5093_v19 = vmax.f32 %v4985_v52, 0.0 }
 0x681   : > { %v7222_v23 = vsel %vm940_vm7, %v1387_v49, %v8765_v57  ;;  %v7223_v18 = vsel %vm940_vm7, %v1388_v26, %v8766_v39  ;;  %v5094_v39 = vmax.f32 %v4988_v0, 0.0 }
 0x682   : > { %v7286_v48 = vpack.c.bf16 %v7223_v18, %v7222_v23  ;;  %v8774_v11 = vpop.permute.xlu1 %8773  ;;  %v7254_v35 = vsel %vm940_vm7, %v5087_v34, %v8760_v15  ;;  %v7255_v4 = vsel %vm940_vm7, %v5088_v27, %v8761_v40  ;;  %v16585_v34 = vld [vmem:[#allocation57_spill] sm:$0xff]  ;;  %v16586_v40 = vld [vmem:[#allocation60_spill] sm:$0xff] }
 0x683   : > { %v8769_v28 = vpop.permute.xlu0 %8768  ;;  %v8776_v41 = vunpack.i.h.bf16 %v8774_v11  ;;  %v8775_v45 = vunpack.i.l.bf16 %v8774_v11  ;;  %v7287_v58 = vpack.c.bf16 %v7255_v4, %v7254_v35  ;;  %v1301_v27 = vadd.f32 %v16585_v34, %v16565_v29 }
 0x684   : > { %v8771_v43 = vunpack.i.h.bf16 %v8769_v28  ;;  %v8770_v10 = vunpack.i.l.bf16 %v8769_v28  ;;  %v1304_v15 = vadd.f32 %v16586_v40, %v16565_v29  ;;  %v1396_v11 = vmax.f32 %v1296_v59, 0.0 }
 0x685   : > { %7485 = vmatprep.mubr.bf16.mxu0 %v7287_v58  ;;  %v7224_v25 = vsel %vm940_vm7, %v1389_v33, %v8775_v45  ;;  %v7225_v53 = vsel %vm940_vm7, %v1390_v47, %v8776_v41  ;;  %v1397_v58 = vmax.f32 %v1301_v27, 0.0 }
 0x686   : > { %v8784_v9 = vpop.permute.xlu1 %8783  ;;  %v7256_v50 = vsel %vm940_vm7, %v5089_v37, %v8770_v10  ;;  %v7257_v3 = vsel %vm940_vm7, %v5090_v36, %v8771_v43  ;;  %v7288_v62 = vpack.c.bf16 %v7225_v53, %v7224_v25  ;;  %v1398_v16 = vmax.f32 %v1304_v15, 0.0  ;;  %v16587_v53 = vld [vmem:[#allocation64_spill] sm:$0xff] }
 0x687   : > { %v8779_v24 = vpop.permute.xlu0 %8778  ;;  %v8786_v31 = vunpack.i.h.bf16 %v8784_v9  ;;  %v8785_v2 = vunpack.i.l.bf16 %v8784_v9  ;;  %v7289_v44 = vpack.c.bf16 %v7257_v3, %v7256_v50  ;;  %v1399_v52 = vmax.f32 %v16587_v53, 0.0  ;;  %v16588_v9 = vld [vmem:[#allocation69_spill] sm:$0xff]  ;;  %v16596_v53 = vld [vmem:[#allocation10_spill] sm:$0xff] }
 0x688   : > { %v8781_v56 = vunpack.i.h.bf16 %v8779_v24  ;;  %v8780_v5 = vunpack.i.l.bf16 %v8779_v24  ;;  %7486 = vmatmul.mubr.bf16.vlgmr.msra.gmra.mrb[36].mxu0 %v7286_v48  ;;  %v1400_v50 = vmax.f32 %v16588_v9, 0.0 }
 0x689   : > { %7493 = vmatprep.mubr.bf16.mxu0 %v7289_v44  ;;  %v7226_v33 = vsel %vm940_vm7, %v1391_v6, %v8785_v2  ;;  %v7227_v49 = vsel %vm940_vm7, %v1392_v22, %v8786_v31  ;;  %v16589_v44 = vld [vmem:[#allocation206_spill] sm:$0xff] }
 0x68a   : > { %v8794_v14 = vpop.permute.xlu1 %8793  ;;  %v7258_v26 = vsel %vm940_vm7, %v5091_v55, %v8780_v5  ;;  %v7259_v30 = vsel %vm940_vm7, %v5092_v63, %v8781_v56  ;;  %v7290_v46 = vpack.c.bf16 %v7227_v49, %v7226_v33  ;;  %v1401_v55 = vmax.f32 %v16589_v44, 0.0  ;;  %v16590_v63 = vld [vmem:[#allocation67_spill] sm:$0xff] }
 0x68b   : > { %v8789_v61 = vpop.permute.xlu0 %8788  ;;  %v8796_v8 = vunpack.i.h.bf16 %v8794_v14  ;;  %v8795_v54 = vunpack.i.l.bf16 %v8794_v14  ;;  %v7291_v42 = vpack.c.bf16 %v7259_v30, %v7258_v26  ;;  %v1402_v56 = vmax.f32 %v16590_v63, 0.0  ;;  %v16591_v30 = vld [vmem:[#allocation74_spill] sm:$0xff] }
 0x68c   : > { %v8791_v57 = vunpack.i.h.bf16 %v8789_v61  ;;  %v8790_v13 = vunpack.i.l.bf16 %v8789_v61 }
 0x68d   : > { %v7228_v47 = vsel %vm940_vm7, %v1393_v20, %v8795_v54  ;;  %v7229_v38 = vsel %vm940_vm7, %v1394_v32, %v8796_v8  ;;  %v16592_v54 = vld [vmem:[#allocation76_spill] sm:$0xff] }
 0x68e   : > { %v8804_v23 = vpop.permute.xlu1 %8803  ;;  %v7260_v18 = vsel %vm940_vm7, %v5093_v19, %v8790_v13  ;;  %v7261_v37 = vsel %vm940_vm7, %v5094_v39, %v8791_v57  ;;  %v7292_v48 = vpack.c.bf16 %v7229_v38, %v7228_v47  ;;  %v16593_v38 = vld [vmem:[#allocation70_spill] sm:$0xff] }
 0x68f   : > { %v8806_v35 = vunpack.i.h.bf16 %v8804_v23  ;;  %v8805_v4 = vunpack.i.l.bf16 %v8804_v23  ;;  %v7293_v36 = vpack.c.bf16 %v7261_v37, %v7260_v18 }
 0x690   : > { %7494 = vmatmul.mubr.bf16.gmra.mrb[40].mxu0 %v7288_v62 }
 0x691   : > { %7501 = vmatprep.mubr.bf16.mxu0 %v7291_v42  ;;  %v15051_v28 = vsel %vm940_vm7, %v1395_v51, %v8805_v4  ;;  %v15054_v29 = vsel %vm940_vm7, %v1396_v11, %v8806_v35  ;;  %v1404_v42 = vmax.f32 %v16592_v54, 0.0  ;;  %v1405_v51 = vmax.f32 %v16593_v38, 0.0  ;;  %v16594_v11 = vld [vmem:[#allocation75_spill] sm:$0xff]  ;;  %v16603_v38 = vld [vmem:[#allocation86_spill] sm:$0xff] }
 0x692   : > { %v8814_v41 = vpop.permute.xlu1 %8813  ;;  %v7294_v45 = vpack.c.bf16 %v15054_v29, %v15051_v28  ;;  %v1406_v35 = vmax.f32 %v16594_v11, 0.0 }
 0x693   : > { %v8816_v12 = vunpack.i.h.bf16 %v8814_v41  ;;  %v8815_v43 = vunpack.i.l.bf16 %v8814_v41 }
 0x695   : > { %v15059_v10 = vsel %vm940_vm7, %v1397_v58, %v8815_v43  ;;  %v15062_v6 = vsel %vm940_vm7, %v1398_v16, %v8816_v12  ;;  %v16595_v43 = vld [vmem:[#allocation80_spill] sm:$0xff] }
 0x696   : > { %v8824_v22 = vpop.permute.xlu1 %8823  ;;  %v7296_v25 = vpack.c.bf16 %v15062_v6, %v15059_v10 }
 0x697   : > { %v8826_v3 = vunpack.i.h.bf16 %v8824_v22  ;;  %v8825_v62 = vunpack.i.l.bf16 %v8824_v22  ;;  %v1407_v22 = vmax.f32 %v16595_v43, 0.0 }
 0x698   : > { %7502 = vmatmul.mubr.bf16.gmra.mrb[44].mxu0 %v7290_v46  ;;  %v1403_v46 = vmax.f32 %v16591_v30, 0.0 }
 0x699   : > { %7509 = vmatprep.mubr.bf16.mxu0 %v7293_v36  ;;  %v15069_v0 = vsel %vm940_vm7, %v1399_v52, %v8825_v62  ;;  %v15072_v24 = vsel %vm940_vm7, %v1400_v50, %v8826_v3  ;;  %v1408_v52 = vmax.f32 %v16596_v53, 0.0 }
 0x69a   : > { %v8834_v31 = vpop.permute.xlu1 %8833  ;;  %v7298_v2 = vpack.c.bf16 %v15072_v24, %v15069_v0 }
 0x69b   : > { %v8694_v5 = vpop.f32.mrb[88].mxu1  ;;  %v8836_v20 = vunpack.i.h.bf16 %v8834_v31  ;;  %v8835_v32 = vunpack.i.l.bf16 %v8834_v31 }
 0x69c   : > { %v6895_v33 = vadd.f32 %v8694_v5, %v13909_v17  ;;  %v6886_v49 = vpop.f32.mrb[89].mxu1 }
 0x69d   : > { %v6887_v60 = vadd.f32 %v6886_v49, %v13909_v17  ;;  %v8695_v7 = vpop.f32.mrb[90].mxu1  ;;  %v15081_v14 = vsel %vm940_vm7, %v1401_v55, %v8835_v32  ;;  %v15084_v26 = vsel %vm940_vm7, %v1402_v56, %v8836_v20  ;;  %v16597_v55 = vld [vmem:[#allocation79_spill] sm:$0xff]  ;;  %v16598_v56 = vld [vmem:[#allocation81_spill] sm:$0xff]  ;;  %v8799_v20 = vpop.permute.xlu0 %8798 }
 0x69e   : > { %v6898_v1 = vadd.f32 %v8695_v7, %v13909_v17  ;;  %v6889_v59 = vpop.f32.mrb[91].mxu1  ;;  %v8844_v61 = vpop.permute.xlu1 %8843  ;;  %v7300_v8 = vpack.c.bf16 %v15084_v26, %v15081_v14  ;;  %v6955_v13 = vmax.f32 %v6895_v33, 0.0  ;;  %v1409_v63 = vmax.f32 %v16597_v55, 0.0 }
 0x69f   : > { %v6890_v19 = vadd.f32 %v6889_v59, %v13909_v17  ;;  %v8846_v39 = vunpack.i.h.bf16 %v8844_v61  ;;  %v8845_v57 = vunpack.i.l.bf16 %v8844_v61  ;;  %v6953_v27 = vmax.f32 %v6887_v60, 0.0  ;;  %v16600_v59 = vld [vmem:[#allocation18_spill] sm:$0xff] }
 0x6a0   : > { %v6956_v34 = vmax.f32 %v6898_v1, 0.0  ;;  %7510 = vmatmul.mubr.bf16.gmra.mrb[48].mxu0 %v7292_v48  ;;  %v1410_v5 = vmax.f32 %v16598_v56, 0.0  ;;  %v1412_v61 = vmax.f32 %v16600_v59, 0.0 }
 0x6a1   : > { %v6954_v40 = vmax.f32 %v6890_v19, 0.0  ;;  %v15093_v15 = vsel %vm940_vm7, %v1403_v46, %v8845_v57  ;;  %v15096_v47 = vsel %vm940_vm7, %v1404_v42, %v8846_v39  ;;  %v16599_v46 = vld [vmem:[#allocation11_spill] sm:$0xff]  ;;  %v16601_v39 = vld [vmem:[#allocation84_spill] sm:$0xff] }
 0x6a2   : > { %v8867_v23 = vpack.i.bf16 %v6956_v34, %v6955_v13  ;;  %v8854_v18 = vpop.permute.xlu1 %8853  ;;  %v7302_v37 = vpack.c.bf16 %v15096_v47, %v15093_v15  ;;  %v1411_v1 = vmax.f32 %v16599_v46, 0.0  ;;  %v1413_v57 = vmax.f32 %v16601_v39, 0.0  ;;  %v16602_v13 = vld [vmem:[#allocation16_spill] sm:$0xff] }
 0x6a3   : > { %v8857_v4 = vpack.i.bf16 %v6954_v40, %v6953_v27  ;;  %v8856_v36 = vunpack.i.h.bf16 %v8854_v18  ;;  %v8855_v48 = vunpack.i.l.bf16 %v8854_v18  ;;  %v1414_v34 = vmax.f32 %v16602_v13, 0.0 }
 0x6a5   : > { %8858 = vrot.lane.b32.xlu0 %v8857_v4, %s9102_s18  ;;  %v15104_v41 = vsel %vm940_vm7, %v1405_v51, %v8855_v48  ;;  %v15107_v58 = vsel %vm940_vm7, %v1406_v35, %v8856_v36  ;;  %v1415_v51 = vmax.f32 %v16603_v38, 0.0  ;;  %v16604_v36 = vld [vmem:[#allocation88_spill] sm:$0xff] }
 0x6a6   : > { %v8864_v16 = vpop.permute.xlu1 %8863  ;;  %v7304_v12 = vpack.c.bf16 %v15107_v58, %v15104_v41  ;;  %v1416_v48 = vmax.f32 %v16604_v36, 0.0  ;;  %v16606_v36 = vld [vmem:[#allocation87_spill] sm:$0xff] }
 0x6a7   : > { %v8866_v9 = vunpack.i.h.bf16 %v8864_v16  ;;  %v8865_v50 = vunpack.i.l.bf16 %v8864_v16 }
 0x6a9   : > { %8868 = vrot.lane.b32.xlu0 %v8867_v23, %s9102_s18  ;;  %v15115_v3 = vsel %vm940_vm7, %v1407_v22, %v8865_v50  ;;  %v15118_v62 = vsel %vm940_vm7, %v1408_v52, %v8866_v9  ;;  %v8809_v23 = vpop.permute.xlu0 %8808 }
 0x6aa   : > { %v8874_v31 = vpop.permute.xlu1 %8873  ;;  %v7306_v44 = vpack.c.bf16 %v15118_v62, %v15115_v3  ;;  %v8811_v56 = vunpack.i.h.bf16 %v8809_v23 }
 0x6ab   : > { %v8876_v32 = vunpack.i.h.bf16 %v8874_v31  ;;  %v8875_v33 = vunpack.i.l.bf16 %v8874_v31 }
 0x6ad   : > { %v15125_v49 = vsel %vm940_vm7, %v1409_v63, %v8875_v33  ;;  %v15128_v60 = vsel %vm940_vm7, %v1410_v5, %v8876_v32  ;;  %v8800_v63 = vunpack.i.l.bf16 %v8799_v20  ;;  %v8810_v5 = vunpack.i.l.bf16 %v8809_v23  ;;  %v8819_v10 = vpop.permute.xlu0 %8818 }
 0x6ae   : > { %v8884_v7 = vpop.permute.xlu1 %8883  ;;  %v7308_v30 = vpack.c.bf16 %v15128_v60, %v15125_v49  ;;  %v8801_v33 = vunpack.i.h.bf16 %v8799_v20 }
 0x6af   : > { %v8644_v54 = vpop.f32.mrb[12].mxu0  ;;  %v8886_v42 = vunpack.i.h.bf16 %v8884_v7  ;;  %v8885_v19 = vunpack.i.l.bf16 %v8884_v7 }
 0x6b0   : > { %v5001_v27 = vadd.f32 %v8644_v54, %v14972_v21  ;;  %v4992_v40 = vpop.f32.mrb[13].mxu0 }
 0x6b1   : > { %v4993_v18 = vadd.f32 %v4992_v40, %v14972_v21  ;;  %v8645_v11 = vpop.f32.mrb[14].mxu0  ;;  %v15140_v35 = vsel %vm940_vm7, %v1411_v1, %v8885_v19  ;;  %v15143_v4 = vsel %vm940_vm7, %v1412_v61, %v8886_v42 }
 0x6b2   : > { %v5097_v16 = vmax.f32 %v5001_v27, 0.0  ;;  %v5004_v43 = vadd.f32 %v8645_v11, %v14972_v21  ;;  %v4995_v22 = vpop.f32.mrb[15].mxu0  ;;  %v8894_v53 = vpop.permute.xlu1 %8893  ;;  %v7310_v52 = vpack.c.bf16 %v15143_v4, %v15140_v35 }
 0x6b3   : > { %v5095_v9 = vmax.f32 %v4993_v18, 0.0  ;;  %v4996_v50 = vadd.f32 %v4995_v22, %v14972_v21  ;;  %v8896_v31 = vunpack.i.h.bf16 %v8894_v53  ;;  %v8895_v55 = vunpack.i.l.bf16 %v8894_v53  ;;  %v16605_v18 = vld [vmem:[#allocation85_spill] sm:$0xff] }
 0x6b4   : > { %v5098_v32 = vmax.f32 %v5004_v43, 0.0  ;;  %v7264_v54 = vsel %vm940_vm7, %v5097_v16, %v8810_v5  ;;  %v1417_v11 = vmax.f32 %v16605_v18, 0.0  ;;  %v1418_v16 = vmax.f32 %v16606_v36, 0.0 }
 0x6b5   : > { %v5096_v7 = vmax.f32 %v4996_v50, 0.0  ;;  %v15151_v46 = vsel %vm940_vm7, %v1413_v57, %v8895_v55  ;;  %v15154_v1 = vsel %vm940_vm7, %v1414_v34, %v8896_v31  ;;  %v7262_v61 = vsel %vm940_vm7, %v5095_v9, %v8800_v63 }
 0x6b6   : > { %v8904_v59 = vpop.permute.xlu1 %8903  ;;  %v7265_v42 = vsel %vm940_vm7, %v5098_v32, %v8811_v56  ;;  %v7312_v19 = vpack.c.bf16 %v15154_v1, %v15151_v46 }
 0x6b7   : > { %v8906_v39 = vunpack.i.h.bf16 %v8904_v59  ;;  %v8905_v13 = vunpack.i.l.bf16 %v8904_v59  ;;  %v7263_v20 = vsel %vm940_vm7, %v5096_v7, %v8801_v33  ;;  %v7297_v27 = vpack.c.bf16 %v7265_v42, %v7264_v54  ;;  %v8829_v54 = vpop.permute.xlu0 %8828 }
 0x6b8   : > { %v7295_v57 = vpack.c.bf16 %v7263_v20, %v7262_v61  ;;  %v8831_v18 = vunpack.i.h.bf16 %v8829_v54 }
 0x6b9   : > { %v15163_v40 = vsel %vm940_vm7, %v1415_v51, %v8905_v13  ;;  %v15166_v34 = vsel %vm940_vm7, %v1416_v48, %v8906_v39 }
 0x6ba   : > { %7517 = vmatprep.mubr.bf16.mxu0 %v7295_v57  ;;  %v8914_v38 = vpop.permute.xlu1 %8913  ;;  %v7314_v23 = vpack.c.bf16 %v15166_v34, %v15163_v40 }
 0x6bb   : > { %v8916_v43 = vunpack.i.h.bf16 %v8914_v38  ;;  %v8915_v22 = vunpack.i.l.bf16 %v8914_v38  ;;  %7518 = vmatmul.mubr.bf16.gmra.mrb[52].mxu0 %v7294_v45 }
 0x6bc   : > { %7525 = vmatprep.mubr.bf16.mxu0 %v7297_v27 }
 0x6bd   : > { %v15176_v51 = vsel %vm940_vm7, %v1417_v11, %v8915_v22  ;;  %v15179_v48 = vsel %vm940_vm7, %v1418_v16, %v8916_v43  ;;  %v8830_v11 = vunpack.i.l.bf16 %v8829_v54  ;;  %v8821_v16 = vunpack.i.h.bf16 %v8819_v10 }
 0x6be   : > { %v7316_v53 = vpack.c.bf16 %v15179_v48, %v15176_v51  ;;  %v8820_v43 = vunpack.i.l.bf16 %v8819_v10 }
 0x6c3   : > { %7526 = vmatmul.mubr.bf16.gmra.mrb[56].mxu0 %v7296_v25 }
 0x6db   : > { %v8698_v9 = vpop.f32.mrb[92].mxu1 }
 0x6dc   : > { %v6911_v50 = vadd.f32 %v8698_v9, %v13909_v17  ;;  %v6902_v31 = vpop.f32.mrb[93].mxu1 }
 0x6dd   : > { %v6903_v28 = vadd.f32 %v6902_v31, %v13909_v17  ;;  %v8699_v29 = vpop.f32.mrb[94].mxu1 }
 0x6de   : > { %v6914_v45 = vadd.f32 %v8699_v29, %v13909_v17  ;;  %v6905_v55 = vpop.f32.mrb[95].mxu1  ;;  %v6959_v56 = vmax.f32 %v6911_v50, 0.0 }
 0x6df   : > { %v6906_v63 = vadd.f32 %v6905_v55, %v13909_v17  ;;  %v6957_v32 = vmax.f32 %v6903_v28, 0.0 }
 0x6e0   : > { %v6960_v5 = vmax.f32 %v6914_v45, 0.0 }
 0x6e1   : > { %v6958_v33 = vmax.f32 %v6906_v63, 0.0 }
 0x6e2   : > { %v8887_v7 = vpack.i.bf16 %v6960_v5, %v6959_v56 }
 0x6e3   : > { %v8877_v59 = vpack.i.bf16 %v6958_v33, %v6957_v32 }
 0x6e5   : > { %8878 = vrot.lane.b32.xlu0 %v8877_v59, %s9102_s18  ;;  %v8839_v59 = vpop.permute.xlu0 %8838 }
 0x6e9   : > { %8888 = vrot.lane.b32.xlu0 %v8887_v7, %s9102_s18  ;;  %v8849_v54 = vpop.permute.xlu0 %8848 }
 0x6ef   : > { %v8648_v6 = vpop.f32.mrb[16].mxu0 }
 0x6f0   : > { %v5017_v25 = vadd.f32 %v8648_v6, %v14972_v21  ;;  %v5008_v61 = vpop.f32.mrb[17].mxu0 }
 0x6f1   : > { %v5009_v42 = vadd.f32 %v5008_v61, %v14972_v21  ;;  %v8649_v39 = vpop.f32.mrb[18].mxu0 }
 0x6f2   : > { %v5101_v13 = vmax.f32 %v5017_v25, 0.0  ;;  %v5020_v20 = vadd.f32 %v8649_v39, %v14972_v21  ;;  %v5011_v27 = vpop.f32.mrb[19].mxu0 }
 0x6f3   : > { %v5099_v57 = vmax.f32 %v5009_v42, 0.0  ;;  %v5012_v38 = vadd.f32 %v5011_v27, %v14972_v21 }
 0x6f4   : > { %v5102_v36 = vmax.f32 %v5020_v20, 0.0  ;;  %v7268_v9 = vsel %vm940_vm7, %v5101_v13, %v8830_v11 }
 0x6f5   : > { %v5100_v22 = vmax.f32 %v5012_v38, 0.0  ;;  %v7266_v31 = vsel %vm940_vm7, %v5099_v57, %v8820_v43  ;;  %v8851_v38 = vunpack.i.h.bf16 %v8849_v54 }
 0x6f6   : > { %v7269_v50 = vsel %vm940_vm7, %v5102_v36, %v8831_v18  ;;  %v8850_v18 = vunpack.i.l.bf16 %v8849_v54  ;;  %v8841_v36 = vunpack.i.h.bf16 %v8839_v59 }
 0x6f7   : > { %v7267_v28 = vsel %vm940_vm7, %v5100_v22, %v8821_v16  ;;  %v7301_v29 = vpack.c.bf16 %v7269_v50, %v7268_v9  ;;  %v8840_v16 = vunpack.i.l.bf16 %v8839_v59 }
 0x6f8   : > { %v7299_v45 = vpack.c.bf16 %v7267_v28, %v7266_v31 }
 0x6fa   : > { %7533 = vmatprep.mubr.bf16.mxu0 %v7299_v45 }
 0x6fb   : > { %7534 = vmatmul.mubr.bf16.gmra.mrb[60].mxu0 %v7298_v2 }
 0x6fc   : > { %7541 = vmatprep.mubr.bf16.mxu0 %v7301_v29 }
 0x703   : > { %7542 = vmatmul.mubr.bf16.gmra.mrb[64].mxu0 %v7300_v8 }
 0x717   : > { %v8859_v45 = vpop.permute.xlu0 %8858 }
 0x71b   : > { %v8702_v55 = vpop.f32.mrb[96].mxu1 }
 0x71c   : > { %v6927_v63 = vadd.f32 %v8702_v55, %v13909_v17  ;;  %v6918_v56 = vpop.f32.mrb[97].mxu1 }
 0x71d   : > { %v6919_v5 = vadd.f32 %v6918_v56, %v13909_v17  ;;  %v8703_v32 = vpop.f32.mrb[98].mxu1 }
 0x71e   : > { %v6930_v33 = vadd.f32 %v8703_v32, %v13909_v17  ;;  %v6921_v7 = vpop.f32.mrb[99].mxu1  ;;  %v6963_v0 = vmax.f32 %v6927_v63, 0.0 }
 0x71f   : > { %v6922_v10 = vadd.f32 %v6921_v7, %v13909_v17  ;;  %v6961_v2 = vmax.f32 %v6919_v5, 0.0  ;;  %v8869_v5 = vpop.permute.xlu0 %8868 }
 0x720   : > { %v6964_v24 = vmax.f32 %v6930_v33, 0.0  ;;  %v8871_v15 = vunpack.i.h.bf16 %v8869_v5  ;;  %v8870_v47 = vunpack.i.l.bf16 %v8869_v5 }
 0x721   : > { %v6962_v6 = vmax.f32 %v6922_v10, 0.0 }
 0x722   : > { %v8907_v25 = vpack.i.bf16 %v6964_v24, %v6963_v0 }
 0x723   : > { %v8897_v14 = vpack.i.bf16 %v6962_v6, %v6961_v2  ;;  %v8652_v26 = vpop.f32.mrb[20].mxu0  ;;  %v8861_v2 = vunpack.i.h.bf16 %v8859_v45  ;;  %v8860_v6 = vunpack.i.l.bf16 %v8859_v45 }
 0x724   : > { %v5033_v8 = vadd.f32 %v8652_v26, %v14972_v21  ;;  %v5024_v61 = vpop.f32.mrb[21].mxu0 }
 0x725   : > { %v5025_v42 = vadd.f32 %v5024_v61, %v14972_v21  ;;  %v8653_v39 = vpop.f32.mrb[22].mxu0  ;;  %8898 = vrot.lane.b32.xlu0 %v8897_v14, %s9102_s18 }
 0x726   : > { %v5105_v13 = vmax.f32 %v5033_v8, 0.0  ;;  %v5036_v20 = vadd.f32 %v8653_v39, %v14972_v21  ;;  %v5027_v17 = vpop.f32.mrb[23].mxu0 }
 0x727   : > { %v5103_v27 = vmax.f32 %v5025_v42, 0.0  ;;  %v5028_v57 = vadd.f32 %v5027_v17, %v14972_v21 }
 0x728   : > { %v5106_v11 = vmax.f32 %v5036_v20, 0.0  ;;  %v7272_v22 = vsel %vm940_vm7, %v5105_v13, %v8850_v18 }
 0x729   : > { %v5104_v43 = vmax.f32 %v5028_v57, 0.0  ;;  %8908 = vrot.lane.b32.xlu0 %v8907_v25, %s9102_s18  ;;  %v7270_v50 = vsel %vm940_vm7, %v5103_v27, %v8840_v16 }
 0x72a   : > { %v7273_v9 = vsel %vm940_vm7, %v5106_v11, %v8851_v38 }
 0x72b   : > { %v7271_v31 = vsel %vm940_vm7, %v5104_v43, %v8841_v36  ;;  %v7305_v28 = vpack.c.bf16 %v7273_v9, %v7272_v22 }
 0x72c   : > { %v7303_v29 = vpack.c.bf16 %v7271_v31, %v7270_v50 }
 0x72e   : > { %7549 = vmatprep.mubr.bf16.mxu0 %v7303_v29 }
 0x72f   : > { %7550 = vmatmul.mubr.bf16.gmra.mrb[68].mxu0 %v7302_v37 }
 0x730   : > { %7557 = vmatprep.mubr.bf16.mxu0 %v7305_v28 }
 0x733   : > { %v8656_v55 = vpop.f32.mrb[24].mxu0 }
 0x734   : > { %v5049_v63 = vadd.f32 %v8656_v55, %v14972_v21  ;;  %v5040_v56 = vpop.f32.mrb[25].mxu0 }
 0x735   : > { %v5041_v32 = vadd.f32 %v5040_v56, %v14972_v21  ;;  %v8657_v33 = vpop.f32.mrb[26].mxu0 }
 0x736   : > { %v5109_v7 = vmax.f32 %v5049_v63, 0.0  ;;  %v5052_v59 = vadd.f32 %v8657_v33, %v14972_v21  ;;  %v5043_v10 = vpop.f32.mrb[27].mxu0  ;;  %v15254_v63 = vld [vmem:[#allocation3] ss:$0 sm:$0xff] }
 0x737   : > { %v5107_v0 = vmax.f32 %v5041_v32, 0.0  ;;  %v5044_v24 = vadd.f32 %v5043_v10, %v14972_v21  ;;  %7558 = vmatmul.mubr.bf16.gmra.mrb[72].mxu0 %v7304_v12 }
 0x738   : > { %v5110_v37 = vmax.f32 %v5052_v59, 0.0  ;;  %v7276_v14 = vsel %vm940_vm7, %v5109_v7, %v8870_v47 }
 0x739   : > { %v5108_v25 = vmax.f32 %v5044_v24, 0.0  ;;  %v7274_v8 = vsel %vm940_vm7, %v5107_v0, %v8860_v6 }
 0x73a   : > { %v7277_v26 = vsel %vm940_vm7, %v5110_v37, %v8871_v15 }
 0x73b   : > { %v7275_v61 = vsel %vm940_vm7, %v5108_v25, %v8861_v2  ;;  %v7309_v54 = vpack.c.bf16 %v7277_v26, %v7276_v14 }
 0x73c   : > { %v7307_v42 = vpack.c.bf16 %v7275_v61, %v7274_v8 }
 0x73e   : > { %7565 = vmatprep.mubr.bf16.mxu0 %v7307_v42 }
 0x73f   : > { %7566 = vmatmul.mubr.bf16.gmra.mrb[76].mxu0 %v7306_v44 }
 0x740   : > { %7573 = vmatprep.mubr.bf16.mxu0 %v7309_v54 }
 0x743   : > { %v8660_v41 = vpop.f32.mrb[28].mxu0 }
 0x744   : > { %v5056_v58 = vpop.f32.mrb[29].mxu0  ;;  %v5065_v62 = vadd.f32 %v8660_v41, %v14972_v21 }
 0x745   : > { %v8661_v12 = vpop.f32.mrb[30].mxu0  ;;  %v5057_v20 = vadd.f32 %v5056_v58, %v14972_v21 }
 0x746   : > { %v5059_v39 = vpop.f32.mrb[31].mxu0  ;;  %v5068_v44 = vadd.f32 %v8661_v12, %v14972_v21  ;;  %v5113_v9 = vmax.f32 %v5065_v62, 0.0 }
 0x747   : > { %7574 = vmatmul.mubr.bf16.gmra.mrb[80].mxu0 %v7308_v30  ;;  %v5060_v17 = vadd.f32 %v5059_v39, %v14972_v21  ;;  %v5111_v18 = vmax.f32 %v5057_v20, 0.0 }
 0x748   : > { %v5114_v50 = vmax.f32 %v5068_v44, 0.0 }
 0x749   : > { %v5112_v49 = vmax.f32 %v5060_v17, 0.0 }
 0x753   : > { %v15240_v13 = vpop.f32.mrb[32].mxu0 }
 0x754   : > { %v15244_v27 = vpop.f32.mrb[33].mxu0 }
 0x755   : > { %v15246_v57 = vpop.f32.mrb[34].mxu0 }
 0x756   : > { %v15248_v3 = vpop.f32.mrb[35].mxu0 }
 0x757   : > { %v8879_v38 = vpop.permute.xlu0 %8878 }
 0x758   : > { %v8881_v60 = vunpack.i.h.bf16 %v8879_v38  ;;  %v8880_v30 = vunpack.i.l.bf16 %v8879_v38 }
 0x75a   : > { %v7278_v11 = vsel %vm940_vm7, %v5111_v18, %v8880_v30  ;;  %v7279_v36 = vsel %vm940_vm7, %v5112_v49, %v8881_v60 }
 0x75b   : > { %v8889_v16 = vpop.permute.xlu0 %8888  ;;  %v8436_v43 = vpop.f32.mrb[36].mxu0  ;;  %v7311_v22 = vpack.c.bf16 %v7279_v36, %v7278_v11 }
 0x75c   : > { %v8891_v31 = vunpack.i.h.bf16 %v8889_v16  ;;  %v8890_v28 = vunpack.i.l.bf16 %v8889_v16  ;;  %v8437_v29 = vpop.f32.mrb[37].mxu0 }
 0x75d   : > { %v8438_v45 = vadd.f32 %v8437_v29, %v8436_v43  ;;  %v8439_v55 = vpop.f32.mrb[38].mxu0  ;;  %7581 = vmatprep.mubr.bf16.mxu0 %v7311_v22 }
 0x75e   : > { %v8440_v56 = vpop.f32.mrb[39].mxu0  ;;  %7582 = vmatmul.mubr.bf16.gmra.mrb[84].mxu0 %v7310_v52  ;;  %v7280_v5 = vsel %vm940_vm7, %v5113_v9, %v8890_v28  ;;  %v7281_v32 = vsel %vm940_vm7, %v5114_v50, %v8891_v31  ;;  %v5073_v50 = vadd.f32 %v15244_v27, %v14972_v21  ;;  %v5076_v31 = vadd.f32 %v15248_v3, %v14972_v21 }
 0x75f   : > { %v7488_v33 = vadd.f32 %v8438_v45, %v15254_v63  ;;  %v8441_v7 = vadd.f32 %v8440_v56, %v8439_v55  ;;  %v7313_v59 = vpack.c.bf16 %v7281_v32, %v7280_v5  ;;  %v5081_v55 = vadd.f32 %v15240_v13, %v14972_v21 }
 0x760   : > { %v5115_v56 = vmax.f32 %v5073_v50, 0.0  ;;  %v5084_v5 = vadd.f32 %v15246_v57, %v14972_v21  ;;  %v5116_v32 = vmax.f32 %v5076_v31, 0.0 }
 0x761   : > { %v7614_v10 = vmax.f32 %v7488_v33, 0.0  ;;  %v7491_v0 = vadd.f32 %v8441_v7, %v15254_v63  ;;  %7589 = vmatprep.mubr.bf16.mxu0 %v7313_v59 }
 0x763   : > { %v8442_v24 = vpop.f32.mrb[40].mxu0  ;;  %7646 = vxpose.xlu0.b32.start [1/16] (narrow) %v7614_v10, 64  ;;  %v7615_v47 = vmax.f32 %v7491_v0, 0.0 }
 0x764   : > { %v8443_v15 = vpop.f32.mrb[41].mxu0 }
 0x765   : > { %v8444_v37 = vadd.f32 %v8443_v15, %v8442_v24  ;;  %v8445_v2 = vpop.f32.mrb[42].mxu0 }
 0x766   : > { %v8446_v35 = vpop.f32.mrb[43].mxu0  ;;  %7590 = vmatmul.mubr.bf16.gmra.mrb[88].mxu0 %v7312_v19 }
 0x767   : > { %v7496_v4 = vadd.f32 %v8444_v37, %v15254_v63  ;;  %v8447_v52 = vadd.f32 %v8446_v35, %v8445_v2  ;;  %7647 = vxpose.xlu0.b32.cont [2/16] (narrow) %v7615_v47, 64  ;;  %v5117_v2 = vmax.f32 %v5081_v55, 0.0  ;;  %v5118_v35 = vmax.f32 %v5084_v5, 0.0 }
 0x769   : > { %v7616_v6 = vmax.f32 %v7496_v4, 0.0  ;;  %v7499_v25 = vadd.f32 %v8447_v52, %v15254_v63 }
 0x76b   : > { %v8448_v14 = vpop.f32.mrb[44].mxu0  ;;  %7648 = vxpose.xlu0.b32.cont [3/16] (narrow) %v7616_v6, 64  ;;  %v7617_v8 = vmax.f32 %v7499_v25, 0.0 }
 0x76c   : > { %v8449_v26 = vpop.f32.mrb[45].mxu0 }
 0x76d   : > { %v8450_v61 = vadd.f32 %v8449_v26, %v8448_v14  ;;  %v8451_v54 = vpop.f32.mrb[46].mxu0 }
 0x76e   : > { %v8452_v42 = vpop.f32.mrb[47].mxu0 }
 0x76f   : > { %v7504_v41 = vadd.f32 %v8450_v61, %v15254_v63  ;;  %v8453_v58 = vadd.f32 %v8452_v42, %v8451_v54  ;;  %7649 = vxpose.xlu0.b32.cont [4/16] (narrow) %v7617_v8, 64 }
 0x771   : > { %v7618_v46 = vmax.f32 %v7504_v41, 0.0  ;;  %v7507_v1 = vadd.f32 %v8453_v58, %v15254_v63 }
 0x773   : > { %v8454_v19 = vpop.f32.mrb[48].mxu0  ;;  %7650 = vxpose.xlu0.b32.cont [5/16] (narrow) %v7618_v46, 64  ;;  %v7619_v39 = vmax.f32 %v7507_v1, 0.0 }
 0x774   : > { %v8455_v12 = vpop.f32.mrb[49].mxu0 }
 0x775   : > { %v8456_v20 = vadd.f32 %v8455_v12, %v8454_v19  ;;  %v8457_v17 = vpop.f32.mrb[50].mxu0 }
 0x776   : > { %v8458_v62 = vpop.f32.mrb[51].mxu0 }
 0x777   : > { %v7512_v44 = vadd.f32 %v8456_v20, %v15254_v63  ;;  %v8459_v38 = vadd.f32 %v8458_v62, %v8457_v17  ;;  %7651 = vxpose.xlu0.b32.cont [6/16] (narrow) %v7619_v39, 64 }
 0x779   : > { %v7620_v18 = vmax.f32 %v7512_v44, 0.0  ;;  %v7515_v49 = vadd.f32 %v8459_v38, %v15254_v63 }
 0x77b   : > { %7652 = vxpose.xlu0.b32.cont [7/16] (narrow) %v7620_v18, 64  ;;  %v7621_v60 = vmax.f32 %v7515_v49, 0.0 }
 0x77f   : > { %7653 = vxpose.xlu0.b32.cont [8/16] (narrow) %v7621_v60, 64 }
 0x78e   : > { %v8460_v30 = vpop.f32.mrb[52].mxu0 }
 0x78f   : > { %v8461_v11 = vpop.f32.mrb[53].mxu0 }
 0x790   : > { %v8462_v36 = vadd.f32 %v8461_v11, %v8460_v30  ;;  %v8463_v16 = vpop.f32.mrb[54].mxu0 }
 0x791   : > { %v8464_v43 = vpop.f32.mrb[55].mxu0 }
 0x792   : > { %v7520_v22 = vadd.f32 %v8462_v36, %v15254_v63  ;;  %v8465_v9 = vadd.f32 %v8464_v43, %v8463_v16 }
 0x794   : > { %v7622_v28 = vmax.f32 %v7520_v22, 0.0  ;;  %v7523_v29 = vadd.f32 %v8465_v9, %v15254_v63 }
 0x796   : > { %v8466_v45 = vpop.f32.mrb[56].mxu0  ;;  %7654 = vxpose.xlu0.b32.cont [9/16] (narrow) %v7622_v28, 64  ;;  %v7623_v59 = vmax.f32 %v7523_v29, 0.0 }
 0x797   : > { %v8899_v33 = vpop.permute.xlu0 %8898  ;;  %v8467_v7 = vpop.f32.mrb[57].mxu0 }
 0x798   : > { %v8901_v27 = vunpack.i.h.bf16 %v8899_v33  ;;  %v8900_v10 = vunpack.i.l.bf16 %v8899_v33  ;;  %v8468_v0 = vadd.f32 %v8467_v7, %v8466_v45  ;;  %v8469_v3 = vpop.f32.mrb[58].mxu0 }
 0x799   : > { %v8470_v24 = vpop.f32.mrb[59].mxu0 }
 0x79a   : > { %v7528_v15 = vadd.f32 %v8468_v0, %v15254_v63  ;;  %v8471_v47 = vadd.f32 %v8470_v24, %v8469_v3  ;;  %7655 = vxpose.xlu0.b32.cont [10/16] (narrow) %v7623_v59, 64  ;;  %v7282_v37 = vsel %vm940_vm7, %v5115_v56, %v8900_v10  ;;  %v7283_v13 = vsel %vm940_vm7, %v5116_v32, %v8901_v27 }
 0x79b   : > { %v8909_v21 = vpop.permute.xlu0 %8908  ;;  %v7315_v57 = vpack.c.bf16 %v7283_v13, %v7282_v37 }
 0x79c   : > { %v7624_v4 = vmax.f32 %v7528_v15, 0.0  ;;  %v7531_v52 = vadd.f32 %v8471_v47, %v15254_v63  ;;  %v8911_v6 = vunpack.i.h.bf16 %v8909_v21  ;;  %v8910_v25 = vunpack.i.l.bf16 %v8909_v21 }
 0x79d   : > { %7597 = vmatprep.mubr.bf16.mxu0 %v7315_v57 }
 0x79e   : > { %7598 = vmatmul.mubr.bf16.gmra.mrb[92].mxu0 %v7314_v23  ;;  %7656 = vxpose.xlu0.b32.cont [11/16] (narrow) %v7624_v4, 64  ;;  %v7284_v14 = vsel %vm940_vm7, %v5117_v2, %v8910_v25  ;;  %v7285_v26 = vsel %vm940_vm7, %v5118_v35, %v8911_v6  ;;  %v7625_v61 = vmax.f32 %v7531_v52, 0.0 }
 0x79f   : > { %v7317_v8 = vpack.c.bf16 %v7285_v26, %v7284_v14 }
 0x7a1   : > { %7605 = vmatprep.mubr.bf16.mxu0 %v7317_v8 }
 0x7a2   : > { %7657 = vxpose.xlu0.b32.cont [12/16] (narrow) %v7625_v61, 64 }
 0x7a6   : > { %7606 = vmatmul.mubr.bf16.gmra.mrb[96].mxu0 %v7316_v53 }
 0x7ce   : > { %v8472_v54 = vpop.f32.mrb[60].mxu0 }
 0x7cf   : > { %v8473_v42 = vpop.f32.mrb[61].mxu0 }
 0x7d0   : > { %v8474_v41 = vadd.f32 %v8473_v42, %v8472_v54  ;;  %v8475_v58 = vpop.f32.mrb[62].mxu0 }
 0x7d1   : > { %v8476_v46 = vpop.f32.mrb[63].mxu0 }
 0x7d2   : > { %v7536_v40 = vadd.f32 %v8474_v41, %v15254_v63  ;;  %v8477_v34 = vadd.f32 %v8476_v46, %v8475_v58 }
 0x7d4   : > { %v7626_v23 = vmax.f32 %v7536_v40, 0.0  ;;  %v7539_v1 = vadd.f32 %v8477_v34, %v15254_v63 }
 0x7d6   : > { %v8478_v19 = vpop.f32.mrb[64].mxu0  ;;  %7658 = vxpose.xlu0.b32.cont [13/16] (narrow) %v7626_v23, 64  ;;  %v7627_v39 = vmax.f32 %v7539_v1, 0.0 }
 0x7d7   : > { %v8479_v12 = vpop.f32.mrb[65].mxu0 }
 0x7d8   : > { %v8480_v20 = vadd.f32 %v8479_v12, %v8478_v19  ;;  %v8481_v17 = vpop.f32.mrb[66].mxu0 }
 0x7d9   : > { %v8482_v62 = vpop.f32.mrb[67].mxu0 }
 0x7da   : > { %v7544_v51 = vadd.f32 %v8480_v20, %v15254_v63  ;;  %v8483_v48 = vadd.f32 %v8482_v62, %v8481_v17  ;;  %7659 = vxpose.xlu0.b32.cont [14/16] (narrow) %v7627_v39, 64 }
 0x7dc   : > { %v7628_v53 = vmax.f32 %v7544_v51, 0.0  ;;  %v7547_v44 = vadd.f32 %v8483_v48, %v15254_v63 }
 0x7de   : > { %7660 = vxpose.xlu0.b32.cont [15/16] (narrow) %v7628_v53, 64  ;;  %v7629_v38 = vmax.f32 %v7547_v44, 0.0 }
 0x7e2   : > { %7661 = vxpose.xlu0.b32.end [16/16] (narrow) %v7629_v38, 64 }
 0x802   : > { %v8484_v18 = vpop.f32.mrb[68].mxu0 }
 0x803   : > { %v8485_v49 = vpop.f32.mrb[69].mxu0 }
 0x804   : > { %v8486_v60 = vadd.f32 %v8485_v49, %v8484_v18  ;;  %v8487_v30 = vpop.f32.mrb[70].mxu0 }
 0x805   : > { %v8488_v11 = vpop.f32.mrb[71].mxu0 }
 0x806   : > { %v7552_v36 = vadd.f32 %v8486_v60, %v15254_v63  ;;  %v8489_v16 = vadd.f32 %v8488_v11, %v8487_v30 }
 0x808   : > { %v7630_v43 = vmax.f32 %v7552_v36, 0.0  ;;  %v7555_v22 = vadd.f32 %v8489_v16, %v15254_v63 }
 0x80a   : > { %v8490_v9 = vpop.f32.mrb[72].mxu0  ;;  %7678 = vxpose.xlu1.b32.start [1/16] (narrow) %v7630_v43, 64  ;;  %v7631_v31 = vmax.f32 %v7555_v22, 0.0 }
 0x80b   : > { %v8491_v50 = vpop.f32.mrb[73].mxu0 }
 0x80c   : > { %v8492_v28 = vadd.f32 %v8491_v50, %v8490_v9  ;;  %v8493_v29 = vpop.f32.mrb[74].mxu0 }
 0x80d   : > { %v8494_v45 = vpop.f32.mrb[75].mxu0 }
 0x80e   : > { %v7560_v55 = vadd.f32 %v8492_v28, %v15254_v63  ;;  %v8495_v56 = vadd.f32 %v8494_v45, %v8493_v29  ;;  %7679 = vxpose.xlu1.b32.cont [2/16] (narrow) %v7631_v31, 64 }
 0x810   : > { %v7632_v5 = vmax.f32 %v7560_v55, 0.0  ;;  %v7563_v32 = vadd.f32 %v8495_v56, %v15254_v63 }
 0x812   : > { %v8496_v33 = vpop.f32.mrb[76].mxu0  ;;  %7680 = vxpose.xlu1.b32.cont [3/16] (narrow) %v7632_v5, 64  ;;  %v7633_v59 = vmax.f32 %v7563_v32, 0.0 }
 0x813   : > { %v8497_v7 = vpop.f32.mrb[77].mxu0 }
 0x814   : > { %v8498_v27 = vadd.f32 %v8497_v7, %v8496_v33  ;;  %v8499_v10 = vpop.f32.mrb[78].mxu0 }
 0x815   : > { %v8500_v0 = vpop.f32.mrb[79].mxu0 }
 0x816   : > { %v7568_v3 = vadd.f32 %v8498_v27, %v15254_v63  ;;  %v8501_v24 = vadd.f32 %v8500_v0, %v8499_v10  ;;  %7681 = vxpose.xlu1.b32.cont [4/16] (narrow) %v7633_v59, 64 }
 0x818   : > { %v7634_v15 = vmax.f32 %v7568_v3, 0.0  ;;  %v7571_v47 = vadd.f32 %v8501_v24, %v15254_v63 }
 0x81a   : > { %v8502_v37 = vpop.f32.mrb[80].mxu0  ;;  %7682 = vxpose.xlu1.b32.cont [5/16] (narrow) %v7634_v15, 64  ;;  %v7635_v2 = vmax.f32 %v7571_v47, 0.0 }
 0x81b   : > { %v8503_v13 = vpop.f32.mrb[81].mxu0 }
 0x81c   : > { %v8504_v35 = vadd.f32 %v8503_v13, %v8502_v37  ;;  %v8505_v21 = vpop.f32.mrb[82].mxu0 }
 0x81d   : > { %v8506_v57 = vpop.f32.mrb[83].mxu0 }
 0x81e   : > { %v7576_v4 = vadd.f32 %v8504_v35, %v15254_v63  ;;  %v8507_v52 = vadd.f32 %v8506_v57, %v8505_v21  ;;  %7683 = vxpose.xlu1.b32.cont [6/16] (narrow) %v7635_v2, 64 }
 0x820   : > { %v7636_v6 = vmax.f32 %v7576_v4, 0.0  ;;  %v7579_v25 = vadd.f32 %v8507_v52, %v15254_v63 }
 0x822   : > { %7684 = vxpose.xlu1.b32.cont [7/16] (narrow) %v7636_v6, 64  ;;  %v7637_v14 = vmax.f32 %v7579_v25, 0.0 }
 0x826   : > { %7685 = vxpose.xlu1.b32.cont [8/16] (narrow) %v7637_v14, 64  ;;  %v7662_v53 = vpop.trf.xlu0 }
 0x827   : > { %7710 = vst [vmem:[%s15314_s29] sm:$0xff] %v7662_v53 }
 0x82a   : > { %v7663_v44 = vpop.trf.xlu0 }
 0x82b   : > { %7712 = vst [vmem:[%s15314_s29 + $0x10] sm:$0xff] %v7663_v44 }
 0x82e   : > { %v7664_v38 = vpop.trf.xlu0 }
 0x82f   : > { %7714 = vst [vmem:[%s15314_s29 + $0x20] sm:$0xff] %v7664_v38 }
 0x831   : > { %v8508_v26 = vpop.f32.mrb[84].mxu0 }
 0x832   : > { %v8509_v8 = vpop.f32.mrb[85].mxu0  ;;  %v7665_v18 = vpop.trf.xlu0 }
 0x833   : > { %v8510_v61 = vadd.f32 %v8509_v8, %v8508_v26  ;;  %v8511_v54 = vpop.f32.mrb[86].mxu0  ;;  %7716 = vst [vmem:[%s15314_s29 + $0x30] sm:$0xff] %v7665_v18 }
 0x834   : > { %v8512_v42 = vpop.f32.mrb[87].mxu0 }
 0x835   : > { %v7584_v41 = vadd.f32 %v8510_v61, %v15254_v63  ;;  %v8513_v58 = vadd.f32 %v8512_v42, %v8511_v54 }
 0x836   : > { %v7666_v49 = vpop.trf.xlu0 }
 0x837   : > { %v7638_v46 = vmax.f32 %v7584_v41, 0.0  ;;  %v7587_v40 = vadd.f32 %v8513_v58, %v15254_v63  ;;  %7718 = vst [vmem:[%s15314_s29 + $0x40] sm:$0xff] %v7666_v49 }
 0x839   : > { %v8514_v34 = vpop.f32.mrb[88].mxu0  ;;  %7686 = vxpose.xlu1.b32.cont [9/16] (narrow) %v7638_v46, 64  ;;  %v7639_v1 = vmax.f32 %v7587_v40, 0.0 }
 0x83a   : > { %v8515_v23 = vpop.f32.mrb[89].mxu0  ;;  %v7667_v60 = vpop.trf.xlu0 }
 0x83b   : > { %v8516_v19 = vadd.f32 %v8515_v23, %v8514_v34  ;;  %v8517_v12 = vpop.f32.mrb[90].mxu0  ;;  %7720 = vst [vmem:[%s15314_s29 + $0x50] sm:$0xff] %v7667_v60 }
 0x83c   : > { %v8518_v39 = vpop.f32.mrb[91].mxu0 }
 0x83d   : > { %v7592_v20 = vadd.f32 %v8516_v19, %v15254_v63  ;;  %v8519_v17 = vadd.f32 %v8518_v39, %v8517_v12  ;;  %7687 = vxpose.xlu1.b32.cont [10/16] (narrow) %v7639_v1, 64 }
 0x83e   : > { %v7668_v30 = vpop.trf.xlu0 }
 0x83f   : > { %v7640_v62 = vmax.f32 %v7592_v20, 0.0  ;;  %v7595_v51 = vadd.f32 %v8519_v17, %v15254_v63  ;;  %7722 = vst [vmem:[%s15314_s29 + $0x60] sm:$0xff] %v7668_v30 }
 0x841   : > { %7688 = vxpose.xlu1.b32.cont [11/16] (narrow) %v7640_v62, 64  ;;  %v7641_v48 = vmax.f32 %v7595_v51, 0.0 }
 0x842   : > { %v7669_v11 = vpop.trf.xlu0 }
 0x843   : > { %7724 = vst [vmem:[%s15314_s29 + $0x70] sm:$0xff] %v7669_v11 }
 0x845   : > { %7689 = vxpose.xlu1.b32.cont [12/16] (narrow) %v7641_v48, 64 }
 0x871   : > { %v8520_v36 = vpop.f32.mrb[92].mxu0 }
 0x872   : > { %v8521_v16 = vpop.f32.mrb[93].mxu0 }
 0x873   : > { %v8522_v43 = vadd.f32 %v8521_v16, %v8520_v36  ;;  %v8523_v22 = vpop.f32.mrb[94].mxu0 }
 0x874   : > { %v8524_v9 = vpop.f32.mrb[95].mxu0 }
 0x875   : > { %v7600_v50 = vadd.f32 %v8522_v43, %v15254_v63  ;;  %v8525_v31 = vadd.f32 %v8524_v9, %v8523_v22 }
 0x877   : > { %v7642_v28 = vmax.f32 %v7600_v50, 0.0  ;;  %v7603_v29 = vadd.f32 %v8525_v31, %v15254_v63 }
 0x879   : > { %v8526_v45 = vpop.f32.mrb[96].mxu0  ;;  %7690 = vxpose.xlu1.b32.cont [13/16] (narrow) %v7642_v28, 64  ;;  %v7643_v56 = vmax.f32 %v7603_v29, 0.0 }
 0x87a   : > { %v8527_v55 = vpop.f32.mrb[97].mxu0 }
 0x87b   : > { %v8528_v5 = vadd.f32 %v8527_v55, %v8526_v45  ;;  %v8529_v32 = vpop.f32.mrb[98].mxu0 }
 0x87c   : > { %v8530_v33 = vpop.f32.mrb[99].mxu0 }
 0x87d   : > { %v7608_v7 = vadd.f32 %v8528_v5, %v15254_v63  ;;  %v8531_v59 = vadd.f32 %v8530_v33, %v8529_v32  ;;  %7691 = vxpose.xlu1.b32.cont [14/16] (narrow) %v7643_v56, 64 }
 0x87f   : > { %v7644_v27 = vmax.f32 %v7608_v7, 0.0  ;;  %v7611_v10 = vadd.f32 %v8531_v59, %v15254_v63 }
 0x881   : > { %7692 = vxpose.xlu1.b32.cont [15/16] (narrow) %v7644_v27, 64  ;;  %v7645_v0 = vmax.f32 %v7611_v10, 0.0 }
 0x885   : > { %7693 = vxpose.xlu1.b32.end [16/16] (narrow) %v7645_v0, 64 }
 0x8c9   : > { %v7694_v3 = vpop.trf.xlu1 }
 0x8ca   : > { %7711 = vst [vmem:[%s15314_s29 + $0x8] sm:$0xff] %v7694_v3 }
 0x8cd   : > { %v7695_v24 = vpop.trf.xlu1 }
 0x8ce   : > { %7713 = vst [vmem:[%s15314_s29 + $0x18] sm:$0xff] %v7695_v24 }
 0x8d1   : > { %v7696_v15 = vpop.trf.xlu1 }
 0x8d2   : > { %7715 = vst [vmem:[%s15314_s29 + $0x28] sm:$0xff] %v7696_v15 }
 0x8d5   : > { %v7697_v47 = vpop.trf.xlu1 }
 0x8d6   : > { %7717 = vst [vmem:[%s15314_s29 + $0x38] sm:$0xff] %v7697_v47 }
 0x8d9   : > { %v7698_v37 = vpop.trf.xlu1 }
 0x8da   : > { %7719 = vst [vmem:[%s15314_s29 + $0x48] sm:$0xff] %v7698_v37 }
 0x8dd   : > { %v7699_v13 = vpop.trf.xlu1 }
 0x8de   : > { %7721 = vst [vmem:[%s15314_s29 + $0x58] sm:$0xff] %v7699_v13 }
 0x8e1   : > { %v7700_v2 = vpop.trf.xlu1 }
 0x8e2   : > { %7723 = vst [vmem:[%s15314_s29 + $0x68] sm:$0xff] %v7700_v2 }
 0x8e5   : > { %v7701_v63 = vpop.trf.xlu1 }
 0x8e6   : > { %7725 = vst [vmem:[%s15314_s29 + $0x78] sm:$0xff] %v7701_v63 }
 0x8e7 PF: > { %s19_s11 = sadd.s32 1, %s9088_s11   ;;  %s16607_s30 = smov %s9084_s10 }
 0x8e8   : > { %p16_p5 = scmp.ge.s32.totalorder %s19_s11, 4   ;;  %s16608_s10 = smov %s16610_s12 }
 0x8ea   :  { %18 = sbr.rel (!%p16_p5) target bundleno = 2 (0x2), region = 100 }

</bundles_post_ra>
